<compile_context>
chip_gen: v6e
topology: v6e:2x2x1
jax: 0.10.0
libtpu: 0.0.40
codegen_flags: <defaults>
</compile_context>

<pallas_src>
import functools

import jax
import jax.numpy as jnp
from jax.experimental import pallas as pl
from jax.experimental.pallas import tpu as pltpu

N_DAYS_IN_WEEK = 7


# --------------------------------------------------------------------------
# Pallas kernels
# --------------------------------------------------------------------------
def _layer_norm(x, w, b, eps=1e-5):
    mu = jnp.mean(x, axis=-1, keepdims=True)
    xc = x - mu
    var = jnp.mean(xc * xc, axis=-1, keepdims=True)
    return xc * jax.lax.rsqrt(var + eps) * w + b


def _stae_attn_layer_kernel(x_ref,
                            wq_ref, bq_ref, wk_ref, bk_ref, wv_ref, bv_ref,
                            wo_ref, bo_ref, w1_ref, b1_ref, w2_ref, b2_ref,
                            ln1w_ref, ln1b_ref, ln2w_ref, ln2b_ref,
                            o_ref, *, n_heads):
    """One STAEAttentionLayer over a block of TB sequences.

    x_ref block: (TB, L, D).  Weights are full-array VMEM-resident (their
    index maps are constant, so Pallas does not re-DMA them across steps).
    MXU dots take bf16 operands with f32 accumulation; softmax / LayerNorm /
    ReLU run in f32 on the VPU.
    """
    TB, L, D = x_ref.shape
    hd = D // n_heads
    scale = 1.0 / float(hd) ** 0.5

    x2d = x_ref[...].reshape(TB * L, D)                      # (M, D) f32
    x_bf = x2d.astype(jnp.bfloat16)

    # ---- QKV projections: one (M, D) x (D, D) MXU matmul each ----
    q = jnp.dot(x_bf, wq_ref[...], preferred_element_type=jnp.float32) + bq_ref[...]
    k = jnp.dot(x_bf, wk_ref[...], preferred_element_type=jnp.float32) + bk_ref[...]
    v = jnp.dot(x_bf, wv_ref[...], preferred_element_type=jnp.float32) + bv_ref[...]

    q = q * scale                                            # fold 1/sqrt(hd)
    q3 = q.astype(jnp.bfloat16).reshape(TB, L, D)
    k3 = k.astype(jnp.bfloat16).reshape(TB, L, D)
    v3 = v.astype(jnp.bfloat16).reshape(TB, L, D)

    wo = wo_ref[...]                                         # (D, D) bf16
    acc = jnp.zeros((TB * L, D), jnp.float32)
    for h in range(n_heads):                                 # static unroll
        sl = slice(h * hd, (h + 1) * hd)
        qh, kh, vh = q3[:, :, sl], k3[:, :, sl], v3[:, :, sl]
        # batched scores per sequence: (L, hd) @ (hd, L)
        s = jnp.einsum('bld,bmd->blm', qh, kh,
                       preferred_element_type=jnp.float32)   # (TB, L, L) f32
        s = s - jnp.max(s, axis=-1, keepdims=True)
        e = jnp.exp(s)
        p = e * pl.reciprocal(jnp.sum(e, axis=-1, keepdims=True), approx=True)
        oh = jnp.einsum('blm,bmd->bld', p.astype(jnp.bfloat16), vh,
                        preferred_element_type=jnp.float32)  # (TB, L, hd)
        # Accumulate this head straight through the output projection —
        # no lane-axis concat of 32-wide head outputs.
        acc = acc + jnp.dot(oh.reshape(TB * L, hd).astype(jnp.bfloat16),
                            wo[sl, :], preferred_element_type=jnp.float32)

    attn = acc + bo_ref[...]

    # residual + LN1 (dropout is a no-op in eval mode)
    h1 = _layer_norm(x2d + attn, ln1w_ref[...], ln1b_ref[...])

    # feed-forward
    ff = jnp.dot(h1.astype(jnp.bfloat16), w1_ref[...],
                 preferred_element_type=jnp.float32) + b1_ref[...]
    ff = jnp.maximum(ff, 0.0)
    ff = jnp.dot(ff.astype(jnp.bfloat16), w2_ref[...],
                 preferred_element_type=jnp.float32) + b2_ref[...]

    # residual + LN2
    h2 = _layer_norm(h1 + ff, ln2w_ref[...], ln2b_ref[...])
    o_ref[...] = h2.reshape(TB, L, D)


def _choose_seq_batch(n_seq, seq_len, max_rows=256):
    """Sequences per grid step: largest divisor TB of n_seq with
    TB*seq_len <= max_rows, preferring a grid of >= 2 steps (megacore)."""
    divisors = [d for d in range(1, n_seq + 1) if n_seq % d == 0]
    cands = [d for d in divisors if d * seq_len <= max_rows] or [1]
    tb = max(cands)
    if n_seq // tb < 2:
        two_step = [d for d in cands if n_seq // d >= 2]
        if two_step:
            tb = max(two_step)
    return tb


def stae_attention_layer(x, lp, n_heads):
    """x: (n_seq, L, D) float32 -> (n_seq, L, D). TB sequences per grid step."""
    n_seq, L, D = x.shape
    F = lp['w1'].shape[1]
    TB = _choose_seq_batch(n_seq, L)

    def full2d(shape):
        return pl.BlockSpec(shape, lambda b: (0, 0))

    in_specs = [
        pl.BlockSpec((TB, L, D), lambda b: (b, 0, 0)),
        full2d((D, D)), full2d((1, D)),      # q
        full2d((D, D)), full2d((1, D)),      # k
        full2d((D, D)), full2d((1, D)),      # v
        full2d((D, D)), full2d((1, D)),      # out proj
        full2d((D, F)), full2d((1, F)),      # ff1
        full2d((F, D)), full2d((1, D)),      # ff2
        full2d((1, D)), full2d((1, D)),      # ln1
        full2d((1, D)), full2d((1, D)),      # ln2
    ]
    return pl.pallas_call(
        functools.partial(_stae_attn_layer_kernel, n_heads=n_heads),
        out_shape=jax.ShapeDtypeStruct((n_seq, L, D), jnp.float32),
        grid=(n_seq // TB,),
        in_specs=in_specs,
        out_specs=pl.BlockSpec((TB, L, D), lambda b: (b, 0, 0)),
        compiler_params=pltpu.CompilerParams(
            dimension_semantics=("parallel",)),
    )(x,
      lp['wq'], lp['bq'], lp['wk'], lp['bk'], lp['wv'], lp['bv'],
      lp['wo'], lp['bo'], lp['w1'], lp['b1'], lp['w2'], lp['b2'],
      lp['ln1w'], lp['ln1b'], lp['ln2w'], lp['ln2b'])


def output_projection(h2d, w, b):
    """Mixed output projection: (M, P*D) @ (P*D, Q*out_dim) + bias.

    Nout = out_len*out_dim (= 8 here) is lane-sparse: a dedicated Pallas call
    would pay launch overhead plus masked stores for ~260K MACs, so this tiny
    matmul is deliberately left to XLA (per perf review).
    """
    return jnp.dot(h2d, w, preferred_element_type=jnp.float32) + b


# --------------------------------------------------------------------------
# Parameter construction (deterministic, synthetic)
# --------------------------------------------------------------------------
def _rand(key, shape, scale=0.05):
    return scale * jax.random.normal(key, shape, dtype=jnp.float32)


def make_attn_layer_params(key, D, F):
    ks = jax.random.split(key, 12)
    bf = jnp.bfloat16
    return dict(
        wq=_rand(ks[0], (D, D)).astype(bf), bq=_rand(ks[1], (1, D)),
        wk=_rand(ks[2], (D, D)).astype(bf), bk=_rand(ks[3], (1, D)),
        wv=_rand(ks[4], (D, D)).astype(bf), bv=_rand(ks[5], (1, D)),
        wo=_rand(ks[6], (D, D)).astype(bf), bo=_rand(ks[7], (1, D)),
        w1=_rand(ks[8], (D, F)).astype(bf), b1=_rand(ks[9], (1, F)),
        w2=_rand(ks[10], (F, D)).astype(bf), b2=_rand(ks[11], (1, D)),
        ln1w=jnp.ones((1, D), jnp.float32), ln1b=jnp.zeros((1, D), jnp.float32),
        ln2w=jnp.ones((1, D), jnp.float32), ln2b=jnp.zeros((1, D), jnp.float32),
    )


def make_params(key, cfg):
    D = cfg['h_dim']
    keys = jax.random.split(key, 8 + 2 * cfg['n_layers'])
    params = dict(
        in_lin_w=_rand(keys[0], (cfg['in_dim'], cfg['lin_h_dim'])),
        in_lin_b=_rand(keys[1], (cfg['lin_h_dim'],)),
        tid_emb=_rand(keys[2], (cfg['n_tids'], cfg['tid_emb_dim'])),
        diw_emb=_rand(keys[3], (N_DAYS_IN_WEEK, cfg['diw_emb_dim'])),
        node_emb=_rand(keys[4], (cfg['n_series'], cfg['node_emb_dim'])),
        adp_emb=_rand(keys[5], (cfg['in_len'], cfg['n_series'], cfg['adp_emb_dim'])),
        out_w=_rand(keys[6], (cfg['in_len'] * D, cfg['out_len'] * cfg['out_dim'])),
        out_b=_rand(keys[7], (1, cfg['out_len'] * cfg['out_dim'])),
        temporal_layers=[make_attn_layer_params(keys[8 + i], D, cfg['ffl_h_dim'])
                         for i in range(cfg['n_layers'])],
        spatial_layers=[make_attn_layer_params(keys[8 + cfg['n_layers'] + i], D,
                                               cfg['ffl_h_dim'])
                        for i in range(cfg['n_layers'])],
    )
    return params


# --------------------------------------------------------------------------
# Full forward (mirrors STAEformer.forward, use_mixed_proj=True, eval mode)
# --------------------------------------------------------------------------
def staeformer_forward(x, params, cfg):
    B, P, N, _ = x.shape
    D = cfg['h_dim']
    Q, out_dim = cfg['out_len'], cfg['out_dim']

    # ---- feature / embedding construction (plain-JAX glue) ----
    tid = jnp.clip((x[..., 1] * cfg['n_tids']).astype(jnp.int32),
                   0, cfg['n_tids'] - 1)
    diw = jnp.clip((x[..., 2] * N_DAYS_IN_WEEK).astype(jnp.int32),
                   0, N_DAYS_IN_WEEK - 1)
    xin = x[..., :cfg['in_dim']]
    feat = jnp.dot(xin, params['in_lin_w']) + params['in_lin_b']   # (B,P,N,lin)
    feats = [feat,
             params['tid_emb'][tid],                               # (B,P,N,tid)
             params['diw_emb'][diw],                               # (B,P,N,diw)
             jnp.broadcast_to(params['node_emb'][None, None],
                              (B, P, N, cfg['node_emb_dim'])),
             jnp.broadcast_to(params['adp_emb'][None],
                              (B, P, N, cfg['adp_emb_dim']))]
    h = jnp.concatenate(feats, axis=-1)                            # (B,P,N,D)

    # ---- temporal attention layers (attend over P) ----
    # Transpose hoisted out of the layer loop: one relayout per direction.
    ht = jnp.transpose(h, (0, 2, 1, 3)).reshape(B * N, P, D)
    for lp in params['temporal_layers']:
        ht = stae_attention_layer(ht, lp, cfg['n_heads'])
    h = jnp.transpose(ht.reshape(B, N, P, D), (0, 2, 1, 3))

    # ---- spatial attention layers (attend over N) ----
    hs = h.reshape(B * P, N, D)
    for lp in params['spatial_layers']:
        hs = stae_attention_layer(hs, lp, cfg['n_heads'])
    h = hs.reshape(B, P, N, D)

    # ---- mixed output projection ----
    hm = jnp.transpose(h, (0, 2, 1, 3)).reshape(B * N, P * D)
    out = output_projection(hm, params['out_w'], params['out_b'])  # (B*N, Q*od)
    out = out.reshape(B, N, Q, out_dim)
    out = jnp.transpose(out, (0, 2, 1, 3))                         # (B,Q,N,od)
    if out_dim == 1:
        out = jnp.squeeze(out, axis=-1)                            # (B,Q,N)
    return out


# --------------------------------------------------------------------------
# Main
# --------------------------------------------------------------------------
if __name__ == "__main__":
    cfg = dict(
        in_dim=1, in_len=8, out_dim=1, out_len=8, n_series=16,
        n_layers=1, lin_h_dim=16, ffl_h_dim=256, n_heads=4,
        tid_emb_dim=16, diw_emb_dim=16, adp_emb_dim=64, node_emb_dim=16,
        n_tids=48, use_mixed_proj=True, dropout=0.0,
    )
    cfg['h_dim'] = (cfg['lin_h_dim'] + cfg['node_emb_dim'] + cfg['tid_emb_dim']
                    + cfg['diw_emb_dim'] + cfg['adp_emb_dim'])     # = 128

    key = jax.random.PRNGKey(0)
    k_param, k_val, k_tid, k_diw = jax.random.split(key, 4)
    params = make_params(k_param, cfg)

    B, P, N = 2, cfg['in_len'], cfg['n_series']
    x_val = jax.random.normal(k_val, (B, P, N, 1), dtype=jnp.float32)
    x_tid = jax.random.uniform(k_tid, (B, P, N, 1), dtype=jnp.float32,
                               minval=0.0, maxval=0.999)
    x_diw = jax.random.uniform(k_diw, (B, P, N, 1), dtype=jnp.float32,
                               minval=0.0, maxval=0.999)
    x = jnp.concatenate([x_val, x_tid, x_diw], axis=-1)            # (B,P,N,3)

    fwd = jax.jit(functools.partial(staeformer_forward, cfg=cfg))
    out = fwd(x, params)
    jax.block_until_ready(out)
    assert out.shape == (B, cfg['out_len'], N), out.shape
    assert bool(jnp.all(jnp.isfinite(out)))
    print("KERNEL_OK")
</pallas_src>

<mosaic_0001>
module attributes {stable_mosaic.version = 11 : i64} {
  func.func @_stae_attn_layer_kernel(%arg0: i32, %arg1: memref<16x8x128xf32, #tpu.memory_space<vmem>>, %arg2: memref<128x128xbf16, #tpu.memory_space<vmem>>, %arg3: memref<1x128xf32, #tpu.memory_space<vmem>>, %arg4: memref<128x128xbf16, #tpu.memory_space<vmem>>, %arg5: memref<1x128xf32, #tpu.memory_space<vmem>>, %arg6: memref<128x128xbf16, #tpu.memory_space<vmem>>, %arg7: memref<1x128xf32, #tpu.memory_space<vmem>>, %arg8: memref<128x128xbf16, #tpu.memory_space<vmem>>, %arg9: memref<1x128xf32, #tpu.memory_space<vmem>>, %arg10: memref<128x256xbf16, #tpu.memory_space<vmem>>, %arg11: memref<1x256xf32, #tpu.memory_space<vmem>>, %arg12: memref<256x128xbf16, #tpu.memory_space<vmem>>, %arg13: memref<1x128xf32, #tpu.memory_space<vmem>>, %arg14: memref<1x128xf32, #tpu.memory_space<vmem>>, %arg15: memref<1x128xf32, #tpu.memory_space<vmem>>, %arg16: memref<1x128xf32, #tpu.memory_space<vmem>>, %arg17: memref<1x128xf32, #tpu.memory_space<vmem>>, %arg18: memref<16x8x128xf32, #tpu.memory_space<vmem>>) attributes {dimension_semantics = [#tpu.dimension_semantics<parallel>], iteration_bounds = array<i64: 2>, scalar_prefetch = 0 : i64, scratch_operands = 0 : i64, tpu.core_type = #tpu.core_type<tc>, window_params = [{transform_indices = @transform_0, window_bounds = array<i64: 16, 8, 128>}, {pipeline_mode = #tpu.pipeline_mode<synchronous>, transform_indices = @transform_1, window_bounds = array<i64: 128, 128>}, {pipeline_mode = #tpu.pipeline_mode<synchronous>, transform_indices = @transform_2, window_bounds = array<i64: 1, 128>}, {pipeline_mode = #tpu.pipeline_mode<synchronous>, transform_indices = @transform_3, window_bounds = array<i64: 128, 128>}, {pipeline_mode = #tpu.pipeline_mode<synchronous>, transform_indices = @transform_4, window_bounds = array<i64: 1, 128>}, {pipeline_mode = #tpu.pipeline_mode<synchronous>, transform_indices = @transform_5, window_bounds = array<i64: 128, 128>}, {pipeline_mode = #tpu.pipeline_mode<synchronous>, transform_indices = @transform_6, window_bounds = array<i64: 1, 128>}, {pipeline_mode = #tpu.pipeline_mode<synchronous>, transform_indices = @transform_7, window_bounds = array<i64: 128, 128>}, {pipeline_mode = #tpu.pipeline_mode<synchronous>, transform_indices = @transform_8, window_bounds = array<i64: 1, 128>}, {pipeline_mode = #tpu.pipeline_mode<synchronous>, transform_indices = @transform_9, window_bounds = array<i64: 128, 256>}, {pipeline_mode = #tpu.pipeline_mode<synchronous>, transform_indices = @transform_10, window_bounds = array<i64: 1, 256>}, {pipeline_mode = #tpu.pipeline_mode<synchronous>, transform_indices = @transform_11, window_bounds = array<i64: 256, 128>}, {pipeline_mode = #tpu.pipeline_mode<synchronous>, transform_indices = @transform_12, window_bounds = array<i64: 1, 128>}, {pipeline_mode = #tpu.pipeline_mode<synchronous>, transform_indices = @transform_13, window_bounds = array<i64: 1, 128>}, {pipeline_mode = #tpu.pipeline_mode<synchronous>, transform_indices = @transform_14, window_bounds = array<i64: 1, 128>}, {pipeline_mode = #tpu.pipeline_mode<synchronous>, transform_indices = @transform_15, window_bounds = array<i64: 1, 128>}, {pipeline_mode = #tpu.pipeline_mode<synchronous>, transform_indices = @transform_16, window_bounds = array<i64: 1, 128>}, {transform_indices = @transform_17, window_bounds = array<i64: 16, 8, 128>}]} {
    %c0 = arith.constant 0 : index
    %c0_0 = arith.constant 0 : index
    %c0_1 = arith.constant 0 : index
    %0 = vector.load %arg1[%c0, %c0_0, %c0_1] : memref<16x8x128xf32, #tpu.memory_space<vmem>>, vector<16x8x128xf32>
    %1 = vector.shape_cast %0 : vector<16x8x128xf32> to vector<128x128xf32>
    %2 = arith.truncf %1 : vector<128x128xf32> to vector<128x128xbf16>
    %c0_2 = arith.constant 0 : index
    %c0_3 = arith.constant 0 : index
    %3 = vector.load %arg2[%c0_2, %c0_3] : memref<128x128xbf16, #tpu.memory_space<vmem>>, vector<128x128xbf16>
    %cst = arith.constant dense<0.000000e+00> : vector<128x128xf32>
    %4 = tpu.matmul %2, %3, %cst {dimension_numbers = #tpu.dot_dimension_numbers<[1], [0], [0], [1], [0, 0, 1, 1], [], []>} : vector<128x128xbf16>, vector<128x128xbf16>, vector<128x128xf32> -> vector<128x128xf32>
    %c0_4 = arith.constant 0 : index
    %c0_5 = arith.constant 0 : index
    %5 = vector.load %arg3[%c0_4, %c0_5] : memref<1x128xf32, #tpu.memory_space<vmem>>, vector<1x128xf32>
    %6 = vector.broadcast %5 : vector<1x128xf32> to vector<128x128xf32>
    %7 = arith.addf %4, %6 : vector<128x128xf32>
    %c0_6 = arith.constant 0 : index
    %c0_7 = arith.constant 0 : index
    %8 = vector.load %arg4[%c0_6, %c0_7] : memref<128x128xbf16, #tpu.memory_space<vmem>>, vector<128x128xbf16>
    %cst_8 = arith.constant dense<0.000000e+00> : vector<128x128xf32>
    %9 = tpu.matmul %2, %8, %cst_8 {dimension_numbers = #tpu.dot_dimension_numbers<[1], [0], [0], [1], [0, 0, 1, 1], [], []>} : vector<128x128xbf16>, vector<128x128xbf16>, vector<128x128xf32> -> vector<128x128xf32>
    %c0_9 = arith.constant 0 : index
    %c0_10 = arith.constant 0 : index
    %10 = vector.load %arg5[%c0_9, %c0_10] : memref<1x128xf32, #tpu.memory_space<vmem>>, vector<1x128xf32>
    %11 = vector.broadcast %10 : vector<1x128xf32> to vector<128x128xf32>
    %12 = arith.addf %9, %11 : vector<128x128xf32>
    %c0_11 = arith.constant 0 : index
    %c0_12 = arith.constant 0 : index
    %13 = vector.load %arg6[%c0_11, %c0_12] : memref<128x128xbf16, #tpu.memory_space<vmem>>, vector<128x128xbf16>
    %cst_13 = arith.constant dense<0.000000e+00> : vector<128x128xf32>
    %14 = tpu.matmul %2, %13, %cst_13 {dimension_numbers = #tpu.dot_dimension_numbers<[1], [0], [0], [1], [0, 0, 1, 1], [], []>} : vector<128x128xbf16>, vector<128x128xbf16>, vector<128x128xf32> -> vector<128x128xf32>
    %c0_14 = arith.constant 0 : index
    %c0_15 = arith.constant 0 : index
    %15 = vector.load %arg7[%c0_14, %c0_15] : memref<1x128xf32, #tpu.memory_space<vmem>>, vector<1x128xf32>
    %16 = vector.broadcast %15 : vector<1x128xf32> to vector<128x128xf32>
    %17 = arith.addf %14, %16 : vector<128x128xf32>
    %cst_16 = arith.constant 0.176776692 : f32
    %18 = vector.broadcast %cst_16 : f32 to vector<128x128xf32>
    %19 = arith.mulf %7, %18 : vector<128x128xf32>
    %20 = arith.truncf %19 : vector<128x128xf32> to vector<128x128xbf16>
    %21 = vector.shape_cast %20 : vector<128x128xbf16> to vector<16x8x128xbf16>
    %22 = arith.truncf %12 : vector<128x128xf32> to vector<128x128xbf16>
    %23 = vector.shape_cast %22 : vector<128x128xbf16> to vector<16x8x128xbf16>
    %24 = arith.truncf %17 : vector<128x128xf32> to vector<128x128xbf16>
    %25 = vector.shape_cast %24 : vector<128x128xbf16> to vector<16x8x128xbf16>
    %c0_17 = arith.constant 0 : index
    %c0_18 = arith.constant 0 : index
    %26 = vector.load %arg8[%c0_17, %c0_18] : memref<128x128xbf16, #tpu.memory_space<vmem>>, vector<128x128xbf16>
    %cst_19 = arith.constant 0.000000e+00 : f32
    %27 = vector.broadcast %cst_19 : f32 to vector<128x128xf32>
    %28 = vector.extract_strided_slice %21 {offsets = [0, 0, 0], sizes = [16, 8, 32], strides = [1, 1, 1]} : vector<16x8x128xbf16> to vector<16x8x32xbf16>
    %29 = vector.extract_strided_slice %23 {offsets = [0, 0, 0], sizes = [16, 8, 32], strides = [1, 1, 1]} : vector<16x8x128xbf16> to vector<16x8x32xbf16>
    %30 = vector.extract_strided_slice %25 {offsets = [0, 0, 0], sizes = [16, 8, 32], strides = [1, 1, 1]} : vector<16x8x128xbf16> to vector<16x8x32xbf16>
    "tpu.trace_start"() <{level = 10 : i32, message = "bld,bmd->blm"}> : () -> ()
    %cst_20 = arith.constant dense<0.000000e+00> : vector<16x8x8xf32>
    %31 = tpu.matmul %28, %29, %cst_20 {dimension_numbers = #tpu.dot_dimension_numbers<[2], [2], [1], [1], [0, 0, 0, 1, 1, 1], [0], [0]>} : vector<16x8x32xbf16>, vector<16x8x32xbf16>, vector<16x8x8xf32> -> vector<16x8x8xf32>
    "tpu.trace_stop"() : () -> ()
    %cst_21 = arith.constant dense<0xFF800000> : vector<16x8xf32>
    %32 = vector.multi_reduction <maximumf>, %31, %cst_21 [2] : vector<16x8x8xf32> to vector<16x8xf32>
    %33 = vector.shape_cast %32 : vector<16x8xf32> to vector<16x8x1xf32>
    %34 = vector.broadcast %33 : vector<16x8x1xf32> to vector<16x8x8xf32>
    %35 = arith.subf %31, %34 : vector<16x8x8xf32>
    %36 = math.exp %35 : vector<16x8x8xf32>
    %cst_22 = arith.constant dense<0.000000e+00> : vector<16x8xf32>
    %37 = vector.multi_reduction <add>, %36, %cst_22 [2] : vector<16x8x8xf32> to vector<16x8xf32>
    %38 = vector.shape_cast %37 : vector<16x8xf32> to vector<16x8x1xf32>
    %39 = tpu.reciprocal %38 {approx = true} : vector<16x8x1xf32> -> vector<16x8x1xf32>
    %40 = vector.broadcast %39 : vector<16x8x1xf32> to vector<16x8x8xf32>
    %41 = arith.mulf %36, %40 : vector<16x8x8xf32>
    %42 = arith.truncf %41 : vector<16x8x8xf32> to vector<16x8x8xbf16>
    "tpu.trace_start"() <{level = 10 : i32, message = "blm,bmd->bld"}> : () -> ()
    %cst_23 = arith.constant dense<0.000000e+00> : vector<16x8x32xf32>
    %43 = tpu.matmul %42, %30, %cst_23 {dimension_numbers = #tpu.dot_dimension_numbers<[2], [1], [1], [2], [0, 0, 0, 1, 1, 2], [0], [0]>} : vector<16x8x8xbf16>, vector<16x8x32xbf16>, vector<16x8x32xf32> -> vector<16x8x32xf32>
    "tpu.trace_stop"() : () -> ()
    %44 = vector.shape_cast %43 : vector<16x8x32xf32> to vector<128x32xf32>
    %45 = arith.truncf %44 : vector<128x32xf32> to vector<128x32xbf16>
    %46 = vector.extract_strided_slice %26 {offsets = [0, 0], sizes = [32, 128], strides = [1, 1]} : vector<128x128xbf16> to vector<32x128xbf16>
    %cst_24 = arith.constant dense<0.000000e+00> : vector<128x128xf32>
    %47 = tpu.matmul %45, %46, %cst_24 {dimension_numbers = #tpu.dot_dimension_numbers<[1], [0], [0], [1], [0, 0, 1, 1], [], []>} : vector<128x32xbf16>, vector<32x128xbf16>, vector<128x128xf32> -> vector<128x128xf32>
    %48 = arith.addf %27, %47 : vector<128x128xf32>
    %49 = vector.extract_strided_slice %21 {offsets = [0, 0, 32], sizes = [16, 8, 32], strides = [1, 1, 1]} : vector<16x8x128xbf16> to vector<16x8x32xbf16>
    %50 = vector.extract_strided_slice %23 {offsets = [0, 0, 32], sizes = [16, 8, 32], strides = [1, 1, 1]} : vector<16x8x128xbf16> to vector<16x8x32xbf16>
    %51 = vector.extract_strided_slice %25 {offsets = [0, 0, 32], sizes = [16, 8, 32], strides = [1, 1, 1]} : vector<16x8x128xbf16> to vector<16x8x32xbf16>
    "tpu.trace_start"() <{level = 10 : i32, message = "bld,bmd->blm"}> : () -> ()
    %cst_25 = arith.constant dense<0.000000e+00> : vector<16x8x8xf32>
    %52 = tpu.matmul %49, %50, %cst_25 {dimension_numbers = #tpu.dot_dimension_numbers<[2], [2], [1], [1], [0, 0, 0, 1, 1, 1], [0], [0]>} : vector<16x8x32xbf16>, vector<16x8x32xbf16>, vector<16x8x8xf32> -> vector<16x8x8xf32>
    "tpu.trace_stop"() : () -> ()
    %cst_26 = arith.constant dense<0xFF800000> : vector<16x8xf32>
    %53 = vector.multi_reduction <maximumf>, %52, %cst_26 [2] : vector<16x8x8xf32> to vector<16x8xf32>
    %54 = vector.shape_cast %53 : vector<16x8xf32> to vector<16x8x1xf32>
    %55 = vector.broadcast %54 : vector<16x8x1xf32> to vector<16x8x8xf32>
    %56 = arith.subf %52, %55 : vector<16x8x8xf32>
    %57 = math.exp %56 : vector<16x8x8xf32>
    %cst_27 = arith.constant dense<0.000000e+00> : vector<16x8xf32>
    %58 = vector.multi_reduction <add>, %57, %cst_27 [2] : vector<16x8x8xf32> to vector<16x8xf32>
    %59 = vector.shape_cast %58 : vector<16x8xf32> to vector<16x8x1xf32>
    %60 = tpu.reciprocal %59 {approx = true} : vector<16x8x1xf32> -> vector<16x8x1xf32>
    %61 = vector.broadcast %60 : vector<16x8x1xf32> to vector<16x8x8xf32>
    %62 = arith.mulf %57, %61 : vector<16x8x8xf32>
    %63 = arith.truncf %62 : vector<16x8x8xf32> to vector<16x8x8xbf16>
    "tpu.trace_start"() <{level = 10 : i32, message = "blm,bmd->bld"}> : () -> ()
    %cst_28 = arith.constant dense<0.000000e+00> : vector<16x8x32xf32>
    %64 = tpu.matmul %63, %51, %cst_28 {dimension_numbers = #tpu.dot_dimension_numbers<[2], [1], [1], [2], [0, 0, 0, 1, 1, 2], [0], [0]>} : vector<16x8x8xbf16>, vector<16x8x32xbf16>, vector<16x8x32xf32> -> vector<16x8x32xf32>
    "tpu.trace_stop"() : () -> ()
    %65 = vector.shape_cast %64 : vector<16x8x32xf32> to vector<128x32xf32>
    %66 = arith.truncf %65 : vector<128x32xf32> to vector<128x32xbf16>
    %67 = vector.extract_strided_slice %26 {offsets = [32, 0], sizes = [32, 128], strides = [1, 1]} : vector<128x128xbf16> to vector<32x128xbf16>
    %cst_29 = arith.constant dense<0.000000e+00> : vector<128x128xf32>
    %68 = tpu.matmul %66, %67, %cst_29 {dimension_numbers = #tpu.dot_dimension_numbers<[1], [0], [0], [1], [0, 0, 1, 1], [], []>} : vector<128x32xbf16>, vector<32x128xbf16>, vector<128x128xf32> -> vector<128x128xf32>
    %69 = arith.addf %48, %68 : vector<128x128xf32>
    %70 = vector.extract_strided_slice %21 {offsets = [0, 0, 64], sizes = [16, 8, 32], strides = [1, 1, 1]} : vector<16x8x128xbf16> to vector<16x8x32xbf16>
    %71 = vector.extract_strided_slice %23 {offsets = [0, 0, 64], sizes = [16, 8, 32], strides = [1, 1, 1]} : vector<16x8x128xbf16> to vector<16x8x32xbf16>
    %72 = vector.extract_strided_slice %25 {offsets = [0, 0, 64], sizes = [16, 8, 32], strides = [1, 1, 1]} : vector<16x8x128xbf16> to vector<16x8x32xbf16>
    "tpu.trace_start"() <{level = 10 : i32, message = "bld,bmd->blm"}> : () -> ()
    %cst_30 = arith.constant dense<0.000000e+00> : vector<16x8x8xf32>
    %73 = tpu.matmul %70, %71, %cst_30 {dimension_numbers = #tpu.dot_dimension_numbers<[2], [2], [1], [1], [0, 0, 0, 1, 1, 1], [0], [0]>} : vector<16x8x32xbf16>, vector<16x8x32xbf16>, vector<16x8x8xf32> -> vector<16x8x8xf32>
    "tpu.trace_stop"() : () -> ()
    %cst_31 = arith.constant dense<0xFF800000> : vector<16x8xf32>
    %74 = vector.multi_reduction <maximumf>, %73, %cst_31 [2] : vector<16x8x8xf32> to vector<16x8xf32>
    %75 = vector.shape_cast %74 : vector<16x8xf32> to vector<16x8x1xf32>
    %76 = vector.broadcast %75 : vector<16x8x1xf32> to vector<16x8x8xf32>
    %77 = arith.subf %73, %76 : vector<16x8x8xf32>
    %78 = math.exp %77 : vector<16x8x8xf32>
    %cst_32 = arith.constant dense<0.000000e+00> : vector<16x8xf32>
    %79 = vector.multi_reduction <add>, %78, %cst_32 [2] : vector<16x8x8xf32> to vector<16x8xf32>
    %80 = vector.shape_cast %79 : vector<16x8xf32> to vector<16x8x1xf32>
    %81 = tpu.reciprocal %80 {approx = true} : vector<16x8x1xf32> -> vector<16x8x1xf32>
    %82 = vector.broadcast %81 : vector<16x8x1xf32> to vector<16x8x8xf32>
    %83 = arith.mulf %78, %82 : vector<16x8x8xf32>
    %84 = arith.truncf %83 : vector<16x8x8xf32> to vector<16x8x8xbf16>
    "tpu.trace_start"() <{level = 10 : i32, message = "blm,bmd->bld"}> : () -> ()
    %cst_33 = arith.constant dense<0.000000e+00> : vector<16x8x32xf32>
    %85 = tpu.matmul %84, %72, %cst_33 {dimension_numbers = #tpu.dot_dimension_numbers<[2], [1], [1], [2], [0, 0, 0, 1, 1, 2], [0], [0]>} : vector<16x8x8xbf16>, vector<16x8x32xbf16>, vector<16x8x32xf32> -> vector<16x8x32xf32>
    "tpu.trace_stop"() : () -> ()
    %86 = vector.shape_cast %85 : vector<16x8x32xf32> to vector<128x32xf32>
    %87 = arith.truncf %86 : vector<128x32xf32> to vector<128x32xbf16>
    %88 = vector.extract_strided_slice %26 {offsets = [64, 0], sizes = [32, 128], strides = [1, 1]} : vector<128x128xbf16> to vector<32x128xbf16>
    %cst_34 = arith.constant dense<0.000000e+00> : vector<128x128xf32>
    %89 = tpu.matmul %87, %88, %cst_34 {dimension_numbers = #tpu.dot_dimension_numbers<[1], [0], [0], [1], [0, 0, 1, 1], [], []>} : vector<128x32xbf16>, vector<32x128xbf16>, vector<128x128xf32> -> vector<128x128xf32>
    %90 = arith.addf %69, %89 : vector<128x128xf32>
    %91 = vector.extract_strided_slice %21 {offsets = [0, 0, 96], sizes = [16, 8, 32], strides = [1, 1, 1]} : vector<16x8x128xbf16> to vector<16x8x32xbf16>
    %92 = vector.extract_strided_slice %23 {offsets = [0, 0, 96], sizes = [16, 8, 32], strides = [1, 1, 1]} : vector<16x8x128xbf16> to vector<16x8x32xbf16>
    %93 = vector.extract_strided_slice %25 {offsets = [0, 0, 96], sizes = [16, 8, 32], strides = [1, 1, 1]} : vector<16x8x128xbf16> to vector<16x8x32xbf16>
    "tpu.trace_start"() <{level = 10 : i32, message = "bld,bmd->blm"}> : () -> ()
    %cst_35 = arith.constant dense<0.000000e+00> : vector<16x8x8xf32>
    %94 = tpu.matmul %91, %92, %cst_35 {dimension_numbers = #tpu.dot_dimension_numbers<[2], [2], [1], [1], [0, 0, 0, 1, 1, 1], [0], [0]>} : vector<16x8x32xbf16>, vector<16x8x32xbf16>, vector<16x8x8xf32> -> vector<16x8x8xf32>
    "tpu.trace_stop"() : () -> ()
    %cst_36 = arith.constant dense<0xFF800000> : vector<16x8xf32>
    %95 = vector.multi_reduction <maximumf>, %94, %cst_36 [2] : vector<16x8x8xf32> to vector<16x8xf32>
    %96 = vector.shape_cast %95 : vector<16x8xf32> to vector<16x8x1xf32>
    %97 = vector.broadcast %96 : vector<16x8x1xf32> to vector<16x8x8xf32>
    %98 = arith.subf %94, %97 : vector<16x8x8xf32>
    %99 = math.exp %98 : vector<16x8x8xf32>
    %cst_37 = arith.constant dense<0.000000e+00> : vector<16x8xf32>
    %100 = vector.multi_reduction <add>, %99, %cst_37 [2] : vector<16x8x8xf32> to vector<16x8xf32>
    %101 = vector.shape_cast %100 : vector<16x8xf32> to vector<16x8x1xf32>
    %102 = tpu.reciprocal %101 {approx = true} : vector<16x8x1xf32> -> vector<16x8x1xf32>
    %103 = vector.broadcast %102 : vector<16x8x1xf32> to vector<16x8x8xf32>
    %104 = arith.mulf %99, %103 : vector<16x8x8xf32>
    %105 = arith.truncf %104 : vector<16x8x8xf32> to vector<16x8x8xbf16>
    "tpu.trace_start"() <{level = 10 : i32, message = "blm,bmd->bld"}> : () -> ()
    %cst_38 = arith.constant dense<0.000000e+00> : vector<16x8x32xf32>
    %106 = tpu.matmul %105, %93, %cst_38 {dimension_numbers = #tpu.dot_dimension_numbers<[2], [1], [1], [2], [0, 0, 0, 1, 1, 2], [0], [0]>} : vector<16x8x8xbf16>, vector<16x8x32xbf16>, vector<16x8x32xf32> -> vector<16x8x32xf32>
    "tpu.trace_stop"() : () -> ()
    %107 = vector.shape_cast %106 : vector<16x8x32xf32> to vector<128x32xf32>
    %108 = arith.truncf %107 : vector<128x32xf32> to vector<128x32xbf16>
    %109 = vector.extract_strided_slice %26 {offsets = [96, 0], sizes = [32, 128], strides = [1, 1]} : vector<128x128xbf16> to vector<32x128xbf16>
    %cst_39 = arith.constant dense<0.000000e+00> : vector<128x128xf32>
    %110 = tpu.matmul %108, %109, %cst_39 {dimension_numbers = #tpu.dot_dimension_numbers<[1], [0], [0], [1], [0, 0, 1, 1], [], []>} : vector<128x32xbf16>, vector<32x128xbf16>, vector<128x128xf32> -> vector<128x128xf32>
    %111 = arith.addf %90, %110 : vector<128x128xf32>
    %c0_40 = arith.constant 0 : index
    %c0_41 = arith.constant 0 : index
    %112 = vector.load %arg9[%c0_40, %c0_41] : memref<1x128xf32, #tpu.memory_space<vmem>>, vector<1x128xf32>
    %113 = vector.broadcast %112 : vector<1x128xf32> to vector<128x128xf32>
    %114 = arith.addf %111, %113 : vector<128x128xf32>
    %115 = arith.addf %1, %114 : vector<128x128xf32>
    %c0_42 = arith.constant 0 : index
    %c0_43 = arith.constant 0 : index
    %116 = vector.load %arg14[%c0_42, %c0_43] : memref<1x128xf32, #tpu.memory_space<vmem>>, vector<1x128xf32>
    %c0_44 = arith.constant 0 : index
    %c0_45 = arith.constant 0 : index
    %117 = vector.load %arg15[%c0_44, %c0_45] : memref<1x128xf32, #tpu.memory_space<vmem>>, vector<1x128xf32>
    %cst_46 = arith.constant dense<0.000000e+00> : vector<128xf32>
    %118 = vector.multi_reduction <add>, %115, %cst_46 [1] : vector<128x128xf32> to vector<128xf32>
    %119 = vector.shape_cast %118 : vector<128xf32> to vector<128x1xf32>
    %cst_47 = arith.constant 1.280000e+02 : f32
    %120 = vector.broadcast %cst_47 : f32 to vector<128x1xf32>
    %121 = arith.divf %119, %120 : vector<128x1xf32>
    %122 = vector.broadcast %121 : vector<128x1xf32> to vector<128x128xf32>
    %123 = arith.subf %115, %122 : vector<128x128xf32>
    %124 = arith.mulf %123, %123 : vector<128x128xf32>
    %cst_48 = arith.constant dense<0.000000e+00> : vector<128xf32>
    %125 = vector.multi_reduction <add>, %124, %cst_48 [1] : vector<128x128xf32> to vector<128xf32>
    %126 = vector.shape_cast %125 : vector<128xf32> to vector<128x1xf32>
    %cst_49 = arith.constant 1.280000e+02 : f32
    %127 = vector.broadcast %cst_49 : f32 to vector<128x1xf32>
    %128 = arith.divf %126, %127 : vector<128x1xf32>
    %cst_50 = arith.constant 9.99999974E-6 : f32
    %129 = vector.broadcast %cst_50 : f32 to vector<128x1xf32>
    %130 = arith.addf %128, %129 : vector<128x1xf32>
    %131 = math.rsqrt %130 : vector<128x1xf32>
    %132 = vector.broadcast %131 : vector<128x1xf32> to vector<128x128xf32>
    %133 = arith.mulf %123, %132 : vector<128x128xf32>
    %134 = vector.broadcast %116 : vector<1x128xf32> to vector<128x128xf32>
    %135 = arith.mulf %133, %134 : vector<128x128xf32>
    %136 = vector.broadcast %117 : vector<1x128xf32> to vector<128x128xf32>
    %137 = arith.addf %135, %136 : vector<128x128xf32>
    %138 = arith.truncf %137 : vector<128x128xf32> to vector<128x128xbf16>
    %c0_51 = arith.constant 0 : index
    %c0_52 = arith.constant 0 : index
    %139 = vector.load %arg10[%c0_51, %c0_52] : memref<128x256xbf16, #tpu.memory_space<vmem>>, vector<128x256xbf16>
    %cst_53 = arith.constant dense<0.000000e+00> : vector<128x256xf32>
    %140 = tpu.matmul %138, %139, %cst_53 {dimension_numbers = #tpu.dot_dimension_numbers<[1], [0], [0], [1], [0, 0, 1, 1], [], []>} : vector<128x128xbf16>, vector<128x256xbf16>, vector<128x256xf32> -> vector<128x256xf32>
    %c0_54 = arith.constant 0 : index
    %c0_55 = arith.constant 0 : index
    %141 = vector.load %arg11[%c0_54, %c0_55] : memref<1x256xf32, #tpu.memory_space<vmem>>, vector<1x256xf32>
    %142 = vector.broadcast %141 : vector<1x256xf32> to vector<128x256xf32>
    %143 = arith.addf %140, %142 : vector<128x256xf32>
    %cst_56 = arith.constant 0.000000e+00 : f32
    %144 = vector.broadcast %cst_56 : f32 to vector<128x256xf32>
    %145 = arith.maximumf %143, %144 : vector<128x256xf32>
    %146 = arith.truncf %145 : vector<128x256xf32> to vector<128x256xbf16>
    %c0_57 = arith.constant 0 : index
    %c0_58 = arith.constant 0 : index
    %147 = vector.load %arg12[%c0_57, %c0_58] : memref<256x128xbf16, #tpu.memory_space<vmem>>, vector<256x128xbf16>
    %cst_59 = arith.constant dense<0.000000e+00> : vector<128x128xf32>
    %148 = tpu.matmul %146, %147, %cst_59 {dimension_numbers = #tpu.dot_dimension_numbers<[1], [0], [0], [1], [0, 0, 1, 1], [], []>} : vector<128x256xbf16>, vector<256x128xbf16>, vector<128x128xf32> -> vector<128x128xf32>
    %c0_60 = arith.constant 0 : index
    %c0_61 = arith.constant 0 : index
    %149 = vector.load %arg13[%c0_60, %c0_61] : memref<1x128xf32, #tpu.memory_space<vmem>>, vector<1x128xf32>
    %150 = vector.broadcast %149 : vector<1x128xf32> to vector<128x128xf32>
    %151 = arith.addf %148, %150 : vector<128x128xf32>
    %152 = arith.addf %137, %151 : vector<128x128xf32>
    %c0_62 = arith.constant 0 : index
    %c0_63 = arith.constant 0 : index
    %153 = vector.load %arg16[%c0_62, %c0_63] : memref<1x128xf32, #tpu.memory_space<vmem>>, vector<1x128xf32>
    %c0_64 = arith.constant 0 : index
    %c0_65 = arith.constant 0 : index
    %154 = vector.load %arg17[%c0_64, %c0_65] : memref<1x128xf32, #tpu.memory_space<vmem>>, vector<1x128xf32>
    %cst_66 = arith.constant dense<0.000000e+00> : vector<128xf32>
    %155 = vector.multi_reduction <add>, %152, %cst_66 [1] : vector<128x128xf32> to vector<128xf32>
    %156 = vector.shape_cast %155 : vector<128xf32> to vector<128x1xf32>
    %cst_67 = arith.constant 1.280000e+02 : f32
    %157 = vector.broadcast %cst_67 : f32 to vector<128x1xf32>
    %158 = arith.divf %156, %157 : vector<128x1xf32>
    %159 = vector.broadcast %158 : vector<128x1xf32> to vector<128x128xf32>
    %160 = arith.subf %152, %159 : vector<128x128xf32>
    %161 = arith.mulf %160, %160 : vector<128x128xf32>
    %cst_68 = arith.constant dense<0.000000e+00> : vector<128xf32>
    %162 = vector.multi_reduction <add>, %161, %cst_68 [1] : vector<128x128xf32> to vector<128xf32>
    %163 = vector.shape_cast %162 : vector<128xf32> to vector<128x1xf32>
    %cst_69 = arith.constant 1.280000e+02 : f32
    %164 = vector.broadcast %cst_69 : f32 to vector<128x1xf32>
    %165 = arith.divf %163, %164 : vector<128x1xf32>
    %cst_70 = arith.constant 9.99999974E-6 : f32
    %166 = vector.broadcast %cst_70 : f32 to vector<128x1xf32>
    %167 = arith.addf %165, %166 : vector<128x1xf32>
    %168 = math.rsqrt %167 : vector<128x1xf32>
    %169 = vector.broadcast %168 : vector<128x1xf32> to vector<128x128xf32>
    %170 = arith.mulf %160, %169 : vector<128x128xf32>
    %171 = vector.broadcast %153 : vector<1x128xf32> to vector<128x128xf32>
    %172 = arith.mulf %170, %171 : vector<128x128xf32>
    %173 = vector.broadcast %154 : vector<1x128xf32> to vector<128x128xf32>
    %174 = arith.addf %172, %173 : vector<128x128xf32>
    %175 = vector.shape_cast %174 : vector<128x128xf32> to vector<16x8x128xf32>
    %c0_71 = arith.constant 0 : index
    %c0_72 = arith.constant 0 : index
    %c0_73 = arith.constant 0 : index
    %176 = vector.load %arg18[%c0_71, %c0_72, %c0_73] : memref<16x8x128xf32, #tpu.memory_space<vmem>>, vector<16x8x128xf32>
    tpu.vector_store %arg18[%c0_71, %c0_72, %c0_73], %175 {strides = array<i32>} : memref<16x8x128xf32, #tpu.memory_space<vmem>>, vector<16x8x128xf32>,
    return
  }
  func.func @transform_0(%arg0: i32) -> (i32, i32, i32) {
    %c0_i32 = arith.constant 0 : i32
    %c0_i32_0 = arith.constant 0 : i32
    %c0_i32_1 = arith.constant 0 : i32
    return %arg0, %c0_i32, %c0_i32_0 : i32, i32, i32
  }
  func.func @transform_1(%arg0: i32) -> (i32, i32) {
    %c0_i32 = arith.constant 0 : i32
    %c0_i32_0 = arith.constant 0 : i32
    %c0_i32_1 = arith.constant 0 : i32
    return %c0_i32, %c0_i32_0 : i32, i32
  }
  func.func @transform_2(%arg0: i32) -> (i32, i32) {
    %c0_i32 = arith.constant 0 : i32
    %c0_i32_0 = arith.constant 0 : i32
    %c0_i32_1 = arith.constant 0 : i32
    return %c0_i32, %c0_i32_0 : i32, i32
  }
  func.func @transform_3(%arg0: i32) -> (i32, i32) {
    %c0_i32 = arith.constant 0 : i32
    %c0_i32_0 = arith.constant 0 : i32
    %c0_i32_1 = arith.constant 0 : i32
    return %c0_i32, %c0_i32_0 : i32, i32
  }
  func.func @transform_4(%arg0: i32) -> (i32, i32) {
    %c0_i32 = arith.constant 0 : i32
    %c0_i32_0 = arith.constant 0 : i32
    %c0_i32_1 = arith.constant 0 : i32
    return %c0_i32, %c0_i32_0 : i32, i32
  }
  func.func @transform_5(%arg0: i32) -> (i32, i32) {
    %c0_i32 = arith.constant 0 : i32
    %c0_i32_0 = arith.constant 0 : i32
    %c0_i32_1 = arith.constant 0 : i32
    return %c0_i32, %c0_i32_0 : i32, i32
  }
  func.func @transform_6(%arg0: i32) -> (i32, i32) {
    %c0_i32 = arith.constant 0 : i32
    %c0_i32_0 = arith.constant 0 : i32
    %c0_i32_1 = arith.constant 0 : i32
    return %c0_i32, %c0_i32_0 : i32, i32
  }
  func.func @transform_7(%arg0: i32) -> (i32, i32) {
    %c0_i32 = arith.constant 0 : i32
    %c0_i32_0 = arith.constant 0 : i32
    %c0_i32_1 = arith.constant 0 : i32
    return %c0_i32, %c0_i32_0 : i32, i32
  }
  func.func @transform_8(%arg0: i32) -> (i32, i32) {
    %c0_i32 = arith.constant 0 : i32
    %c0_i32_0 = arith.constant 0 : i32
    %c0_i32_1 = arith.constant 0 : i32
    return %c0_i32, %c0_i32_0 : i32, i32
  }
  func.func @transform_9(%arg0: i32) -> (i32, i32) {
    %c0_i32 = arith.constant 0 : i32
    %c0_i32_0 = arith.constant 0 : i32
    %c0_i32_1 = arith.constant 0 : i32
    return %c0_i32, %c0_i32_0 : i32, i32
  }
  func.func @transform_10(%arg0: i32) -> (i32, i32) {
    %c0_i32 = arith.constant 0 : i32
    %c0_i32_0 = arith.constant 0 : i32
    %c0_i32_1 = arith.constant 0 : i32
    return %c0_i32, %c0_i32_0 : i32, i32
  }
  func.func @transform_11(%arg0: i32) -> (i32, i32) {
    %c0_i32 = arith.constant 0 : i32
    %c0_i32_0 = arith.constant 0 : i32
    %c0_i32_1 = arith.constant 0 : i32
    return %c0_i32, %c0_i32_0 : i32, i32
  }
  func.func @transform_12(%arg0: i32) -> (i32, i32) {
    %c0_i32 = arith.constant 0 : i32
    %c0_i32_0 = arith.constant 0 : i32
    %c0_i32_1 = arith.constant 0 : i32
    return %c0_i32, %c0_i32_0 : i32, i32
  }
  func.func @transform_13(%arg0: i32) -> (i32, i32) {
    %c0_i32 = arith.constant 0 : i32
    %c0_i32_0 = arith.constant 0 : i32
    %c0_i32_1 = arith.constant 0 : i32
    return %c0_i32, %c0_i32_0 : i32, i32
  }
  func.func @transform_14(%arg0: i32) -> (i32, i32) {
    %c0_i32 = arith.constant 0 : i32
    %c0_i32_0 = arith.constant 0 : i32
    %c0_i32_1 = arith.constant 0 : i32
    return %c0_i32, %c0_i32_0 : i32, i32
  }
  func.func @transform_15(%arg0: i32) -> (i32, i32) {
    %c0_i32 = arith.constant 0 : i32
    %c0_i32_0 = arith.constant 0 : i32
    %c0_i32_1 = arith.constant 0 : i32
    return %c0_i32, %c0_i32_0 : i32, i32
  }
  func.func @transform_16(%arg0: i32) -> (i32, i32) {
    %c0_i32 = arith.constant 0 : i32
    %c0_i32_0 = arith.constant 0 : i32
    %c0_i32_1 = arith.constant 0 : i32
    return %c0_i32, %c0_i32_0 : i32, i32
  }
  func.func @transform_17(%arg0: i32) -> (i32, i32, i32) {
    %c0_i32 = arith.constant 0 : i32
    %c0_i32_0 = arith.constant 0 : i32
    %c0_i32_1 = arith.constant 0 : i32
    return %arg0, %c0_i32, %c0_i32_0 : i32, i32, i32
  }
}

module attributes {stable_mosaic.version = 11 : i64} {
  func.func @_stae_attn_layer_kernel(%arg0: i32, %arg1: memref<8x16x128xf32, #tpu.memory_space<vmem>>, %arg2: memref<128x128xbf16, #tpu.memory_space<vmem>>, %arg3: memref<1x128xf32, #tpu.memory_space<vmem>>, %arg4: memref<128x128xbf16, #tpu.memory_space<vmem>>, %arg5: memref<1x128xf32, #tpu.memory_space<vmem>>, %arg6: memref<128x128xbf16, #tpu.memory_space<vmem>>, %arg7: memref<1x128xf32, #tpu.memory_space<vmem>>, %arg8: memref<128x128xbf16, #tpu.memory_space<vmem>>, %arg9: memref<1x128xf32, #tpu.memory_space<vmem>>, %arg10: memref<128x256xbf16, #tpu.memory_space<vmem>>, %arg11: memref<1x256xf32, #tpu.memory_space<vmem>>, %arg12: memref<256x128xbf16, #tpu.memory_space<vmem>>, %arg13: memref<1x128xf32, #tpu.memory_space<vmem>>, %arg14: memref<1x128xf32, #tpu.memory_space<vmem>>, %arg15: memref<1x128xf32, #tpu.memory_space<vmem>>, %arg16: memref<1x128xf32, #tpu.memory_space<vmem>>, %arg17: memref<1x128xf32, #tpu.memory_space<vmem>>, %arg18: memref<8x16x128xf32, #tpu.memory_space<vmem>>) attributes {dimension_semantics = [#tpu.dimension_semantics<parallel>], iteration_bounds = array<i64: 2>, scalar_prefetch = 0 : i64, scratch_operands = 0 : i64, tpu.core_type = #tpu.core_type<tc>, window_params = [{transform_indices = @transform_0, window_bounds = array<i64: 8, 16, 128>}, {pipeline_mode = #tpu.pipeline_mode<synchronous>, transform_indices = @transform_1, window_bounds = array<i64: 128, 128>}, {pipeline_mode = #tpu.pipeline_mode<synchronous>, transform_indices = @transform_2, window_bounds = array<i64: 1, 128>}, {pipeline_mode = #tpu.pipeline_mode<synchronous>, transform_indices = @transform_3, window_bounds = array<i64: 128, 128>}, {pipeline_mode = #tpu.pipeline_mode<synchronous>, transform_indices = @transform_4, window_bounds = array<i64: 1, 128>}, {pipeline_mode = #tpu.pipeline_mode<synchronous>, transform_indices = @transform_5, window_bounds = array<i64: 128, 128>}, {pipeline_mode = #tpu.pipeline_mode<synchronous>, transform_indices = @transform_6, window_bounds = array<i64: 1, 128>}, {pipeline_mode = #tpu.pipeline_mode<synchronous>, transform_indices = @transform_7, window_bounds = array<i64: 128, 128>}, {pipeline_mode = #tpu.pipeline_mode<synchronous>, transform_indices = @transform_8, window_bounds = array<i64: 1, 128>}, {pipeline_mode = #tpu.pipeline_mode<synchronous>, transform_indices = @transform_9, window_bounds = array<i64: 128, 256>}, {pipeline_mode = #tpu.pipeline_mode<synchronous>, transform_indices = @transform_10, window_bounds = array<i64: 1, 256>}, {pipeline_mode = #tpu.pipeline_mode<synchronous>, transform_indices = @transform_11, window_bounds = array<i64: 256, 128>}, {pipeline_mode = #tpu.pipeline_mode<synchronous>, transform_indices = @transform_12, window_bounds = array<i64: 1, 128>}, {pipeline_mode = #tpu.pipeline_mode<synchronous>, transform_indices = @transform_13, window_bounds = array<i64: 1, 128>}, {pipeline_mode = #tpu.pipeline_mode<synchronous>, transform_indices = @transform_14, window_bounds = array<i64: 1, 128>}, {pipeline_mode = #tpu.pipeline_mode<synchronous>, transform_indices = @transform_15, window_bounds = array<i64: 1, 128>}, {pipeline_mode = #tpu.pipeline_mode<synchronous>, transform_indices = @transform_16, window_bounds = array<i64: 1, 128>}, {transform_indices = @transform_17, window_bounds = array<i64: 8, 16, 128>}]} {
    %c0 = arith.constant 0 : index
    %c0_0 = arith.constant 0 : index
    %c0_1 = arith.constant 0 : index
    %0 = vector.load %arg1[%c0, %c0_0, %c0_1] : memref<8x16x128xf32, #tpu.memory_space<vmem>>, vector<8x16x128xf32>
    %1 = vector.shape_cast %0 : vector<8x16x128xf32> to vector<128x128xf32>
    %2 = arith.truncf %1 : vector<128x128xf32> to vector<128x128xbf16>
    %c0_2 = arith.constant 0 : index
    %c0_3 = arith.constant 0 : index
    %3 = vector.load %arg2[%c0_2, %c0_3] : memref<128x128xbf16, #tpu.memory_space<vmem>>, vector<128x128xbf16>
    %cst = arith.constant dense<0.000000e+00> : vector<128x128xf32>
    %4 = tpu.matmul %2, %3, %cst {dimension_numbers = #tpu.dot_dimension_numbers<[1], [0], [0], [1], [0, 0, 1, 1], [], []>} : vector<128x128xbf16>, vector<128x128xbf16>, vector<128x128xf32> -> vector<128x128xf32>
    %c0_4 = arith.constant 0 : index
    %c0_5 = arith.constant 0 : index
    %5 = vector.load %arg3[%c0_4, %c0_5] : memref<1x128xf32, #tpu.memory_space<vmem>>, vector<1x128xf32>
    %6 = vector.broadcast %5 : vector<1x128xf32> to vector<128x128xf32>
    %7 = arith.addf %4, %6 : vector<128x128xf32>
    %c0_6 = arith.constant 0 : index
    %c0_7 = arith.constant 0 : index
    %8 = vector.load %arg4[%c0_6, %c0_7] : memref<128x128xbf16, #tpu.memory_space<vmem>>, vector<128x128xbf16>
    %cst_8 = arith.constant dense<0.000000e+00> : vector<128x128xf32>
    %9 = tpu.matmul %2, %8, %cst_8 {dimension_numbers = #tpu.dot_dimension_numbers<[1], [0], [0], [1], [0, 0, 1, 1], [], []>} : vector<128x128xbf16>, vector<128x128xbf16>, vector<128x128xf32> -> vector<128x128xf32>
    %c0_9 = arith.constant 0 : index
    %c0_10 = arith.constant 0 : index
    %10 = vector.load %arg5[%c0_9, %c0_10] : memref<1x128xf32, #tpu.memory_space<vmem>>, vector<1x128xf32>
    %11 = vector.broadcast %10 : vector<1x128xf32> to vector<128x128xf32>
    %12 = arith.addf %9, %11 : vector<128x128xf32>
    %c0_11 = arith.constant 0 : index
    %c0_12 = arith.constant 0 : index
    %13 = vector.load %arg6[%c0_11, %c0_12] : memref<128x128xbf16, #tpu.memory_space<vmem>>, vector<128x128xbf16>
    %cst_13 = arith.constant dense<0.000000e+00> : vector<128x128xf32>
    %14 = tpu.matmul %2, %13, %cst_13 {dimension_numbers = #tpu.dot_dimension_numbers<[1], [0], [0], [1], [0, 0, 1, 1], [], []>} : vector<128x128xbf16>, vector<128x128xbf16>, vector<128x128xf32> -> vector<128x128xf32>
    %c0_14 = arith.constant 0 : index
    %c0_15 = arith.constant 0 : index
    %15 = vector.load %arg7[%c0_14, %c0_15] : memref<1x128xf32, #tpu.memory_space<vmem>>, vector<1x128xf32>
    %16 = vector.broadcast %15 : vector<1x128xf32> to vector<128x128xf32>
    %17 = arith.addf %14, %16 : vector<128x128xf32>
    %cst_16 = arith.constant 0.176776692 : f32
    %18 = vector.broadcast %cst_16 : f32 to vector<128x128xf32>
    %19 = arith.mulf %7, %18 : vector<128x128xf32>
    %20 = arith.truncf %19 : vector<128x128xf32> to vector<128x128xbf16>
    %21 = vector.shape_cast %20 : vector<128x128xbf16> to vector<8x16x128xbf16>
    %22 = arith.truncf %12 : vector<128x128xf32> to vector<128x128xbf16>
    %23 = vector.shape_cast %22 : vector<128x128xbf16> to vector<8x16x128xbf16>
    %24 = arith.truncf %17 : vector<128x128xf32> to vector<128x128xbf16>
    %25 = vector.shape_cast %24 : vector<128x128xbf16> to vector<8x16x128xbf16>
    %c0_17 = arith.constant 0 : index
    %c0_18 = arith.constant 0 : index
    %26 = vector.load %arg8[%c0_17, %c0_18] : memref<128x128xbf16, #tpu.memory_space<vmem>>, vector<128x128xbf16>
    %cst_19 = arith.constant 0.000000e+00 : f32
    %27 = vector.broadcast %cst_19 : f32 to vector<128x128xf32>
    %28 = vector.extract_strided_slice %21 {offsets = [0, 0, 0], sizes = [8, 16, 32], strides = [1, 1, 1]} : vector<8x16x128xbf16> to vector<8x16x32xbf16>
    %29 = vector.extract_strided_slice %23 {offsets = [0, 0, 0], sizes = [8, 16, 32], strides = [1, 1, 1]} : vector<8x16x128xbf16> to vector<8x16x32xbf16>
    %30 = vector.extract_strided_slice %25 {offsets = [0, 0, 0], sizes = [8, 16, 32], strides = [1, 1, 1]} : vector<8x16x128xbf16> to vector<8x16x32xbf16>
    "tpu.trace_start"() <{level = 10 : i32, message = "bld,bmd->blm"}> : () -> ()
    %cst_20 = arith.constant dense<0.000000e+00> : vector<8x16x16xf32>
    %31 = tpu.matmul %28, %29, %cst_20 {dimension_numbers = #tpu.dot_dimension_numbers<[2], [2], [1], [1], [0, 0, 0, 1, 1, 1], [0], [0]>} : vector<8x16x32xbf16>, vector<8x16x32xbf16>, vector<8x16x16xf32> -> vector<8x16x16xf32>
    "tpu.trace_stop"() : () -> ()
    %cst_21 = arith.constant dense<0xFF800000> : vector<8x16xf32>
    %32 = vector.multi_reduction <maximumf>, %31, %cst_21 [2] : vector<8x16x16xf32> to vector<8x16xf32>
    %33 = vector.shape_cast %32 : vector<8x16xf32> to vector<8x16x1xf32>
    %34 = vector.broadcast %33 : vector<8x16x1xf32> to vector<8x16x16xf32>
    %35 = arith.subf %31, %34 : vector<8x16x16xf32>
    %36 = math.exp %35 : vector<8x16x16xf32>
    %cst_22 = arith.constant dense<0.000000e+00> : vector<8x16xf32>
    %37 = vector.multi_reduction <add>, %36, %cst_22 [2] : vector<8x16x16xf32> to vector<8x16xf32>
    %38 = vector.shape_cast %37 : vector<8x16xf32> to vector<8x16x1xf32>
    %39 = tpu.reciprocal %38 {approx = true} : vector<8x16x1xf32> -> vector<8x16x1xf32>
    %40 = vector.broadcast %39 : vector<8x16x1xf32> to vector<8x16x16xf32>
    %41 = arith.mulf %36, %40 : vector<8x16x16xf32>
    %42 = arith.truncf %41 : vector<8x16x16xf32> to vector<8x16x16xbf16>
    "tpu.trace_start"() <{level = 10 : i32, message = "blm,bmd->bld"}> : () -> ()
    %cst_23 = arith.constant dense<0.000000e+00> : vector<8x16x32xf32>
    %43 = tpu.matmul %42, %30, %cst_23 {dimension_numbers = #tpu.dot_dimension_numbers<[2], [1], [1], [2], [0, 0, 0, 1, 1, 2], [0], [0]>} : vector<8x16x16xbf16>, vector<8x16x32xbf16>, vector<8x16x32xf32> -> vector<8x16x32xf32>
    "tpu.trace_stop"() : () -> ()
    %44 = vector.shape_cast %43 : vector<8x16x32xf32> to vector<128x32xf32>
    %45 = arith.truncf %44 : vector<128x32xf32> to vector<128x32xbf16>
    %46 = vector.extract_strided_slice %26 {offsets = [0, 0], sizes = [32, 128], strides = [1, 1]} : vector<128x128xbf16> to vector<32x128xbf16>
    %cst_24 = arith.constant dense<0.000000e+00> : vector<128x128xf32>
    %47 = tpu.matmul %45, %46, %cst_24 {dimension_numbers = #tpu.dot_dimension_numbers<[1], [0], [0], [1], [0, 0, 1, 1], [], []>} : vector<128x32xbf16>, vector<32x128xbf16>, vector<128x128xf32> -> vector<128x128xf32>
    %48 = arith.addf %27, %47 : vector<128x128xf32>
    %49 = vector.extract_strided_slice %21 {offsets = [0, 0, 32], sizes = [8, 16, 32], strides = [1, 1, 1]} : vector<8x16x128xbf16> to vector<8x16x32xbf16>
    %50 = vector.extract_strided_slice %23 {offsets = [0, 0, 32], sizes = [8, 16, 32], strides = [1, 1, 1]} : vector<8x16x128xbf16> to vector<8x16x32xbf16>
    %51 = vector.extract_strided_slice %25 {offsets = [0, 0, 32], sizes = [8, 16, 32], strides = [1, 1, 1]} : vector<8x16x128xbf16> to vector<8x16x32xbf16>
    "tpu.trace_start"() <{level = 10 : i32, message = "bld,bmd->blm"}> : () -> ()
    %cst_25 = arith.constant dense<0.000000e+00> : vector<8x16x16xf32>
    %52 = tpu.matmul %49, %50, %cst_25 {dimension_numbers = #tpu.dot_dimension_numbers<[2], [2], [1], [1], [0, 0, 0, 1, 1, 1], [0], [0]>} : vector<8x16x32xbf16>, vector<8x16x32xbf16>, vector<8x16x16xf32> -> vector<8x16x16xf32>
    "tpu.trace_stop"() : () -> ()
    %cst_26 = arith.constant dense<0xFF800000> : vector<8x16xf32>
    %53 = vector.multi_reduction <maximumf>, %52, %cst_26 [2] : vector<8x16x16xf32> to vector<8x16xf32>
    %54 = vector.shape_cast %53 : vector<8x16xf32> to vector<8x16x1xf32>
    %55 = vector.broadcast %54 : vector<8x16x1xf32> to vector<8x16x16xf32>
    %56 = arith.subf %52, %55 : vector<8x16x16xf32>
    %57 = math.exp %56 : vector<8x16x16xf32>
    %cst_27 = arith.constant dense<0.000000e+00> : vector<8x16xf32>
    %58 = vector.multi_reduction <add>, %57, %cst_27 [2] : vector<8x16x16xf32> to vector<8x16xf32>
    %59 = vector.shape_cast %58 : vector<8x16xf32> to vector<8x16x1xf32>
    %60 = tpu.reciprocal %59 {approx = true} : vector<8x16x1xf32> -> vector<8x16x1xf32>
    %61 = vector.broadcast %60 : vector<8x16x1xf32> to vector<8x16x16xf32>
    %62 = arith.mulf %57, %61 : vector<8x16x16xf32>
    %63 = arith.truncf %62 : vector<8x16x16xf32> to vector<8x16x16xbf16>
    "tpu.trace_start"() <{level = 10 : i32, message = "blm,bmd->bld"}> : () -> ()
    %cst_28 = arith.constant dense<0.000000e+00> : vector<8x16x32xf32>
    %64 = tpu.matmul %63, %51, %cst_28 {dimension_numbers = #tpu.dot_dimension_numbers<[2], [1], [1], [2], [0, 0, 0, 1, 1, 2], [0], [0]>} : vector<8x16x16xbf16>, vector<8x16x32xbf16>, vector<8x16x32xf32> -> vector<8x16x32xf32>
    "tpu.trace_stop"() : () -> ()
    %65 = vector.shape_cast %64 : vector<8x16x32xf32> to vector<128x32xf32>
    %66 = arith.truncf %65 : vector<128x32xf32> to vector<128x32xbf16>
    %67 = vector.extract_strided_slice %26 {offsets = [32, 0], sizes = [32, 128], strides = [1, 1]} : vector<128x128xbf16> to vector<32x128xbf16>
    %cst_29 = arith.constant dense<0.000000e+00> : vector<128x128xf32>
    %68 = tpu.matmul %66, %67, %cst_29 {dimension_numbers = #tpu.dot_dimension_numbers<[1], [0], [0], [1], [0, 0, 1, 1], [], []>} : vector<128x32xbf16>, vector<32x128xbf16>, vector<128x128xf32> -> vector<128x128xf32>
    %69 = arith.addf %48, %68 : vector<128x128xf32>
    %70 = vector.extract_strided_slice %21 {offsets = [0, 0, 64], sizes = [8, 16, 32], strides = [1, 1, 1]} : vector<8x16x128xbf16> to vector<8x16x32xbf16>
    %71 = vector.extract_strided_slice %23 {offsets = [0, 0, 64], sizes = [8, 16, 32], strides = [1, 1, 1]} : vector<8x16x128xbf16> to vector<8x16x32xbf16>
    %72 = vector.extract_strided_slice %25 {offsets = [0, 0, 64], sizes = [8, 16, 32], strides = [1, 1, 1]} : vector<8x16x128xbf16> to vector<8x16x32xbf16>
    "tpu.trace_start"() <{level = 10 : i32, message = "bld,bmd->blm"}> : () -> ()
    %cst_30 = arith.constant dense<0.000000e+00> : vector<8x16x16xf32>
    %73 = tpu.matmul %70, %71, %cst_30 {dimension_numbers = #tpu.dot_dimension_numbers<[2], [2], [1], [1], [0, 0, 0, 1, 1, 1], [0], [0]>} : vector<8x16x32xbf16>, vector<8x16x32xbf16>, vector<8x16x16xf32> -> vector<8x16x16xf32>
    "tpu.trace_stop"() : () -> ()
    %cst_31 = arith.constant dense<0xFF800000> : vector<8x16xf32>
    %74 = vector.multi_reduction <maximumf>, %73, %cst_31 [2] : vector<8x16x16xf32> to vector<8x16xf32>
    %75 = vector.shape_cast %74 : vector<8x16xf32> to vector<8x16x1xf32>
    %76 = vector.broadcast %75 : vector<8x16x1xf32> to vector<8x16x16xf32>
    %77 = arith.subf %73, %76 : vector<8x16x16xf32>
    %78 = math.exp %77 : vector<8x16x16xf32>
    %cst_32 = arith.constant dense<0.000000e+00> : vector<8x16xf32>
    %79 = vector.multi_reduction <add>, %78, %cst_32 [2] : vector<8x16x16xf32> to vector<8x16xf32>
    %80 = vector.shape_cast %79 : vector<8x16xf32> to vector<8x16x1xf32>
    %81 = tpu.reciprocal %80 {approx = true} : vector<8x16x1xf32> -> vector<8x16x1xf32>
    %82 = vector.broadcast %81 : vector<8x16x1xf32> to vector<8x16x16xf32>
    %83 = arith.mulf %78, %82 : vector<8x16x16xf32>
    %84 = arith.truncf %83 : vector<8x16x16xf32> to vector<8x16x16xbf16>
    "tpu.trace_start"() <{level = 10 : i32, message = "blm,bmd->bld"}> : () -> ()
    %cst_33 = arith.constant dense<0.000000e+00> : vector<8x16x32xf32>
    %85 = tpu.matmul %84, %72, %cst_33 {dimension_numbers = #tpu.dot_dimension_numbers<[2], [1], [1], [2], [0, 0, 0, 1, 1, 2], [0], [0]>} : vector<8x16x16xbf16>, vector<8x16x32xbf16>, vector<8x16x32xf32> -> vector<8x16x32xf32>
    "tpu.trace_stop"() : () -> ()
    %86 = vector.shape_cast %85 : vector<8x16x32xf32> to vector<128x32xf32>
    %87 = arith.truncf %86 : vector<128x32xf32> to vector<128x32xbf16>
    %88 = vector.extract_strided_slice %26 {offsets = [64, 0], sizes = [32, 128], strides = [1, 1]} : vector<128x128xbf16> to vector<32x128xbf16>
    %cst_34 = arith.constant dense<0.000000e+00> : vector<128x128xf32>
    %89 = tpu.matmul %87, %88, %cst_34 {dimension_numbers = #tpu.dot_dimension_numbers<[1], [0], [0], [1], [0, 0, 1, 1], [], []>} : vector<128x32xbf16>, vector<32x128xbf16>, vector<128x128xf32> -> vector<128x128xf32>
    %90 = arith.addf %69, %89 : vector<128x128xf32>
    %91 = vector.extract_strided_slice %21 {offsets = [0, 0, 96], sizes = [8, 16, 32], strides = [1, 1, 1]} : vector<8x16x128xbf16> to vector<8x16x32xbf16>
    %92 = vector.extract_strided_slice %23 {offsets = [0, 0, 96], sizes = [8, 16, 32], strides = [1, 1, 1]} : vector<8x16x128xbf16> to vector<8x16x32xbf16>
    %93 = vector.extract_strided_slice %25 {offsets = [0, 0, 96], sizes = [8, 16, 32], strides = [1, 1, 1]} : vector<8x16x128xbf16> to vector<8x16x32xbf16>
    "tpu.trace_start"() <{level = 10 : i32, message = "bld,bmd->blm"}> : () -> ()
    %cst_35 = arith.constant dense<0.000000e+00> : vector<8x16x16xf32>
    %94 = tpu.matmul %91, %92, %cst_35 {dimension_numbers = #tpu.dot_dimension_numbers<[2], [2], [1], [1], [0, 0, 0, 1, 1, 1], [0], [0]>} : vector<8x16x32xbf16>, vector<8x16x32xbf16>, vector<8x16x16xf32> -> vector<8x16x16xf32>
    "tpu.trace_stop"() : () -> ()
    %cst_36 = arith.constant dense<0xFF800000> : vector<8x16xf32>
    %95 = vector.multi_reduction <maximumf>, %94, %cst_36 [2] : vector<8x16x16xf32> to vector<8x16xf32>
    %96 = vector.shape_cast %95 : vector<8x16xf32> to vector<8x16x1xf32>
    %97 = vector.broadcast %96 : vector<8x16x1xf32> to vector<8x16x16xf32>
    %98 = arith.subf %94, %97 : vector<8x16x16xf32>
    %99 = math.exp %98 : vector<8x16x16xf32>
    %cst_37 = arith.constant dense<0.000000e+00> : vector<8x16xf32>
    %100 = vector.multi_reduction <add>, %99, %cst_37 [2] : vector<8x16x16xf32> to vector<8x16xf32>
    %101 = vector.shape_cast %100 : vector<8x16xf32> to vector<8x16x1xf32>
    %102 = tpu.reciprocal %101 {approx = true} : vector<8x16x1xf32> -> vector<8x16x1xf32>
    %103 = vector.broadcast %102 : vector<8x16x1xf32> to vector<8x16x16xf32>
    %104 = arith.mulf %99, %103 : vector<8x16x16xf32>
    %105 = arith.truncf %104 : vector<8x16x16xf32> to vector<8x16x16xbf16>
    "tpu.trace_start"() <{level = 10 : i32, message = "blm,bmd->bld"}> : () -> ()
    %cst_38 = arith.constant dense<0.000000e+00> : vector<8x16x32xf32>
    %106 = tpu.matmul %105, %93, %cst_38 {dimension_numbers = #tpu.dot_dimension_numbers<[2], [1], [1], [2], [0, 0, 0, 1, 1, 2], [0], [0]>} : vector<8x16x16xbf16>, vector<8x16x32xbf16>, vector<8x16x32xf32> -> vector<8x16x32xf32>
    "tpu.trace_stop"() : () -> ()
    %107 = vector.shape_cast %106 : vector<8x16x32xf32> to vector<128x32xf32>
    %108 = arith.truncf %107 : vector<128x32xf32> to vector<128x32xbf16>
    %109 = vector.extract_strided_slice %26 {offsets = [96, 0], sizes = [32, 128], strides = [1, 1]} : vector<128x128xbf16> to vector<32x128xbf16>
    %cst_39 = arith.constant dense<0.000000e+00> : vector<128x128xf32>
    %110 = tpu.matmul %108, %109, %cst_39 {dimension_numbers = #tpu.dot_dimension_numbers<[1], [0], [0], [1], [0, 0, 1, 1], [], []>} : vector<128x32xbf16>, vector<32x128xbf16>, vector<128x128xf32> -> vector<128x128xf32>
    %111 = arith.addf %90, %110 : vector<128x128xf32>
    %c0_40 = arith.constant 0 : index
    %c0_41 = arith.constant 0 : index
    %112 = vector.load %arg9[%c0_40, %c0_41] : memref<1x128xf32, #tpu.memory_space<vmem>>, vector<1x128xf32>
    %113 = vector.broadcast %112 : vector<1x128xf32> to vector<128x128xf32>
    %114 = arith.addf %111, %113 : vector<128x128xf32>
    %115 = arith.addf %1, %114 : vector<128x128xf32>
    %c0_42 = arith.constant 0 : index
    %c0_43 = arith.constant 0 : index
    %116 = vector.load %arg14[%c0_42, %c0_43] : memref<1x128xf32, #tpu.memory_space<vmem>>, vector<1x128xf32>
    %c0_44 = arith.constant 0 : index
    %c0_45 = arith.constant 0 : index
    %117 = vector.load %arg15[%c0_44, %c0_45] : memref<1x128xf32, #tpu.memory_space<vmem>>, vector<1x128xf32>
    %cst_46 = arith.constant dense<0.000000e+00> : vector<128xf32>
    %118 = vector.multi_reduction <add>, %115, %cst_46 [1] : vector<128x128xf32> to vector<128xf32>
    %119 = vector.shape_cast %118 : vector<128xf32> to vector<128x1xf32>
    %cst_47 = arith.constant 1.280000e+02 : f32
    %120 = vector.broadcast %cst_47 : f32 to vector<128x1xf32>
    %121 = arith.divf %119, %120 : vector<128x1xf32>
    %122 = vector.broadcast %121 : vector<128x1xf32> to vector<128x128xf32>
    %123 = arith.subf %115, %122 : vector<128x128xf32>
    %124 = arith.mulf %123, %123 : vector<128x128xf32>
    %cst_48 = arith.constant dense<0.000000e+00> : vector<128xf32>
    %125 = vector.multi_reduction <add>, %124, %cst_48 [1] : vector<128x128xf32> to vector<128xf32>
    %126 = vector.shape_cast %125 : vector<128xf32> to vector<128x1xf32>
    %cst_49 = arith.constant 1.280000e+02 : f32
    %127 = vector.broadcast %cst_49 : f32 to vector<128x1xf32>
    %128 = arith.divf %126, %127 : vector<128x1xf32>
    %cst_50 = arith.constant 9.99999974E-6 : f32
    %129 = vector.broadcast %cst_50 : f32 to vector<128x1xf32>
    %130 = arith.addf %128, %129 : vector<128x1xf32>
    %131 = math.rsqrt %130 : vector<128x1xf32>
    %132 = vector.broadcast %131 : vector<128x1xf32> to vector<128x128xf32>
    %133 = arith.mulf %123, %132 : vector<128x128xf32>
    %134 = vector.broadcast %116 : vector<1x128xf32> to vector<128x128xf32>
    %135 = arith.mulf %133, %134 : vector<128x128xf32>
    %136 = vector.broadcast %117 : vector<1x128xf32> to vector<128x128xf32>
    %137 = arith.addf %135, %136 : vector<128x128xf32>
    %138 = arith.truncf %137 : vector<128x128xf32> to vector<128x128xbf16>
    %c0_51 = arith.constant 0 : index
    %c0_52 = arith.constant 0 : index
    %139 = vector.load %arg10[%c0_51, %c0_52] : memref<128x256xbf16, #tpu.memory_space<vmem>>, vector<128x256xbf16>
    %cst_53 = arith.constant dense<0.000000e+00> : vector<128x256xf32>
    %140 = tpu.matmul %138, %139, %cst_53 {dimension_numbers = #tpu.dot_dimension_numbers<[1], [0], [0], [1], [0, 0, 1, 1], [], []>} : vector<128x128xbf16>, vector<128x256xbf16>, vector<128x256xf32> -> vector<128x256xf32>
    %c0_54 = arith.constant 0 : index
    %c0_55 = arith.constant 0 : index
    %141 = vector.load %arg11[%c0_54, %c0_55] : memref<1x256xf32, #tpu.memory_space<vmem>>, vector<1x256xf32>
    %142 = vector.broadcast %141 : vector<1x256xf32> to vector<128x256xf32>
    %143 = arith.addf %140, %142 : vector<128x256xf32>
    %cst_56 = arith.constant 0.000000e+00 : f32
    %144 = vector.broadcast %cst_56 : f32 to vector<128x256xf32>
    %145 = arith.maximumf %143, %144 : vector<128x256xf32>
    %146 = arith.truncf %145 : vector<128x256xf32> to vector<128x256xbf16>
    %c0_57 = arith.constant 0 : index
    %c0_58 = arith.constant 0 : index
    %147 = vector.load %arg12[%c0_57, %c0_58] : memref<256x128xbf16, #tpu.memory_space<vmem>>, vector<256x128xbf16>
    %cst_59 = arith.constant dense<0.000000e+00> : vector<128x128xf32>
    %148 = tpu.matmul %146, %147, %cst_59 {dimension_numbers = #tpu.dot_dimension_numbers<[1], [0], [0], [1], [0, 0, 1, 1], [], []>} : vector<128x256xbf16>, vector<256x128xbf16>, vector<128x128xf32> -> vector<128x128xf32>
    %c0_60 = arith.constant 0 : index
    %c0_61 = arith.constant 0 : index
    %149 = vector.load %arg13[%c0_60, %c0_61] : memref<1x128xf32, #tpu.memory_space<vmem>>, vector<1x128xf32>
    %150 = vector.broadcast %149 : vector<1x128xf32> to vector<128x128xf32>
    %151 = arith.addf %148, %150 : vector<128x128xf32>
    %152 = arith.addf %137, %151 : vector<128x128xf32>
    %c0_62 = arith.constant 0 : index
    %c0_63 = arith.constant 0 : index
    %153 = vector.load %arg16[%c0_62, %c0_63] : memref<1x128xf32, #tpu.memory_space<vmem>>, vector<1x128xf32>
    %c0_64 = arith.constant 0 : index
    %c0_65 = arith.constant 0 : index
    %154 = vector.load %arg17[%c0_64, %c0_65] : memref<1x128xf32, #tpu.memory_space<vmem>>, vector<1x128xf32>
    %cst_66 = arith.constant dense<0.000000e+00> : vector<128xf32>
    %155 = vector.multi_reduction <add>, %152, %cst_66 [1] : vector<128x128xf32> to vector<128xf32>
    %156 = vector.shape_cast %155 : vector<128xf32> to vector<128x1xf32>
    %cst_67 = arith.constant 1.280000e+02 : f32
    %157 = vector.broadcast %cst_67 : f32 to vector<128x1xf32>
    %158 = arith.divf %156, %157 : vector<128x1xf32>
    %159 = vector.broadcast %158 : vector<128x1xf32> to vector<128x128xf32>
    %160 = arith.subf %152, %159 : vector<128x128xf32>
    %161 = arith.mulf %160, %160 : vector<128x128xf32>
    %cst_68 = arith.constant dense<0.000000e+00> : vector<128xf32>
    %162 = vector.multi_reduction <add>, %161, %cst_68 [1] : vector<128x128xf32> to vector<128xf32>
    %163 = vector.shape_cast %162 : vector<128xf32> to vector<128x1xf32>
    %cst_69 = arith.constant 1.280000e+02 : f32
    %164 = vector.broadcast %cst_69 : f32 to vector<128x1xf32>
    %165 = arith.divf %163, %164 : vector<128x1xf32>
    %cst_70 = arith.constant 9.99999974E-6 : f32
    %166 = vector.broadcast %cst_70 : f32 to vector<128x1xf32>
    %167 = arith.addf %165, %166 : vector<128x1xf32>
    %168 = math.rsqrt %167 : vector<128x1xf32>
    %169 = vector.broadcast %168 : vector<128x1xf32> to vector<128x128xf32>
    %170 = arith.mulf %160, %169 : vector<128x128xf32>
    %171 = vector.broadcast %153 : vector<1x128xf32> to vector<128x128xf32>
    %172 = arith.mulf %170, %171 : vector<128x128xf32>
    %173 = vector.broadcast %154 : vector<1x128xf32> to vector<128x128xf32>
    %174 = arith.addf %172, %173 : vector<128x128xf32>
    %175 = vector.shape_cast %174 : vector<128x128xf32> to vector<8x16x128xf32>
    %c0_71 = arith.constant 0 : index
    %c0_72 = arith.constant 0 : index
    %c0_73 = arith.constant 0 : index
    %176 = vector.load %arg18[%c0_71, %c0_72, %c0_73] : memref<8x16x128xf32, #tpu.memory_space<vmem>>, vector<8x16x128xf32>
    tpu.vector_store %arg18[%c0_71, %c0_72, %c0_73], %175 {strides = array<i32>} : memref<8x16x128xf32, #tpu.memory_space<vmem>>, vector<8x16x128xf32>,
    return
  }
  func.func @transform_0(%arg0: i32) -> (i32, i32, i32) {
    %c0_i32 = arith.constant 0 : i32
    %c0_i32_0 = arith.constant 0 : i32
    %c0_i32_1 = arith.constant 0 : i32
    return %arg0, %c0_i32, %c0_i32_0 : i32, i32, i32
  }
  func.func @transform_1(%arg0: i32) -> (i32, i32) {
    %c0_i32 = arith.constant 0 : i32
    %c0_i32_0 = arith.constant 0 : i32
    %c0_i32_1 = arith.constant 0 : i32
    return %c0_i32, %c0_i32_0 : i32, i32
  }
  func.func @transform_2(%arg0: i32) -> (i32, i32) {
    %c0_i32 = arith.constant 0 : i32
    %c0_i32_0 = arith.constant 0 : i32
    %c0_i32_1 = arith.constant 0 : i32
    return %c0_i32, %c0_i32_0 : i32, i32
  }
  func.func @transform_3(%arg0: i32) -> (i32, i32) {
    %c0_i32 = arith.constant 0 : i32
    %c0_i32_0 = arith.constant 0 : i32
    %c0_i32_1 = arith.constant 0 : i32
    return %c0_i32, %c0_i32_0 : i32, i32
  }
  func.func @transform_4(%arg0: i32) -> (i32, i32) {
    %c0_i32 = arith.constant 0 : i32
    %c0_i32_0 = arith.constant 0 : i32
    %c0_i32_1 = arith.constant 0 : i32
    return %c0_i32, %c0_i32_0 : i32, i32
  }
  func.func @transform_5(%arg0: i32) -> (i32, i32) {
    %c0_i32 = arith.constant 0 : i32
    %c0_i32_0 = arith.constant 0 : i32
    %c0_i32_1 = arith.constant 0 : i32
    return %c0_i32, %c0_i32_0 : i32, i32
  }
  func.func @transform_6(%arg0: i32) -> (i32, i32) {
    %c0_i32 = arith.constant 0 : i32
    %c0_i32_0 = arith.constant 0 : i32
    %c0_i32_1 = arith.constant 0 : i32
    return %c0_i32, %c0_i32_0 : i32, i32
  }
  func.func @transform_7(%arg0: i32) -> (i32, i32) {
    %c0_i32 = arith.constant 0 : i32
    %c0_i32_0 = arith.constant 0 : i32
    %c0_i32_1 = arith.constant 0 : i32
    return %c0_i32, %c0_i32_0 : i32, i32
  }
  func.func @transform_8(%arg0: i32) -> (i32, i32) {
    %c0_i32 = arith.constant 0 : i32
    %c0_i32_0 = arith.constant 0 : i32
    %c0_i32_1 = arith.constant 0 : i32
    return %c0_i32, %c0_i32_0 : i32, i32
  }
  func.func @transform_9(%arg0: i32) -> (i32, i32) {
    %c0_i32 = arith.constant 0 : i32
    %c0_i32_0 = arith.constant 0 : i32
    %c0_i32_1 = arith.constant 0 : i32
    return %c0_i32, %c0_i32_0 : i32, i32
  }
  func.func @transform_10(%arg0: i32) -> (i32, i32) {
    %c0_i32 = arith.constant 0 : i32
    %c0_i32_0 = arith.constant 0 : i32
    %c0_i32_1 = arith.constant 0 : i32
    return %c0_i32, %c0_i32_0 : i32, i32
  }
  func.func @transform_11(%arg0: i32) -> (i32, i32) {
    %c0_i32 = arith.constant 0 : i32
    %c0_i32_0 = arith.constant 0 : i32
    %c0_i32_1 = arith.constant 0 : i32
    return %c0_i32, %c0_i32_0 : i32, i32
  }
  func.func @transform_12(%arg0: i32) -> (i32, i32) {
    %c0_i32 = arith.constant 0 : i32
    %c0_i32_0 = arith.constant 0 : i32
    %c0_i32_1 = arith.constant 0 : i32
    return %c0_i32, %c0_i32_0 : i32, i32
  }
  func.func @transform_13(%arg0: i32) -> (i32, i32) {
    %c0_i32 = arith.constant 0 : i32
    %c0_i32_0 = arith.constant 0 : i32
    %c0_i32_1 = arith.constant 0 : i32
    return %c0_i32, %c0_i32_0 : i32, i32
  }
  func.func @transform_14(%arg0: i32) -> (i32, i32) {
    %c0_i32 = arith.constant 0 : i32
    %c0_i32_0 = arith.constant 0 : i32
    %c0_i32_1 = arith.constant 0 : i32
    return %c0_i32, %c0_i32_0 : i32, i32
  }
  func.func @transform_15(%arg0: i32) -> (i32, i32) {
    %c0_i32 = arith.constant 0 : i32
    %c0_i32_0 = arith.constant 0 : i32
    %c0_i32_1 = arith.constant 0 : i32
    return %c0_i32, %c0_i32_0 : i32, i32
  }
  func.func @transform_16(%arg0: i32) -> (i32, i32) {
    %c0_i32 = arith.constant 0 : i32
    %c0_i32_0 = arith.constant 0 : i32
    %c0_i32_1 = arith.constant 0 : i32
    return %c0_i32, %c0_i32_0 : i32, i32
  }
  func.func @transform_17(%arg0: i32) -> (i32, i32, i32) {
    %c0_i32 = arith.constant 0 : i32
    %c0_i32_0 = arith.constant 0 : i32
    %c0_i32_1 = arith.constant 0 : i32
    return %arg0, %c0_i32, %c0_i32_0 : i32, i32, i32
  }
}

</mosaic_0001>

<bundles_post_ra>
// kernel: staeformer_forward.3
= control target key start
LH: loop header
LB: loop body
LE: loop exit
PB: predicated region body
PF: predicated region fallthrough
CT: control target
= control target key end

     0   :  { %s8213_s24 = smov 0   ;;  %s10464_s0 = inlined_call_operand.vmem [shape: f32[16,16,128], index: 0, kind: input, shape index: {}]   ;;  %s10465_s1 = inlined_call_operand.vmem [shape: bf16[128,128], index: 1, kind: input, shape index: {}]   ;;  %s10466_s2 = inlined_call_operand.vmem [shape: f32[1,128], index: 2, kind: input, shape index: {}]   ;;  %s10467_s3 = inlined_call_operand.vmem [shape: bf16[128,128], index: 3, kind: input, shape index: {}]   ;;  %s10468_s4 = inlined_call_operand.vmem [shape: f32[1,128], index: 4, kind: input, shape index: {}]   ;;  %s10469_s5 = inlined_call_operand.vmem [shape: bf16[128,128], index: 5, kind: input, shape index: {}]   ;;  %s10470_s6 = inlined_call_operand.vmem [shape: f32[1,128], index: 6, kind: input, shape index: {}]   ;;  %s10471_s7 = inlined_call_operand.vmem [shape: bf16[128,128], index: 7, kind: input, shape index: {}]   ;;  %s10472_s8 = inlined_call_operand.vmem [shape: f32[1,128], index: 8, kind: input, shape index: {}]   ;;  %s10473_s9 = inlined_call_operand.vmem [shape: bf16[128,256], index: 9, kind: input, shape index: {}]   ;;  %s10474_s10 = inlined_call_operand.vmem [shape: f32[1,256], index: 10, kind: input, shape index: {}]   ;;  %s10475_s11 = inlined_call_operand.vmem [shape: bf16[256,128], index: 11, kind: input, shape index: {}]   ;;  %s10476_s12 = inlined_call_operand.vmem [shape: f32[1,128], index: 12, kind: input, shape index: {}]   ;;  %s10477_s13 = inlined_call_operand.vmem [shape: f32[1,128], index: 13, kind: input, shape index: {}]   ;;  %s10478_s14 = inlined_call_operand.vmem [shape: f32[1,128], index: 14, kind: input, shape index: {}]   ;;  %s10479_s15 = inlined_call_operand.vmem [shape: f32[1,128], index: 15, kind: input, shape index: {}]   ;;  %s10480_s16 = inlined_call_operand.vmem [shape: f32[1,128], index: 16, kind: input, shape index: {}]   ;;  %s10481_s17 = inlined_call_operand.vmem [shape: f32[16,16,128], index: 17, kind: output, shape index: {}]  }
   0x1   :  { %10498 = sst [smem:[#allocation30_spill]] %s10464_s0 }
   0x2   :  { %10499 = sst [smem:[#allocation31_spill]] %s10465_s1 }
   0x3 LB: > { %s6663_s25 = sadd.s32 4294967295, %s8115_s24   ;;  %p6667_p0 = scmp.ge.s32.totalorder %s8115_s24, 1  ;;  %s8115_s24 = sphi %s8213_s24, %s27_s24  }
   0x4   : > { %p489_p1 = scmp.lt.s32.totalorder %s8115_s24, 3 }
   0x6   : > { %p490_p2 = pnand %p6667_p0, %p489_p1 }
   0x8   : > { %493 = sbr.rel (%p490_p2) target bundleno = 4474 (0x117a), region = 88 }
   0xd   : > { %v7701_v0 = vld [vmem:[%s10467_s3 + $0x38] sm:$0xff]   ;;  %s6668_s28 = sshll.u32 %s6663_s25, 3  ;;  %v7702_v1 = vld [vmem:[%s10467_s3 + $0x30] sm:$0xff]   ;;  %s10500_s19 = sld [smem:[#allocation31_spill]]  ;;  %v7704_v3 = vld [vmem:[%s10467_s3 + $0x28] sm:$0xff]   ;;  %v10483_v48 = vmov 0.0  }
   0xe   : > { %p544_p3 = scmp.lt.s32.totalorder %s6668_s28, 15  ;;  %7159 = vmatprep.subr.bf16.mxu1 %v7701_v0  ;;  %v7706_v6 = vld [vmem:[%s10467_s3 + $0x20] sm:$0xff]   ;;  %v7708_v8 = vld [vmem:[%s10467_s3 + $0x18] sm:$0xff]   ;;  %s10501_s22 = sld [smem:[#allocation30_spill]]  ;;  %v7710_v12 = vld [vmem:[%s10467_s3 + $0x10] sm:$0xff]   ;;  %vm8118_vm0 = vmmov 0  }
   0xf   : > { %7160 = vmatpush3.bf16.msra.mxu1 %v7701_v0  ;;  %v7712_v15 = vld [vmem:[%s10467_s3 + $0x8] sm:$0xff]   ;;  %v7714_v17 = vld [vmem:[%s10467_s3] sm:$0xff]   ;;  %v7717_v23 = vld [vmem:[%s10469_s5 + $0x38] sm:$0xff]   ;;  %vm1142_vm1 = vcmask 261120   ;;  %vm1519_vm2 = vcmask 130048   ;;  %s8119_s1 = smov 96  }
  0x10   : > { %7161 = vmatprep.subr.bf16.mxu1 %v7702_v1  ;;  %s10575_s28 = smov (!%p544_p3, %s6668_s28), 15  ;;  %v7718_v26 = vld [vmem:[%s10469_s5 + $0x30] sm:$0xff]   ;;  %v7719_v31 = vld [vmem:[%s10469_s5 + $0x28] sm:$0xff]   ;;  %v7720_v34 = vld [vmem:[%s10469_s5 + $0x20] sm:$0xff]   ;;  %s8120_s20 = smov 64  }
  0x11   : > { %s6845_s29 = sshll.u32 %s10575_s28, 4  ;;  %v7721_v39 = vld [vmem:[%s10469_s5 + $0x18] sm:$0xff]   ;;  %v7722_v45 = vld [vmem:[%s10469_s5 + $0x10] sm:$0xff]   ;;  %v7723_v46 = vld [vmem:[%s10469_s5 + $0x8] sm:$0xff]  }
  0x12   : > { %v7724_v47 = vld [vmem:[%s10469_s5] sm:$0xff]  }
  0x13   : > { %v7703_v2 = vld [vmem:[%s10500_s19 + $0x38] sm:$0xff]   ;;  %v7705_v4 = vld [vmem:[%s10500_s19 + $0x30] sm:$0xff]   ;;  %v7707_v5 = vld [vmem:[%s10500_s19 + $0x28] sm:$0xff]   ;;  %7162 = vmatpush3.bf16.msra.mxu1 %v7702_v1 }
  0x14   : > { %7127 = vmatprep.subr.bf16.mxu0 %v7703_v2  ;;  %7163 = vmatprep.subr.bf16.mxu1 %v7704_v3  ;;  %v7709_v7 = vld [vmem:[%s10500_s19 + $0x20] sm:$0xff]   ;;  %s8256_s23 = scalar_lea.vmem %s10501_s22, %s6845_s29  ;;  %v7711_v9 = vld [vmem:[%s10500_s19 + $0x18] sm:$0xff]   ;;  %v7713_v14 = vld [vmem:[%s10500_s19 + $0x10] sm:$0xff]  }
  0x15   : > { %7128 = vmatpush3.bf16.msra.mxu0 %v7703_v2  ;;  %v558_v10 = vld [vmem:[%s8256_s23] sm:$0xff]  ;;  %v559_v11 = vld [vmem:[%s8256_s23 + $0x8] sm:$0xff]  ;;  %v560_v18 = vld [vmem:[%s8256_s23 + $0x10] sm:$0xff] }
  0x16   : > { %7129 = vmatprep.subr.bf16.mxu0 %v7705_v4  ;;  %v8266_v13 = vpack.c.bf16 %v559_v11, %v558_v10  ;;  %v7715_v16 = vld [vmem:[%s10500_s19 + $0x8] sm:$0xff]   ;;  %v561_v19 = vld [vmem:[%s8256_s23 + $0x18] sm:$0xff]  ;;  %v7716_v20 = vld [vmem:[%s10500_s19] sm:$0xff]  }
  0x17   : > { %7164 = vmatpush3.bf16.msra.mxu1 %v7704_v3  ;;  %v562_v21 = vld [vmem:[%s8256_s23 + $0x20] sm:$0xff]  ;;  %v563_v22 = vld [vmem:[%s8256_s23 + $0x28] sm:$0xff]  ;;  %v575_v24 = vpack.c.bf16 %v561_v19, %v560_v18  ;;  %v564_v27 = vld [vmem:[%s8256_s23 + $0x30] sm:$0xff] }
  0x18   : > { %7165 = vmatprep.subr.bf16.mxu1 %v7706_v6  ;;  %7175 = vmatprep.mubr.bf16.mxu1 %v8266_v13  ;;  %v576_v25 = vpack.c.bf16 %v563_v22, %v562_v21  ;;  %v565_v28 = vld [vmem:[%s8256_s23 + $0x38] sm:$0xff]  ;;  %v566_v29 = vld [vmem:[%s8256_s23 + $0x40] sm:$0xff]  ;;  %v567_v30 = vld [vmem:[%s8256_s23 + $0x48] sm:$0xff] }
  0x19   : > { %7130 = vmatpush3.bf16.msra.mxu0 %v7705_v4  ;;  %7143 = vmatprep.mubr.bf16.mxu0 %v8266_v13  ;;  %v577_v32 = vpack.c.bf16 %v565_v28, %v564_v27  ;;  %v578_v33 = vpack.c.bf16 %v567_v30, %v566_v29  ;;  %v568_v35 = vld [vmem:[%s8256_s23 + $0x50] sm:$0xff]  ;;  %v569_v36 = vld [vmem:[%s8256_s23 + $0x58] sm:$0xff]  ;;  %v570_v37 = vld [vmem:[%s8256_s23 + $0x60] sm:$0xff] }
  0x1a   : > { %7131 = vmatprep.subr.bf16.mxu0 %v7707_v5  ;;  %v571_v38 = vld [vmem:[%s8256_s23 + $0x68] sm:$0xff]  ;;  %v579_v40 = vpack.c.bf16 %v569_v36, %v568_v35  ;;  %v572_v42 = vld [vmem:[%s8256_s23 + $0x70] sm:$0xff]  ;;  %v573_v43 = vld [vmem:[%s8256_s23 + $0x78] sm:$0xff] }
  0x1b   : > { %7166 = vmatpush3.bf16.msra.mxu1 %v7706_v6  ;;  %v580_v41 = vpack.c.bf16 %v571_v38, %v570_v37  ;;  %v581_v44 = vpack.c.bf16 %v573_v43, %v572_v42  ;;  %v8333_v54 = vld [vmem:[%s10468_s4] ss:$0 sm:$0xff] }
  0x1c   : > { %7167 = vmatprep.subr.bf16.mxu1 %v7708_v8  ;;  %v8338_v55 = vld [vmem:[%s10466_s2] ss:$0 sm:$0xff] }
  0x1d   : > { %7132 = vmatpush3.bf16.msra.mxu0 %v7707_v5 }
  0x1e   : > { %7133 = vmatprep.subr.bf16.mxu0 %v7709_v7 }
  0x1f   : > { %7168 = vmatpush3.bf16.msra.mxu1 %v7708_v8 }
  0x20   : > { %7169 = vmatprep.subr.bf16.mxu1 %v7710_v12 }
  0x21   : > { %7134 = vmatpush3.bf16.msra.mxu0 %v7709_v7 }
  0x22   : > { %7135 = vmatprep.subr.bf16.mxu0 %v7711_v9 }
  0x23   : > { %7170 = vmatpush3.bf16.msra.mxu1 %v7710_v12 }
  0x24   : > { %7171 = vmatprep.subr.bf16.mxu1 %v7712_v15 }
  0x25   : > { %7136 = vmatpush3.bf16.msra.mxu0 %v7711_v9 }
  0x26   : > { %7137 = vmatprep.subr.bf16.mxu0 %v7713_v14 }
  0x27   : > { %7172 = vmatpush3.bf16.msra.mxu1 %v7712_v15 }
  0x28   : > { %7173 = vmatprep.subr.bf16.mxu1 %v7714_v17 }
  0x29   : > { %7138 = vmatpush3.bf16.msra.mxu0 %v7713_v14 }
  0x2a   : > { %7139 = vmatprep.subr.bf16.mxu0 %v7715_v16 }
  0x2b   : > { %7174 = vmatpush3.bf16.msra.mxu1 %v7714_v17 }
  0x2c   : > { %7223 = vmatprep.subr.bf16.mxu1 %v10483_v48 }
  0x2d   : > { %7140 = vmatpush3.bf16.msra.mxu0 %v7715_v16 }
  0x2e   : > { %7141 = vmatprep.subr.bf16.mxu0 %v7716_v20  ;;  %7176 = vmatmul.mubr.bf16.vlgmr.msra.gmra.mxu1 %v575_v24 }
  0x2f   : > { %7179 = vmatprep.mubr.bf16.mxu1 %v576_v25 }
  0x31   : > { %7142 = vmatpush3.bf16.msra.mxu0 %v7716_v20 }
  0x32   : > { %7191 = vmatprep.subr.bf16.mxu0 %v7717_v23 }
  0x34   : > { %7144 = vmatmul.mubr.bf16.vlgmr.msra.gmra.mxu0 %v575_v24 }
  0x35   : > { %7147 = vmatprep.mubr.bf16.mxu0 %v576_v25  ;;  %7192 = vmatpush3.bf16.msra.mxu0 %v7717_v23 }
  0x36   : > { %7193 = vmatprep.subr.bf16.mxu0 %v7718_v26  ;;  %7180 = vmatmul.mubr.bf16.gmra.mxu1 %v577_v32 }
  0x37   : > { %7183 = vmatprep.mubr.bf16.mxu1 %v578_v33 }
  0x39   : > { %7194 = vmatpush3.bf16.msra.mxu0 %v7718_v26 }
  0x3a   : > { %7195 = vmatprep.subr.bf16.mxu0 %v7719_v31 }
  0x3c   : > { %7148 = vmatmul.mubr.bf16.gmra.mxu0 %v577_v32 }
  0x3d   : > { %7151 = vmatprep.mubr.bf16.mxu0 %v578_v33  ;;  %7196 = vmatpush3.bf16.msra.mxu0 %v7719_v31 }
  0x3e   : > { %7197 = vmatprep.subr.bf16.mxu0 %v7720_v34  ;;  %7184 = vmatmul.mubr.bf16.gmra.mxu1 %v579_v40 }
  0x3f   : > { %7187 = vmatprep.mubr.bf16.mxu1 %v580_v41 }
  0x41   : > { %7198 = vmatpush3.bf16.msra.mxu0 %v7720_v34 }
  0x42   : > { %7199 = vmatprep.subr.bf16.mxu0 %v7721_v39 }
  0x44   : > { %7152 = vmatmul.mubr.bf16.gmra.mxu0 %v579_v40 }
  0x45   : > { %7155 = vmatprep.mubr.bf16.mxu0 %v580_v41  ;;  %7200 = vmatpush3.bf16.msra.mxu0 %v7721_v39 }
  0x46   : > { %7188 = vmatmul.mubr.bf16.gmra.mxu1 %v581_v44  ;;  %7201 = vmatprep.subr.bf16.mxu0 %v7722_v45 }
  0x47   : > { %7225 = vmatprep.mubr.msk.bf16.mxu1 %vm8118_vm0, %v10483_v48 }
  0x49   : > { %7202 = vmatpush3.bf16.msra.mxu0 %v7722_v45 }
  0x4a   : > { %7203 = vmatprep.subr.bf16.mxu0 %v7723_v46 }
  0x4c   : > { %7156 = vmatmul.mubr.bf16.gmra.mxu0 %v581_v44 }
  0x4d   : > { %7207 = vmatprep.mubr.bf16.mxu0 %v8266_v13  ;;  %7204 = vmatpush3.bf16.msra.mxu0 %v7723_v46 }
  0x4e   : > { %7205 = vmatprep.subr.bf16.mxu0 %v7724_v47 }
  0x51   : > { %7206 = vmatpush3.bf16.msra.mxu0 %v7724_v47 }
  0x52   : > { %7247 = vmatprep.subr.bf16.mxu0 %v10483_v48 }
  0x54   : > { %7208 = vmatmul.mubr.bf16.vlgmr.msra.gmra.mxu0 %v575_v24 }
  0x55   : > { %7211 = vmatprep.mubr.bf16.mxu0 %v576_v25 }
  0x5c   : > { %7212 = vmatmul.mubr.bf16.gmra.mxu0 %v577_v32 }
  0x5d   : > { %7215 = vmatprep.mubr.bf16.mxu0 %v578_v33 }
  0x64   : > { %7216 = vmatmul.mubr.bf16.gmra.mxu0 %v579_v40 }
  0x65   : > { %7219 = vmatprep.mubr.bf16.mxu0 %v580_v41 }
  0x6c   : > { %7220 = vmatmul.mubr.bf16.gmra.mxu0 %v581_v44 }
  0x6d   : > { %7249 = vmatprep.mubr.msk.bf16.mxu0 %vm8118_vm0, %v10483_v48 }
  0xee   : > { %v7177_v49 = vpop.f32.mrf.mxu1 }
  0xef   : > { %v864_v7 = vadd.f32 %v7177_v49, %v8333_v54 }
  0xf0   : > { %v855_v50 = vpop.f32.mrf.mxu1 }
  0xf1   : > { %v856_v58 = vadd.f32 %v8333_v54, %v855_v50 }
  0xf2   : > { %v7178_v52 = vpop.f32.mrf.mxu1 }
  0xf3   : > { %v867_v3 = vadd.f32 %v7178_v52, %v8333_v54 }
  0xf4   : > { %v7145_v51 = vpop.f32.mrf.mxu0  ;;  %v858_v56 = vpop.f32.mrf.mxu1 }
  0xf5   : > { %v859_v59 = vadd.f32 %v8333_v54, %v858_v56  ;;  %v8353_v12 = vpack.c.bf16 %v867_v3, %v864_v7  ;;  %v696_v15 = vadd.f32 %v7145_v51, %v8338_v55 }
  0xf6   : > { %v687_v53 = vpop.f32.mrf.mxu0  ;;  %v7181_v61 = vpop.f32.mrf.mxu1 }
  0xf7   : > { %v8342_v62 = vpack.c.bf16 %v859_v59, %v856_v58  ;;  %v688_v63 = vadd.f32 %v8338_v55, %v687_v53  ;;  %v1194_v22 = vsel %vm1142_vm1, %v8353_v12, 0  ;;  %v1088_v25 = vmul.f32 0.17677669, %v696_v15 }
  0xf8   : > { %v7146_v57 = vpop.f32.mrf.mxu0  ;;  %v871_v1 = vpop.f32.mrf.mxu1  ;;  %v880_v42 = vadd.f32 %v7181_v61, %v8333_v54 }
  0xf9   : > { %v1147_v4 = vsel %vm1142_vm1, %v8342_v62, 0  ;;  %v1086_v8 = vmul.f32 0.17677669, %v688_v63  ;;  %v699_v16 = vadd.f32 %v7146_v57, %v8338_v55  ;;  %v872_v20 = vadd.f32 %v8333_v54, %v871_v1 }
  0xfa   : > { %v690_v60 = vpop.f32.mrf.mxu0  ;;  %7224 = vmatpush3.bf16.xpose.msra.mxu1 %v1147_v4  ;;  %v7182_v5 = vpop.f32.mrf.mxu1 }
  0xfb   : > { %v691_v0 = vadd.f32 %v8338_v55, %v690_v60  ;;  %7229 = vmatprep.subr.bf16.mxu1 %v10483_v48  ;;  %v1089_v26 = vmul.f32 0.17677669, %v699_v16  ;;  %v883_v43 = vadd.f32 %v7182_v5, %v8333_v54 }
  0xfc   : > { %v8346_v2 = vpop.f32.mrf.mxu0  ;;  %v874_v10 = vpop.f32.mrf.mxu1 }
  0xfd   : > { %v1087_v9 = vmul.f32 0.17677669, %v691_v0  ;;  %v875_v21 = vadd.f32 %v8333_v54, %v874_v10  ;;  %v8376_v36 = vpack.c.bf16 %v1089_v26, %v1088_v25  ;;  %v8397_v58 = vpack.c.bf16 %v883_v43, %v880_v42 }
  0xfe   : > { %v703_v6 = vpop.f32.mrf.mxu0  ;;  %v7185_v13 = vpop.f32.mrf.mxu1  ;;  %v712_v60 = vadd.f32 %v8346_v2, %v8338_v55 }
  0xff   : > { %v8357_v17 = vpack.c.bf16 %v1087_v9, %v1086_v8  ;;  %v8371_v30 = vpack.c.bf16 %v875_v21, %v872_v20  ;;  %v704_v32 = vadd.f32 %v8338_v55, %v703_v6  ;;  %v896_v6 = vadd.f32 %v7185_v13, %v8333_v54 }
 0x100   : > { %v7150_v11 = vpop.f32.mrf.mxu0  ;;  %v887_v18 = vpop.f32.mrf.mxu1  ;;  %v1288_v2 = vsel %vm1142_vm1, %v8397_v58, 0  ;;  %v1092_v9 = vmul.f32 0.17677669, %v712_v60 }
 0x101   : > { %7226 = vmatmul.mubr.msk.bf16.vlgmr.msra.gmra.mxu1 %vm1142_vm1, %v8357_v17  ;;  %v888_v27 = vadd.f32 %v8333_v54, %v887_v18  ;;  %v1241_v44 = vsel %vm1142_vm1, %v8371_v30, 0  ;;  %v1090_v46 = vmul.f32 0.17677669, %v704_v32  ;;  %v715_v61 = vadd.f32 %v7150_v11, %v8338_v55 }
 0x102   : > { %v706_v14 = vpop.f32.mrf.mxu0  ;;  %7230 = vmatpush3.bf16.xpose.msra.mxu1 %v1194_v22  ;;  %v7186_v23 = vpop.f32.mrf.mxu1  ;;  %7231 = vmatprep.mubr.msk.bf16.mxu1 %vm8118_vm0, %v10483_v48 }
 0x103   : > { %7235 = vmatprep.subr.bf16.mxu1 %v10483_v48  ;;  %v707_v33 = vadd.f32 %v8338_v55, %v706_v14  ;;  %v899_v7 = vadd.f32 %v7186_v23, %v8333_v54  ;;  %v1093_v10 = vmul.f32 0.17677669, %v715_v61 }
 0x104   : > { %v8359_v19 = vpop.f32.mrf.mxu0  ;;  %v890_v28 = vpop.f32.mrf.mxu1 }
 0x105   : > { %v891_v31 = vadd.f32 %v8333_v54, %v890_v28  ;;  %v1091_v47 = vmul.f32 0.17677669, %v707_v33  ;;  %v8426_v14 = vpack.c.bf16 %v899_v7, %v896_v6  ;;  %v8429_v15 = vpack.c.bf16 %v1093_v10, %v1092_v9  ;;  %v6692_v33 = vld [vmem:[%s10470_s6] ss:$0 sm:$0xff] }
 0x106   : > { %v719_v24 = vpop.f32.mrf.mxu0  ;;  %v7189_v34 = vpop.f32.mrf.mxu1  ;;  %v728_v16 = vadd.f32 %v8359_v19, %v8338_v55 }
 0x107   : > { %v8378_v37 = vpack.c.bf16 %v891_v31, %v888_v27  ;;  %v720_v38 = vadd.f32 %v8338_v55, %v719_v24  ;;  %v8403_v63 = vpack.c.bf16 %v1091_v47, %v1090_v46  ;;  %v912_v21 = vadd.f32 %v7189_v34, %v8333_v54 }
 0x108   : > { %v7154_v29 = vpop.f32.mrf.mxu0  ;;  %v903_v40 = vpop.f32.mrf.mxu1  ;;  %v1382_v23 = vsel %vm1142_vm1, %v8426_v14, 0  ;;  %v1096_v24 = vmul.f32 0.17677669, %v728_v16 }
 0x109   : > { %7232 = vmatmul.mubr.msk.bf16.vlgmr.msra.gmra.mxu1 %vm1142_vm1, %v8376_v36  ;;  %v1335_v45 = vsel %vm1142_vm1, %v8378_v37, 0  ;;  %v1094_v51 = vmul.f32 0.17677669, %v720_v38  ;;  %v904_v52 = vadd.f32 %v8333_v54, %v903_v40  ;;  %v731_v18 = vadd.f32 %v7154_v29, %v8338_v55 }
 0x10a   : > { %v722_v35 = vpop.f32.mrf.mxu0  ;;  %7236 = vmatpush3.bf16.xpose.msra.mxu1 %v1241_v44  ;;  %7237 = vmatprep.mubr.msk.bf16.mxu1 %vm8118_vm0, %v10483_v48  ;;  %v7190_v49 = vpop.f32.mrf.mxu1 }
 0x10b   : > { %v723_v39 = vadd.f32 %v8338_v55, %v722_v35  ;;  %7248 = vmatpush3.bf16.xpose.msra.mxu0 %v1335_v45  ;;  %7241 = vmatprep.subr.bf16.mxu1 %v10483_v48  ;;  %v915_v22 = vadd.f32 %v7190_v49, %v8333_v54  ;;  %v1097_v19 = vmul.f32 0.17677669, %v731_v18 }
 0x10c   : > { %v8382_v41 = vpop.f32.mrf.mxu0  ;;  %v906_v56 = vpop.f32.mrf.mxu1  ;;  %7259 = vmatprep.subr.bf16.mxu0 %v10483_v48 }
 0x10d   : > { %v1095_v53 = vmul.f32 0.17677669, %v723_v39  ;;  %v907_v59 = vadd.f32 %v8333_v54, %v906_v56  ;;  %v8449_v54 = vpack.c.bf16 %v915_v22, %v912_v21  ;;  %v8451_v25 = vpack.c.bf16 %v1097_v19, %v1096_v24 }
 0x10e   : > { %v735_v50 = vpop.f32.mrf.mxu0  ;;  %v744_v26 = vadd.f32 %v8382_v41, %v8338_v55 }
 0x10f   : > { %v8405_v1 = vpack.c.bf16 %v1095_v53, %v1094_v51  ;;  %v8407_v3 = vpack.c.bf16 %v907_v59, %v904_v52  ;;  %v736_v4 = vadd.f32 %v8338_v55, %v735_v50  ;;  %v1476_v28 = vsel %vm1142_vm1, %v8449_v54, 0 }
 0x110   : > { %v7158_v57 = vpop.f32.mrf.mxu0  ;;  %v1100_v29 = vmul.f32 0.17677669, %v744_v26 }
 0x111   : > { %7238 = vmatmul.mubr.msk.bf16.vlgmr.msra.gmra.mxu1 %vm1142_vm1, %v8403_v63  ;;  %v1429_v8 = vsel %vm1142_vm1, %v8407_v3, 0  ;;  %v1098_v11 = vmul.f32 0.17677669, %v736_v4  ;;  %v747_v27 = vadd.f32 %v7158_v57, %v8338_v55 }
 0x112   : > { %v738_v0 = vpop.f32.mrf.mxu0  ;;  %7242 = vmatpush3.bf16.xpose.msra.mxu1 %v1288_v2  ;;  %7243 = vmatprep.mubr.msk.bf16.mxu1 %vm8118_vm0, %v10483_v48 }
 0x113   : > { %v739_v5 = vadd.f32 %v8338_v55, %v738_v0  ;;  %7253 = vmatprep.subr.bf16.mxu1 %v10483_v48  ;;  %7250 = vmatmul.mubr.msk.bf16.vlgmr.msra.gmra.mxu0 %vm1142_vm1, %v8405_v1  ;;  %v1101_v31 = vmul.f32 0.17677669, %v747_v27 }
 0x114   : > { %7260 = vmatpush3.bf16.xpose.msra.mxu0 %v1429_v8  ;;  %7261 = vmatprep.mubr.msk.bf16.mxu0 %vm8118_vm0, %v10483_v48  ;;  %v7209_v55 = vpop.f32.mrf.mxu0 }
 0x115   : > { %v1099_v13 = vmul.f32 0.17677669, %v739_v5  ;;  %7271 = vmatprep.subr.bf16.mxu0 %v10483_v48  ;;  %v8463_v32 = vpack.c.bf16 %v1101_v31, %v1100_v29  ;;  %v1032_v35 = vadd.f32 %v7209_v55, %v6692_v33 }
 0x116   : > { %v1023_v34 = vpop.f32.mrf.mxu0 }
 0x117   : > { %v8434_v20 = vpack.c.bf16 %v1099_v13, %v1098_v11  ;;  %v1024_v44 = vadd.f32 %v6692_v33, %v1023_v34 }
 0x118   : > { %v7210_v38 = vpop.f32.mrf.mxu0 }
 0x119   : > { %7244 = vmatmul.mubr.msk.bf16.vlgmr.msra.gmra.mxu1 %vm1142_vm1, %v8429_v15  ;;  %v1035_v39 = vadd.f32 %v7210_v38, %v6692_v33 }
 0x11a   : > { %7254 = vmatpush3.bf16.xpose.msra.mxu1 %v1382_v23  ;;  %7255 = vmatprep.mubr.msk.bf16.mxu1 %vm8118_vm0, %v10483_v48  ;;  %v1026_v40 = vpop.f32.mrf.mxu0 }
 0x11b   : > { %7265 = vmatprep.subr.bf16.mxu1 %v10483_v48  ;;  %7262 = vmatmul.mubr.msk.bf16.vlgmr.msra.gmra.mxu0 %vm1142_vm1, %v8434_v20  ;;  %v8472_v41 = vpack.c.bf16 %v1035_v39, %v1032_v35  ;;  %v1027_v46 = vadd.f32 %v6692_v33, %v1026_v40 }
 0x11c   : > { %7273 = vmatprep.mubr.msk.bf16.mxu0 %vm8118_vm0, %v10483_v48  ;;  %v7213_v42 = vpop.f32.mrf.mxu0 }
 0x11d   : > { %10502 = vst [vmem:[#allocation2_spill] sm:$0xff] %v8472_v41  ;;  %v8476_v49 = vpack.c.bf16 %v1027_v46, %v1024_v44  ;;  %v1048_v50 = vadd.f32 %v7213_v42, %v6692_v33 }
 0x11e   : > { %v1039_v43 = vpop.f32.mrf.mxu0 }
 0x11f   : > { %10503 = vst [vmem:[#allocation3_spill] sm:$0xff] %v8476_v49  ;;  %7272 = vmatpush3.bf16.msra.mxu0 %v8476_v49  ;;  %v1040_v52 = vadd.f32 %v6692_v33, %v1039_v43 }
 0x120   : > { %v7214_v45 = vpop.f32.mrf.mxu0  ;;  %7283 = vmatprep.subr.bf16.mxu0 %v10483_v48 }
 0x121   : > { %7256 = vmatmul.mubr.msk.bf16.vlgmr.msra.gmra.mxu1 %vm1142_vm1, %v8451_v25  ;;  %v1051_v56 = vadd.f32 %v7214_v45, %v6692_v33 }
 0x122   : > { %7266 = vmatpush3.bf16.xpose.msra.mxu1 %v1476_v28  ;;  %7267 = vmatprep.mubr.msk.bf16.mxu1 %vm8118_vm0, %v10483_v48  ;;  %v1042_v47 = vpop.f32.mrf.mxu0 }
 0x123   : > { %7277 = vmatprep.subr.bf16.mxu1 %v10483_v48  ;;  %v1043_v59 = vadd.f32 %v6692_v33, %v1042_v47  ;;  %v8480_v60 = vpack.c.bf16 %v1051_v56, %v1048_v50 }
 0x124   : > { %v7217_v51 = vpop.f32.mrf.mxu0 }
 0x125   : > { %10504 = vst [vmem:[#allocation4_spill] sm:$0xff] %v8480_v60  ;;  %v8482_v0 = vpack.c.bf16 %v1043_v59, %v1040_v52  ;;  %v1064_v4 = vadd.f32 %v7217_v51, %v6692_v33 }
 0x126   : > { %v1055_v53 = vpop.f32.mrf.mxu0 }
 0x127   : > { %10505 = vst [vmem:[#allocation5_spill] sm:$0xff] %v8482_v0  ;;  %v1056_v6 = vadd.f32 %v6692_v33, %v1055_v53 }
 0x128   : > { %v7218_v57 = vpop.f32.mrf.mxu0 }
 0x129   : > { %7268 = vmatmul.mubr.msk.bf16.vlgmr.msra.gmra.mxu1 %vm1142_vm1, %v8463_v32  ;;  %v1067_v7 = vadd.f32 %v7218_v57, %v6692_v33 }
 0x12a   : > { %7279 = vmatprep.mubr.msk.bf16.mxu1 %vm8118_vm0, %v10483_v48  ;;  %7278 = vmatpush3.bf16.msra.mxu1 %v8472_v41  ;;  %v1058_v61 = vpop.f32.mrf.mxu0 }
 0x12b   : > { %7289 = vmatprep.subr.bf16.mxu1 %v10483_v48  ;;  %v1059_v8 = vadd.f32 %v6692_v33, %v1058_v61  ;;  %v8484_v9 = vpack.c.bf16 %v1067_v7, %v1064_v4 }
 0x12c   : > { %v7221_v5 = vpop.f32.mrf.mxu0 }
 0x12d   : > { %10506 = vst [vmem:[#allocation6_spill] sm:$0xff] %v8484_v9  ;;  %v8486_v10 = vpack.c.bf16 %v1059_v8, %v1056_v6  ;;  %v1080_v11 = vadd.f32 %v7221_v5, %v6692_v33 }
 0x12e   : > { %v1071_v2 = vpop.f32.mrf.mxu0 }
 0x12f   : > { %10507 = vst [vmem:[#allocation7_spill] sm:$0xff] %v8486_v10  ;;  %v1072_v16 = vadd.f32 %v6692_v33, %v1071_v2 }
 0x130   : > { %v7222_v13 = vpop.f32.mrf.mxu0 }
 0x131   : > { %v1083_v18 = vadd.f32 %v7222_v13, %v6692_v33 }
 0x132   : > { %v1074_v21 = vpop.f32.mrf.mxu0 }
 0x133   : > { %v1075_v22 = vadd.f32 %v6692_v33, %v1074_v21  ;;  %v8488_v23 = vpack.c.bf16 %v1083_v18, %v1080_v11 }
 0x135   : > { %v8490_v24 = vpack.c.bf16 %v1075_v22, %v1072_v16 }
 0x1c1   : > { %v8492_v19 = vpop.f32.mrf.mxu1 }
 0x1c2   : > { %v1520_v26 = vsel %vm1519_vm2, %v8492_v19, -inf }
 0x1c3   : > { %1521 = vmax.xlane.f32.xlu0 %v1520_v26  ;;  %v7227_v27 = vpop.f32.mrf.mxu1 }
 0x1c5   : > { %v8496_v28 = vpop.f32.mrf.mxu1 }
 0x1c6   : > { %v1523_v29 = vsel %vm1519_vm2, %v8496_v28, -inf }
 0x1c7   : > { %1524 = vmax.xlane.f32.xlu0 %v1523_v29  ;;  %v7228_v31 = vpop.f32.mrf.mxu1 }
 0x1c9   : > { %v8500_v55 = vpop.f32.mrf.mxu1 }
 0x1ca   : > { %v1526_v33 = vsel %vm1519_vm2, %v8500_v55, -inf }
 0x1cb   : > { %1527 = vmax.xlane.f32.xlu1 %v1526_v33  ;;  %v7233_v34 = vpop.f32.mrf.mxu1 }
 0x1cd   : > { %v8504_v35 = vpop.f32.mrf.mxu1 }
 0x1ce   : > { %v1529_v38 = vsel %vm1519_vm2, %v8504_v35, -inf }
 0x1cf   : > { %1530 = vmax.xlane.f32.xlu1 %v1529_v38  ;;  %v7234_v39 = vpop.f32.mrf.mxu1 }
 0x1d1   : > { %v8508_v40 = vpop.f32.mrf.mxu1 }
 0x1d2   : > { %v1532_v42 = vsel %vm1519_vm2, %v8508_v40, -inf }
 0x1d3   : > { %1533 = vmax.xlane.f32.xlu0 %v1532_v42  ;;  %v7239_v43 = vpop.f32.mrf.mxu1  ;;  %v8512_v44 = vpop.f32.mrf.mxu0 }
 0x1d4   : > { %v1544_v5 = vsel %vm1519_vm2, %v8512_v44, -inf }
 0x1d5   : > { %v8514_v45 = vpop.f32.mrf.mxu1  ;;  %v7251_v46 = vpop.f32.mrf.mxu0 }
 0x1d6   : > { %v1535_v47 = vsel %vm1519_vm2, %v8514_v45, -inf }
 0x1d7   : > { %1536 = vmax.xlane.f32.xlu1 %v1535_v47  ;;  %v7240_v50 = vpop.f32.mrf.mxu1  ;;  %v8518_v51 = vpop.f32.mrf.mxu0 }
 0x1d8   : > { %v1547_v13 = vsel %vm1519_vm2, %v8518_v51, -inf }
 0x1d9   : > { %v8520_v52 = vpop.f32.mrf.mxu1  ;;  %v7252_v53 = vpop.f32.mrf.mxu0 }
 0x1da   : > { %v1538_v56 = vsel %vm1519_vm2, %v8520_v52, -inf }
 0x1db   : > { %1539 = vmax.xlane.f32.xlu0 %v1538_v56  ;;  %v7245_v57 = vpop.f32.mrf.mxu1  ;;  %v8524_v59 = vpop.f32.mrf.mxu0 }
 0x1dc   : > { %v1556_v22 = vsel %vm1519_vm2, %v8524_v59, -inf }
 0x1dd   : > { %v8526_v61 = vpop.f32.mrf.mxu1  ;;  %v7263_v4 = vpop.f32.mrf.mxu0 }
 0x1de   : > { %v1541_v6 = vsel %vm1519_vm2, %v8526_v61, -inf }
 0x1df   : > { %1545 = vmax.xlane.f32.xlu0 %v1544_v5  ;;  %1542 = vmax.xlane.f32.xlu1 %v1541_v6  ;;  %v7246_v7 = vpop.f32.mrf.mxu1  ;;  %v8532_v2 = vpop.f32.mrf.mxu0 }
 0x1e0   : > { %v1559_v31 = vsel %vm1519_vm2, %v8532_v2, -inf }
 0x1e1   : > { %v8534_v8 = vpop.f32.mrf.mxu1  ;;  %v7264_v11 = vpop.f32.mrf.mxu0 }
 0x1e2   : > { %v1550_v16 = vsel %vm1519_vm2, %v8534_v8, -inf }
 0x1e3   : > { %1548 = vmax.xlane.f32.xlu1 %v1547_v13  ;;  %1551 = vmax.xlane.f32.xlu0 %v1550_v16  ;;  %v7257_v18 = vpop.f32.mrf.mxu1 }
 0x1e5   : > { %v8540_v21 = vpop.f32.mrf.mxu1 }
 0x1e6   : > { %v1553_v26 = vsel %vm1519_vm2, %v8540_v21, -inf }
 0x1e7   : > { %1557 = vmax.xlane.f32.xlu0 %v1556_v22  ;;  %1554 = vmax.xlane.f32.xlu1 %v1553_v26  ;;  %v7258_v27 = vpop.f32.mrf.mxu1 }
 0x1e9   : > { %v8546_v29 = vpop.f32.mrf.mxu1 }
 0x1ea   : > { %v1562_v33 = vsel %vm1519_vm2, %v8546_v29, -inf }
 0x1eb   : > { %1560 = vmax.xlane.f32.xlu1 %v1559_v31  ;;  %1563 = vmax.xlane.f32.xlu0 %v1562_v33  ;;  %v7269_v34 = vpop.f32.mrf.mxu1 }
 0x1ed   : > { %v8552_v38 = vpop.f32.mrf.mxu1 }
 0x1ee   : > { %v1565_v39 = vsel %vm1519_vm2, %v8552_v38, -inf }
 0x1ef   : > { %1566 = vmax.xlane.f32.xlu1 %v1565_v39  ;;  %v7270_v42 = vpop.f32.mrf.mxu1 }
 0x24c   : > { %v1522_v43 = vpop.xlane.xlu0 %1521 }
 0x24d   : > { %v1568_v46 = vsub.f32 %v8492_v19, %v1522_v43 }
 0x24f   : > { %v1584_v47 = vmul.f32 1.442695, %v1568_v46 }
 0x250   : > { %v1525_v50 = vpop.xlane.xlu0 %1524 }
 0x251   : > { %7773 = vpow2.f32 %v1584_v47  ;;  %v1569_v53 = vsub.f32 %v8496_v28, %v1525_v50 }
 0x253   : > { %v1586_v56 = vmul.f32 1.442695, %v1569_v53 }
 0x254   : > { %v1528_v57 = vpop.xlane.xlu1 %1527 }
 0x255   : > { %7775 = vpow2.f32 %v1586_v56  ;;  %v1570_v4 = vsub.f32 %v8500_v55, %v1528_v57 }
 0x257   : > { %v1588_v5 = vmul.f32 1.442695, %v1570_v4 }
 0x258   : > { %v1531_v6 = vpop.xlane.xlu1 %1530 }
 0x259   : > { %7777 = vpow2.f32 %v1588_v5  ;;  %v1571_v7 = vsub.f32 %v8504_v35, %v1531_v6 }
 0x25b   : > { %v1590_v11 = vmul.f32 1.442695, %v1571_v7 }
 0x25c   : > { %v1534_v13 = vpop.xlane.xlu0 %1533 }
 0x25d   : > { %7779 = vpow2.f32 %v1590_v11  ;;  %v1572_v19 = vsub.f32 %v8508_v40, %v1534_v13 }
 0x25e   : > { %v8561_v16 = vpop.eup %7773 }
 0x25f   : > { %v1592_v18 = vmul.f32 1.442695, %v1572_v19  ;;  %v1616_v28 = vsel %vm1519_vm2, %v8561_v16, 0.0 }
 0x260   : > { %v1537_v22 = vpop.xlane.xlu1 %1536  ;;  %1617 = vadd.xlane.f32.xlu0 %v1616_v28 }
 0x261   : > { %7781 = vpow2.f32 %v1592_v18  ;;  %v1573_v55 = vsub.f32 %v8514_v45, %v1537_v22 }
 0x262   : > { %v8566_v26 = vpop.eup %7775 }
 0x263   : > { %v1594_v27 = vmul.f32 1.442695, %v1573_v55  ;;  %v1619_v35 = vsel %vm1519_vm2, %v8566_v26, 0.0 }
 0x264   : > { %v1540_v31 = vpop.xlane.xlu0 %1539  ;;  %1620 = vadd.xlane.f32.xlu1 %v1619_v35 }
 0x265   : > { %7783 = vpow2.f32 %v1594_v27  ;;  %v1574_v40 = vsub.f32 %v8520_v52, %v1540_v31 }
 0x266   : > { %v8571_v33 = vpop.eup %7777 }
 0x267   : > { %v1596_v34 = vmul.f32 1.442695, %v1574_v40  ;;  %v1622_v39 = vsel %vm1519_vm2, %v8571_v33, 0.0 }
 0x268   : > { %v1546_v42 = vpop.xlane.xlu0 %1545  ;;  %v1543_v43 = vpop.xlane.xlu1 %1542  ;;  %1623 = vadd.xlane.f32.xlu0 %v1622_v39 }
 0x269   : > { %7785 = vpow2.f32 %v1596_v34  ;;  %v1576_v45 = vsub.f32 %v8512_v44, %v1546_v42  ;;  %v1575_v47 = vsub.f32 %v8526_v61, %v1543_v43 }
 0x26a   : > { %v8576_v46 = vpop.eup %7779 }
 0x26b   : > { %v1600_v50 = vmul.f32 1.442695, %v1576_v45  ;;  %v1625_v52 = vsel %vm1519_vm2, %v8576_v46, 0.0  ;;  %v1598_v6 = vmul.f32 1.442695, %v1575_v47 }
 0x26c   : > { %v1549_v53 = vpop.xlane.xlu1 %1548  ;;  %v1552_v56 = vpop.xlane.xlu0 %1551  ;;  %1626 = vadd.xlane.f32.xlu1 %v1625_v52 }
 0x26d   : > { %7787 = vpow2.f32 %v1600_v50  ;;  %v1577_v57 = vsub.f32 %v8518_v51, %v1549_v53  ;;  %v1578_v4 = vsub.f32 %v8534_v8, %v1552_v56 }
 0x26e   : > { %v8583_v5 = vpop.eup %7781 }
 0x26f   : > { %v1602_v44 = vmul.f32 1.442695, %v1577_v57  ;;  %v1604_v7 = vmul.f32 1.442695, %v1578_v4  ;;  %v1628_v61 = vsel %vm1519_vm2, %v8583_v5, 0.0 }
 0x270   : > { %v1558_v11 = vpop.xlane.xlu0 %1557  ;;  %v1555_v13 = vpop.xlane.xlu1 %1554  ;;  %1629 = vadd.xlane.f32.xlu0 %v1628_v61 }
 0x271   : > { %7789 = vpow2.f32 %v1602_v44  ;;  %v1580_v19 = vsub.f32 %v8524_v59, %v1558_v11  ;;  %v1579_v51 = vsub.f32 %v8540_v21, %v1555_v13 }
 0x272   : > { %v8588_v18 = vpop.eup %7783  ;;  %7791 = vpow2.f32 %v1604_v7 }
 0x273   : > { %7793 = vpow2.f32 %v1598_v6  ;;  %v1608_v8 = vmul.f32 1.442695, %v1580_v19  ;;  %v1631_v28 = vsel %vm1519_vm2, %v8588_v18, 0.0  ;;  %v1606_v59 = vmul.f32 1.442695, %v1579_v51 }
 0x274   : > { %v1561_v22 = vpop.xlane.xlu1 %1560  ;;  %v1564_v55 = vpop.xlane.xlu0 %1563  ;;  %1632 = vadd.xlane.f32.xlu1 %v1631_v28 }
 0x275   : > { %7795 = vpow2.f32 %v1608_v8  ;;  %v1581_v27 = vsub.f32 %v8532_v2, %v1561_v22  ;;  %v1582_v35 = vsub.f32 %v8546_v29, %v1564_v55 }
 0x276   : > { %v8595_v31 = vpop.eup %7785 }
 0x277   : > { %v1610_v40 = vmul.f32 1.442695, %v1581_v27  ;;  %v1612_v34 = vmul.f32 1.442695, %v1582_v35  ;;  %v1634_v21 = vsel %vm1519_vm2, %v8595_v31, 0.0 }
 0x278   : > { %1635 = vadd.xlane.f32.xlu0 %v1634_v21  ;;  %v1567_v61 = vpop.xlane.xlu1 %1566 }
 0x279   : > { %7797 = vpow2.f32 %v1610_v40  ;;  %v1583_v11 = vsub.f32 %v8552_v38, %v1567_v61 }
 0x27a   : > { %v8599_v39 = vpop.eup %7787  ;;  %7799 = vpow2.f32 %v1612_v34 }
 0x27b   : > { %7801 = vpow2.f32 %v1606_v59  ;;  %v1640_v42 = vsel %vm1519_vm2, %v8599_v39, 0.0  ;;  %v1614_v13 = vmul.f32 1.442695, %v1583_v11 }
 0x27c   : > { %1641 = vadd.xlane.f32.xlu0 %v1640_v42 }
 0x27d   : > { %7803 = vpow2.f32 %v1614_v13 }
 0x27e   : > { %v8603_v2 = vpop.eup %7789 }
 0x27f   : > { %v8605_v29 = vpop.eup %7791  ;;  %v1643_v43 = vsel %vm1519_vm2, %v8603_v2, 0.0 }
 0x280   : > { %v8609_v45 = vpop.eup %7793  ;;  %v1646_v47 = vsel %vm1519_vm2, %v8605_v29, 0.0  ;;  %1644 = vadd.xlane.f32.xlu1 %v1643_v43 }
 0x281   : > { %1647 = vadd.xlane.f32.xlu0 %v1646_v47  ;;  %v1637_v53 = vsel %vm1519_vm2, %v8609_v45, 0.0 }
 0x282   : > { %v8613_v50 = vpop.eup %7795 }
 0x283   : > { %v1652_v52 = vsel %vm1519_vm2, %v8613_v50, 0.0 }
 0x284   : > { %1638 = vadd.xlane.f32.xlu1 %v1637_v53 }
 0x285   : > { %1653 = vadd.xlane.f32.xlu0 %v1652_v52 }
 0x286   : > { %v8619_v56 = vpop.eup %7797 }
 0x287   : > { %v8621_v57 = vpop.eup %7799  ;;  %v1655_v4 = vsel %vm1519_vm2, %v8619_v56, 0.0 }
 0x288   : > { %v8625_v6 = vpop.eup %7801  ;;  %v1658_v44 = vsel %vm1519_vm2, %v8621_v57, 0.0  ;;  %1656 = vadd.xlane.f32.xlu1 %v1655_v4 }
 0x289   : > { %1659 = vadd.xlane.f32.xlu0 %v1658_v44  ;;  %v1649_v7 = vsel %vm1519_vm2, %v8625_v6, 0.0 }
 0x28a   : > { %v8650_v19 = vpop.eup %7803 }
 0x28b   : > { %v1661_v51 = vsel %vm1519_vm2, %v8650_v19, 0.0 }
 0x28c   : > { %1650 = vadd.xlane.f32.xlu1 %v1649_v7 }
 0x29d   : > { %2121 = vrot.lane.b32.xlu1 %v8353_v12, %s8119_s1 }
 0x29f   : > { %2068 = vrot.lane.b32.xlu0 %v8342_v62, %s8119_s1 }
 0x2a1   : > { %2065 = vrot.lane.b32.xlu1 %v8357_v17, %s8119_s1 }
 0x2a3   : > { %2118 = vrot.lane.b32.xlu0 %v8376_v36, %s8119_s1 }
 0x2a7   : > { %2171 = vrot.lane.b32.xlu0 %v8403_v63, %s8119_s1 }
 0x2ab   : > { %2224 = vrot.lane.b32.xlu0 %v8429_v15, %s8119_s1 }
 0x2af   : > { %2277 = vrot.lane.b32.xlu0 %v8405_v1, %s8119_s1 }
 0x2b3   : > { %2330 = vrot.lane.b32.xlu0 %v8451_v25, %s8119_s1 }
 0x2b7   : > { %2383 = vrot.lane.b32.xlu0 %v8434_v20, %s8119_s1 }
 0x2c5   : > { %1662 = vadd.xlane.f32.xlu1 %v1661_v51 }
 0x2d6   : > { %2174 = vrot.lane.b32.xlu1 %v8371_v30, %s8119_s1 }
 0x2da   : > { %2227 = vrot.lane.b32.xlu1 %v8397_v58, %s8119_s1 }
 0x2de   : > { %2280 = vrot.lane.b32.xlu1 %v8378_v37, %s8119_s1 }
 0x2e2   : > { %2333 = vrot.lane.b32.xlu1 %v8426_v14, %s8119_s1 }
 0x2e6   : > { %2386 = vrot.lane.b32.xlu1 %v8407_v3, %s8119_s1 }
 0x2e9   : > { %v1618_v38 = vpop.xlane.xlu0 %1617 }
 0x2ea   : > { %2439 = vrot.lane.b32.xlu1 %v8449_v54, %s8119_s1  ;;  %7805 = vrcp.f32 %v1618_v38 }
 0x2ed   : > { %v1621_v8 = vpop.xlane.xlu1 %1620 }
 0x2ee   : > { %7807 = vrcp.f32 %v1621_v8  ;;  %2436 = vrot.lane.b32.xlu1 %v8463_v32, %s8119_s1 }
 0x2f1   : > { %v1624_v28 = vpop.xlane.xlu0 %1623 }
 0x2f2   : > { %7809 = vrcp.f32 %v1624_v28 }
 0x2f5   : > { %v1627_v22 = vpop.xlane.xlu1 %1626 }
 0x2f6   : > { %7811 = vrcp.f32 %v1627_v22 }
 0x2f7   : > { %v7806_v55 = vpop.eup %7805 }
 0x2f8   : > { %v1680_v59 = vmul.f32 %v7806_v55, %v8561_v16 }
 0x2f9   : > { %v1630_v27 = vpop.xlane.xlu0 %1629 }
 0x2fa   : > { %7813 = vrcp.f32 %v1630_v27 }
 0x2fb   : > { %v7808_v35 = vpop.eup %7807 }
 0x2fc   : > { %v1681_v40 = vmul.f32 %v7808_v35, %v8566_v26 }
 0x2fd   : > { %v1633_v34 = vpop.xlane.xlu1 %1632 }
 0x2fe   : > { %7815 = vrcp.f32 %v1633_v34  ;;  %v1696_v21 = vpack.c.bf16 %v1681_v40, %v1680_v59 }
 0x2ff   : > { %v7810_v42 = vpop.eup %7809 }
 0x300   : > { %7274 = vmatmul.mubr.msk.bf16.vlgmr.msra.gmra.mxu0 %vm1519_vm2, %v1696_v21  ;;  %v1682_v52 = vmul.f32 %v7810_v42, %v8571_v33 }
 0x301   : > { %7284 = vmatpush3.bf16.msra.mxu0 %v8482_v0  ;;  %v1636_v43 = vpop.xlane.xlu0 %1635  ;;  %7285 = vmatprep.mubr.msk.bf16.mxu0 %vm8118_vm0, %v10483_v48 }
 0x302   : > { %7295 = vmatprep.subr.bf16.mxu0 %v10483_v48 }
 0x303   : > { %v7812_v47 = vpop.eup %7811 }
 0x304   : > { %v1683_v16 = vmul.f32 %v7812_v47, %v8576_v46 }
 0x305   : > { %v1642_v26 = vpop.xlane.xlu0 %1641 }
 0x306   : > { %v1697_v53 = vpack.c.bf16 %v1683_v16, %v1682_v52  ;;  %7817 = vrcp.f32 %v1642_v26 }
 0x307   : > { %v7814_v4 = vpop.eup %7813 }
 0x308   : > { %7280 = vmatmul.mubr.msk.bf16.vlgmr.msra.gmra.mxu1 %vm1519_vm2, %v1697_v53  ;;  %v1684_v33 = vmul.f32 %v7814_v4, %v8583_v5 }
 0x309   : > { %7290 = vmatpush3.bf16.msra.mxu1 %v8480_v60  ;;  %v1645_v44 = vpop.xlane.xlu1 %1644  ;;  %7291 = vmatprep.mubr.msk.bf16.mxu1 %vm8118_vm0, %v10483_v48 }
 0x30a   : > { %v1648_v7 = vpop.xlane.xlu0 %1647  ;;  %7819 = vrcp.f32 %v1645_v44  ;;  %7301 = vmatprep.subr.bf16.mxu1 %v10483_v48 }
 0x30b   : > { %v7816_v61 = vpop.eup %7815  ;;  %7821 = vrcp.f32 %v1636_v43 }
 0x30c   : > { %v1685_v46 = vmul.f32 %v7816_v61, %v8588_v18 }
 0x30d   : > { %v1639_v11 = vpop.xlane.xlu1 %1638 }
 0x30e   : > { %v1654_v13 = vpop.xlane.xlu0 %1653  ;;  %7823 = vrcp.f32 %v1639_v11  ;;  %v1698_v51 = vpack.c.bf16 %v1685_v46, %v1684_v33 }
 0x30f   : > { %7825 = vrcp.f32 %v1654_v13 }
 0x310   : > { %7286 = vmatmul.mubr.msk.bf16.vlgmr.msra.gmra.mxu0 %vm1519_vm2, %v1698_v51 }
 0x311   : > { %7296 = vmatpush3.bf16.msra.mxu0 %v8486_v10  ;;  %v1657_v38 = vpop.xlane.xlu1 %1656  ;;  %7297 = vmatprep.mubr.msk.bf16.mxu0 %vm8118_vm0, %v10483_v48 }
 0x312   : > { %7827 = vrcp.f32 %v1657_v38  ;;  %7307 = vmatprep.subr.bf16.mxu0 %v10483_v48  ;;  %v1660_v59 = vpop.xlane.xlu0 %1659 }
 0x313   : > { %7829 = vrcp.f32 %v1648_v7  ;;  %v7818_v5 = vpop.eup %7817 }
 0x314   : > { %v1688_v28 = vmul.f32 %v7818_v5, %v8599_v39 }
 0x315   : > { %v1651_v8 = vpop.xlane.xlu1 %1650 }
 0x316   : > { %7831 = vrcp.f32 %v1651_v8 }
 0x317   : > { %v7820_v18 = vpop.eup %7819  ;;  %7833 = vrcp.f32 %v1660_v59 }
 0x318   : > { %v1689_v22 = vmul.f32 %v7820_v18, %v8603_v2  ;;  %v7822_v55 = vpop.eup %7821 }
 0x319   : > { %v1686_v40 = vmul.f32 %v7822_v55, %v8595_v31  ;;  %v2069_v31 = vpop.permute.xlu0 %2068 }
 0x31a   : > { %v1700_v27 = vpack.c.bf16 %v1689_v22, %v1688_v28  ;;  %v2074_v16 = vsel %vm1142_vm1, %v2069_v31, 0 }
 0x31b   : > { %v7824_v35 = vpop.eup %7823 }
 0x31c   : > { %7298 = vmatmul.mubr.msk.bf16.vlgmr.msra.gmra.mxu0 %vm1519_vm2, %v1700_v27  ;;  %v1687_v34 = vmul.f32 %v7824_v35, %v8609_v45  ;;  %v7826_v21 = vpop.eup %7825 }
 0x31d   : > { %7308 = vmatpush3.bf16.msra.mxu0 %v8490_v24  ;;  %7309 = vmatprep.mubr.msk.bf16.mxu0 %vm8118_vm0, %v10483_v48  ;;  %v1692_v2 = vmul.f32 %v7826_v21, %v8613_v50 }
 0x31e   : > { %v1699_v42 = vpack.c.bf16 %v1687_v34, %v1686_v40  ;;  %7319 = vmatprep.subr.bf16.mxu0 %v10483_v48 }
 0x31f   : > { %v7828_v39 = vpop.eup %7827 }
 0x320   : > { %7292 = vmatmul.mubr.msk.bf16.vlgmr.msra.gmra.mxu1 %vm1519_vm2, %v1699_v42  ;;  %v1693_v43 = vmul.f32 %v7828_v39, %v8619_v56  ;;  %v7830_v47 = vpop.eup %7829  ;;  %v2122_v56 = vpop.permute.xlu1 %2121 }
 0x321   : > { %7302 = vmatpush3.bf16.msra.mxu1 %v8484_v9  ;;  %7303 = vmatprep.mubr.msk.bf16.mxu1 %vm8118_vm0, %v10483_v48  ;;  %v1690_v26 = vmul.f32 %v7830_v47, %v8605_v29  ;;  %v2127_v55 = vsel %vm1142_vm1, %v2122_v56, 0 }
 0x322   : > { %v1702_v45 = vpack.c.bf16 %v1693_v43, %v1692_v2  ;;  %7313 = vmatprep.subr.bf16.mxu1 %v10483_v48 }
 0x323   : > { %v7832_v52 = vpop.eup %7831 }
 0x324   : > { %7310 = vmatmul.mubr.msk.bf16.vlgmr.msra.gmra.mxu0 %vm1519_vm2, %v1702_v45  ;;  %v1691_v50 = vmul.f32 %v7832_v52, %v8625_v6  ;;  %v2066_v29 = vpop.permute.xlu1 %2065  ;;  %v2119_v6 = vpop.permute.xlu0 %2118 }
 0x325   : > { %7320 = vmatpush3.bf16.xpose.msra.mxu0 %v2074_v16  ;;  %7321 = vmatprep.mubr.msk.bf16.mxu0 %vm8118_vm0, %v10483_v48  ;;  %v7834_v11 = vpop.eup %7833 }
 0x326   : > { %v1701_v53 = vpack.c.bf16 %v1691_v50, %v1690_v26  ;;  %7331 = vmatprep.subr.bf16.mxu0 %v10483_v48  ;;  %v1694_v5 = vmul.f32 %v7834_v11, %v8621_v57 }
 0x328   : > { %7304 = vmatmul.mubr.msk.bf16.vlgmr.msra.gmra.mxu1 %vm1519_vm2, %v1701_v53  ;;  %v2172_v44 = vpop.permute.xlu0 %2171 }
 0x329   : > { %7314 = vmatpush3.bf16.msra.mxu1 %v8488_v23  ;;  %7315 = vmatprep.mubr.msk.bf16.mxu1 %vm8118_vm0, %v10483_v48 }
 0x32a   : > { %7325 = vmatprep.subr.bf16.mxu1 %v10483_v48 }
 0x32c   : > { %7322 = vmatmul.mubr.msk.bf16.vlgmr.msra.gmra.mxu0 %vm1142_vm1, %v2066_v29  ;;  %v2225_v46 = vpop.permute.xlu0 %2224 }
 0x32d   : > { %7333 = vmatprep.mubr.msk.bf16.mxu0 %vm8118_vm0, %v10483_v48 }
 0x330   : > { %v2278_v18 = vpop.permute.xlu0 %2277 }
 0x334   : > { %v2331_v57 = vpop.permute.xlu0 %2330 }
 0x338   : > { %v2384_v59 = vpop.permute.xlu0 %2383 }
 0x34e   : > { %v1663_v4 = vpop.xlane.xlu1 %1662 }
 0x34f   : > { %7835 = vrcp.f32 %v1663_v4 }
 0x352   : > { %v2175_v7 = vpop.permute.xlu1 %2174 }
 0x353   : > { %v2180_v61 = vsel %vm1142_vm1, %v2175_v7, 0 }
 0x354   : > { %7332 = vmatpush3.bf16.xpose.msra.mxu0 %v2180_v61 }
 0x355   : > { %7343 = vmatprep.subr.bf16.mxu0 %v10483_v48 }
 0x356   : > { %v2228_v33 = vpop.permute.xlu1 %2227 }
 0x35a   : > { %v2281_v13 = vpop.permute.xlu1 %2280 }
 0x35b   : > { %v2286_v51 = vsel %vm1142_vm1, %v2281_v13, 0  ;;  %7334 = vmatmul.mubr.msk.bf16.vlgmr.msra.gmra.mxu0 %vm1142_vm1, %v2172_v44 }
 0x35c   : > { %v7836_v38 = vpop.eup %7835  ;;  %7344 = vmatpush3.bf16.xpose.msra.mxu0 %v2286_v51  ;;  %7345 = vmatprep.mubr.msk.bf16.mxu0 %vm8118_vm0, %v10483_v48 }
 0x35d   : > { %v1695_v8 = vmul.f32 %v7836_v38, %v8650_v19  ;;  %7355 = vmatprep.subr.bf16.mxu0 %v10483_v48  ;;  %v2233_v19 = vsel %vm1142_vm1, %v2228_v33, 0 }
 0x35e   : > { %v2334_v28 = vpop.permute.xlu1 %2333 }
 0x35f   : > { %v1703_v22 = vpack.c.bf16 %v1695_v8, %v1694_v5  ;;  %v2339_v40 = vsel %vm1142_vm1, %v2334_v28, 0 }
 0x361   : > { %7316 = vmatmul.mubr.msk.bf16.vlgmr.msra.gmra.mxu1 %vm1519_vm2, %v1703_v22 }
 0x362   : > { %7326 = vmatpush3.bf16.xpose.msra.mxu1 %v2127_v55  ;;  %v2387_v27 = vpop.permute.xlu1 %2386  ;;  %7327 = vmatprep.mubr.msk.bf16.mxu1 %vm8118_vm0, %v10483_v48 }
 0x363   : > { %v2392_v35 = vsel %vm1142_vm1, %v2387_v27, 0  ;;  %7346 = vmatmul.mubr.msk.bf16.vlgmr.msra.gmra.mxu0 %vm1142_vm1, %v2278_v18  ;;  %7337 = vmatprep.subr.bf16.mxu1 %v10483_v48 }
 0x364   : > { %7356 = vmatpush3.bf16.xpose.msra.mxu0 %v2392_v35  ;;  %7357 = vmatprep.mubr.msk.bf16.mxu0 %vm8118_vm0, %v10483_v48 }
 0x365   : > { %7367 = vmatprep.subr.bf16.mxu0 %v10483_v48 }
 0x366   : > { %v2440_v34 = vpop.permute.xlu1 %2439 }
 0x367   : > { %v2445_v21 = vsel %vm1142_vm1, %v2440_v34, 0 }
 0x369   : > { %7328 = vmatmul.mubr.msk.bf16.vlgmr.msra.gmra.mxu1 %vm1142_vm1, %v2119_v6 }
 0x36a   : > { %7338 = vmatpush3.bf16.xpose.msra.mxu1 %v2233_v19  ;;  %7339 = vmatprep.mubr.msk.bf16.mxu1 %vm8118_vm0, %v10483_v48  ;;  %v2437_v42 = vpop.permute.xlu1 %2436 }
 0x36b   : > { %7358 = vmatmul.mubr.msk.bf16.vlgmr.msra.gmra.mxu0 %vm1142_vm1, %v2384_v59  ;;  %7349 = vmatprep.subr.bf16.mxu1 %v10483_v48 }
 0x36c   : > { %7369 = vmatprep.mubr.msk.bf16.mxu0 %vm8118_vm0, %v10483_v48 }
 0x371   : > { %7340 = vmatmul.mubr.msk.bf16.vlgmr.msra.gmra.mxu1 %vm1142_vm1, %v2225_v46 }
 0x372   : > { %7350 = vmatpush3.bf16.xpose.msra.mxu1 %v2339_v40  ;;  %7351 = vmatprep.mubr.msk.bf16.mxu1 %vm8118_vm0, %v10483_v48 }
 0x373   : > { %7361 = vmatprep.subr.bf16.mxu1 %v10483_v48 }
 0x379   : > { %7352 = vmatmul.mubr.msk.bf16.vlgmr.msra.gmra.mxu1 %vm1142_vm1, %v2331_v57 }
 0x37a   : > { %7362 = vmatpush3.bf16.xpose.msra.mxu1 %v2445_v21  ;;  %7363 = vmatprep.mubr.msk.bf16.mxu1 %vm8118_vm0, %v10483_v48 }
 0x37b   : > { %7373 = vmatprep.subr.bf16.mxu1 %v10483_v48 }
 0x381   : > { %7364 = vmatmul.mubr.msk.bf16.vlgmr.msra.gmra.mxu1 %vm1142_vm1, %v2437_v42 }
 0x382   : > { %7375 = vmatprep.mubr.msk.bf16.mxu1 %vm8118_vm0, %v10483_v48 }
 0x3c0   : > { %v8760_v39 = vpop.f32.mrf.mxu0 }
 0x3c2   : > { %v7275_v2 = vpop.f32.mrf.mxu0 }
 0x3c4   : > { %v8762_v43 = vpop.f32.mrf.mxu0 }
 0x3c6   : > { %v7276_v31 = vpop.f32.mrf.mxu0 }
 0x3c8   : > { %v8766_v45 = vpop.f32.mrf.mxu1 }
 0x3ca   : > { %v7281_v52 = vpop.f32.mrf.mxu1 }
 0x3cc   : > { %v8768_v16 = vpop.f32.mrf.mxu1 }
 0x3ce   : > { %v7282_v50 = vpop.f32.mrf.mxu1 }
 0x3d0   : > { %v8772_v56 = vpop.f32.mrf.mxu0 }
 0x3d2   : > { %v7287_v53 = vpop.f32.mrf.mxu0 }
 0x3d4   : > { %v8774_v29 = vpop.f32.mrf.mxu0 }
 0x3d6   : > { %v7288_v4 = vpop.f32.mrf.mxu0 }
 0x3dc   : > { %v8778_v44 = vpop.f32.mrf.mxu0 }
 0x3de   : > { %v7299_v7 = vpop.f32.mrf.mxu0 }
 0x3e0   : > { %v8780_v61 = vpop.f32.mrf.mxu1  ;;  %v8782_v33 = vpop.f32.mrf.mxu0 }
 0x3e2   : > { %v7293_v11 = vpop.f32.mrf.mxu1  ;;  %v7300_v13 = vpop.f32.mrf.mxu0 }
 0x3e4   : > { %v8786_v51 = vpop.f32.mrf.mxu1  ;;  %v8788_v38 = vpop.f32.mrf.mxu0 }
 0x3e6   : > { %v7294_v8 = vpop.f32.mrf.mxu1  ;;  %v7311_v18 = vpop.f32.mrf.mxu0 }
 0x3e8   : > { %v8792_v28 = vpop.f32.mrf.mxu1  ;;  %v8794_v22 = vpop.f32.mrf.mxu0 }
 0x3ea   : > { %v7305_v27 = vpop.f32.mrf.mxu1  ;;  %v7312_v35 = vpop.f32.mrf.mxu0 }
 0x3ec   : > { %v8798_v57 = vpop.f32.mrf.mxu1  ;;  %v8800_v19 = vpop.f32.mrf.mxu0 }
 0x3ed   : > { %v2488_v40 = vsel %vm1519_vm2, %v8800_v19, -inf }
 0x3ee   : > { %2489 = vmax.xlane.f32.xlu0 %v2488_v40  ;;  %v7306_v34 = vpop.f32.mrf.mxu1  ;;  %v7323_v21 = vpop.f32.mrf.mxu0 }
 0x3f0   : > { %v8806_v42 = vpop.f32.mrf.mxu0 }
 0x3f1   : > { %v2491_v2 = vsel %vm1519_vm2, %v8806_v42, -inf }
 0x3f2   : > { %2492 = vmax.xlane.f32.xlu1 %v2491_v2  ;;  %v7324_v31 = vpop.f32.mrf.mxu0 }
 0x41b   : > { %v8810_v52 = vpop.f32.mrf.mxu0 }
 0x41c   : > { %v2500_v59 = vsel %vm1519_vm2, %v8810_v52, -inf }
 0x41d   : > { %v7335_v50 = vpop.f32.mrf.mxu0 }
 0x41f   : > { %v8812_v53 = vpop.f32.mrf.mxu0 }
 0x420   : > { %v2503_v4 = vsel %vm1519_vm2, %v8812_v53, -inf }
 0x421   : > { %2504 = vmax.xlane.f32.xlu1 %v2503_v4  ;;  %v8816_v7 = vpop.f32.mrf.mxu1  ;;  %v7336_v11 = vpop.f32.mrf.mxu0 }
 0x422   : > { %10508 = vst [vmem:[#allocation8_spill] sm:$0xff] %v8816_v7 }
 0x423   : > { %v7317_v13 = vpop.f32.mrf.mxu1  ;;  %v8818_v8 = vpop.f32.mrf.mxu0 }
 0x425   : > { %v8820_v18 = vpop.f32.mrf.mxu1  ;;  %v7347_v27 = vpop.f32.mrf.mxu0 }
 0x427   : > { %v7318_v40 = vpop.f32.mrf.mxu1  ;;  %v8824_v34 = vpop.f32.mrf.mxu0 }
 0x429   : > { %v8826_v21 = vpop.f32.mrf.mxu1  ;;  %v7348_v2 = vpop.f32.mrf.mxu0 }
 0x42a   : > { %v2494_v31 = vsel %vm1519_vm2, %v8826_v21, -inf }
 0x42b   : > { %v8830_v50 = vpop.f32.mrf.mxu0  ;;  %2495 = vmax.xlane.f32.xlu0 %v2494_v31  ;;  %v7329_v4 = vpop.f32.mrf.mxu1 }
 0x42c   : > { %v2524_v26 = vsel %vm1519_vm2, %v8830_v50, -inf }
 0x42d   : > { %v8832_v11 = vpop.f32.mrf.mxu1  ;;  %v7359_v13 = vpop.f32.mrf.mxu0 }
 0x42e   : > { %v2497_v27 = vsel %vm1519_vm2, %v8832_v11, -inf }
 0x42f   : > { %v8836_v35 = vpop.f32.mrf.mxu0  ;;  %2498 = vmax.xlane.f32.xlu0 %v2497_v27  ;;  %v7330_v40 = vpop.f32.mrf.mxu1 }
 0x431   : > { %v8838_v55 = vpop.f32.mrf.mxu1  ;;  %v7360_v2 = vpop.f32.mrf.mxu0 }
 0x432   : > { %v2506_v4 = vsel %vm1519_vm2, %v8838_v55, -inf  ;;  %v2512_v2 = vsel %vm1519_vm2, %v8818_v8, -inf }
 0x433   : > { %2501 = vmax.xlane.f32.xlu0 %v2500_v59  ;;  %v7341_v46 = vpop.f32.mrf.mxu1  ;;  %v2515_v59 = vsel %vm1519_vm2, %v8824_v34, -inf }
 0x435   : > { %v8842_v31 = vpop.f32.mrf.mxu1 }
 0x436   : > { %v2509_v13 = vsel %vm1519_vm2, %v8842_v31, -inf }
 0x437   : > { %2507 = vmax.xlane.f32.xlu0 %v2506_v4  ;;  %2510 = vmax.xlane.f32.xlu1 %v2509_v13  ;;  %v7342_v27 = vpop.f32.mrf.mxu1 }
 0x439   : > { %v8848_v40 = vpop.f32.mrf.mxu1 }
 0x43a   : > { %v2518_v6 = vsel %vm1519_vm2, %v8848_v40, -inf }
 0x43b   : > { %2513 = vmax.xlane.f32.xlu0 %v2512_v2  ;;  %2516 = vmax.xlane.f32.xlu1 %v2515_v59  ;;  %v7353_v46 = vpop.f32.mrf.mxu1  ;;  %v2527_v2 = vsel %vm1519_vm2, %v8836_v35, -inf }
 0x43d   : > { %v8854_v5 = vpop.f32.mrf.mxu1 }
 0x43e   : > { %v2521_v4 = vsel %vm1519_vm2, %v8854_v5, -inf }
 0x43f   : > { %2519 = vmax.xlane.f32.xlu0 %v2518_v6  ;;  %2522 = vmax.xlane.f32.xlu1 %v2521_v4  ;;  %v7354_v13 = vpop.f32.mrf.mxu1 }
 0x441   : > { %v8860_v27 = vpop.f32.mrf.mxu1 }
 0x442   : > { %v2530_v47 = vsel %vm1519_vm2, %v8860_v27, -inf }
 0x443   : > { %2525 = vmax.xlane.f32.xlu0 %v2524_v26  ;;  %2528 = vmax.xlane.f32.xlu1 %v2527_v2  ;;  %v7365_v59 = vpop.f32.mrf.mxu1 }
 0x445   : > { %v8866_v46 = vpop.f32.mrf.mxu1 }
 0x446   : > { %v2533_v13 = vsel %vm1519_vm2, %v8866_v46, -inf }
 0x447   : > { %2531 = vmax.xlane.f32.xlu0 %v2530_v47  ;;  %v7366_v6 = vpop.f32.mrf.mxu1 }
 0x454   : > { %2721 = vrot.lane.b32.xlu1 %v8472_v41, %s8119_s1 }
 0x458   : > { %2769 = vrot.lane.b32.xlu1 %v8482_v0, %s8119_s1 }
 0x45c   : > { %2817 = vrot.lane.b32.xlu1 %v8480_v60, %s8119_s1 }
 0x45d   : > { %2673 = vrot.lane.b32.xlu0 %v8476_v49, %s8119_s1 }
 0x461   : > { %2865 = vrot.lane.b32.xlu0 %v8486_v10, %s8119_s1 }
 0x477   : > { %v2490_v26 = vpop.xlane.xlu0 %2489 }
 0x478   : > { %v2536_v4 = vsub.f32 %v8800_v19, %v2490_v26 }
 0x47a   : > { %v2552_v47 = vmul.f32 1.442695, %v2536_v4 }
 0x47b   : > { %v2493_v6 = vpop.xlane.xlu1 %2492 }
 0x47c   : > { %7837 = vpow2.f32 %v2552_v47  ;;  %v2537_v48 = vsub.f32 %v8806_v42, %v2493_v6 }
 0x47e   : > { %v2554_v10 = vmul.f32 1.442695, %v2537_v48 }
 0x480   : > { %2534 = vmax.xlane.f32.xlu1 %v2533_v13  ;;  %7839 = vpow2.f32 %v2554_v10 }
 0x489   : > { %v8883_v2 = vpop.eup %7837 }
 0x48a   : > { %v2584_v59 = vsel %vm1519_vm2, %v8883_v2, 0.0 }
 0x48b   : > { %2585 = vadd.xlane.f32.xlu0 %v2584_v59 }
 0x48d   : > { %v8890_v19 = vpop.eup %7839 }
 0x48e   : > { %v2587_v47 = vsel %vm1519_vm2, %v8890_v19, 0.0 }
 0x491   : > { %2913 = vrot.lane.b32.xlu1 %v8484_v9, %s8119_s1 }
 0x4aa   : > { %v2505_v26 = vpop.xlane.xlu1 %2504 }
 0x4ab   : > { %v2541_v59 = vsub.f32 %v8812_v53, %v2505_v26 }
 0x4ad   : > { %v2562_v42 = vmul.f32 1.442695, %v2541_v59 }
 0x4b4   : > { %v2496_v4 = vpop.xlane.xlu0 %2495 }
 0x4b5   : > { %v2538_v13 = vsub.f32 %v8826_v21, %v2496_v4  ;;  %2588 = vadd.xlane.f32.xlu1 %v2587_v47 }
 0x4b7   : > { %v2556_v60 = vmul.f32 1.442695, %v2538_v13 }
 0x4b8   : > { %v2499_v49 = vpop.xlane.xlu0 %2498 }
 0x4b9   : > { %7841 = vpow2.f32 %v2556_v60  ;;  %v2539_v9 = vsub.f32 %v8832_v11, %v2499_v49 }
 0x4bb   : > { %v2558_v48 = vmul.f32 1.442695, %v2539_v9 }
 0x4bc   : > { %v2502_v10 = vpop.xlane.xlu0 %2501 }
 0x4bd   : > { %7843 = vpow2.f32 %v2558_v48  ;;  %v2540_v6 = vsub.f32 %v8810_v52, %v2502_v10 }
 0x4be   : > { %7845 = vpow2.f32 %v2562_v42 }
 0x4bf   : > { %v2560_v0 = vmul.f32 1.442695, %v2540_v6 }
 0x4c0   : > { %v2508_v41 = vpop.xlane.xlu0 %2507  ;;  %v2511_v7 = vpop.xlane.xlu1 %2510 }
 0x4c1   : > { %7847 = vpow2.f32 %v2560_v0  ;;  %v2542_v21 = vsub.f32 %v8838_v55, %v2508_v41  ;;  %v2543_v53 = vsub.f32 %v8842_v31, %v2511_v7 }
 0x4c3   : > { %v2564_v26 = vmul.f32 1.442695, %v2542_v21  ;;  %v2566_v4 = vmul.f32 1.442695, %v2543_v53 }
 0x4c4   : > { %v2514_v60 = vpop.xlane.xlu0 %2513  ;;  %v2517_v47 = vpop.xlane.xlu1 %2516 }
 0x4c5   : > { %7849 = vpow2.f32 %v2564_v26  ;;  %v2544_v49 = vsub.f32 %v8818_v8, %v2514_v60  ;;  %v2545_v9 = vsub.f32 %v8824_v34, %v2517_v47 }
 0x4c6   : > { %v8902_v11 = vpop.eup %7841  ;;  %7851 = vpow2.f32 %v2566_v4 }
 0x4c7   : > { %v2568_v52 = vmul.f32 1.442695, %v2544_v49  ;;  %v2570_v13 = vmul.f32 1.442695, %v2545_v9  ;;  %v2590_v0 = vsel %vm1519_vm2, %v8902_v11, 0.0  ;;  %v10509_v9 = vmov 0.0  }
 0x4c8   : > { %v2520_v41 = vpop.xlane.xlu0 %2519  ;;  %v2523_v55 = vpop.xlane.xlu1 %2522  ;;  %2591 = vadd.xlane.f32.xlu0 %v2590_v0 }
 0x4c9   : > { %7853 = vpow2.f32 %v2568_v52  ;;  %v2546_v7 = vsub.f32 %v8848_v40, %v2520_v41  ;;  %v2547_v31 = vsub.f32 %v8854_v5, %v2523_v55 }
 0x4ca   : > { %v8908_v59 = vpop.eup %7843  ;;  %7855 = vpow2.f32 %v2570_v13 }
 0x4cb   : > { %v2572_v8 = vmul.f32 1.442695, %v2546_v7  ;;  %v2574_v34 = vmul.f32 1.442695, %v2547_v31  ;;  %v2593_v42 = vsel %vm1519_vm2, %v8908_v59, 0.0  ;;  %v8912_v48 = vpop.eup %7845 }
 0x4cc   : > { %v2526_v10 = vpop.xlane.xlu0 %2525  ;;  %v2529_v6 = vpop.xlane.xlu1 %2528  ;;  %2594 = vadd.xlane.f32.xlu1 %v2593_v42  ;;  %v2599_v60 = vsel %vm1519_vm2, %v8912_v48, 0.0 }
 0x4cd   : > { %7857 = vpow2.f32 %v2572_v8  ;;  %v2548_v21 = vsub.f32 %v8830_v50, %v2526_v10  ;;  %v2549_v40 = vsub.f32 %v8836_v35, %v2529_v6 }
 0x4ce   : > { %v8916_v53 = vpop.eup %7847  ;;  %7859 = vpow2.f32 %v2574_v34 }
 0x4cf   : > { %v2576_v5 = vmul.f32 1.442695, %v2548_v21  ;;  %v2578_v26 = vmul.f32 1.442695, %v2549_v40  ;;  %v2596_v4 = vsel %vm1519_vm2, %v8916_v53, 0.0 }
 0x4d0   : > { %v2722_v47 = vpop.permute.xlu1 %2721  ;;  %2597 = vadd.xlane.f32.xlu0 %v2596_v4  ;;  %v2532_v49 = vpop.xlane.xlu0 %2531  ;;  %2600 = vadd.xlane.f32.xlu1 %v2599_v60 }
 0x4d1   : > { %7861 = vpow2.f32 %v2576_v5  ;;  %v2550_v50 = vsub.f32 %v8860_v27, %v2532_v49  ;;  %7374 = vmatpush3.bf16.msra.mxu1 %v2722_v47 }
 0x4d2   : > { %v8923_v35 = vpop.eup %7849  ;;  %7863 = vpow2.f32 %v2578_v26  ;;  %7385 = vmatprep.subr.bf16.mxu1 %v10509_v9 }
 0x4d3   : > { %v8926_v52 = vpop.eup %7851  ;;  %v2580_v13 = vmul.f32 1.442695, %v2550_v50  ;;  %v2602_v0 = vsel %vm1519_vm2, %v8923_v35, 0.0 }
 0x4d4   : > { %2603 = vadd.xlane.f32.xlu0 %v2602_v0  ;;  %v2674_v41 = vpop.permute.xlu0 %2673  ;;  %v2605_v55 = vsel %vm1519_vm2, %v8926_v52, 0.0  ;;  %v2770_v47 = vpop.permute.xlu1 %2769 }
 0x4d5   : > { %7865 = vpow2.f32 %v2580_v13  ;;  %2606 = vadd.xlane.f32.xlu1 %v2605_v55  ;;  %7368 = vmatpush3.bf16.msra.mxu0 %v2674_v41 }
 0x4d6   : > { %v8932_v27 = vpop.eup %7853  ;;  %7379 = vmatprep.subr.bf16.mxu0 %v10509_v9 }
 0x4d7   : > { %v8935_v7 = vpop.eup %7855  ;;  %v2608_v31 = vsel %vm1519_vm2, %v8932_v27, 0.0 }
 0x4d8   : > { %2609 = vadd.xlane.f32.xlu0 %v2608_v31  ;;  %v2611_v8 = vsel %vm1519_vm2, %v8935_v7, 0.0  ;;  %v8967_v49 = vpop.permute.xlu1 %2817  ;;  %v8990_v55 = vpop.permute.xlu0 %2865 }
 0x4d9   : > { %2612 = vadd.xlane.f32.xlu1 %v2611_v8 }
 0x4da   : > { %v8941_v34 = vpop.eup %7857 }
 0x4db   : > { %v8943_v42 = vpop.eup %7859  ;;  %v2614_v10 = vsel %vm1519_vm2, %v8941_v34, 0.0 }
 0x4dc   : > { %2615 = vadd.xlane.f32.xlu0 %v2614_v10  ;;  %v2617_v6 = vsel %vm1519_vm2, %v8943_v42, 0.0 }
 0x4dd   : > { %2618 = vadd.xlane.f32.xlu1 %v2617_v6 }
 0x4de   : > { %v8949_v21 = vpop.eup %7861 }
 0x4df   : > { %v8951_v40 = vpop.eup %7863  ;;  %v2620_v5 = vsel %vm1519_vm2, %v8949_v21, 0.0 }
 0x4e0   : > { %2621 = vadd.xlane.f32.xlu0 %v2620_v5  ;;  %v2623_v26 = vsel %vm1519_vm2, %v8951_v40, 0.0 }
 0x4e1   : > { %2624 = vadd.xlane.f32.xlu1 %v2623_v26 }
 0x4e2   : > { %v8957_v4 = vpop.eup %7865 }
 0x4e3   : > { %v2626_v60 = vsel %vm1519_vm2, %v8957_v4, 0.0 }
 0x4e4   : > { %2627 = vadd.xlane.f32.xlu0 %v2626_v60 }
 0x4fa   : > { %2961 = vrot.lane.b32.xlu0 %v8490_v24, %s8119_s1 }
 0x4fe   : > { %3332 = vrot.lane.b32.xlu0 %v8342_v62, %s8120_s20 }
 0x502   : > { %3330 = vrot.lane.b32.xlu0 %v8357_v17, %s8120_s20 }
 0x506   : > { %3381 = vrot.lane.b32.xlu0 %v8376_v36, %s8120_s20 }
 0x509   : > { %v2535_v50 = vpop.xlane.xlu1 %2534 }
 0x50a   : > { %v2551_v13 = vsub.f32 %v8866_v46, %v2535_v50  ;;  %3432 = vrot.lane.b32.xlu0 %v8403_v63, %s8120_s20 }
 0x50c   : > { %v2582_v0 = vmul.f32 1.442695, %v2551_v13 }
 0x50d   : > { %v8994_v31 = vpop.permute.xlu1 %2913 }
 0x50e   : > { %7867 = vpow2.f32 %v2582_v0  ;;  %3483 = vrot.lane.b32.xlu0 %v8429_v15, %s8120_s20 }
 0x512   : > { %3534 = vrot.lane.b32.xlu0 %v8405_v1, %s8120_s20 }
 0x514   : > { %v2586_v8 = vpop.xlane.xlu0 %2585 }
 0x515   : > { %7869 = vrcp.f32 %v2586_v8 }
 0x516   : > { %3585 = vrot.lane.b32.xlu0 %v8451_v25, %s8120_s20 }
 0x51a   : > { %3636 = vrot.lane.b32.xlu0 %v8434_v20, %s8120_s20 }
 0x51b   : > { %v8982_v41 = vpop.eup %7867 }
 0x51c   : > { %v2629_v46 = vsel %vm1519_vm2, %v8982_v41, 0.0 }
 0x51d   : > { %2630 = vadd.xlane.f32.xlu1 %v2629_v46 }
 0x522   : > { %v7870_v6 = vpop.eup %7869 }
 0x523   : > { %v2648_v26 = vmul.f32 %v7870_v6, %v8883_v2 }
 0x52e   : > { %3009 = vrot.lane.b32.xlu1 %v8488_v23, %s8119_s1  ;;  %s8121_s1 = smov 32  }
 0x532   : > { %3383 = vrot.lane.b32.xlu1 %v8353_v12, %s8120_s20 }
 0x536   : > { %3434 = vrot.lane.b32.xlu1 %v8371_v30, %s8120_s20 }
 0x53a   : > { %3485 = vrot.lane.b32.xlu1 %v8397_v58, %s8120_s20 }
 0x53e   : > { %3536 = vrot.lane.b32.xlu1 %v8378_v37, %s8120_s20  ;;  %v2589_v10 = vpop.xlane.xlu1 %2588 }
 0x53f   : > { %7871 = vrcp.f32 %v2589_v10 }
 0x542   : > { %3587 = vrot.lane.b32.xlu1 %v8426_v14, %s8120_s20 }
 0x546   : > { %3638 = vrot.lane.b32.xlu1 %v8407_v3, %s8120_s20 }
 0x54a   : > { %3689 = vrot.lane.b32.xlu1 %v8449_v54, %s8120_s20 }
 0x54c   : > { %v7872_v5 = vpop.eup %7871 }
 0x54d   : > { %v2649_v60 = vmul.f32 %v7872_v5, %v8890_v19 }
 0x54e   : > { %3687 = vrot.lane.b32.xlu1 %v8463_v32, %s8120_s20 }
 0x54f   : > { %v2664_v50 = vpack.c.bf16 %v2649_v60, %v2648_v26 }
 0x551   : > { %v2592_v13 = vpop.xlane.xlu0 %2591  ;;  %7370 = vmatmul.mubr.msk.bf16.vlgmr.msra.gmra.mxu0 %vm1519_vm2, %v2664_v50 }
 0x552   : > { %7380 = vmatpush3.bf16.msra.mxu0 %v2770_v47  ;;  %7381 = vmatprep.mubr.msk.bf16.mxu0 %vm8118_vm0, %v10509_v9  ;;  %7873 = vrcp.f32 %v2592_v13 }
 0x553   : > { %7391 = vmatprep.subr.bf16.mxu0 %v10509_v9 }
 0x555   : > { %v2595_v0 = vpop.xlane.xlu1 %2594 }
 0x556   : > { %7875 = vrcp.f32 %v2595_v0 }
 0x559   : > { %v2598_v46 = vpop.xlane.xlu0 %2597  ;;  %v2601_v2 = vpop.xlane.xlu1 %2600 }
 0x55a   : > { %7877 = vrcp.f32 %v2598_v46 }
 0x55b   : > { %7879 = vrcp.f32 %v2601_v2 }
 0x55d   : > { %v2604_v19 = vpop.xlane.xlu0 %2603 }
 0x55e   : > { %7881 = vrcp.f32 %v2604_v19  ;;  %v2607_v8 = vpop.xlane.xlu1 %2606 }
 0x55f   : > { %7883 = vrcp.f32 %v2607_v8  ;;  %v7874_v10 = vpop.eup %7873 }
 0x560   : > { %v2650_v26 = vmul.f32 %v7874_v10, %v8902_v11 }
 0x561   : > { %v2610_v6 = vpop.xlane.xlu0 %2609 }
 0x562   : > { %7885 = vrcp.f32 %v2610_v6  ;;  %v2613_v47 = vpop.xlane.xlu1 %2612 }
 0x563   : > { %v7876_v5 = vpop.eup %7875  ;;  %7887 = vrcp.f32 %v2613_v47 }
 0x564   : > { %v2651_v60 = vmul.f32 %v7876_v5, %v8908_v59 }
 0x565   : > { %v2616_v50 = vpop.xlane.xlu0 %2615 }
 0x566   : > { %7889 = vrcp.f32 %v2616_v50  ;;  %v2619_v13 = vpop.xlane.xlu1 %2618  ;;  %v2665_v0 = vpack.c.bf16 %v2651_v60, %v2650_v26 }
 0x567   : > { %v7878_v46 = vpop.eup %7877  ;;  %7891 = vrcp.f32 %v2619_v13 }
 0x568   : > { %v7880_v2 = vpop.eup %7879  ;;  %7376 = vmatmul.mubr.msk.bf16.vlgmr.msra.gmra.mxu1 %vm1519_vm2, %v2665_v0  ;;  %v2652_v19 = vmul.f32 %v7878_v46, %v8916_v53 }
 0x569   : > { %7386 = vmatpush3.bf16.msra.mxu1 %v8967_v49  ;;  %v2622_v8 = vpop.xlane.xlu0 %2621  ;;  %v2653_v6 = vmul.f32 %v7880_v2, %v8912_v48  ;;  %7387 = vmatprep.mubr.msk.bf16.mxu1 %vm8118_vm0, %v10509_v9 }
 0x56a   : > { %7893 = vrcp.f32 %v2622_v8  ;;  %v2625_v11 = vpop.xlane.xlu1 %2624  ;;  %7397 = vmatprep.subr.bf16.mxu1 %v10509_v9 }
 0x56b   : > { %v7882_v59 = vpop.eup %7881  ;;  %7895 = vrcp.f32 %v2625_v11  ;;  %v2666_v10 = vpack.c.bf16 %v2653_v6, %v2652_v19  ;;  %v7728_v11 = vld [vmem:[%s10471_s7 + $0x10] sm:$0xff]  }
 0x56c   : > { %v7884_v47 = vpop.eup %7883  ;;  %v2654_v5 = vmul.f32 %v7882_v59, %v8923_v35 }
 0x56d   : > { %7382 = vmatmul.mubr.msk.bf16.vlgmr.msra.gmra.mxu0 %vm1519_vm2, %v2666_v10  ;;  %v2655_v53 = vmul.f32 %v7884_v47, %v8926_v52  ;;  %v2628_v49 = vpop.xlane.xlu0 %2627 }
 0x56e   : > { %7392 = vmatpush3.bf16.msra.mxu0 %v8990_v55  ;;  %7393 = vmatprep.mubr.msk.bf16.mxu0 %vm8118_vm0, %v10509_v9  ;;  %7897 = vrcp.f32 %v2628_v49  ;;  %v10510_v49 = vpack.c.bf16 %v8762_v43, %v8760_v39  ;;  %v10513_v39 = vpack.c.bf16 %v8786_v51, %v8780_v61  ;;  %v10514_v43 = vpack.c.bf16 %v8782_v33, %v8778_v44  ;;  %v10517_v44 = vld [vmem:[#allocation8_spill] sm:$0xff] }
 0x56f   : > { %v7886_v48 = vpop.eup %7885  ;;  %v2667_v26 = vpack.c.bf16 %v2655_v53, %v2654_v5  ;;  %7403 = vmatprep.subr.bf16.mxu0 %v10509_v9  ;;  %v10516_v61 = vpack.c.bf16 %v8794_v22, %v8788_v38  ;;  %v10518_v33 = vpack.c.bf16 %v8820_v18, %v10517_v44 }
 0x570   : > { %v7888_v60 = vpop.eup %7887  ;;  %v2656_v50 = vmul.f32 %v7886_v48, %v8932_v27  ;;  %v7726_v48 = vld [vmem:[%s10471_s7] sm:$0xff]  }
 0x571   : > { %7388 = vmatmul.mubr.msk.bf16.vlgmr.msra.gmra.mxu1 %vm1519_vm2, %v2667_v26  ;;  %v2657_v35 = vmul.f32 %v7888_v60, %v8935_v7  ;;  %v2962_v46 = vpop.permute.xlu0 %2961  ;;  %v10512_v60 = vpack.c.bf16 %v8774_v29, %v8772_v56  ;;  %v10515_v56 = vpack.c.bf16 %v8798_v57, %v8792_v28 }
 0x572   : > { %7398 = vmatpush3.bf16.msra.mxu1 %v8994_v31  ;;  %7399 = vmatprep.mubr.msk.bf16.mxu1 %vm8118_vm0, %v10509_v9 }
 0x573   : > { %v7890_v52 = vpop.eup %7889  ;;  %v2668_v55 = vpack.c.bf16 %v2657_v35, %v2656_v50  ;;  %7409 = vmatprep.subr.bf16.mxu1 %v10509_v9 }
 0x574   : > { %v7892_v13 = vpop.eup %7891  ;;  %v2658_v0 = vmul.f32 %v7890_v52, %v8941_v34 }
 0x575   : > { %7394 = vmatmul.mubr.msk.bf16.vlgmr.msra.gmra.mxu0 %vm1519_vm2, %v2668_v55  ;;  %v2659_v27 = vmul.f32 %v7892_v13, %v8943_v42  ;;  %v7727_v42 = vld [vmem:[%s10471_s7 + $0x18] sm:$0xff]  }
 0x576   : > { %7404 = vmatpush3.bf16.msra.mxu0 %v2962_v46  ;;  %7405 = vmatprep.mubr.msk.bf16.mxu0 %vm8118_vm0, %v10509_v9 }
 0x577   : > { %v7894_v7 = vpop.eup %7893  ;;  %v2669_v31 = vpack.c.bf16 %v2659_v27, %v2658_v0  ;;  %7415 = vmatprep.subr.bf16.mxu0 %v7727_v42 }
 0x578   : > { %v7896_v2 = vpop.eup %7895  ;;  %v2660_v19 = vmul.f32 %v7894_v7, %v8949_v21  ;;  %v7725_v21 = vld [vmem:[%s10471_s7 + $0x8] sm:$0xff]  }
 0x579   : > { %7400 = vmatmul.mubr.msk.bf16.vlgmr.msra.gmra.mxu1 %vm1519_vm2, %v2669_v31  ;;  %v2661_v8 = vmul.f32 %v7896_v2, %v8951_v40 }
 0x57a   : > { %7411 = vmatprep.mubr.msk.bf16.mxu1 %vm8118_vm0, %v10509_v9 }
 0x57b   : > { %v2670_v34 = vpack.c.bf16 %v2661_v8, %v2660_v19  ;;  %v7898_v59 = vpop.eup %7897 }
 0x57c   : > { %v2662_v47 = vmul.f32 %v7898_v59, %v8957_v4 }
 0x57d   : > { %7406 = vmatmul.mubr.msk.bf16.vlgmr.msra.gmra.mxu0 %vm1519_vm2, %v2670_v34 }
 0x57e   : > { %7416 = vmatpush3.bf16.msra.mxu0 %v7727_v42 }
 0x57f   : > { %7417 = vmatprep.subr.bf16.mxu0 %v7728_v11 }
 0x582   : > { %7418 = vmatpush3.bf16.msra.mxu0 %v7728_v11 }
 0x583   : > { %7455 = vmatprep.subr.bf16.mxu0 %v10509_v9 }
 0x5a6   : > { %v2631_v6 = vpop.xlane.xlu1 %2630 }
 0x5a7   : > { %7899 = vrcp.f32 %v2631_v6 }
 0x5aa   : > { %v3010_v40 = vpop.permute.xlu1 %3009 }
 0x5ab   : > { %7410 = vmatpush3.bf16.msra.mxu1 %v3010_v40 }
 0x5ac   : > { %7435 = vmatprep.subr.bf16.mxu1 %v7725_v21 }
 0x5ae   : > { %v3384_v26 = vpop.permute.xlu1 %3383 }
 0x5af   : > { %v3389_v4 = vsel %vm1142_vm1, %v3384_v26, 0 }
 0x5b4   : > { %v7900_v10 = vpop.eup %7899 }
 0x5b5   : > { %v2663_v5 = vmul.f32 %v7900_v10, %v8982_v41  ;;  %v10511_v41 = vpack.c.bf16 %v8768_v16, %v8766_v45  ;;  %v3333_v45 = vpop.permute.xlu0 %3332  ;;  %v9087_v16 = vpop.permute.xlu1 %3434 }
 0x5b6   : > { %v3338_v59 = vsel %vm1142_vm1, %v3333_v45, 0 }
 0x5b7   : > { %v2671_v53 = vpack.c.bf16 %v2663_v5, %v2662_v47 }
 0x5b9   : > { %7412 = vmatmul.mubr.msk.bf16.vlgmr.msra.gmra.mxu1 %vm1519_vm2, %v2671_v53  ;;  %v9093_v29 = vpop.permute.xlu0 %3330  ;;  %v3486_v51 = vpop.permute.xlu1 %3485 }
 0x5ba   : > { %7436 = vmatpush3.bf16.msra.mxu1 %v7725_v21  ;;  %7439 = vmatprep.mubr.msk.bf16.mxu1 %vm1142_vm1, %v10510_v49  ;;  %v3491_v35 = vsel %vm1142_vm1, %v3486_v51, 0 }
 0x5bb   : > { %7437 = vmatprep.subr.bf16.mxu1 %v7726_v48 }
 0x5bd   : > { %v3382_v50 = vpop.permute.xlu0 %3381  ;;  %v9105_v28 = vpop.permute.xlu1 %3536 }
 0x5be   : > { %7438 = vmatpush3.bf16.msra.mxu1 %v7726_v48 }
 0x5bf   : > { %7461 = vmatprep.subr.bf16.mxu1 %v10509_v9 }
 0x5c1   : > { %7440 = vmatmul.mubr.msk.bf16.vlgmr.msra.gmra.mxu1 %vm1142_vm1, %v10511_v41  ;;  %v9107_v57 = vpop.permute.xlu0 %3432  ;;  %v3588_v38 = vpop.permute.xlu1 %3587 }
 0x5c2   : > { %7462 = vmatpush3.bf16.xpose.msra.mxu1 %v3389_v4  ;;  %7443 = vmatprep.mubr.msk.bf16.mxu1 %vm1142_vm1, %v10512_v60  ;;  %v3593_v52 = vsel %vm1142_vm1, %v3588_v38, 0 }
 0x5c3   : > { %7473 = vmatprep.subr.bf16.mxu1 %v10509_v9 }
 0x5c5   : > { %v3484_v22 = vpop.permute.xlu0 %3483  ;;  %v9114_v18 = vpop.permute.xlu1 %3638 }
 0x5c9   : > { %7444 = vmatmul.mubr.msk.bf16.gmra.mxu1 %vm1142_vm1, %v10513_v39  ;;  %v9118_v55 = vpop.permute.xlu0 %3534  ;;  %v3690_v13 = vpop.permute.xlu1 %3689 }
 0x5ca   : > { %7447 = vmatprep.mubr.msk.bf16.mxu1 %vm1142_vm1, %v10514_v43  ;;  %v3695_v46 = vsel %vm1142_vm1, %v3690_v13, 0 }
 0x5cd   : > { %v3586_v0 = vpop.permute.xlu0 %3585  ;;  %v3688_v27 = vpop.permute.xlu1 %3687 }
 0x5d1   : > { %7448 = vmatmul.mubr.msk.bf16.gmra.mxu1 %vm1142_vm1, %v10515_v56 }
 0x5d2   : > { %7451 = vmatprep.mubr.msk.bf16.mxu1 %vm1142_vm1, %v10516_v61 }
 0x5d9   : > { %7452 = vmatmul.mubr.msk.bf16.gmra.mxu1 %vm1142_vm1, %v10518_v33 }
 0x5da   : > { %7463 = vmatprep.mubr.msk.bf16.mxu1 %vm8118_vm0, %v10509_v9 }
 0x5e1   : > { %7464 = vmatmul.mubr.msk.bf16.vlgmr.msra.gmra.mxu1 %vm1142_vm1, %v3382_v50 }
 0x5e2   : > { %7474 = vmatpush3.bf16.xpose.msra.mxu1 %v3491_v35  ;;  %7475 = vmatprep.mubr.msk.bf16.mxu1 %vm8118_vm0, %v10509_v9 }
 0x5e3   : > { %7485 = vmatprep.subr.bf16.mxu1 %v10509_v9 }
 0x5e9   : > { %7476 = vmatmul.mubr.msk.bf16.vlgmr.msra.gmra.mxu1 %vm1142_vm1, %v3484_v22 }
 0x5ea   : > { %7486 = vmatpush3.bf16.xpose.msra.mxu1 %v3593_v52  ;;  %7487 = vmatprep.mubr.msk.bf16.mxu1 %vm8118_vm0, %v10509_v9 }
 0x5eb   : > { %7497 = vmatprep.subr.bf16.mxu1 %v10509_v9 }
 0x5f1   : > { %7488 = vmatmul.mubr.msk.bf16.vlgmr.msra.gmra.mxu1 %vm1142_vm1, %v3586_v0 }
 0x5f2   : > { %7498 = vmatpush3.bf16.xpose.msra.mxu1 %v3695_v46  ;;  %7499 = vmatprep.mubr.msk.bf16.mxu1 %vm8118_vm0, %v10509_v9 }
 0x5f3   : > { %7509 = vmatprep.subr.bf16.mxu1 %v10509_v9 }
 0x5f9   : > { %7500 = vmatmul.mubr.msk.bf16.vlgmr.msra.gmra.mxu1 %vm1142_vm1, %v3688_v27 }
 0x5fa   : > { %7511 = vmatprep.mubr.msk.bf16.mxu1 %vm8118_vm0, %v10509_v9 }
 0x611   : > { %v2713_v7 = vpop.f32.mrf.mxu0 }
 0x613   : > { %v7371_v31 = vpop.f32.mrf.mxu0 }
 0x615   : > { %v2716_v2 = vpop.f32.mrf.mxu0 }
 0x616   : > { %v3056_v19 = vpack.c.bf16 %v2716_v2, %v2713_v7 }
 0x617   : > { %v7372_v8 = vpop.f32.mrf.mxu0 }
 0x618   : > { %7419 = vmatprep.mubr.msk.bf16.mxu0 %vm1142_vm1, %v3056_v19 }
 0x628   : > { %v2761_v34 = vpop.f32.mrf.mxu1 }
 0x62a   : > { %v7377_v42 = vpop.f32.mrf.mxu1 }
 0x62b   : > { %v3440_v42 = vsel %vm1142_vm1, %v9087_v16, 0  ;;  %v3542_v16 = vsel %vm1142_vm1, %v9105_v28, 0  ;;  %v3644_v28 = vsel %vm1142_vm1, %v9114_v18, 0 }
 0x62c   : > { %v2764_v6 = vpop.f32.mrf.mxu1 }
 0x62d   : > { %v3057_v21 = vpack.c.bf16 %v2764_v6, %v2761_v34  ;;  %v2809_v40 = vpop.f32.mrf.mxu0 }
 0x62e   : > { %v7378_v11 = vpop.f32.mrf.mxu1 }
 0x62f   : > { %v7383_v10 = vpop.f32.mrf.mxu0  ;;  %7420 = vmatmul.mubr.msk.bf16.vlgmr.msra.gmra.mxu0 %vm1142_vm1, %v3057_v21 }
 0x630   : > { %7456 = vmatpush3.bf16.xpose.msra.mxu0 %v3338_v59 }
 0x631   : > { %v2812_v47 = vpop.f32.mrf.mxu0  ;;  %v2857_v5 = vpop.f32.mrf.mxu1  ;;  %7467 = vmatprep.subr.bf16.mxu0 %v10509_v9 }
 0x632   : > { %v3058_v53 = vpack.c.bf16 %v2812_v47, %v2809_v40 }
 0x633   : > { %v7384_v48 = vpop.f32.mrf.mxu0  ;;  %v7389_v49 = vpop.f32.mrf.mxu1 }
 0x634   : > { %7423 = vmatprep.mubr.msk.bf16.mxu0 %vm1142_vm1, %v3058_v53  ;;  %v3637_v48 = vpop.permute.xlu0 %3636 }
 0x635   : > { %v2860_v26 = vpop.f32.mrf.mxu1  ;;  %v2905_v4 = vpop.f32.mrf.mxu0 }
 0x636   : > { %v3059_v41 = vpack.c.bf16 %v2860_v26, %v2857_v5 }
 0x637   : > { %v7390_v60 = vpop.f32.mrf.mxu1  ;;  %v7395_v39 = vpop.f32.mrf.mxu0 }
 0x638   : > { %7424 = vmatmul.mubr.msk.bf16.gmra.mxu0 %vm1142_vm1, %v3059_v41 }
 0x639   : > { %v2908_v43 = vpop.f32.mrf.mxu0  ;;  %v2953_v45 = vpop.f32.mrf.mxu1 }
 0x63a   : > { %v3060_v56 = vpack.c.bf16 %v2908_v43, %v2905_v4 }
 0x63b   : > { %v7396_v61 = vpop.f32.mrf.mxu0  ;;  %v7401_v51 = vpop.f32.mrf.mxu1 }
 0x63c   : > { %7427 = vmatprep.mubr.msk.bf16.mxu0 %vm1142_vm1, %v3060_v56 }
 0x63d   : > { %v2956_v50 = vpop.f32.mrf.mxu1  ;;  %v3001_v44 = vpop.f32.mrf.mxu0 }
 0x63e   : > { %v3061_v33 = vpack.c.bf16 %v2956_v50, %v2953_v45 }
 0x63f   : > { %v7402_v35 = vpop.f32.mrf.mxu1  ;;  %v7407_v38 = vpop.f32.mrf.mxu0 }
 0x640   : > { %7428 = vmatmul.mubr.msk.bf16.gmra.mxu0 %vm1142_vm1, %v3061_v33 }
 0x641   : > { %v3004_v22 = vpop.f32.mrf.mxu0 }
 0x642   : > { %v3062_v52 = vpack.c.bf16 %v3004_v22, %v3001_v44 }
 0x643   : > { %v7408_v13 = vpop.f32.mrf.mxu0 }
 0x644   : > { %7431 = vmatprep.mubr.msk.bf16.mxu0 %vm1142_vm1, %v3062_v52 }
 0x679   : > { %v3049_v0 = vpop.f32.mrf.mxu1 }
 0x67b   : > { %v7413_v46 = vpop.f32.mrf.mxu1 }
 0x67d   : > { %v3052_v27 = vpop.f32.mrf.mxu1 }
 0x67e   : > { %v3063_v7 = vpack.c.bf16 %v3052_v27, %v3049_v0 }
 0x67f   : > { %v7414_v31 = vpop.f32.mrf.mxu1 }
 0x680   : > { %7432 = vmatmul.mubr.msk.bf16.gmra.mxu0 %vm1142_vm1, %v3063_v7 }
 0x681   : > { %v9141_v2 = vpop.f32.mrf.mxu1  ;;  %7457 = vmatprep.mubr.msk.bf16.mxu0 %vm8118_vm0, %v10509_v9 }
 0x683   : > { %v9145_v19 = vpop.f32.mrf.mxu1 }
 0x685   : > { %v9147_v8 = vpop.f32.mrf.mxu1 }
 0x687   : > { %v9149_v34 = vpop.f32.mrf.mxu1 }
 0x688   : > { %10519 = vst [vmem:[#allocation8_spill] sm:$0xff] %v9149_v34  ;;  %7458 = vmatmul.mubr.msk.bf16.vlgmr.msra.gmra.mxu0 %vm1142_vm1, %v9093_v29 }
 0x689   : > { %7468 = vmatpush3.bf16.xpose.msra.mxu0 %v3440_v42  ;;  %v9155_v6 = vpop.f32.mrf.mxu1  ;;  %7469 = vmatprep.mubr.msk.bf16.mxu0 %vm8118_vm0, %v10509_v9 }
 0x68a   : > { %7479 = vmatprep.subr.bf16.mxu0 %v10509_v9 }
 0x68b   : > { %v9160_v21 = vpop.f32.mrf.mxu1 }
 0x68d   : > { %v9162_v40 = vpop.f32.mrf.mxu1 }
 0x68e   : > { %10520 = vst [vmem:[#allocation9_spill] sm:$0xff] %v9162_v40 }
 0x68f   : > { %v9164_v11 = vpop.f32.mrf.mxu1 }
 0x690   : > { %10521 = vst [vmem:[#allocation10_spill] sm:$0xff] %v9164_v11  ;;  %7470 = vmatmul.mubr.msk.bf16.vlgmr.msra.gmra.mxu0 %vm1142_vm1, %v9107_v57 }
 0x691   : > { %7480 = vmatpush3.bf16.xpose.msra.mxu0 %v3542_v16  ;;  %v9170_v29 = vpop.f32.mrf.mxu1  ;;  %7481 = vmatprep.mubr.msk.bf16.mxu0 %vm8118_vm0, %v10509_v9 }
 0x692   : > { %10522 = vst [vmem:[#allocation11_spill] sm:$0xff] %v9170_v29  ;;  %7491 = vmatprep.subr.bf16.mxu0 %v10509_v9 }
 0x693   : > { %v9175_v59 = vpop.f32.mrf.mxu1 }
 0x694   : > { %10523 = vst [vmem:[#allocation12_spill] sm:$0xff] %v9175_v59 }
 0x695   : > { %v9177_v10 = vpop.f32.mrf.mxu1 }
 0x696   : > { %10524 = vst [vmem:[#allocation13_spill] sm:$0xff] %v9177_v10 }
 0x697   : > { %v9179_v47 = vpop.f32.mrf.mxu1 }
 0x698   : > { %10525 = vst [vmem:[#allocation14_spill] sm:$0xff] %v9179_v47  ;;  %7482 = vmatmul.mubr.msk.bf16.vlgmr.msra.gmra.mxu0 %vm1142_vm1, %v9118_v55 }
 0x699   : > { %7492 = vmatpush3.bf16.xpose.msra.mxu0 %v3644_v28  ;;  %v9185_v57 = vpop.f32.mrf.mxu1  ;;  %7493 = vmatprep.mubr.msk.bf16.mxu0 %vm8118_vm0, %v10509_v9 }
 0x69a   : > { %10526 = vst [vmem:[#allocation15_spill] sm:$0xff] %v9185_v57  ;;  %7503 = vmatprep.subr.bf16.mxu0 %v10509_v9 }
 0x69b   : > { %v9190_v5 = vpop.f32.mrf.mxu1 }
 0x69c   : > { %10527 = vst [vmem:[#allocation16_spill] sm:$0xff] %v9190_v5  ;;  %v10541_v5 = vld [vmem:[#allocation2_spill] sm:$0xff] }
 0x69d   : > { %v9192_v53 = vpop.f32.mrf.mxu1 }
 0x69e   : > { %10528 = vst [vmem:[#allocation17_spill] sm:$0xff] %v9192_v53 }
 0x69f   : > { %v9194_v49 = vpop.f32.mrf.mxu1 }
 0x6a0   : > { %10529 = vst [vmem:[#allocation18_spill] sm:$0xff] %v9194_v49  ;;  %7494 = vmatmul.mubr.msk.bf16.vlgmr.msra.gmra.mxu0 %vm1142_vm1, %v3637_v48 }
 0x6a1   : > { %v3425_v18 = vpop.f32.mrf.mxu1  ;;  %7505 = vmatprep.mubr.msk.bf16.mxu0 %vm8118_vm0, %v10509_v9 }
 0x6a2   : > { %v3744_v55 = vsel %vm1519_vm2, %v3425_v18, -inf }
 0x6a3   : > { %3745 = vmax.xlane.f32.xlu0 %v3744_v55  ;;  %v7465_v26 = vpop.f32.mrf.mxu1 }
 0x6a5   : > { %v3428_v4 = vpop.f32.mrf.mxu1 }
 0x6a6   : > { %v3747_v41 = vsel %vm1519_vm2, %v3428_v4, -inf }
 0x6a7   : > { %3748 = vmax.xlane.f32.xlu0 %v3747_v41  ;;  %v7466_v60 = vpop.f32.mrf.mxu1 }
 0x6a9   : > { %v3527_v39 = vpop.f32.mrf.mxu1 }
 0x6aa   : > { %v3756_v43 = vsel %vm1519_vm2, %v3527_v39, -inf }
 0x6ab   : > { %3757 = vmax.xlane.f32.xlu0 %v3756_v43  ;;  %v7477_v45 = vpop.f32.mrf.mxu1 }
 0x6ad   : > { %v3530_v56 = vpop.f32.mrf.mxu1 }
 0x6ae   : > { %v3759_v61 = vsel %vm1519_vm2, %v3530_v56, -inf }
 0x6af   : > { %3760 = vmax.xlane.f32.xlu1 %v3759_v61  ;;  %v7478_v51 = vpop.f32.mrf.mxu1 }
 0x6b1   : > { %v3629_v50 = vpop.f32.mrf.mxu1 }
 0x6b2   : > { %v3768_v44 = vsel %vm1519_vm2, %v3629_v50, -inf }
 0x6b3   : > { %3769 = vmax.xlane.f32.xlu0 %v3768_v44  ;;  %v7489_v33 = vpop.f32.mrf.mxu1 }
 0x6b5   : > { %v3632_v35 = vpop.f32.mrf.mxu1 }
 0x6b6   : > { %v3771_v38 = vsel %vm1519_vm2, %v3632_v35, -inf }
 0x6b7   : > { %3772 = vmax.xlane.f32.xlu1 %v3771_v38  ;;  %v7490_v22 = vpop.f32.mrf.mxu1 }
 0x6b9   : > { %v3731_v52 = vpop.f32.mrf.mxu1 }
 0x6ba   : > { %v3780_v13 = vsel %vm1519_vm2, %v3731_v52, -inf }
 0x6bb   : > { %3781 = vmax.xlane.f32.xlu0 %v3780_v13  ;;  %v7501_v0 = vpop.f32.mrf.mxu1 }
 0x6bd   : > { %v3734_v46 = vpop.f32.mrf.mxu1 }
 0x6be   : > { %v3783_v27 = vsel %vm1519_vm2, %v3734_v46, -inf }
 0x6bf   : > { %3784 = vmax.xlane.f32.xlu1 %v3783_v27  ;;  %v7502_v7 = vpop.f32.mrf.mxu1 }
 0x6ef   : > { %v9207_v31 = vpop.f32.mrf.mxu0 }
 0x6f1   : > { %v9209_v42 = vpop.f32.mrf.mxu0 }
 0x6f3   : > { %v9211_v16 = vpop.f32.mrf.mxu0 }
 0x6f5   : > { %v9213_v28 = vpop.f32.mrf.mxu0 }
 0x6f6   : > { %10530 = vst [vmem:[#allocation19_spill] sm:$0xff] %v9213_v28 }
 0x6f8   : > { %v9215_v48 = vpop.f32.mrf.mxu0 }
 0x6fa   : > { %v9217_v55 = vpop.f32.mrf.mxu0 }
 0x6fc   : > { %v9219_v26 = vpop.f32.mrf.mxu0 }
 0x6fd   : > { %10531 = vst [vmem:[#allocation20_spill] sm:$0xff] %v9219_v26 }
 0x6fe   : > { %v9221_v43 = vpop.f32.mrf.mxu0 }
 0x6ff   : > { %10532 = vst [vmem:[#allocation21_spill] sm:$0xff] %v9221_v43 }
 0x700   : > { %v9223_v44 = vpop.f32.mrf.mxu0 }
 0x701   : > { %10533 = vst [vmem:[#allocation22_spill] sm:$0xff] %v9223_v44 }
 0x702   : > { %v9225_v13 = vpop.f32.mrf.mxu0 }
 0x703   : > { %10534 = vst [vmem:[#allocation23_spill] sm:$0xff] %v9225_v13 }
 0x704   : > { %v9227_v49 = vpop.f32.mrf.mxu0 }
 0x705   : > { %10535 = vst [vmem:[#allocation24_spill] sm:$0xff] %v9227_v49 }
 0x72c   : > { %v3746_v41 = vpop.xlane.xlu0 %3745 }
 0x72d   : > { %v3788_v60 = vsub.f32 %v3425_v18, %v3746_v41 }
 0x72f   : > { %v3806_v45 = vmul.f32 1.442695, %v3788_v60 }
 0x730   : > { %v3749_v61 = vpop.xlane.xlu0 %3748 }
 0x731   : > { %7901 = vpow2.f32 %v3806_v45  ;;  %v3789_v51 = vsub.f32 %v3428_v4, %v3749_v61  ;;  %v9231_v4 = vpop.f32.mrf.mxu0 }
 0x732   : > { %10536 = vst [vmem:[#allocation25_spill] sm:$0xff] %v9231_v4 }
 0x733   : > { %v3808_v33 = vmul.f32 1.442695, %v3789_v51 }
 0x734   : > { %v3758_v38 = vpop.xlane.xlu0 %3757 }
 0x735   : > { %7903 = vpow2.f32 %v3808_v33  ;;  %v3792_v22 = vsub.f32 %v3527_v39, %v3758_v38 }
 0x737   : > { %v3814_v0 = vmul.f32 1.442695, %v3792_v22 }
 0x738   : > { %v3761_v27 = vpop.xlane.xlu1 %3760 }
 0x739   : > { %7905 = vpow2.f32 %v3814_v0  ;;  %v3793_v7 = vsub.f32 %v3530_v56, %v3761_v27 }
 0x73b   : > { %v3816_v18 = vmul.f32 1.442695, %v3793_v7 }
 0x73c   : > { %v3770_v41 = vpop.xlane.xlu0 %3769 }
 0x73d   : > { %7907 = vpow2.f32 %v3816_v18  ;;  %v3796_v60 = vsub.f32 %v3629_v50, %v3770_v41 }
 0x73e   : > { %v9229_v45 = vpop.eup %7901 }
 0x73f   : > { %v3822_v61 = vmul.f32 1.442695, %v3796_v60  ;;  %v3840_v39 = vsel %vm1519_vm2, %v9229_v45, 0.0 }
 0x740   : > { %v9235_v51 = vpop.f32.mrf.mxu0  ;;  %v3773_v33 = vpop.xlane.xlu1 %3772  ;;  %3841 = vadd.xlane.f32.xlu0 %v3840_v39 }
 0x741   : > { %10537 = vst [vmem:[#allocation26_spill] sm:$0xff] %v9235_v51  ;;  %7909 = vpow2.f32 %v3822_v61  ;;  %v3797_v56 = vsub.f32 %v3632_v35, %v3773_v33 }
 0x742   : > { %v9237_v38 = vpop.eup %7903  ;;  %v9239_v22 = vpop.f32.mrf.mxu0 }
 0x743   : > { %10538 = vst [vmem:[#allocation27_spill] sm:$0xff] %v9239_v22  ;;  %v3824_v0 = vmul.f32 1.442695, %v3797_v56  ;;  %v3843_v50 = vsel %vm1519_vm2, %v9237_v38, 0.0 }
 0x744   : > { %v9243_v27 = vpop.f32.mrf.mxu0  ;;  %v3782_v7 = vpop.xlane.xlu0 %3781  ;;  %3844 = vadd.xlane.f32.xlu1 %v3843_v50 }
 0x745   : > { %10539 = vst [vmem:[#allocation28_spill] sm:$0xff] %v9243_v27  ;;  %7911 = vpow2.f32 %v3824_v0  ;;  %v3800_v18 = vsub.f32 %v3731_v52, %v3782_v7 }
 0x746   : > { %v9245_v41 = vpop.eup %7905  ;;  %v9247_v60 = vpop.f32.mrf.mxu0 }
 0x747   : > { %10540 = vst [vmem:[#allocation29_spill] sm:$0xff] %v9247_v60  ;;  %v3830_v61 = vmul.f32 1.442695, %v3800_v18  ;;  %v3852_v35 = vsel %vm1519_vm2, %v9245_v41, 0.0 }
 0x748   : > { %v9251_v39 = vpop.f32.mrf.mxu0  ;;  %3853 = vadd.xlane.f32.xlu0 %v3852_v35  ;;  %v3785_v33 = vpop.xlane.xlu1 %3784 }
 0x749   : > { %7913 = vpow2.f32 %v3830_v61  ;;  %v3801_v56 = vsub.f32 %v3734_v46, %v3785_v33  ;;  %v3738_v52 = vsel %vm1519_vm2, %v9251_v39, -inf }
 0x74a   : > { %v9253_v47 = vpop.eup %7907  ;;  %v7459_v4 = vpop.f32.mrf.mxu0 }
 0x74b   : > { %v3832_v50 = vmul.f32 1.442695, %v3801_v56  ;;  %v3855_v0 = vsel %vm1519_vm2, %v9253_v47, 0.0 }
 0x74c   : > { %v3377_v7 = vpop.f32.mrf.mxu0  ;;  %3739 = vmax.xlane.f32.xlu0 %v3738_v52  ;;  %3856 = vadd.xlane.f32.xlu1 %v3855_v0 }
 0x74d   : > { %7915 = vpow2.f32 %v3832_v50  ;;  %v3741_v61 = vsel %vm1519_vm2, %v3377_v7, -inf }
 0x74e   : > { %v9259_v18 = vpop.eup %7909  ;;  %v7460_v35 = vpop.f32.mrf.mxu0 }
 0x74f   : > { %v3864_v46 = vsel %vm1519_vm2, %v9259_v18, 0.0 }
 0x750   : > { %v3476_v4 = vpop.f32.mrf.mxu0  ;;  %3865 = vadd.xlane.f32.xlu0 %v3864_v46  ;;  %3742 = vmax.xlane.f32.xlu1 %v3741_v61 }
 0x751   : > { %v3750_v60 = vsel %vm1519_vm2, %v3476_v4, -inf }
 0x752   : > { %v9264_v33 = vpop.eup %7911  ;;  %v7471_v56 = vpop.f32.mrf.mxu0 }
 0x753   : > { %v3867_v52 = vsel %vm1519_vm2, %v9264_v33, 0.0 }
 0x754   : > { %v9269_v50 = vpop.f32.mrf.mxu0  ;;  %3751 = vmax.xlane.f32.xlu0 %v3750_v60  ;;  %3868 = vadd.xlane.f32.xlu1 %v3867_v52 }
 0x755   : > { %v3753_v46 = vsel %vm1519_vm2, %v9269_v50, -inf }
 0x756   : > { %v9271_v0 = vpop.eup %7913  ;;  %v7472_v35 = vpop.f32.mrf.mxu0 }
 0x757   : > { %v3876_v11 = vsel %vm1519_vm2, %v9271_v0, 0.0 }
 0x758   : > { %v9277_v61 = vpop.f32.mrf.mxu0  ;;  %3877 = vadd.xlane.f32.xlu0 %v3876_v11  ;;  %3754 = vmax.xlane.f32.xlu1 %v3753_v46 }
 0x759   : > { %v3762_v60 = vsel %vm1519_vm2, %v9277_v61, -inf }
 0x75a   : > { %v9279_v56 = vpop.eup %7915  ;;  %v7483_v43 = vpop.f32.mrf.mxu0 }
 0x75b   : > { %v3879_v52 = vsel %vm1519_vm2, %v9279_v56, 0.0 }
 0x75c   : > { %v9285_v35 = vpop.f32.mrf.mxu0  ;;  %3763 = vmax.xlane.f32.xlu0 %v3762_v60  ;;  %3880 = vadd.xlane.f32.xlu1 %v3879_v52  ;;  %v10542_v60 = vld [vmem:[#allocation5_spill] sm:$0xff]  ;;  %v10544_v52 = vld [vmem:[#allocation4_spill] sm:$0xff] }
 0x75d   : > { %v3765_v28 = vsel %vm1519_vm2, %v9285_v35, -inf }
 0x75e   : > { %v7484_v34 = vpop.f32.mrf.mxu0 }
 0x75f   : > { %v10543_v34 = vld [vmem:[#allocation3_spill] sm:$0xff] }
 0x760   : > { %v9289_v53 = vpop.f32.mrf.mxu0  ;;  %3766 = vmax.xlane.f32.xlu1 %v3765_v28 }
 0x761   : > { %v3774_v11 = vsel %vm1519_vm2, %v9289_v53, -inf }
 0x762   : > { %v7495_v43 = vpop.f32.mrf.mxu0  ;;  %3775 = vmax.xlane.f32.xlu0 %v3774_v11 }
 0x764   : > { %v9293_v46 = vpop.f32.mrf.mxu0 }
 0x765   : > { %v3777_v28 = vsel %vm1519_vm2, %v9293_v46, -inf }
 0x766   : > { %v7496_v27 = vpop.f32.mrf.mxu0 }
 0x771   : > { %3969 = vrot.lane.b32.xlu1 %v10541_v5, %s8120_s20 }
 0x775   : > { %4016 = vrot.lane.b32.xlu1 %v10542_v60, %s8120_s20 }
 0x778   : > { %3922 = vrot.lane.b32.xlu0 %v10543_v34, %s8120_s20 }
 0x799   : > { %3778 = vmax.xlane.f32.xlu1 %v3777_v28 }
 0x7aa   : > { %4063 = vrot.lane.b32.xlu1 %v10544_v52, %s8120_s20 }
 0x7c9   : > { %v3842_v11 = vpop.xlane.xlu0 %3841 }
 0x7cd   : > { %v3845_v43 = vpop.xlane.xlu1 %3844 }
 0x7d1   : > { %v3854_v22 = vpop.xlane.xlu0 %3853 }
 0x7d5   : > { %v3740_v27 = vpop.xlane.xlu0 %3739  ;;  %v3857_v57 = vpop.xlane.xlu1 %3856 }
 0x7d6   : > { %v3786_v5 = vsub.f32 %v9251_v39, %v3740_v27 }
 0x7d8   : > { %v3802_v51 = vmul.f32 1.442695, %v3786_v5 }
 0x7d9   : > { %v9306_v10 = vpop.xlane.xlu0 %3865  ;;  %v3743_v60 = vpop.xlane.xlu1 %3742 }
 0x7da   : > { %7917 = vpow2.f32 %v3802_v51  ;;  %v3787_v34 = vsub.f32 %v3377_v7, %v3743_v60 }
 0x7db   : > { %7919 = vrcp.f32 %v3845_v43 }
 0x7dc   : > { %v3804_v49 = vmul.f32 1.442695, %v3787_v34  ;;  %7921 = vrcp.f32 %v3842_v11 }
 0x7dd   : > { %v3752_v28 = vpop.xlane.xlu0 %3751  ;;  %v9308_v59 = vpop.xlane.xlu1 %3868 }
 0x7de   : > { %7923 = vpow2.f32 %v3804_v49  ;;  %v3790_v52 = vsub.f32 %v3476_v4, %v3752_v28 }
 0x7e0   : > { %v3810_v13 = vmul.f32 1.442695, %v3790_v52 }
 0x7e1   : > { %v9310_v29 = vpop.xlane.xlu0 %3877  ;;  %v3755_v44 = vpop.xlane.xlu1 %3754 }
 0x7e2   : > { %7925 = vpow2.f32 %v3810_v13 }
 0x7e5   : > { %v9312_v39 = vpop.xlane.xlu1 %3880  ;;  %v3764_v27 = vpop.xlane.xlu0 %3763 }
 0x7e7   : > { %v9314_v5 = vpop.eup %7917 }
 0x7e8   : > { %v7920_v51 = vpop.eup %7919  ;;  %v3834_v7 = vsel %vm1519_vm2, %v9314_v5, 0.0 }
 0x7e9   : > { %3835 = vadd.xlane.f32.xlu0 %v3834_v7  ;;  %v3767_v60 = vpop.xlane.xlu1 %3766  ;;  %v7922_v34 = vpop.eup %7921  ;;  %v3901_v49 = vmul.f32 %v7920_v51, %v9237_v38  ;;  %v10546_v38 = vld [vmem:[#allocation7_spill] sm:$0xff]  ;;  %v3791_v51 = vsub.f32 %v9269_v50, %v3755_v44 }
 0x7ea   : > { %v3900_v52 = vmul.f32 %v7922_v34, %v9229_v45  ;;  %v10545_v45 = vld [vmem:[#allocation6_spill] sm:$0xff] }
 0x7eb   : > { %v9318_v11 = vpop.eup %7923  ;;  %v3776_v4 = vpop.xlane.xlu0 %3775  ;;  %v3812_v34 = vmul.f32 1.442695, %v3791_v51 }
 0x7ec   : > { %v3837_v13 = vsel %vm1519_vm2, %v9318_v11, 0.0  ;;  %v3915_v26 = vpack.c.bf16 %v3901_v49, %v3900_v52  ;;  %v3795_v49 = vsub.f32 %v9285_v35, %v3767_v60  ;;  %v3798_v52 = vsub.f32 %v9289_v53, %v3776_v4 }
 0x7ed   : > { %3838 = vadd.xlane.f32.xlu1 %v3837_v13  ;;  %v3970_v43 = vpop.permute.xlu1 %3969  ;;  %7927 = vpow2.f32 %v3812_v34 }
 0x7ee   : > { %7510 = vmatpush3.bf16.msra.mxu1 %v3970_v43  ;;  %7929 = vrcp.f32 %v3857_v57  ;;  %v3826_v43 = vmul.f32 1.442695, %v3798_v52 }
 0x7ef   : > { %v9324_v28 = vpop.eup %7925  ;;  %v3923_v40 = vpop.permute.xlu0 %3922  ;;  %7521 = vmatprep.subr.bf16.mxu1 %v10509_v9 }
 0x7f0   : > { %7504 = vmatpush3.bf16.msra.mxu0 %v3923_v40  ;;  %v3846_v7 = vsel %vm1519_vm2, %v9324_v28, 0.0  ;;  %v3794_v40 = vsub.f32 %v9277_v61, %v3764_v27 }
 0x7f1   : > { %3847 = vadd.xlane.f32.xlu0 %v3846_v7  ;;  %7512 = vmatmul.mubr.msk.bf16.vlgmr.msra.gmra.mxu1 %vm1519_vm2, %v3915_v26  ;;  %v3820_v26 = vmul.f32 1.442695, %v3795_v49 }
 0x7f2   : > { %7523 = vmatprep.mubr.msk.bf16.mxu1 %vm8118_vm0, %v10509_v9  ;;  %7515 = vmatprep.subr.bf16.mxu0 %v10509_v9  ;;  %v3818_v13 = vmul.f32 1.442695, %v3794_v40 }
 0x7f4   : > { %7931 = vpow2.f32 %v3818_v13 }
 0x7f5   : > { %7933 = vpow2.f32 %v3820_v26 }
 0x7f6   : > { %7935 = vrcp.f32 %v3854_v22 }
 0x7f7   : > { %7937 = vpow2.f32 %v3826_v43 }
 0x7fa   : > { %v9341_v7 = vpop.eup %7927 }
 0x7fb   : > { %v7930_v44 = vpop.eup %7929  ;;  %v3849_v61 = vsel %vm1519_vm2, %v9341_v7, 0.0 }
 0x7fc   : > { %v3905_v22 = vmul.f32 %v7930_v44, %v9253_v47 }
 0x7fe   : > { %4157 = vrot.lane.b32.xlu1 %v10545_v45, %s8120_s20 }
 0x801   : > { %v9345_v50 = vpop.eup %7931 }
 0x802   : > { %v9349_v35 = vpop.eup %7933  ;;  %v3858_v4 = vsel %vm1519_vm2, %v9345_v50, 0.0 }
 0x803   : > { %v7936_v57 = vpop.eup %7935  ;;  %v3861_v51 = vsel %vm1519_vm2, %v9349_v35, 0.0 }
 0x804   : > { %v9357_v40 = vpop.eup %7937  ;;  %v3904_v34 = vmul.f32 %v7936_v57, %v9245_v41 }
 0x805   : > { %v3870_v47 = vsel %vm1519_vm2, %v9357_v40, 0.0 }
 0x806   : > { %v3917_v13 = vpack.c.bf16 %v3905_v22, %v3904_v34 }
 0x807   : > { %4110 = vrot.lane.b32.xlu0 %v10546_v38, %s8120_s20  ;;  %v9343_v38 = vpop.permute.xlu1 %4016 }
 0x822   : > { %3850 = vadd.xlane.f32.xlu1 %v3849_v61  ;;  %v3779_v53 = vpop.xlane.xlu1 %3778 }
 0x823   : > { %v3799_v27 = vsub.f32 %v9293_v46, %v3779_v53 }
 0x825   : > { %v3828_v60 = vmul.f32 1.442695, %v3799_v27 }
 0x826   : > { %3859 = vadd.xlane.f32.xlu0 %v3858_v4  ;;  %3862 = vadd.xlane.f32.xlu1 %v3861_v51  ;;  %v4064_v49 = vpop.permute.xlu1 %4063 }
 0x827   : > { %7939 = vpow2.f32 %v3828_v60  ;;  %7522 = vmatpush3.bf16.msra.mxu1 %v4064_v49 }
 0x828   : > { %7533 = vmatprep.subr.bf16.mxu1 %v10509_v9  ;;  %7941 = vrcp.f32 %v9308_v59 }
 0x829   : > { %7943 = vrcp.f32 %v9306_v10 }
 0x82a   : > { %3871 = vadd.xlane.f32.xlu0 %v3870_v47  ;;  %7524 = vmatmul.mubr.msk.bf16.vlgmr.msra.gmra.mxu1 %vm1519_vm2, %v3917_v13 }
 0x82b   : > { %7535 = vmatprep.mubr.msk.bf16.mxu1 %vm8118_vm0, %v10509_v9 }
 0x834   : > { %v9366_v46 = vpop.eup %7939 }
 0x835   : > { %v3873_v41 = vsel %vm1519_vm2, %v9366_v46, 0.0 }
 0x836   : > { %3874 = vadd.xlane.f32.xlu1 %v3873_v41 }
 0x840   : > { %4204 = vrot.lane.b32.xlu0 %v8490_v24, %s8120_s20 }
 0x844   : > { %4457 = vrot.lane.b32.xlu0 %v8342_v62, %s8121_s1 }
 0x847   : > { %4251 = vrot.lane.b32.xlu1 %v8488_v23, %s8120_s20  ;;  %s10397_s20 = scalar_lea.vmem %s10481_s17, %s6845_s29 }
 0x848   : > { %4508 = vrot.lane.b32.xlu0 %v8353_v12, %s8121_s1  ;;  %v7942_v12 = vpop.eup %7941 }
 0x84b   : > { %4455 = vrot.lane.b32.xlu1 %v8357_v17, %s8121_s1 }
 0x84c   : > { %4559 = vrot.lane.b32.xlu0 %v8371_v30, %s8121_s1  ;;  %v7944_v30 = vpop.eup %7943 }
 0x84f   : > { %4506 = vrot.lane.b32.xlu1 %v8376_v36, %s8121_s1  ;;  %v3909_v36 = vmul.f32 %v7942_v12, %v9264_v33 }
 0x850   : > { %4610 = vrot.lane.b32.xlu0 %v8397_v58, %s8121_s1 }
 0x853   : > { %4557 = vrot.lane.b32.xlu1 %v8403_v63, %s8121_s1 }
 0x854   : > { %4661 = vrot.lane.b32.xlu0 %v8378_v37, %s8121_s1  ;;  %v3908_v37 = vmul.f32 %v7944_v30, %v9259_v18 }
 0x856   : > { %v3919_v63 = vpack.c.bf16 %v3909_v36, %v3908_v37 }
 0x857   : > { %4608 = vrot.lane.b32.xlu1 %v8429_v15, %s8121_s1 }
 0x858   : > { %4659 = vrot.lane.b32.xlu0 %v8405_v1, %s8121_s1 }
 0x85b   : > { %4712 = vrot.lane.b32.xlu1 %v8426_v14, %s8121_s1 }
 0x85c   : > { %4763 = vrot.lane.b32.xlu0 %v8407_v3, %s8121_s1 }
 0x85f   : > { %4710 = vrot.lane.b32.xlu1 %v8451_v25, %s8121_s1 }
 0x860   : > { %4761 = vrot.lane.b32.xlu0 %v8434_v20, %s8121_s1 }
 0x863   : > { %4814 = vrot.lane.b32.xlu1 %v8449_v54, %s8121_s1 }
 0x867   : > { %4812 = vrot.lane.b32.xlu1 %v8463_v32, %s8121_s1 }
 0x872   : > { %v3836_v62 = vpop.xlane.xlu0 %3835 }
 0x873   : > { %7945 = vrcp.f32 %v3836_v62 }
 0x876   : > { %v3839_v17 = vpop.xlane.xlu1 %3838 }
 0x877   : > { %7947 = vrcp.f32 %v3839_v17 }
 0x87a   : > { %v4158_v58 = vpop.permute.xlu1 %4157  ;;  %v3848_v54 = vpop.xlane.xlu0 %3847 }
 0x87b   : > { %7534 = vmatpush3.bf16.msra.mxu1 %v4158_v58  ;;  %7949 = vrcp.f32 %v3848_v54  ;;  %v7730_v58 = vld [vmem:[%s10471_s7 + $0x20] sm:$0xff]  }
 0x87c   : > { %7545 = vmatprep.subr.bf16.mxu1 %v10509_v9 }
 0x87e   : > { %7536 = vmatmul.mubr.msk.bf16.vlgmr.msra.gmra.mxu1 %vm1519_vm2, %v3919_v63  ;;  %v4111_v25 = vpop.permute.xlu0 %4110 }
 0x87f   : > { %7547 = vmatprep.mubr.msk.bf16.mxu1 %vm8118_vm0, %v10509_v9 }
 0x880   : > { %v7946_v1 = vpop.eup %7945 }
 0x881   : > { %v3898_v14 = vmul.f32 %v7946_v1, %v9314_v5 }
 0x884   : > { %v7948_v3 = vpop.eup %7947 }
 0x885   : > { %v3899_v15 = vmul.f32 %v7948_v3, %v9318_v11 }
 0x887   : > { %v3914_v20 = vpack.c.bf16 %v3899_v15, %v3898_v14 }
 0x889   : > { %7506 = vmatmul.mubr.msk.bf16.vlgmr.msra.gmra.mxu0 %vm1519_vm2, %v3914_v20 }
 0x88a   : > { %7516 = vmatpush3.bf16.msra.mxu0 %v9343_v38  ;;  %7517 = vmatprep.mubr.msk.bf16.mxu0 %vm8118_vm0, %v10509_v9  ;;  %v7950_v38 = vpop.eup %7949 }
 0x88b   : > { %7527 = vmatprep.subr.bf16.mxu0 %v10509_v9 }
 0x8ab   : > { %v3851_v32 = vpop.xlane.xlu1 %3850 }
 0x8ac   : > { %7951 = vrcp.f32 %v3851_v32 }
 0x8ad   : > { %7953 = vrcp.f32 %v9312_v39  ;;  %v3902_v39 = vmul.f32 %v7950_v38, %v9324_v28 }
 0x8af   : > { %v3860_v59 = vpop.xlane.xlu0 %3859  ;;  %v3863_v10 = vpop.xlane.xlu1 %3862 }
 0x8b0   : > { %7955 = vrcp.f32 %v3860_v59 }
 0x8b1   : > { %7957 = vrcp.f32 %v3863_v10  ;;  %v9422_v18 = vpop.f32.mrf.mxu1 }
 0x8b2   : > { %7959 = vrcp.f32 %v9310_v29 }
 0x8b3   : > { %v7513_v33 = vpop.f32.mrf.mxu1  ;;  %v3872_v52 = vpop.xlane.xlu0 %3871 }
 0x8b4   : > { %7961 = vrcp.f32 %v3872_v52 }
 0x8b5   : > { %v9425_v5 = vpop.f32.mrf.mxu1 }
 0x8b6   : > { %v4299_v11 = vpack.c.bf16 %v9425_v5, %v9422_v18 }
 0x8b7   : > { %v7514_v26 = vpop.f32.mrf.mxu1  ;;  %v4205_v29 = vpop.permute.xlu0 %4204 }
 0x8b9   : > { %v7952_v43 = vpop.eup %7951 }
 0x8ba   : > { %v3903_v44 = vmul.f32 %v7952_v43, %v9341_v7  ;;  %v7954_v61 = vpop.eup %7953 }
 0x8bb   : > { %v3913_v7 = vmul.f32 %v7954_v61, %v9279_v56  ;;  %v4458_v49 = vpop.permute.xlu0 %4457 }
 0x8bc   : > { %v3916_v53 = vpack.c.bf16 %v3903_v44, %v3902_v39 }
 0x8bd   : > { %v7956_v57 = vpop.eup %7955 }
 0x8be   : > { %v7958_v27 = vpop.eup %7957  ;;  %7518 = vmatmul.mubr.msk.bf16.vlgmr.msra.gmra.mxu0 %vm1519_vm2, %v3916_v53  ;;  %v3906_v4 = vmul.f32 %v7956_v57, %v9345_v50  ;;  %v7729_v50 = vld [vmem:[%s10471_s7 + $0x28] sm:$0xff]  }
 0x8bf   : > { %7528 = vmatpush3.bf16.msra.mxu0 %v4111_v25  ;;  %v3875_v22 = vpop.xlane.xlu1 %3874  ;;  %7529 = vmatprep.mubr.msk.bf16.mxu0 %vm8118_vm0, %v10509_v9  ;;  %v7960_v60 = vpop.eup %7959  ;;  %v3907_v28 = vmul.f32 %v7958_v27, %v9349_v35  ;;  %v4463_v35 = vsel %vm1142_vm1, %v4458_v49, 0 }
 0x8c0   : > { %7963 = vrcp.f32 %v3875_v22  ;;  %7539 = vmatprep.subr.bf16.mxu0 %v10509_v9  ;;  %v3912_v51 = vmul.f32 %v7960_v60, %v9271_v0  ;;  %v4509_v41 = vpop.permute.xlu0 %4508 }
 0x8c1   : > { %v3918_v13 = vpack.c.bf16 %v3907_v28, %v3906_v4  ;;  %v7962_v0 = vpop.eup %7961  ;;  %v4514_v36 = vsel %vm1142_vm1, %v4509_v41, 0 }
 0x8c2   : > { %v3921_v47 = vpack.c.bf16 %v3913_v7, %v3912_v51  ;;  %v3910_v12 = vmul.f32 %v7962_v0, %v9357_v40 }
 0x8c3   : > { %v4252_v34 = vpop.permute.xlu1 %4251 }
 0x8c4   : > { %7546 = vmatpush3.bf16.msra.mxu1 %v4252_v34  ;;  %v4560_v40 = vpop.permute.xlu0 %4559 }
 0x8c5   : > { %7571 = vmatprep.subr.bf16.mxu1 %v10509_v9  ;;  %v4565_v63 = vsel %vm1142_vm1, %v4560_v40, 0 }
 0x8c6   : > { %7530 = vmatmul.mubr.msk.bf16.vlgmr.msra.gmra.mxu0 %vm1519_vm2, %v3918_v13 }
 0x8c7   : > { %7540 = vmatpush3.bf16.msra.mxu0 %v4205_v29  ;;  %7548 = vmatmul.mubr.msk.bf16.vlgmr.msra.gmra.mxu1 %vm1519_vm2, %v3921_v47  ;;  %v4456_v56 = vpop.permute.xlu1 %4455 }
 0x8c8   : > { %7572 = vmatpush3.bf16.xpose.msra.mxu1 %v4463_v35  ;;  %7573 = vmatprep.mubr.msk.bf16.mxu1 %vm8118_vm0, %v10509_v9  ;;  %v4611_v3 = vpop.permute.xlu0 %4610 }
 0x8c9   : > { %7577 = vmatprep.subr.bf16.mxu1 %v10509_v9  ;;  %7541 = vmatprep.mubr.msk.bf16.mxu0 %vm8118_vm0, %v10509_v9  ;;  %v4616_v14 = vsel %vm1142_vm1, %v4611_v3, 0 }
 0x8ca   : > { %7551 = vmatprep.subr.bf16.mxu0 %v7729_v50 }
 0x8cb   : > { %v4507_v30 = vpop.permute.xlu1 %4506 }
 0x8cc   : > { %v4662_v22 = vpop.permute.xlu0 %4661 }
 0x8cd   : > { %v7964_v62 = vpop.eup %7963  ;;  %v4667_v28 = vsel %vm1142_vm1, %v4662_v22, 0 }
 0x8ce   : > { %v3911_v17 = vmul.f32 %v7964_v62, %v9366_v46 }
 0x8cf   : > { %7574 = vmatmul.mubr.msk.bf16.vlgmr.msra.gmra.mxu1 %vm1142_vm1, %v4456_v56  ;;  %v4558_v46 = vpop.permute.xlu1 %4557 }
 0x8d0   : > { %7578 = vmatpush3.bf16.xpose.msra.mxu1 %v4514_v36  ;;  %v3920_v37 = vpack.c.bf16 %v3911_v17, %v3910_v12  ;;  %7579 = vmatprep.mubr.msk.bf16.mxu1 %vm8118_vm0, %v10509_v9 }
 0x8d1   : > { %7583 = vmatprep.subr.bf16.mxu1 %v10509_v9 }
 0x8d2   : > { %7542 = vmatmul.mubr.msk.bf16.vlgmr.msra.gmra.mxu0 %vm1519_vm2, %v3920_v37 }
 0x8d3   : > { %7552 = vmatpush3.bf16.msra.mxu0 %v7729_v50  ;;  %v4609_v1 = vpop.permute.xlu1 %4608 }
 0x8d4   : > { %7553 = vmatprep.subr.bf16.mxu0 %v7730_v58 }
 0x8d7   : > { %7580 = vmatmul.mubr.msk.bf16.vlgmr.msra.gmra.mxu1 %vm1142_vm1, %v4507_v30  ;;  %7554 = vmatpush3.bf16.msra.mxu0 %v7730_v58  ;;  %v4713_v15 = vpop.permute.xlu1 %4712 }
 0x8d8   : > { %7584 = vmatpush3.bf16.xpose.msra.mxu1 %v4565_v63  ;;  %7585 = vmatprep.mubr.msk.bf16.mxu1 %vm8118_vm0, %v10509_v9  ;;  %v4718_v54 = vsel %vm1142_vm1, %v4713_v15, 0 }
 0x8d9   : > { %7589 = vmatprep.subr.bf16.mxu1 %v10509_v9  ;;  %7595 = vmatprep.subr.bf16.mxu0 %v10509_v9 }
 0x8db   : > { %v4711_v20 = vpop.permute.xlu1 %4710 }
 0x8df   : > { %7586 = vmatmul.mubr.msk.bf16.vlgmr.msra.gmra.mxu1 %vm1142_vm1, %v4558_v46  ;;  %v4815_v32 = vpop.permute.xlu1 %4814 }
 0x8e0   : > { %7590 = vmatpush3.bf16.xpose.msra.mxu1 %v4616_v14  ;;  %7591 = vmatprep.mubr.msk.bf16.mxu1 %vm8118_vm0, %v10509_v9  ;;  %v4820_v33 = vsel %vm1142_vm1, %v4815_v32, 0 }
 0x8e1   : > { %7601 = vmatprep.subr.bf16.mxu1 %v10509_v9 }
 0x8e3   : > { %v4813_v52 = vpop.permute.xlu1 %4812 }
 0x8e7   : > { %7592 = vmatmul.mubr.msk.bf16.vlgmr.msra.gmra.mxu1 %vm1142_vm1, %v4609_v1 }
 0x8e8   : > { %7602 = vmatpush3.bf16.xpose.msra.mxu1 %v4718_v54  ;;  %7603 = vmatprep.mubr.msk.bf16.mxu1 %vm8118_vm0, %v10509_v9 }
 0x8e9   : > { %7613 = vmatprep.subr.bf16.mxu1 %v10509_v9 }
 0x8ea   : > { %v4103_v25 = vpop.f32.mrf.mxu1 }
 0x8ec   : > { %v7525_v59 = vpop.f32.mrf.mxu1 }
 0x8ee   : > { %v4106_v10 = vpop.f32.mrf.mxu1 }
 0x8ef   : > { %v4301_v38 = vpack.c.bf16 %v4106_v10, %v4103_v25  ;;  %7604 = vmatmul.mubr.msk.bf16.vlgmr.msra.gmra.mxu1 %vm1142_vm1, %v4711_v20  ;;  %v4660_v20 = vpop.permute.xlu0 %4659 }
 0x8f0   : > { %v7526_v26 = vpop.f32.mrf.mxu1  ;;  %7614 = vmatpush3.bf16.xpose.msra.mxu1 %v4820_v33  ;;  %7615 = vmatprep.mubr.msk.bf16.mxu1 %vm8118_vm0, %v10509_v9 }
 0x8f1   : > { %7625 = vmatprep.subr.bf16.mxu1 %v10509_v9 }
 0x8f3   : > { %v4764_v10 = vpop.permute.xlu0 %4763 }
 0x8f7   : > { %7616 = vmatmul.mubr.msk.bf16.vlgmr.msra.gmra.mxu1 %vm1142_vm1, %v4813_v52  ;;  %v4769_v52 = vsel %vm1142_vm1, %v4764_v10, 0 }
 0x8f8   : > { %7627 = vmatprep.mubr.msk.bf16.mxu1 %vm8118_vm0, %v10509_v9 }
 0x93e   : > { %v4197_v43 = vpop.f32.mrf.mxu1 }
 0x940   : > { %v7537_v39 = vpop.f32.mrf.mxu1 }
 0x942   : > { %v4200_v44 = vpop.f32.mrf.mxu1 }
 0x943   : > { %v4303_v61 = vpack.c.bf16 %v4200_v44, %v4197_v43 }
 0x944   : > { %v7538_v53 = vpop.f32.mrf.mxu1 }
 0x949   : > { %v3962_v57 = vpop.f32.mrf.mxu0 }
 0x94b   : > { %v7507_v27 = vpop.f32.mrf.mxu0 }
 0x94d   : > { %v3965_v29 = vpop.f32.mrf.mxu0 }
 0x94e   : > { %v4298_v60 = vpack.c.bf16 %v3965_v29, %v3962_v57  ;;  %v4762_v57 = vpop.permute.xlu0 %4761 }
 0x94f   : > { %v7508_v4 = vpop.f32.mrf.mxu0 }
 0x950   : > { %7555 = vmatprep.mubr.msk.bf16.mxu0 %vm1142_vm1, %v4298_v60 }
 0x951   : > { %7556 = vmatmul.mubr.msk.bf16.vlgmr.msra.gmra.mxu0 %vm1142_vm1, %v4299_v11 }
 0x952   : > { %7596 = vmatpush3.bf16.xpose.msra.mxu0 %v4667_v28 }
 0x953   : > { %7607 = vmatprep.subr.bf16.mxu0 %v10509_v9 }
 0x97e   : > { %v4056_v7 = vpop.f32.mrf.mxu0 }
 0x980   : > { %v7519_v51 = vpop.f32.mrf.mxu0 }
 0x982   : > { %v4059_v34 = vpop.f32.mrf.mxu0 }
 0x983   : > { %v4300_v49 = vpack.c.bf16 %v4059_v34, %v4056_v7 }
 0x984   : > { %v7520_v13 = vpop.f32.mrf.mxu0 }
 0x985   : > { %7559 = vmatprep.mubr.msk.bf16.mxu0 %vm1142_vm1, %v4300_v49 }
 0x986   : > { %v4150_v47 = vpop.f32.mrf.mxu0  ;;  %7560 = vmatmul.mubr.msk.bf16.gmra.mxu0 %vm1142_vm1, %v4301_v38 }
 0x987   : > { %v4291_v50 = vpop.f32.mrf.mxu1 }
 0x988   : > { %v7531_v35 = vpop.f32.mrf.mxu0 }
 0x989   : > { %v7549_v56 = vpop.f32.mrf.mxu1 }
 0x98a   : > { %v4153_v0 = vpop.f32.mrf.mxu0 }
 0x98b   : > { %v4302_v18 = vpack.c.bf16 %v4153_v0, %v4150_v47  ;;  %v4294_v5 = vpop.f32.mrf.mxu1 }
 0x98c   : > { %v7532_v11 = vpop.f32.mrf.mxu0  ;;  %v4305_v3 = vpack.c.bf16 %v4294_v5, %v4291_v50 }
 0x98d   : > { %v7550_v41 = vpop.f32.mrf.mxu1  ;;  %7563 = vmatprep.mubr.msk.bf16.mxu0 %vm1142_vm1, %v4302_v18  ;;  %v3276_v18 = vadd.f32 %v9141_v2, %v9207_v31  ;;  %v3268_v11 = vadd.f32 %v9145_v19, %v9209_v42 }
 0x98e   : > { %7564 = vmatmul.mubr.msk.bf16.gmra.mxu0 %vm1142_vm1, %v4303_v61 }
 0x98f   : > { %v9497_v62 = vpop.f32.mrf.mxu1 }
 0x990   : > { %v4863_v12 = vsel %vm1519_vm2, %v9497_v62, -inf }
 0x991   : > { %4864 = vmax.xlane.f32.xlu0 %v4863_v12  ;;  %v7575_v17 = vpop.f32.mrf.mxu1 }
 0x992   : > { %v4244_v30 = vpop.f32.mrf.mxu0  ;;  %v3279_v17 = vadd.f32 %v9147_v8, %v9211_v16 }
 0x993   : > { %v9501_v36 = vpop.f32.mrf.mxu1 }
 0x994   : > { %v7543_v37 = vpop.f32.mrf.mxu0  ;;  %v4866_v58 = vsel %vm1519_vm2, %v9501_v36, -inf }
 0x995   : > { %4867 = vmax.xlane.f32.xlu1 %v4866_v58  ;;  %v7576_v40 = vpop.f32.mrf.mxu1 }
 0x996   : > { %v4247_v46 = vpop.f32.mrf.mxu0 }
 0x997   : > { %v4304_v63 = vpack.c.bf16 %v4247_v46, %v4244_v30  ;;  %v9505_v1 = vpop.f32.mrf.mxu1 }
 0x998   : > { %v7544_v14 = vpop.f32.mrf.mxu0  ;;  %v4869_v15 = vsel %vm1519_vm2, %v9505_v1, -inf }
 0x999   : > { %7567 = vmatprep.mubr.msk.bf16.mxu0 %vm1142_vm1, %v4304_v63  ;;  %4870 = vmax.xlane.f32.xlu0 %v4869_v15  ;;  %v7581_v54 = vpop.f32.mrf.mxu1 }
 0x99a   : > { %7568 = vmatmul.mubr.msk.bf16.gmra.mxu0 %vm1142_vm1, %v4305_v3 }
 0x99b   : > { %v9511_v25 = vpop.f32.mrf.mxu1  ;;  %7597 = vmatprep.mubr.msk.bf16.mxu0 %vm8118_vm0, %v10509_v9 }
 0x99c   : > { %v4872_v32 = vsel %vm1519_vm2, %v9511_v25, -inf }
 0x99d   : > { %4873 = vmax.xlane.f32.xlu0 %v4872_v32  ;;  %v7582_v59 = vpop.f32.mrf.mxu1 }
 0x99f   : > { %v9517_v33 = vpop.f32.mrf.mxu1 }
 0x9a0   : > { %v4875_v38 = vsel %vm1519_vm2, %v9517_v33, -inf }
 0x9a1   : > { %4876 = vmax.xlane.f32.xlu0 %v4875_v38  ;;  %v7587_v26 = vpop.f32.mrf.mxu1 }
 0x9a2   : > { %7598 = vmatmul.mubr.msk.bf16.vlgmr.msra.gmra.mxu0 %vm1142_vm1, %v4660_v20 }
 0x9a3   : > { %7608 = vmatpush3.bf16.xpose.msra.mxu0 %v4769_v52  ;;  %v9523_v43 = vpop.f32.mrf.mxu1  ;;  %7609 = vmatprep.mubr.msk.bf16.mxu0 %vm8118_vm0, %v10509_v9 }
 0x9a4   : > { %v4878_v39 = vsel %vm1519_vm2, %v9523_v43, -inf  ;;  %7619 = vmatprep.subr.bf16.mxu0 %v10509_v9 }
 0x9a5   : > { %4879 = vmax.xlane.f32.xlu1 %v4878_v39  ;;  %v7588_v44 = vpop.f32.mrf.mxu1 }
 0x9a7   : > { %v9530_v61 = vpop.f32.mrf.mxu1 }
 0x9a8   : > { %v4881_v53 = vsel %vm1519_vm2, %v9530_v61, -inf }
 0x9a9   : > { %4882 = vmax.xlane.f32.xlu0 %v4881_v53  ;;  %v7593_v27 = vpop.f32.mrf.mxu1 }
 0x9aa   : > { %7610 = vmatmul.mubr.msk.bf16.vlgmr.msra.gmra.mxu0 %vm1142_vm1, %v4762_v57 }
 0x9ab   : > { %v9535_v29 = vpop.f32.mrf.mxu1  ;;  %7621 = vmatprep.mubr.msk.bf16.mxu0 %vm8118_vm0, %v10509_v9 }
 0x9ac   : > { %v4884_v22 = vsel %vm1519_vm2, %v9535_v29, -inf }
 0x9ad   : > { %4885 = vmax.xlane.f32.xlu1 %v4884_v22  ;;  %v7594_v60 = vpop.f32.mrf.mxu1 }
 0x9af   : > { %v9541_v4 = vpop.f32.mrf.mxu1 }
 0x9b0   : > { %v4893_v28 = vsel %vm1519_vm2, %v9541_v4, -inf }
 0x9b1   : > { %4894 = vmax.xlane.f32.xlu0 %v4893_v28  ;;  %v7605_v7 = vpop.f32.mrf.mxu1 }
 0x9b3   : > { %v9545_v51 = vpop.f32.mrf.mxu1 }
 0x9b4   : > { %v4896_v34 = vsel %vm1519_vm2, %v9545_v51, -inf }
 0x9b5   : > { %4897 = vmax.xlane.f32.xlu1 %v4896_v34  ;;  %v7606_v49 = vpop.f32.mrf.mxu1 }
 0x9b6   : > { %v3292_v49 = vadd.f32 %v9155_v6, %v9215_v48 }
 0x9b7   : > { %v9549_v13 = vpop.f32.mrf.mxu1 }
 0x9b8   : > { %v4905_v47 = vsel %vm1519_vm2, %v9549_v13, -inf }
 0x9b9   : > { %4906 = vmax.xlane.f32.xlu0 %v4905_v47  ;;  %v7617_v50 = vpop.f32.mrf.mxu1 }
 0x9bb   : > { %v9553_v35 = vpop.f32.mrf.mxu1 }
 0x9bc   : > { %v4908_v56 = vsel %vm1519_vm2, %v9553_v35, -inf }
 0x9bd   : > { %4909 = vmax.xlane.f32.xlu1 %v4908_v56  ;;  %v7618_v0 = vpop.f32.mrf.mxu1  ;;  %v3284_v56 = vadd.f32 %v9160_v21, %v9217_v55  ;;  %v10549_v21 = vld [vmem:[#allocation22_spill] sm:$0xff]  ;;  %v10550_v55 = vld [vmem:[#allocation11_spill] sm:$0xff] }
 0xa11   : > { %v7557_v5 = vpop.f32.mrf.mxu0 }
 0xa12   : > { %v9561_v41 = vadd.f32 %v7557_v5, %v3276_v18 }
 0xa13   : > { %v4376_v12 = vpop.f32.mrf.mxu0 }
 0xa14   : > { %v9565_v30 = vadd.f32 %v4376_v12, %v3268_v11  ;;  %v10547_v11 = vld [vmem:[#allocation20_spill] sm:$0xff]  ;;  %v10548_v12 = vld [vmem:[#allocation9_spill] sm:$0xff] }
 0xa15   : > { %v7558_v37 = vpop.f32.mrf.mxu0 }
 0xa16   : > { %v9567_v58 = vadd.f32 %v7558_v37, %v3279_v17  ;;  %v3295_v17 = vadd.f32 %v10548_v12, %v10547_v11 }
 0xa17   : > { %v9603_v34 = vpop.f32.mrf.mxu0 }
 0xa1a   : > { %v4865_v40 = vpop.xlane.xlu0 %4864 }
 0xa1b   : > { %v4911_v46 = vsub.f32 %v9497_v62, %v4865_v40 }
 0xa1d   : > { %v4927_v63 = vmul.f32 1.442695, %v4911_v46 }
 0xa1e   : > { %v4868_v2 = vpop.xlane.xlu1 %4867 }
 0xa1f   : > { %7965 = vpow2.f32 %v4927_v63  ;;  %v4912_v31 = vsub.f32 %v9501_v36, %v4868_v2  ;;  %v3308_v63 = vadd.f32 %v10550_v55, %v10549_v21 }
 0xa21   : > { %v4929_v19 = vmul.f32 1.442695, %v4912_v31  ;;  %v10551_v31 = vld [vmem:[#allocation23_spill] sm:$0xff] }
 0xa22   : > { %v4871_v42 = vpop.xlane.xlu0 %4870 }
 0xa23   : > { %7967 = vpow2.f32 %v4929_v19  ;;  %v4913_v3 = vsub.f32 %v9505_v1, %v4871_v42  ;;  %v10552_v19 = vld [vmem:[#allocation12_spill] sm:$0xff] }
 0xa24   : > { %v3300_v42 = vadd.f32 %v10552_v19, %v10551_v31  ;;  %v10562_v31 = vld [vmem:[#allocation3_spill] sm:$0xff] }
 0xa25   : > { %v4931_v14 = vmul.f32 1.442695, %v4913_v3 }
 0xa26   : > { %v4874_v8 = vpop.xlane.xlu0 %4873 }
 0xa27   : > { %7969 = vpow2.f32 %v4931_v14  ;;  %v4914_v16 = vsub.f32 %v9511_v25, %v4874_v8  ;;  %v10553_v8 = vld [vmem:[#allocation24_spill] sm:$0xff] }
 0xa29   : > { %v4933_v15 = vmul.f32 1.442695, %v4914_v16  ;;  %v10554_v16 = vld [vmem:[#allocation13_spill] sm:$0xff] }
 0xa2a   : > { %v4877_v20 = vpop.xlane.xlu0 %4876 }
 0xa2b   : > { %7971 = vpow2.f32 %v4933_v15  ;;  %v4915_v62 = vsub.f32 %v9517_v33, %v4877_v20  ;;  %v3311_v15 = vadd.f32 %v10554_v16, %v10553_v8 }
 0xa2c   : > { %v9574_v54 = vpop.eup %7965 }
 0xa2d   : > { %v4935_v32 = vmul.f32 1.442695, %v4915_v62  ;;  %v4959_v36 = vsel %vm1519_vm2, %v9574_v54, 0.0 }
 0xa2e   : > { %v4880_v59 = vpop.xlane.xlu1 %4879  ;;  %4960 = vadd.xlane.f32.xlu0 %v4959_v36 }
 0xa2f   : > { %7973 = vpow2.f32 %v4935_v32  ;;  %v4916_v1 = vsub.f32 %v9523_v43, %v4880_v59  ;;  %v10555_v59 = vld [vmem:[#allocation26_spill] sm:$0xff] }
 0xa30   : > { %v9579_v10 = vpop.eup %7967 }
 0xa31   : > { %v4937_v38 = vmul.f32 1.442695, %v4916_v1  ;;  %v4962_v25 = vsel %vm1519_vm2, %v9579_v10, 0.0  ;;  %v10556_v1 = vld [vmem:[#allocation15_spill] sm:$0xff] }
 0xa32   : > { %v4883_v26 = vpop.xlane.xlu0 %4882  ;;  %4963 = vadd.xlane.f32.xlu1 %v4962_v25 }
 0xa33   : > { %7975 = vpow2.f32 %v4937_v38  ;;  %v4917_v33 = vsub.f32 %v9530_v61, %v4883_v26  ;;  %v3324_v38 = vadd.f32 %v10556_v1, %v10555_v59  ;;  %v10557_v26 = vld [vmem:[#allocation27_spill] sm:$0xff] }
 0xa34   : > { %v9584_v52 = vpop.eup %7969 }
 0xa35   : > { %v4939_v39 = vmul.f32 1.442695, %v4917_v33  ;;  %v4965_v44 = vsel %vm1519_vm2, %v9584_v52, 0.0  ;;  %v10558_v33 = vld [vmem:[#allocation16_spill] sm:$0xff] }
 0xa36   : > { %v4886_v53 = vpop.xlane.xlu1 %4885  ;;  %4966 = vadd.xlane.f32.xlu0 %v4965_v44 }
 0xa37   : > { %7977 = vpow2.f32 %v4939_v39  ;;  %v4918_v43 = vsub.f32 %v9535_v29, %v4886_v53  ;;  %v3316_v39 = vadd.f32 %v10558_v33, %v10557_v26 }
 0xa38   : > { %v9589_v57 = vpop.eup %7971 }
 0xa39   : > { %v4941_v27 = vmul.f32 1.442695, %v4918_v43  ;;  %v4968_v22 = vsel %vm1519_vm2, %v9589_v57, 0.0  ;;  %v10559_v43 = vld [vmem:[#allocation28_spill] sm:$0xff] }
 0xa3a   : > { %4969 = vadd.xlane.f32.xlu1 %v4968_v22  ;;  %v4895_v19 = vpop.xlane.xlu0 %4894 }
 0xa3b   : > { %7979 = vpow2.f32 %v4941_v27  ;;  %v10560_v27 = vld [vmem:[#allocation17_spill] sm:$0xff] }
 0xa3c   : > { %v9593_v61 = vpop.eup %7973  ;;  %v3327_v22 = vadd.f32 %v10560_v27, %v10559_v43 }
 0xa3d   : > { %v4971_v60 = vsel %vm1519_vm2, %v9593_v61, 0.0 }
 0xa3e   : > { %4972 = vadd.xlane.f32.xlu0 %v4971_v60 }
 0xa40   : > { %v9597_v28 = vpop.eup %7975 }
 0xa41   : > { %v4974_v7 = vsel %vm1519_vm2, %v9597_v28, 0.0 }
 0xa42   : > { %4975 = vadd.xlane.f32.xlu1 %v4974_v7  ;;  %v4907_v26 = vpop.xlane.xlu0 %4906 }
 0xa44   : > { %v9601_v29 = vpop.eup %7977 }
 0xa45   : > { %v4977_v47 = vsel %vm1519_vm2, %v9601_v29, 0.0 }
 0xa46   : > { %v7561_v50 = vpop.f32.mrf.mxu0  ;;  %4978 = vadd.xlane.f32.xlu0 %v4977_v47 }
 0xa47   : > { %v9611_v0 = vadd.f32 %v7561_v50, %v3292_v49 }
 0xa48   : > { %v9613_v18 = vpop.eup %7979  ;;  %v4392_v5 = vpop.f32.mrf.mxu0 }
 0xa49   : > { %v9617_v37 = vadd.f32 %v4392_v5, %v3284_v56  ;;  %v4980_v6 = vsel %vm1519_vm2, %v9613_v18, 0.0 }
 0xa4a   : > { %v7562_v48 = vpop.f32.mrf.mxu0  ;;  %4981 = vadd.xlane.f32.xlu1 %v4980_v6 }
 0xa4b   : > { %v9621_v40 = vadd.f32 %v7562_v48, %v3295_v17 }
 0xa4c   : > { %v9623_v46 = vpop.f32.mrf.mxu0 }
 0xa4e   : > { %v7565_v2 = vpop.f32.mrf.mxu0 }
 0xa4f   : > { %v9629_v3 = vadd.f32 %v7565_v2, %v3308_v63  ;;  %v10561_v2 = vld [vmem:[#allocation2_spill] sm:$0xff] }
 0xa50   : > { %v4408_v14 = vpop.f32.mrf.mxu0 }
 0xa51   : > { %v9633_v20 = vadd.f32 %v4408_v14, %v3300_v42  ;;  %v4898_v42 = vpop.xlane.xlu1 %4897  ;;  %v4921_v14 = vsub.f32 %v9541_v4, %v4895_v19 }
 0xa52   : > { %v7566_v62 = vpop.f32.mrf.mxu0  ;;  %v4922_v8 = vsub.f32 %v9545_v51, %v4898_v42  ;;  %v10563_v51 = vld [vmem:[#allocation4_spill] sm:$0xff] }
 0xa53   : > { %v9635_v32 = vadd.f32 %v7566_v62, %v3311_v15  ;;  %v4947_v16 = vmul.f32 1.442695, %v4921_v14 }
 0xa54   : > { %v9637_v36 = vpop.f32.mrf.mxu0  ;;  %v4949_v15 = vmul.f32 1.442695, %v4922_v8 }
 0xa55   : > { %7981 = vpow2.f32 %v4947_v16  ;;  %v4910_v33 = vpop.xlane.xlu1 %4909 }
 0xa56   : > { %7983 = vpow2.f32 %v4949_v15 }
 0xa5a   : > { %v7569_v25 = vpop.f32.mrf.mxu0 }
 0xa5b   : > { %v9643_v44 = vadd.f32 %v7569_v25, %v3324_v38  ;;  %v10564_v25 = vld [vmem:[#allocation5_spill] sm:$0xff] }
 0xa5c   : > { %v4424_v53 = vpop.f32.mrf.mxu0 }
 0xa5d   : > { %v9647_v60 = vadd.f32 %v4424_v53, %v3316_v39  ;;  %v4925_v39 = vsub.f32 %v9549_v13, %v4907_v26  ;;  %v4926_v53 = vsub.f32 %v9553_v35, %v4910_v33 }
 0xa5e   : > { %v7570_v7 = vpop.f32.mrf.mxu0 }
 0xa5f   : > { %v9649_v49 = vadd.f32 %v7570_v7, %v3327_v22  ;;  %v4955_v43 = vmul.f32 1.442695, %v4925_v39  ;;  %v4957_v27 = vmul.f32 1.442695, %v4926_v53 }
 0xa60   : > { %v9651_v47 = vpop.f32.mrf.mxu0 }
 0xa61   : > { %7985 = vpow2.f32 %v4955_v43 }
 0xa62   : > { %v9653_v50 = vpop.f32.mrf.mxu0  ;;  %v9673_v62 = vpop.eup %7981  ;;  %7987 = vpow2.f32 %v4957_v27 }
 0xa63   : > { %v4887_v56 = vsel %vm1519_vm2, %v9653_v50, -inf  ;;  %v9677_v1 = vpop.eup %7983  ;;  %v4989_v38 = vsel %vm1519_vm2, %v9673_v62, 0.0 }
 0xa64   : > { %v7599_v5 = vpop.f32.mrf.mxu0  ;;  %4888 = vmax.xlane.f32.xlu0 %v4887_v56  ;;  %v4992_v4 = vsel %vm1519_vm2, %v9677_v1, 0.0 }
 0xa66   : > { %v9657_v11 = vpop.f32.mrf.mxu0 }
 0xa67   : > { %v4890_v12 = vsel %vm1519_vm2, %v9657_v11, -inf }
 0xa68   : > { %v7600_v17 = vpop.f32.mrf.mxu0  ;;  %4891 = vmax.xlane.f32.xlu1 %v4890_v12 }
 0xa6a   : > { %v9661_v6 = vpop.f32.mrf.mxu0 }
 0xa6b   : > { %v4899_v48 = vsel %vm1519_vm2, %v9661_v6, -inf }
 0xa6c   : > { %v7611_v21 = vpop.f32.mrf.mxu0  ;;  %4900 = vmax.xlane.f32.xlu0 %v4899_v48 }
 0xa6e   : > { %v9665_v55 = vpop.f32.mrf.mxu0  ;;  %v9689_v22 = vpop.eup %7985 }
 0xa6f   : > { %v4902_v59 = vsel %vm1519_vm2, %v9665_v55, -inf  ;;  %v9691_v7 = vpop.eup %7987  ;;  %v5001_v56 = vsel %vm1519_vm2, %v9689_v22, 0.0 }
 0xa70   : > { %v7612_v63 = vpop.f32.mrf.mxu0  ;;  %v5004_v5 = vsel %vm1519_vm2, %v9691_v7, 0.0 }
 0xa79   : > { %5094 = vrot.lane.b32.xlu1 %v10561_v2, %s8121_s1 }
 0xa82   : > { %5047 = vrot.lane.b32.xlu0 %v10562_v31, %s8121_s1 }
 0xa9d   : > { %4903 = vmax.xlane.f32.xlu1 %v4902_v59 }
 0xaa1   : > { %4990 = vadd.xlane.f32.xlu0 %v4989_v38  ;;  %4993 = vadd.xlane.f32.xlu1 %v4992_v4 }
 0xab2   : > { %5188 = vrot.lane.b32.xlu1 %v10563_v51, %s8121_s1 }
 0xab7   : > { %5141 = vrot.lane.b32.xlu0 %v10564_v25, %s8121_s1  ;;  %v4961_v13 = vpop.xlane.xlu0 %4960 }
 0xabb   : > { %v4964_v12 = vpop.xlane.xlu1 %4963 }
 0xabf   : > { %v4967_v35 = vpop.xlane.xlu0 %4966 }
 0xac3   : > { %v4970_v17 = vpop.xlane.xlu1 %4969 }
 0xac4   : > { %7989 = vrcp.f32 %v4970_v17 }
 0xac5   : > { %7991 = vrcp.f32 %v4967_v35 }
 0xac6   : > { %7993 = vrcp.f32 %v4964_v12 }
 0xac7   : > { %v4973_v48 = vpop.xlane.xlu0 %4972  ;;  %7995 = vrcp.f32 %v4961_v13 }
 0xacb   : > { %v4976_v21 = vpop.xlane.xlu1 %4975 }
 0xacf   : > { %v4979_v63 = vpop.xlane.xlu0 %4978 }
 0xad1   : > { %v7990_v42 = vpop.eup %7989 }
 0xad2   : > { %v7992_v16 = vpop.eup %7991  ;;  %v5026_v59 = vmul.f32 %v7990_v42, %v9589_v57 }
 0xad3   : > { %v4982_v2 = vpop.xlane.xlu1 %4981  ;;  %v7994_v38 = vpop.eup %7993  ;;  %v5025_v51 = vmul.f32 %v7992_v16, %v9584_v52 }
 0xad4   : > { %v7996_v33 = vpop.eup %7995 }
 0xad5   : > { %v5040_v53 = vpack.c.bf16 %v5026_v59, %v5025_v51 }
 0xad6   : > { %5002 = vadd.xlane.f32.xlu0 %v5001_v56  ;;  %5005 = vadd.xlane.f32.xlu1 %v5004_v5 }
 0xaed   : > { %v4889_v31 = vpop.xlane.xlu0 %4888 }
 0xaee   : > { %v4919_v19 = vsub.f32 %v9653_v50, %v4889_v31  ;;  %v5024_v50 = vmul.f32 %v7994_v38, %v9579_v10  ;;  %v10565_v38 = vld [vmem:[#allocation7_spill] sm:$0xff] }
 0xaf0   : > { %v4943_v14 = vmul.f32 1.442695, %v4919_v19 }
 0xaf1   : > { %v4892_v8 = vpop.xlane.xlu1 %4891 }
 0xaf2   : > { %7997 = vpow2.f32 %v4943_v14  ;;  %v4920_v15 = vsub.f32 %v9657_v11, %v4892_v8  ;;  %v5023_v11 = vmul.f32 %v7996_v33, %v9574_v54 }
 0xaf4   : > { %v4945_v4 = vmul.f32 1.442695, %v4920_v15  ;;  %v5039_v52 = vpack.c.bf16 %v5024_v50, %v5023_v11 }
 0xaf5   : > { %v4901_v25 = vpop.xlane.xlu0 %4900  ;;  %v5095_v26 = vpop.permute.xlu1 %5094 }
 0xaf6   : > { %7999 = vpow2.f32 %v4945_v4  ;;  %v4923_v39 = vsub.f32 %v9661_v6, %v4901_v25  ;;  %7626 = vmatpush3.bf16.msra.mxu1 %v5095_v26 }
 0xaf7   : > { %7637 = vmatprep.subr.bf16.mxu1 %v10509_v9 }
 0xaf8   : > { %v4951_v43 = vmul.f32 1.442695, %v4923_v39 }
 0xaf9   : > { %v5048_v57 = vpop.permute.xlu0 %5047  ;;  %7628 = vmatmul.mubr.msk.bf16.vlgmr.msra.gmra.mxu1 %vm1519_vm2, %v5040_v53 }
 0xafa   : > { %8001 = vpow2.f32 %v4951_v43  ;;  %7620 = vmatpush3.bf16.msra.mxu0 %v5048_v57  ;;  %7639 = vmatprep.mubr.msk.bf16.mxu1 %vm8118_vm0, %v10509_v9 }
 0xafb   : > { %7631 = vmatprep.subr.bf16.mxu0 %v10509_v9  ;;  %8003 = vrcp.f32 %v4976_v21 }
 0xafc   : > { %8005 = vrcp.f32 %v4982_v2 }
 0xafd   : > { %7622 = vmatmul.mubr.msk.bf16.vlgmr.msra.gmra.mxu0 %vm1519_vm2, %v5039_v52  ;;  %8007 = vrcp.f32 %v4973_v48 }
 0xafe   : > { %7633 = vmatprep.mubr.msk.bf16.mxu0 %vm8118_vm0, %v10509_v9  ;;  %8009 = vrcp.f32 %v4979_v63 }
 0xaff   : > { %v9712_v10 = vpop.eup %7997 }
 0xb00   : > { %v4983_v54 = vsel %vm1519_vm2, %v9712_v10, 0.0 }
 0xb01   : > { %4984 = vadd.xlane.f32.xlu1 %v4983_v54 }
 0xb03   : > { %v9716_v6 = vpop.eup %7999 }
 0xb04   : > { %v4986_v27 = vsel %vm1519_vm2, %v9716_v6, 0.0 }
 0xb05   : > { %4987 = vadd.xlane.f32.xlu0 %v4986_v27 }
 0xb07   : > { %v9720_v56 = vpop.eup %8001 }
 0xb08   : > { %v4995_v5 = vsel %vm1519_vm2, %v9720_v56, 0.0  ;;  %v8004_v17 = vpop.eup %8003 }
 0xb09   : > { %4996 = vadd.xlane.f32.xlu1 %v4995_v5  ;;  %v8006_v35 = vpop.eup %8005  ;;  %v5028_v48 = vmul.f32 %v8004_v17, %v9597_v28 }
 0xb0a   : > { %v8008_v19 = vpop.eup %8007  ;;  %v5030_v21 = vmul.f32 %v8006_v35, %v9613_v18 }
 0xb1a   : > { %5282 = vrot.lane.b32.xlu1 %v10545_v45, %s8121_s1  ;;  %v8010_v45 = vpop.eup %8009 }
 0xb1e   : > { %5329 = vrot.lane.b32.xlu1 %v8490_v24, %s8121_s1  ;;  %v5027_v24 = vmul.f32 %v8008_v19, %v9593_v61 }
 0xb20   : > { %v5041_v2 = vpack.c.bf16 %v5028_v48, %v5027_v24  ;;  %v7731_v48 = vld [vmem:[%s10471_s7 + $0x38] sm:$0xff]  }
 0xb22   : > { %5376 = vrot.lane.b32.xlu1 %v8488_v23, %s8121_s1  ;;  %v5029_v23 = vmul.f32 %v8010_v45, %v9601_v29 }
 0xb24   : > { %v5042_v8 = vpack.c.bf16 %v5030_v21, %v5029_v23 }
 0xb26   : > { %v4904_v12 = vpop.xlane.xlu1 %4903 }
 0xb27   : > { %v4924_v13 = vsub.f32 %v9665_v55, %v4904_v12 }
 0xb29   : > { %v4953_v31 = vmul.f32 1.442695, %v4924_v13 }
 0xb2a   : > { %v4991_v42 = vpop.xlane.xlu0 %4990  ;;  %v4994_v14 = vpop.xlane.xlu1 %4993 }
 0xb2b   : > { %8011 = vpow2.f32 %v4953_v31 }
 0xb2c   : > { %8013 = vrcp.f32 %v4991_v42 }
 0xb2d   : > { %8015 = vrcp.f32 %v4994_v14 }
 0xb2e   : > { %v5142_v63 = vpop.permute.xlu0 %5141  ;;  %v5189_v55 = vpop.permute.xlu1 %5188 }
 0xb2f   : > { %7632 = vmatpush3.bf16.msra.mxu0 %v5142_v63  ;;  %7638 = vmatpush3.bf16.msra.mxu1 %v5189_v55  ;;  %v7732_v63 = vld [vmem:[%s10471_s7 + $0x30] sm:$0xff]  }
 0xb30   : > { %7649 = vmatprep.subr.bf16.mxu1 %v10509_v9  ;;  %7643 = vmatprep.subr.bf16.mxu0 %v10509_v9 }
 0xb32   : > { %7634 = vmatmul.mubr.msk.bf16.vlgmr.msra.gmra.mxu0 %vm1519_vm2, %v5041_v2  ;;  %7640 = vmatmul.mubr.msk.bf16.vlgmr.msra.gmra.mxu1 %vm1519_vm2, %v5042_v8 }
 0xb33   : > { %7651 = vmatprep.mubr.msk.bf16.mxu1 %vm8118_vm0, %v10509_v9  ;;  %7645 = vmatprep.mubr.msk.bf16.mxu0 %vm8118_vm0, %v10509_v9 }
 0xb38   : > { %v8012_v61 = vpop.eup %8011 }
 0xb39   : > { %v8014_v28 = vpop.eup %8013  ;;  %v4998_v29 = vsel %vm1519_vm2, %v8012_v61, 0.0 }
 0xb3a   : > { %v8016_v18 = vpop.eup %8015  ;;  %v5033_v16 = vmul.f32 %v8014_v28, %v9673_v62  ;;  %4999 = vadd.xlane.f32.xlu0 %v4998_v29 }
 0xb3b   : > { %v5034_v15 = vmul.f32 %v8016_v18, %v9677_v1 }
 0xb3d   : > { %v5044_v59 = vpack.c.bf16 %v5034_v15, %v5033_v16 }
 0xb50   : > { %5235 = vrot.lane.b32.xlu0 %v10565_v38, %s8121_s1 }
 0xb5f   : > { %v5003_v4 = vpop.xlane.xlu0 %5002  ;;  %v5006_v51 = vpop.xlane.xlu1 %5005 }
 0xb60   : > { %8017 = vrcp.f32 %v5003_v4 }
 0xb61   : > { %8019 = vrcp.f32 %v5006_v51 }
 0xb6d   : > { %v8018_v39 = vpop.eup %8017 }
 0xb6e   : > { %v8020_v50 = vpop.eup %8019  ;;  %v5037_v1 = vmul.f32 %v8018_v39, %v9689_v22 }
 0xb6f   : > { %v5038_v53 = vmul.f32 %v8020_v50, %v9691_v7 }
 0xb71   : > { %v5046_v11 = vpack.c.bf16 %v5038_v53, %v5037_v1 }
 0xb8a   : > { %v4985_v25 = vpop.xlane.xlu1 %4984 }
 0xb8e   : > { %v4988_v57 = vpop.xlane.xlu0 %4987 }
 0xb8f   : > { %8021 = vrcp.f32 %v4988_v57 }
 0xb90   : > { %8023 = vrcp.f32 %v4985_v25 }
 0xb92   : > { %v4997_v26 = vpop.xlane.xlu1 %4996 }
 0xb93   : > { %8025 = vrcp.f32 %v4997_v26 }
 0xb96   : > { %v5283_v33 = vpop.permute.xlu1 %5282 }
 0xb97   : > { %7650 = vmatpush3.bf16.msra.mxu1 %v5283_v33 }
 0xb98   : > { %7661 = vmatprep.subr.bf16.mxu1 %v10509_v9 }
 0xb9a   : > { %7652 = vmatmul.mubr.msk.bf16.vlgmr.msra.gmra.mxu1 %vm1519_vm2, %v5044_v59  ;;  %v5330_v62 = vpop.permute.xlu1 %5329 }
 0xb9b   : > { %7663 = vmatprep.mubr.msk.bf16.mxu1 %vm8118_vm0, %v10509_v9 }
 0xb9c   : > { %v8022_v35 = vpop.eup %8021 }
 0xb9d   : > { %v8024_v7 = vpop.eup %8023  ;;  %v5032_v19 = vmul.f32 %v8022_v35, %v9716_v6 }
 0xb9e   : > { %v5377_v43 = vpop.permute.xlu1 %5376  ;;  %v5031_v42 = vmul.f32 %v8024_v7, %v9712_v10 }
 0xb9f   : > { %7662 = vmatpush3.bf16.msra.mxu1 %v5377_v43 }
 0xba0   : > { %v5043_v45 = vpack.c.bf16 %v5032_v19, %v5031_v42  ;;  %v8026_v21 = vpop.eup %8025 }
 0xba1   : > { %v5035_v10 = vmul.f32 %v8026_v21, %v9720_v56 }
 0xba2   : > { %7664 = vmatmul.mubr.msk.bf16.vlgmr.msra.gmra.mxu1 %vm1519_vm2, %v5046_v11 }
 0xbb9   : > { %v5134_v52 = vpop.f32.mrf.mxu1 }
 0xbbb   : > { %v7629_v54 = vpop.f32.mrf.mxu1 }
 0xbbd   : > { %v5087_v27 = vpop.f32.mrf.mxu0  ;;  %v5137_v5 = vpop.f32.mrf.mxu1 }
 0xbbf   : > { %v7623_v12 = vpop.f32.mrf.mxu0  ;;  %v7630_v13 = vpop.f32.mrf.mxu1 }
 0xbc1   : > { %v5090_v17 = vpop.f32.mrf.mxu0 }
 0xbc2   : > { %v5423_v55 = vpack.c.bf16 %v5090_v17, %v5087_v27 }
 0xbc3   : > { %v7624_v22 = vpop.f32.mrf.mxu0  ;;  %v5000_v31 = vpop.xlane.xlu0 %4999 }
 0xbc4   : > { %8027 = vrcp.f32 %v5000_v31  ;;  %v10566_v22 = vld [vmem:[#allocation19_spill] sm:$0xff]  ;;  %v10567_v31 = vld [vmem:[#allocation8_spill] sm:$0xff] }
 0xbc5   : > { %v3271_v7 = vadd.f32 %v10567_v31, %v10566_v22 }
 0xbc7   : > { %v5236_v14 = vpop.permute.xlu0 %5235 }
 0xbc8   : > { %7644 = vmatpush3.bf16.msra.mxu0 %v5236_v14  ;;  %v9784_v14 = vld [vmem:[%s10472_s8] ss:$0 sm:$0xff] }
 0xbc9   : > { %7655 = vmatprep.subr.bf16.mxu0 %v10509_v9 }
 0xbcb   : > { %7646 = vmatmul.mubr.msk.bf16.vlgmr.msra.gmra.mxu0 %vm1519_vm2, %v5043_v45 }
 0xbcc   : > { %7656 = vmatpush3.bf16.msra.mxu0 %v5330_v62  ;;  %7657 = vmatprep.mubr.msk.bf16.mxu0 %vm8118_vm0, %v10509_v9  ;;  %v5424_v9 = vpack.c.bf16 %v5137_v5, %v5134_v52 }
 0xbcd   : > { %7667 = vmatprep.subr.bf16.mxu0 %v7731_v48 }
 0xbd1   : > { %v8028_v6 = vpop.eup %8027 }
 0xbd2   : > { %v5036_v24 = vmul.f32 %v8028_v6, %v8012_v61 }
 0xbd4   : > { %v5045_v23 = vpack.c.bf16 %v5036_v24, %v5035_v10 }
 0xbd6   : > { %7658 = vmatmul.mubr.msk.bf16.vlgmr.msra.gmra.mxu0 %vm1519_vm2, %v5045_v23  ;;  %v8093_v23 = vld [vmem:[%s8256_s23] sm:$0xff] }
 0xbd7   : > { %7668 = vmatpush3.bf16.msra.mxu0 %v7731_v48  ;;  %7671 = vmatprep.mubr.msk.bf16.mxu0 %vm1142_vm1, %v5423_v55  ;;  %v4440_v48 = vadd.f32 %v9603_v34, %v3271_v7 }
 0xbd8   : > { %7669 = vmatprep.subr.bf16.mxu0 %v7732_v63 }
 0xbdb   : > { %7670 = vmatpush3.bf16.msra.mxu0 %v7732_v63 }
 0xbde   : > { %7672 = vmatmul.mubr.msk.bf16.vlgmr.msra.gmra.mxu0 %vm1142_vm1, %v5424_v9  ;;  %v8094_v9 = vld [vmem:[%s8256_s23 + $0x8] sm:$0xff] }
 0xbf2   : > { %v5181_v2 = vpop.f32.mrf.mxu0  ;;  %v5228_v8 = vpop.f32.mrf.mxu1 }
 0xbf4   : > { %v7635_v56 = vpop.f32.mrf.mxu0  ;;  %v7641_v61 = vpop.f32.mrf.mxu1 }
 0xbf6   : > { %v5184_v28 = vpop.f32.mrf.mxu0  ;;  %v5231_v29 = vpop.f32.mrf.mxu1 }
 0xbf7   : > { %v5425_v18 = vpack.c.bf16 %v5184_v28, %v5181_v2  ;;  %v5426_v16 = vpack.c.bf16 %v5231_v29, %v5228_v8  ;;  %v8095_v2 = vld [vmem:[%s8256_s23 + $0x10] sm:$0xff]  ;;  %v10568_v29 = vld [vmem:[#allocation21_spill] sm:$0xff] }
 0xbf8   : > { %v7636_v15 = vpop.f32.mrf.mxu0  ;;  %v7642_v59 = vpop.f32.mrf.mxu1 }
 0xbf9   : > { %7675 = vmatprep.mubr.msk.bf16.mxu0 %vm1142_vm1, %v5425_v18  ;;  %v10569_v18 = vld [vmem:[#allocation10_spill] sm:$0xff] }
 0xbfa   : > { %7676 = vmatmul.mubr.msk.bf16.gmra.mxu0 %vm1142_vm1, %v5426_v16  ;;  %v3287_v16 = vadd.f32 %v10569_v18, %v10568_v29 }
 0xc5a   : > { %v5322_v38 = vpop.f32.mrf.mxu1 }
 0xc5c   : > { %v7653_v4 = vpop.f32.mrf.mxu1 }
 0xc5d   : > { %v4444_v4 = vadd.f32 %v9623_v46, %v3287_v16 }
 0xc5e   : > { %v5325_v51 = vpop.f32.mrf.mxu1 }
 0xc5f   : > { %v5428_v11 = vpack.c.bf16 %v5325_v51, %v5322_v38 }
 0xc60   : > { %v7654_v25 = vpop.f32.mrf.mxu1 }
 0xc62   : > { %v5416_v26 = vpop.f32.mrf.mxu1 }
 0xc64   : > { %v7665_v33 = vpop.f32.mrf.mxu1 }
 0xc66   : > { %v5419_v39 = vpop.f32.mrf.mxu1 }
 0xc67   : > { %v5430_v12 = vpack.c.bf16 %v5419_v39, %v5416_v26 }
 0xc68   : > { %v7666_v50 = vpop.f32.mrf.mxu1 }
 0xc69   : > { %v8097_v50 = vld [vmem:[%s8256_s23 + $0x20] sm:$0xff] }
 0xc8b   : > { %v5275_v62 = vpop.f32.mrf.mxu0 }
 0xc8d   : > { %v7647_v1 = vpop.f32.mrf.mxu0 }
 0xc8e   : > { %v8098_v1 = vld [vmem:[%s8256_s23 + $0x28] sm:$0xff] }
 0xc8f   : > { %v5278_v53 = vpop.f32.mrf.mxu0 }
 0xc90   : > { %v5427_v43 = vpack.c.bf16 %v5278_v53, %v5275_v62  ;;  %v8099_v53 = vld [vmem:[%s8256_s23 + $0x30] sm:$0xff] }
 0xc91   : > { %v7648_v57 = vpop.f32.mrf.mxu0 }
 0xc92   : > { %7679 = vmatprep.mubr.msk.bf16.mxu0 %vm1142_vm1, %v5427_v43 }
 0xc93   : > { %7680 = vmatmul.mubr.msk.bf16.gmra.mxu0 %vm1142_vm1, %v5428_v11 }
 0xc96   : > { %v5369_v52 = vpop.f32.mrf.mxu0 }
 0xc98   : > { %v7659_v54 = vpop.f32.mrf.mxu0 }
 0xc99   : > { %v10570_v54 = vld [vmem:[#allocation25_spill] sm:$0xff] }
 0xc9a   : > { %v5372_v27 = vpop.f32.mrf.mxu0 }
 0xc9b   : > { %v5429_v5 = vpack.c.bf16 %v5372_v27, %v5369_v52  ;;  %v10571_v27 = vld [vmem:[#allocation14_spill] sm:$0xff] }
 0xc9c   : > { %v7660_v13 = vpop.f32.mrf.mxu0 }
 0xc9d   : > { %7683 = vmatprep.mubr.msk.bf16.mxu0 %vm1142_vm1, %v5429_v5  ;;  %v3303_v5 = vadd.f32 %v10571_v27, %v10570_v54 }
 0xc9e   : > { %v7673_v17 = vpop.f32.mrf.mxu0  ;;  %7684 = vmatmul.mubr.msk.bf16.gmra.mxu0 %vm1142_vm1, %v5430_v12 }
 0xc9f   : > { %v5566_v19 = vadd.f32 %v7673_v17, %v9561_v41 }
 0xca0   : > { %v5501_v35 = vpop.f32.mrf.mxu0 }
 0xca1   : > { %v5564_v42 = vadd.f32 %v5501_v35, %v9565_v30  ;;  %v5589_v10 = vadd.f32 %v9784_v14, %v5566_v19  ;;  %v4448_v35 = vadd.f32 %v9637_v36, %v3303_v5 }
 0xca2   : > { %v7674_v45 = vpop.f32.mrf.mxu0 }
 0xca3   : > { %v5587_v21 = vadd.f32 %v9784_v14, %v5564_v42  ;;  %v5567_v24 = vadd.f32 %v7674_v45, %v9567_v58  ;;  %v9800_v8 = vadd.f32 %v8095_v2, %v5589_v10  ;;  %v8096_v58 = vld [vmem:[%s8256_s23 + $0x18] sm:$0xff]  ;;  %v8102_v10 = vld [vmem:[%s8256_s23 + $0x48] sm:$0xff] }
 0xca4   : > { %v5504_v6 = vpop.f32.mrf.mxu0 }
 0xca5   : > { %v5565_v41 = vadd.f32 %v5504_v6, %v4440_v48  ;;  %v9791_v30 = vadd.f32 %v8093_v23, %v5587_v21  ;;  %v5590_v55 = vadd.f32 %v9784_v14, %v5567_v24  ;;  %v8101_v48 = vld [vmem:[%s8256_s23 + $0x40] sm:$0xff] }
 0xca7   : > { %v5588_v63 = vadd.f32 %v9784_v14, %v5565_v41  ;;  %5621 = vadd.xlane.f32.xlu0 %v9791_v30  ;;  %v9805_v56 = vadd.f32 %v8096_v58, %v5590_v55  ;;  %v8103_v41 = vld [vmem:[%s8256_s23 + $0x50] sm:$0xff]  ;;  %v10573_v55 = vld [vmem:[#allocation18_spill] sm:$0xff] }
 0xca9   : > { %v9797_v34 = vadd.f32 %v8094_v9, %v5588_v63  ;;  %v10572_v63 = vld [vmem:[#allocation29_spill] sm:$0xff] }
 0xcaa   : > { %v3319_v9 = vadd.f32 %v10573_v55, %v10572_v63  ;;  %v7742_v63 = vld [vmem:[%s10473_s9 + $0x40] ss:$8 sps:$4 sm:$0xff]   ;;  %v7747_v55 = vld [vmem:[%s10473_s9 + $0x34] ss:$8 sps:$4 sm:$0xff]  }
 0xcab   : > { %5623 = vadd.xlane.f32.xlu1 %v9797_v34  ;;  %5625 = vadd.xlane.f32.xlu0 %v9800_v8 }
 0xcac   : > { %v4452_v18 = vadd.f32 %v9651_v47, %v3319_v9  ;;  %v7745_v9 = vld [vmem:[%s10473_s9 + $0x30] ss:$8 sps:$4 sm:$0xff]  }
 0xcaf   : > { %5627 = vadd.xlane.f32.xlu0 %v9805_v56 }
 0xcba   : > { %v7677_v61 = vpop.f32.mrf.mxu0 }
 0xcbb   : > { %v5570_v15 = vadd.f32 %v7677_v61, %v9611_v0 }
 0xcbc   : > { %v5517_v28 = vpop.f32.mrf.mxu0 }
 0xcbd   : > { %v5568_v59 = vadd.f32 %v5517_v28, %v9617_v37  ;;  %v5593_v26 = vadd.f32 %v9784_v14, %v5570_v15  ;;  %v8104_v28 = vld [vmem:[%s8256_s23 + $0x58] sm:$0xff] }
 0xcbe   : > { %v7678_v38 = vpop.f32.mrf.mxu0 }
 0xcbf   : > { %v5591_v51 = vadd.f32 %v9784_v14, %v5568_v59  ;;  %v5571_v33 = vadd.f32 %v7678_v38, %v9621_v40  ;;  %v9826_v43 = vadd.f32 %v8099_v53, %v5593_v26  ;;  %v8100_v40 = vld [vmem:[%s8256_s23 + $0x38] sm:$0xff] }
 0xcc0   : > { %v5520_v25 = vpop.f32.mrf.mxu0 }
 0xcc1   : > { %v5569_v39 = vadd.f32 %v5520_v25, %v4444_v4  ;;  %v9817_v62 = vadd.f32 %v8097_v50, %v5591_v51  ;;  %v5594_v37 = vadd.f32 %v9784_v14, %v5571_v33  ;;  %v8105_v25 = vld [vmem:[%s8256_s23 + $0x60] sm:$0xff] }
 0xcc3   : > { %v5592_v0 = vadd.f32 %v9784_v14, %v5569_v39  ;;  %5629 = vadd.xlane.f32.xlu0 %v9817_v62  ;;  %v9831_v11 = vadd.f32 %v8100_v40, %v5594_v37 }
 0xcc5   : > { %v9823_v46 = vadd.f32 %v8098_v1, %v5592_v0  ;;  %v8106_v1 = vld [vmem:[%s8256_s23 + $0x68] sm:$0xff] }
 0xcc7   : > { %5631 = vadd.xlane.f32.xlu1 %v9823_v46  ;;  %5633 = vadd.xlane.f32.xlu0 %v9826_v43 }
 0xccb   : > { %5635 = vadd.xlane.f32.xlu1 %v9831_v11 }
 0xd30   : > { %v5622_v22 = vpop.xlane.xlu0 %5621 }
 0xd31   : > { %v5654_v15 = vmul.f32 0.0078125, %v5622_v22 }
 0xd33   : > { %v9874_v33 = vsub.f32 %v9791_v30, %v5654_v15  ;;  %v7754_v15 = vld [vmem:[%s10473_s9] ss:$8 sps:$4 sm:$0xff]  }
 0xd34   : > { %v5624_v4 = vpop.xlane.xlu1 %5623 }
 0xd35   : > { %v5655_v39 = vmul.f32 0.0078125, %v5624_v4 }
 0xd53   : > { %v7681_v57 = vpop.f32.mrf.mxu0 }
 0xd54   : > { %v5574_v12 = vadd.f32 %v7681_v57, %v9629_v3  ;;  %v9886_v57 = vsub.f32 %v9797_v34, %v5655_v39 }
 0xd55   : > { %v5533_v52 = vpop.f32.mrf.mxu0 }
 0xd56   : > { %v5572_v13 = vadd.f32 %v5533_v52, %v9633_v20  ;;  %v5597_v19 = vadd.f32 %v9784_v14, %v5574_v12  ;;  %v5626_v20 = vpop.xlane.xlu0 %5625  ;;  %v5632_v52 = vpop.xlane.xlu1 %5631  ;;  %v5686_v12 = vmul.f32 %v9874_v33, %v9874_v33  ;;  %v5687_v34 = vmul.f32 %v9886_v57, %v9886_v57 }
 0xd57   : > { %v7682_v17 = vpop.f32.mrf.mxu0  ;;  %v5656_v0 = vmul.f32 0.0078125, %v5626_v20 }
 0xd58   : > { %v5595_v31 = vadd.f32 %v9784_v14, %v5572_v13  ;;  %v5575_v42 = vadd.f32 %v7682_v17, %v9635_v32  ;;  %v9852_v23 = vadd.f32 %v8103_v41, %v5597_v19  ;;  %v7739_v41 = vld [vmem:[%s10473_s9 + $0x50] ss:$8 sps:$4 sm:$0xff]  }
 0xd59   : > { %v5536_v7 = vpop.f32.mrf.mxu0  ;;  %v9889_v54 = vsub.f32 %v9800_v8, %v5656_v0 }
 0xd5a   : > { %v5573_v45 = vadd.f32 %v5536_v7, %v4448_v35  ;;  %v9843_v21 = vadd.f32 %v8101_v48, %v5595_v31  ;;  %v5598_v36 = vadd.f32 %v9784_v14, %v5575_v42  ;;  %v5628_v59 = vpop.xlane.xlu0 %5627  ;;  %v5659_v35 = vmul.f32 0.0078125, %v5632_v52  ;;  %v5636_v7 = vpop.xlane.xlu1 %5635  ;;  %v7733_v48 = vld [vmem:[%s10473_s9 + $0x70] ss:$8 sps:$4 sm:$0xff]  }
 0xd5b   : > { %v5657_v30 = vmul.f32 0.0078125, %v5628_v59  ;;  %v5688_v31 = vmul.f32 %v9889_v54, %v9889_v54 }
 0xd5c   : > { %v5596_v3 = vadd.f32 %v9784_v14, %v5573_v45  ;;  %5637 = vadd.xlane.f32.xlu0 %v9843_v21  ;;  %v9861_v29 = vadd.f32 %v8104_v28, %v5598_v36  ;;  %v5661_v45 = vmul.f32 0.0078125, %v5636_v7  ;;  %v7738_v36 = vld [vmem:[%s10473_s9 + $0x64] ss:$8 sps:$4 sm:$0xff]   ;;  %v7753_v28 = vld [vmem:[%s10473_s9 + $0x14] ss:$8 sps:$4 sm:$0xff]  }
 0xd5d   : > { %v9898_v17 = vsub.f32 %v9805_v56, %v5657_v30  ;;  %v9910_v56 = vsub.f32 %v9823_v46, %v5659_v35 }
 0xd5e   : > { %v7685_v6 = vpop.f32.mrf.mxu0  ;;  %v9849_v24 = vadd.f32 %v8102_v10, %v5596_v3  ;;  %v5630_v50 = vpop.xlane.xlu0 %5629  ;;  %v7735_v3 = vld [vmem:[%s10473_s9 + $0x74] ss:$8 sps:$4 sm:$0xff]   ;;  %v9924_v46 = vsub.f32 %v9831_v11, %v5661_v45 }
 0xd5f   : > { %v5578_v2 = vadd.f32 %v7685_v6, %v9643_v44  ;;  %v5658_v27 = vmul.f32 0.0078125, %v5630_v50  ;;  %v5689_v19 = vmul.f32 %v9898_v17, %v9898_v17  ;;  %5958 = vmatprep.subr.bf16.mxu1 %v7735_v3  ;;  %v7736_v6 = vld [vmem:[%s10473_s9 + $0x60] ss:$8 sps:$4 sm:$0xff]   ;;  %v7741_v10 = vld [vmem:[%s10473_s9 + $0x54] ss:$8 sps:$4 sm:$0xff]  }
 0xd60   : > { %v5549_v32 = vpop.f32.mrf.mxu0  ;;  %5639 = vadd.xlane.f32.xlu1 %v9849_v24  ;;  %5641 = vadd.xlane.f32.xlu0 %v9852_v23  ;;  %v5693_v11 = vmul.f32 %v9924_v46, %v9924_v46 }
 0xd61   : > { %v5576_v58 = vadd.f32 %v5549_v32, %v9647_v60  ;;  %v5601_v44 = vadd.f32 %v9784_v14, %v5578_v2  ;;  %v9903_v8 = vsub.f32 %v9817_v62, %v5658_v27  ;;  %5959 = vmatpush1.bf16.msra.mxu1 %v7733_v48  ;;  %v7744_v32 = vld [vmem:[%s10473_s9 + $0x44] ss:$8 sps:$4 sm:$0xff]  }
 0xd62   : > { %v7686_v61 = vpop.f32.mrf.mxu0  ;;  %v5634_v13 = vpop.xlane.xlu0 %5633  ;;  %5960 = vmatprep.subr.bf16.mxu1 %v7738_v36  ;;  %v7750_v2 = vld [vmem:[%s10473_s9 + $0x24] ss:$8 sps:$4 sm:$0xff]  }
 0xd63   : > { %v5599_v16 = vadd.f32 %v9784_v14, %v5576_v58  ;;  %v5579_v60 = vadd.f32 %v7686_v61, %v9649_v49  ;;  %v8107_v49 = vld [vmem:[%s8256_s23 + $0x70] sm:$0xff]  ;;  %v5660_v22 = vmul.f32 0.0078125, %v5634_v13  ;;  %v5690_v62 = vmul.f32 %v9903_v8, %v9903_v8  ;;  %v7748_v58 = vld [vmem:[%s10473_s9 + $0x20] ss:$8 sps:$4 sm:$0xff]  }
 0xd64   : > { %v5552_v38 = vpop.f32.mrf.mxu0  ;;  %5643 = vadd.xlane.f32.xlu1 %v9861_v29  ;;  %v9881_v40 = vadd.f32 %v8107_v49, %v5601_v44  ;;  %v7751_v61 = vld [vmem:[%s10473_s9 + $0x10] ss:$8 sps:$4 sm:$0xff]  }
 0xd65   : > { %v5577_v51 = vadd.f32 %v5552_v38, %v4452_v18  ;;  %v9869_v26 = vadd.f32 %v8105_v25, %v5599_v16  ;;  %v5602_v37 = vadd.f32 %v9784_v14, %v5579_v60  ;;  %v9913_v42 = vsub.f32 %v9826_v43, %v5660_v22  ;;  %5961 = vmatpush1.bf16.msra.mxu1 %v7736_v6  ;;  %v7756_v18 = vld [vmem:[%s10473_s9 + $0x4] ss:$8 sps:$4 sm:$0xff]  }
 0xd66   : > { %v5691_v43 = vmul.f32 %v9910_v56, %v9910_v56  ;;  %5962 = vmatprep.subr.bf16.mxu1 %v7741_v10  ;;  %v8122_v16 = vmov 0  }
 0xd67   : > { %v5600_v47 = vadd.f32 %v9784_v14, %v5577_v51  ;;  %5645 = vadd.xlane.f32.xlu0 %v9869_v26  ;;  %v8108_v14 = vld [vmem:[%s8256_s23 + $0x78] sm:$0xff]  ;;  %v5692_v20 = vmul.f32 %v9913_v42, %v9913_v42  ;;  %5990 = vmatprep.mubr.bf16.mxu1 %v8122_v16 }
 0xd68   : > { %v9892_v5 = vadd.f32 %v8108_v14, %v5602_v37 }
 0xd69   : > { %v9878_v53 = vadd.f32 %v8106_v1, %v5600_v47  ;;  %5963 = vmatpush1.bf16.msra.mxu1 %v7739_v41 }
 0xd6a   : > { %5964 = vmatprep.subr.bf16.mxu1 %v7744_v32 }
 0xd6b   : > { %5647 = vadd.xlane.f32.xlu1 %v9878_v53  ;;  %5649 = vadd.xlane.f32.xlu0 %v9881_v40 }
 0xd6d   : > { %5965 = vmatpush1.bf16.msra.mxu1 %v7742_v63 }
 0xd6e   : > { %5966 = vmatprep.subr.bf16.mxu1 %v7747_v55 }
 0xd6f   : > { %5651 = vadd.xlane.f32.xlu1 %v9892_v5  ;;  %5702 = vadd.xlane.f32.xlu0 %v5686_v12 }
 0xd71   : > { %5967 = vmatpush1.bf16.msra.mxu1 %v7745_v9 }
 0xd72   : > { %5968 = vmatprep.subr.bf16.mxu1 %v7750_v2 }
 0xd73   : > { %5704 = vadd.xlane.f32.xlu1 %v5687_v34  ;;  %5706 = vadd.xlane.f32.xlu0 %v5688_v31 }
 0xd75   : > { %5969 = vmatpush1.bf16.msra.mxu1 %v7748_v58 }
 0xd76   : > { %5970 = vmatprep.subr.bf16.mxu1 %v7753_v28 }
 0xd77   : > { %5708 = vadd.xlane.f32.xlu1 %v5689_v19  ;;  %5710 = vadd.xlane.f32.xlu0 %v5690_v62 }
 0xd79   : > { %5971 = vmatpush1.bf16.msra.mxu1 %v7751_v61 }
 0xd7a   : > { %5972 = vmatprep.subr.bf16.mxu1 %v7756_v18 }
 0xd7b   : > { %5712 = vadd.xlane.f32.xlu1 %v5691_v43  ;;  %5714 = vadd.xlane.f32.xlu0 %v5692_v20 }
 0xd7d   : > { %5973 = vmatpush1.bf16.msra.mxu1 %v7754_v15 }
 0xd7f   : > { %5716 = vadd.xlane.f32.xlu1 %v5693_v11 }
 0xde5   : > { %v5638_v59 = vpop.xlane.xlu0 %5637 }
 0xde6   : > { %v5662_v38 = vmul.f32 0.0078125, %v5638_v59 }
 0xde8   : > { %v9976_v4 = vsub.f32 %v9843_v21, %v5662_v38  ;;  %v10019_v38 = vld [vmem:[%s10477_s13] ss:$0 sm:$0xff] }
 0xde9   : > { %v5640_v44 = vpop.xlane.xlu1 %5639  ;;  %v5642_v60 = vpop.xlane.xlu0 %5641 }
 0xdea   : > { %v5663_v51 = vmul.f32 0.0078125, %v5640_v44  ;;  %v5664_v25 = vmul.f32 0.0078125, %v5642_v60  ;;  %v5694_v47 = vmul.f32 %v9976_v4, %v9976_v4 }
 0xdec   : > { %v9981_v39 = vsub.f32 %v9849_v24, %v5663_v51  ;;  %v9984_v50 = vsub.f32 %v9852_v23, %v5664_v25  ;;  %5718 = vadd.xlane.f32.xlu0 %v5694_v47 }
 0xded   : > { %v5644_v0 = vpop.xlane.xlu1 %5643 }
 0xdee   : > { %v5665_v37 = vmul.f32 0.0078125, %v5644_v0  ;;  %v5695_v21 = vmul.f32 %v9981_v39, %v9981_v39  ;;  %v5696_v1 = vmul.f32 %v9984_v50, %v9984_v50 }
 0xdf0   : > { %v9991_v49 = vsub.f32 %v9861_v29, %v5665_v37  ;;  %5720 = vadd.xlane.f32.xlu1 %v5695_v21  ;;  %5722 = vadd.xlane.f32.xlu0 %v5696_v1  ;;  %v5646_v30 = vpop.xlane.xlu0 %5645  ;;  %v10026_v37 = vld [vmem:[%s10478_s14] ss:$0 sm:$0xff] }
 0xdf1   : > { %v5666_v24 = vmul.f32 0.0078125, %v5646_v30 }
 0xdf2   : > { %v5697_v23 = vmul.f32 %v9991_v49, %v9991_v49 }
 0xdf3   : > { %v9996_v52 = vsub.f32 %v9869_v26, %v5666_v24 }
 0xdf4   : > { %v5648_v27 = vpop.xlane.xlu1 %5647  ;;  %5724 = vadd.xlane.f32.xlu1 %v5697_v23  ;;  %v5650_v14 = vpop.xlane.xlu0 %5649 }
 0xdf5   : > { %v5667_v12 = vmul.f32 0.0078125, %v5648_v27  ;;  %v5668_v13 = vmul.f32 0.0078125, %v5650_v14  ;;  %v5698_v34 = vmul.f32 %v9996_v52, %v9996_v52 }
 0xdf7   : > { %v10001_v29 = vsub.f32 %v9878_v53, %v5667_v12  ;;  %v10004_v35 = vsub.f32 %v9881_v40, %v5668_v13  ;;  %5726 = vadd.xlane.f32.xlu0 %v5698_v34 }
 0xdf8   : > { %v5652_v22 = vpop.xlane.xlu1 %5651  ;;  %v5703_v31 = vpop.xlane.xlu0 %5702 }
 0xdf9   : > { %v5669_v7 = vmul.f32 0.0078125, %v5652_v22  ;;  %v5734_v26 = vmul.f32 0.0078125, %v5703_v31  ;;  %v5699_v19 = vmul.f32 %v10001_v29, %v10001_v29  ;;  %v5700_v45 = vmul.f32 %v10004_v35, %v10004_v35 }
 0xdfb   : > { %v10011_v62 = vsub.f32 %v9892_v5, %v5669_v7  ;;  %v5750_v48 = vadd.f32 1e-05, %v5734_v26  ;;  %5728 = vadd.xlane.f32.xlu1 %v5699_v19  ;;  %5730 = vadd.xlane.f32.xlu0 %v5700_v45 }
 0xdfc   : > { %v5705_v53 = vpop.xlane.xlu1 %5704  ;;  %v5707_v40 = vpop.xlane.xlu0 %5706 }
 0xdfd   : > { %8029 = vrsqrt.f32 %v5750_v48  ;;  %v5735_v3 = vmul.f32 0.0078125, %v5705_v53  ;;  %v5736_v43 = vmul.f32 0.0078125, %v5707_v40  ;;  %v5701_v20 = vmul.f32 %v10011_v62, %v10011_v62 }
 0xdff   : > { %v5751_v36 = vadd.f32 1e-05, %v5735_v3  ;;  %v5752_v6 = vadd.f32 1e-05, %v5736_v43  ;;  %5732 = vadd.xlane.f32.xlu1 %v5701_v20 }
 0xe00   : > { %v5709_v11 = vpop.xlane.xlu1 %5708  ;;  %v5711_v10 = vpop.xlane.xlu0 %5710 }
 0xe01   : > { %8031 = vrsqrt.f32 %v5751_v36  ;;  %v5737_v41 = vmul.f32 0.0078125, %v5709_v11  ;;  %v5738_v32 = vmul.f32 0.0078125, %v5711_v10  ;;  %v7758_v36 = vld [vmem:[%s10475_s11 + $0x38] sm:$0xff]   ;;  %v7760_v10 = vld [vmem:[%s10475_s11 + $0x30] sm:$0xff]  }
 0xe02   : > { %8033 = vrsqrt.f32 %v5752_v6  ;;  %v7759_v6 = vld [vmem:[%s10475_s11 + $0x70] sm:$0xff]  }
 0xe03   : > { %v5753_v5 = vadd.f32 1e-05, %v5737_v41  ;;  %v5754_v9 = vadd.f32 1e-05, %v5738_v32  ;;  %v7761_v41 = vld [vmem:[%s10475_s11 + $0x68] sm:$0xff]   ;;  %v7763_v32 = vld [vmem:[%s10475_s11 + $0x60] sm:$0xff]  }
 0xe04   : > { %v5713_v63 = vpop.xlane.xlu1 %5712  ;;  %v5715_v58 = vpop.xlane.xlu0 %5714 }
 0xe05   : > { %8035 = vrsqrt.f32 %v5753_v5  ;;  %v5739_v55 = vmul.f32 0.0078125, %v5713_v63  ;;  %v5740_v15 = vmul.f32 0.0078125, %v5715_v58  ;;  %v7762_v5 = vld [vmem:[%s10475_s11 + $0x28] sm:$0xff]   ;;  %v7764_v63 = vld [vmem:[%s10475_s11 + $0x20] sm:$0xff]   ;;  %v7768_v58 = vld [vmem:[%s10475_s11 + $0x10] sm:$0xff]  }
 0xe07   : > { %v5755_v2 = vadd.f32 1e-05, %v5739_v55  ;;  %v5756_v51 = vadd.f32 1e-05, %v5740_v15  ;;  %v7765_v55 = vld [vmem:[%s10475_s11 + $0x58] sm:$0xff]   ;;  %v7772_v15 = vld [vmem:[%s10475_s11] sm:$0xff]  }
 0xe08   : > { %v5717_v61 = vpop.xlane.xlu1 %5716 }
 0xe09   : > { %8037 = vrsqrt.f32 %v5755_v2  ;;  %v5741_v28 = vmul.f32 0.0078125, %v5717_v61  ;;  %v7767_v2 = vld [vmem:[%s10475_s11 + $0x50] sm:$0xff]   ;;  %v7769_v61 = vld [vmem:[%s10475_s11 + $0x48] sm:$0xff]  }
 0xe0a   : > { %v8030_v18 = vpop.eup %8029  ;;  %8039 = vrsqrt.f32 %v5754_v9  ;;  %v7766_v9 = vld [vmem:[%s10475_s11 + $0x18] sm:$0xff]  }
 0xe0b   : > { %v5782_v59 = vmul.f32 %v8030_v18, %v9874_v33  ;;  %v5757_v44 = vadd.f32 1e-05, %v5741_v28  ;;  %v7770_v28 = vld [vmem:[%s10475_s11 + $0x8] sm:$0xff]   ;;  %v7771_v18 = vld [vmem:[%s10475_s11 + $0x40] sm:$0xff]  }
 0xe0d   : > { %v5804_v47 = vmul.f32 %v10019_v38, %v5782_v59  ;;  %8041 = vrsqrt.f32 %v5757_v44 }
 0xe0e   : > { %v8032_v60 = vpop.eup %8031  ;;  %8043 = vrsqrt.f32 %v5756_v51 }
 0xe0f   : > { %v5783_v25 = vmul.f32 %v8032_v60, %v9886_v57  ;;  %v8034_v0 = vpop.eup %8033  ;;  %v10030_v1 = vadd.f32 %v10026_v37, %v5804_v47 }
 0xe10   : > { %v5784_v57 = vmul.f32 %v8034_v0, %v9889_v54 }
 0xe11   : > { %v5805_v33 = vmul.f32 %v10019_v38, %v5783_v25 }
 0xe12   : > { %v8036_v21 = vpop.eup %8035  ;;  %v5806_v12 = vmul.f32 %v10019_v38, %v5784_v57 }
 0xe13   : > { %v10033_v30 = vadd.f32 %v10026_v37, %v5805_v33  ;;  %v5785_v24 = vmul.f32 %v8036_v21, %v9898_v17 }
 0xe14   : > { %v10047_v54 = vadd.f32 %v10026_v37, %v5806_v12 }
 0xe15   : > { %v5842_v23 = vpack.c.bf16 %v10033_v30, %v10030_v1  ;;  %v5807_v27 = vmul.f32 %v10019_v38, %v5785_v24 }
 0xe16   : > { %v8038_v14 = vpop.eup %8037 }
 0xe17   : > { %5991 = vmatmul.mubr.bf16.vlgmr.msra.gmra.mxu1 %v5842_v23  ;;  %v8040_v13 = vpop.eup %8039  ;;  %v10043_v34 = vadd.f32 %v10026_v37, %v5807_v27  ;;  %v5787_v22 = vmul.f32 %v8038_v14, %v9910_v56 }
 0xe18   : > { %6000 = vmatprep.mubr.bf16.mxu1 %v8122_v16  ;;  %v5786_v17 = vmul.f32 %v8040_v13, %v9903_v8 }
 0xe19   : > { %v5843_v31 = vpack.c.bf16 %v10043_v34, %v10047_v54  ;;  %v5809_v7 = vmul.f32 %v10019_v38, %v5787_v22 }
 0xe1a   : > { %v8042_v26 = vpop.eup %8041  ;;  %v5808_v45 = vmul.f32 %v10019_v38, %v5786_v17 }
 0xe1b   : > { %v8044_v19 = vpop.eup %8043  ;;  %v10056_v48 = vadd.f32 %v10026_v37, %v5809_v7  ;;  %v5789_v56 = vmul.f32 %v8042_v26, %v9924_v46 }
 0xe1c   : > { %v10060_v53 = vadd.f32 %v10026_v37, %v5808_v45  ;;  %v5788_v8 = vmul.f32 %v8044_v19, %v9913_v42  ;;  %v7757_v42 = vld [vmem:[%s10475_s11 + $0x78] sm:$0xff]  }
 0xe1d   : > { %v5811_v3 = vmul.f32 %v10019_v38, %v5789_v56  ;;  %7063 = vmatprep.subr.bf16.mxu0 %v7757_v42 }
 0xe1e   : > { %v5844_v40 = vpack.c.bf16 %v10056_v48, %v10060_v53  ;;  %v5810_v43 = vmul.f32 %v10019_v38, %v5788_v8  ;;  %7064 = vmatpush3.bf16.msra.mxu0 %v7758_v36 }
 0xe1f   : > { %6001 = vmatmul.mubr.bf16.gmra.mxu1 %v5843_v31  ;;  %v10069_v20 = vadd.f32 %v10026_v37, %v5811_v3  ;;  %7065 = vmatprep.subr.bf16.mxu0 %v7759_v6 }
 0xe20   : > { %6010 = vmatprep.mubr.bf16.mxu1 %v8122_v16  ;;  %v10072_v46 = vadd.f32 %v10026_v37, %v5810_v43 }
 0xe22   : > { %v5845_v11 = vpack.c.bf16 %v10069_v20, %v10072_v46  ;;  %7066 = vmatpush3.bf16.msra.mxu0 %v7760_v10 }
 0xe23   : > { %7067 = vmatprep.subr.bf16.mxu0 %v7761_v41 }
 0xe26   : > { %7068 = vmatpush3.bf16.msra.mxu0 %v7762_v5 }
 0xe27   : > { %6011 = vmatmul.mubr.bf16.gmra.mxu1 %v5844_v40  ;;  %7069 = vmatprep.subr.bf16.mxu0 %v7763_v32 }
 0xe28   : > { %6020 = vmatprep.mubr.bf16.mxu1 %v8122_v16 }
 0xe2a   : > { %7070 = vmatpush3.bf16.msra.mxu0 %v7764_v63 }
 0xe2b   : > { %7071 = vmatprep.subr.bf16.mxu0 %v7765_v55 }
 0xe2e   : > { %7072 = vmatpush3.bf16.msra.mxu0 %v7766_v9 }
 0xe2f   : > { %6021 = vmatmul.mubr.bf16.gmra.mxu1 %v5845_v11  ;;  %7073 = vmatprep.subr.bf16.mxu0 %v7767_v2 }
 0xe30   : > { %6030 = vmatprep.mubr.bf16.mxu1 %v8122_v16 }
 0xe32   : > { %7074 = vmatpush3.bf16.msra.mxu0 %v7768_v58 }
 0xe33   : > { %7075 = vmatprep.subr.bf16.mxu0 %v7769_v61 }
 0xe36   : > { %7076 = vmatpush3.bf16.msra.mxu0 %v7770_v28 }
 0xe37   : > { %7077 = vmatprep.subr.bf16.mxu0 %v7771_v18 }
 0xe3a   : > { %7078 = vmatpush3.bf16.msra.mxu0 %v7772_v15 }
 0xe75   : > { %v5719_v59 = vpop.xlane.xlu0 %5718 }
 0xe76   : > { %v5742_v44 = vmul.f32 0.0078125, %v5719_v59 }
 0xe78   : > { %v5758_v60 = vadd.f32 1e-05, %v5742_v44 }
 0xe79   : > { %v5721_v51 = vpop.xlane.xlu1 %5720  ;;  %v5723_v25 = vpop.xlane.xlu0 %5722 }
 0xe7a   : > { %8045 = vrsqrt.f32 %v5758_v60  ;;  %v5743_v47 = vmul.f32 0.0078125, %v5721_v51  ;;  %v5744_v0 = vmul.f32 0.0078125, %v5723_v25 }
 0xe7c   : > { %v5759_v33 = vadd.f32 1e-05, %v5743_v47  ;;  %v5760_v21 = vadd.f32 1e-05, %v5744_v0 }
 0xe7d   : > { %v5725_v57 = vpop.xlane.xlu1 %5724 }
 0xe7e   : > { %8047 = vrsqrt.f32 %v5759_v33  ;;  %v5745_v24 = vmul.f32 0.0078125, %v5725_v57 }
 0xe7f   : > { %8049 = vrsqrt.f32 %v5760_v21 }
 0xe80   : > { %v5761_v23 = vadd.f32 1e-05, %v5745_v24  ;;  %v5727_v27 = vpop.xlane.xlu0 %5726 }
 0xe81   : > { %v5746_v14 = vmul.f32 0.0078125, %v5727_v27 }
 0xe82   : > { %8051 = vrsqrt.f32 %v5761_v23 }
 0xe83   : > { %v5762_v12 = vadd.f32 1e-05, %v5746_v14 }
 0xe84   : > { %v5729_v13 = vpop.xlane.xlu1 %5728  ;;  %v5731_v22 = vpop.xlane.xlu0 %5730 }
 0xe85   : > { %v5747_v17 = vmul.f32 0.0078125, %v5729_v13  ;;  %v5748_v26 = vmul.f32 0.0078125, %v5731_v22  ;;  %8053 = vrsqrt.f32 %v5762_v12 }
 0xe87   : > { %v8046_v31 = vpop.eup %8045  ;;  %v5763_v7 = vadd.f32 1e-05, %v5747_v17  ;;  %v5764_v40 = vadd.f32 1e-05, %v5748_v26 }
 0xe88   : > { %v5733_v19 = vpop.xlane.xlu1 %5732  ;;  %v5790_v45 = vmul.f32 %v8046_v31, %v9976_v4 }
 0xe89   : > { %8055 = vrsqrt.f32 %v5763_v7  ;;  %v5749_v56 = vmul.f32 0.0078125, %v5733_v19 }
 0xe8a   : > { %v5812_v42 = vmul.f32 %v10019_v38, %v5790_v45 }
 0xe8b   : > { %v8048_v8 = vpop.eup %8047  ;;  %v5765_v3 = vadd.f32 1e-05, %v5749_v56 }
 0xe8c   : > { %v5791_v43 = vmul.f32 %v8048_v8, %v9981_v39  ;;  %v8050_v36 = vpop.eup %8049  ;;  %v10130_v10 = vadd.f32 %v10026_v37, %v5812_v42 }
 0xe8d   : > { %8057 = vrsqrt.f32 %v5765_v3  ;;  %v5792_v41 = vmul.f32 %v8050_v36, %v9984_v50 }
 0xe8e   : > { %v5813_v6 = vmul.f32 %v10019_v38, %v5791_v43  ;;  %8059 = vrsqrt.f32 %v5764_v40 }
 0xe8f   : > { %v8052_v11 = vpop.eup %8051  ;;  %v5814_v63 = vmul.f32 %v10019_v38, %v5792_v41 }
 0xe90   : > { %v10133_v4 = vadd.f32 %v10026_v37, %v5813_v6  ;;  %v5793_v5 = vmul.f32 %v8052_v11, %v9991_v49 }
 0xe91   : > { %v10147_v50 = vadd.f32 %v10026_v37, %v5814_v63 }
 0xe92   : > { %v5846_v39 = vpack.c.bf16 %v10133_v4, %v10130_v10  ;;  %v5815_v32 = vmul.f32 %v10019_v38, %v5793_v5  ;;  %v8054_v55 = vpop.eup %8053 }
 0xe93   : > { %v5794_v49 = vmul.f32 %v8054_v55, %v9996_v52 }
 0xe94   : > { %6031 = vmatmul.mubr.bf16.gmra.mxu1 %v5846_v39  ;;  %v10143_v2 = vadd.f32 %v10026_v37, %v5815_v32 }
 0xe95   : > { %6040 = vmatprep.mubr.bf16.mxu1 %v8122_v16  ;;  %v5816_v59 = vmul.f32 %v10019_v38, %v5794_v49 }
 0xe96   : > { %v8056_v9 = vpop.eup %8055  ;;  %v5847_v61 = vpack.c.bf16 %v10143_v2, %v10147_v50 }
 0xe97   : > { %v5795_v58 = vmul.f32 %v8056_v9, %v10001_v29  ;;  %v10160_v60 = vadd.f32 %v10026_v37, %v5816_v59 }
 0xe99   : > { %v5817_v28 = vmul.f32 %v10019_v38, %v5795_v58 }
 0xe9a   : > { %v8058_v18 = vpop.eup %8057 }
 0xe9b   : > { %v8060_v15 = vpop.eup %8059  ;;  %v10156_v44 = vadd.f32 %v10026_v37, %v5817_v28  ;;  %v5797_v29 = vmul.f32 %v8058_v18, %v10011_v62 }
 0xe9c   : > { %6041 = vmatmul.mubr.bf16.gmra.mxu1 %v5847_v61  ;;  %v5796_v52 = vmul.f32 %v8060_v15, %v10004_v35  ;;  %v5868_v35 = vlaneseq }
 0xe9d   : > { %6050 = vmatprep.mubr.bf16.mxu1 %v8122_v16  ;;  %v5848_v51 = vpack.c.bf16 %v10156_v44, %v10160_v60  ;;  %v5819_v25 = vmul.f32 %v10019_v38, %v5797_v29 }
 0xe9e   : > { %v5818_v47 = vmul.f32 %v10019_v38, %v5796_v52  ;;  %v5869_v21 = vshrl.u32 %v5868_v35, 7  ;;  %v5866_v38 = vld [vmem:[%s10474_s10] sm:$0x3] }
 0xe9f   : > { %v10169_v0 = vadd.f32 %v10026_v37, %v5819_v25 }
 0xea0   : > { %v10172_v62 = vadd.f32 %v10026_v37, %v5818_v47  ;;  %v5874_v57 = vsub.s32 1, %v5869_v21  ;;  %v5870_v24 = vsub.s32 0, %v5869_v21 }
 0xea2   : > { %v5849_v33 = vpack.c.bf16 %v10169_v0, %v10172_v62  ;;  %v10181_v27 = vrot.slane %v5866_v38, %v5870_v24 }
 0xea4   : > { %6051 = vmatmul.mubr.bf16.gmra.mxu1 %v5848_v51 }
 0xea5   : > { %6060 = vmatprep.mubr.bf16.mxu1 %v8122_v16  ;;  %v10179_v16 = vrot.slane %v5866_v38, %v5874_v57 }
 0xeac   : > { %6061 = vmatmul.mubr.bf16.gmra.mxu1 %v5849_v33 }
 0xed7   : > { %v5992_v23 = vpop.f32.mrf.mxu1 }
 0xed8   : > { %v5993_v22 = vadd.f32 %v5992_v23, %v10181_v27 }
 0xed9   : > { %v5994_v14 = vpop.f32.mrf.mxu1 }
 0xeda   : > { %v5995_v12 = vadd.f32 %v5994_v14, %v10179_v16  ;;  %v6071_v56 = vmax.f32 %v5993_v22, 0.0 }
 0xedb   : > { %v5996_v37 = vpop.f32.mrf.mxu1 }
 0xedc   : > { %v5997_v13 = vadd.f32 %v5996_v37, %v10181_v27  ;;  %v6072_v19 = vmax.f32 %v5995_v12, 0.0 }
 0xedd   : > { %v5998_v17 = vpop.f32.mrf.mxu1 }
 0xede   : > { %v5999_v31 = vadd.f32 %v5998_v17, %v10179_v16  ;;  %v6073_v7 = vmax.f32 %v5997_v13, 0.0 }
 0xedf   : > { %v6002_v26 = vpop.f32.mrf.mxu1 }
 0xee0   : > { %v6074_v45 = vmax.f32 %v5999_v31, 0.0  ;;  %v6103_v3 = vpack.c.bf16 %v6073_v7, %v6071_v56  ;;  %v6003_v6 = vadd.f32 %v6002_v26, %v10181_v27 }
 0xee1   : > { %v6004_v8 = vpop.f32.mrf.mxu1 }
 0xee2   : > { %v6104_v40 = vpack.c.bf16 %v6074_v45, %v6072_v19  ;;  %v6005_v42 = vadd.f32 %v6004_v8, %v10179_v16  ;;  %v6075_v55 = vmax.f32 %v6003_v6, 0.0 }
 0xee3   : > { %v6006_v43 = vpop.f32.mrf.mxu1 }
 0xee4   : > { %v6007_v36 = vadd.f32 %v6006_v43, %v10181_v27  ;;  %6286 = vmatprep.mubr.bf16.mxu0 %v6104_v40  ;;  %v6076_v32 = vmax.f32 %v6005_v42, 0.0 }
 0xee5   : > { %v6008_v11 = vpop.f32.mrf.mxu1  ;;  %6287 = vmatmul.mubr.bf16.vlgmr.msra.gmra.mxu0 %v6103_v3 }
 0xee6   : > { %v6009_v41 = vadd.f32 %v6008_v11, %v10179_v16  ;;  %v6077_v5 = vmax.f32 %v6007_v36, 0.0 }
 0xee7   : > { %v6012_v39 = vpop.f32.mrf.mxu1 }
 0xee8   : > { %v6078_v63 = vmax.f32 %v6009_v41, 0.0  ;;  %v6105_v49 = vpack.c.bf16 %v6077_v5, %v6075_v55  ;;  %v6013_v15 = vadd.f32 %v6012_v39, %v10181_v27 }
 0xee9   : > { %v6014_v9 = vpop.f32.mrf.mxu1 }
 0xeea   : > { %v6106_v58 = vpack.c.bf16 %v6078_v63, %v6076_v32  ;;  %v6015_v28 = vadd.f32 %v6014_v9, %v10179_v16  ;;  %v6079_v33 = vmax.f32 %v6013_v15, 0.0 }
 0xeeb   : > { %v6016_v61 = vpop.f32.mrf.mxu1 }
 0xeec   : > { %v6017_v18 = vadd.f32 %v6016_v61, %v10181_v27  ;;  %6294 = vmatprep.mubr.bf16.mxu0 %v6106_v58  ;;  %v6080_v25 = vmax.f32 %v6015_v28, 0.0 }
 0xeed   : > { %v6018_v59 = vpop.f32.mrf.mxu1  ;;  %6295 = vmatmul.mubr.bf16.gmra.mxu0 %v6105_v49 }
 0xeee   : > { %v6019_v29 = vadd.f32 %v6018_v59, %v10179_v16  ;;  %v6081_v52 = vmax.f32 %v6017_v18, 0.0 }
 0xeef   : > { %v6022_v51 = vpop.f32.mrf.mxu1 }
 0xef0   : > { %v6082_v47 = vmax.f32 %v6019_v29, 0.0  ;;  %v6107_v57 = vpack.c.bf16 %v6081_v52, %v6079_v33  ;;  %v6023_v14 = vadd.f32 %v6022_v51, %v10181_v27 }
 0xef1   : > { %v6024_v35 = vpop.f32.mrf.mxu1 }
 0xef2   : > { %v6108_v21 = vpack.c.bf16 %v6082_v47, %v6080_v25  ;;  %v6025_v38 = vadd.f32 %v6024_v35, %v10179_v16  ;;  %v6083_v31 = vmax.f32 %v6023_v14, 0.0 }
 0xef3   : > { %v6026_v24 = vpop.f32.mrf.mxu1 }
 0xef4   : > { %v6027_v23 = vadd.f32 %v6026_v24, %v10181_v27  ;;  %6302 = vmatprep.mubr.bf16.mxu0 %v6108_v21  ;;  %v6084_v22 = vmax.f32 %v6025_v38, 0.0 }
 0xef5   : > { %v6028_v37 = vpop.f32.mrf.mxu1  ;;  %6303 = vmatmul.mubr.bf16.gmra.mxu0 %v6107_v57 }
 0xef6   : > { %v6029_v12 = vadd.f32 %v6028_v37, %v10179_v16  ;;  %v6085_v13 = vmax.f32 %v6027_v23, 0.0 }
 0xef8   : > { %v6086_v17 = vmax.f32 %v6029_v12, 0.0  ;;  %v6109_v26 = vpack.c.bf16 %v6085_v13, %v6083_v31 }
 0xefa   : > { %v6110_v7 = vpack.c.bf16 %v6086_v17, %v6084_v22 }
 0xefc   : > { %6310 = vmatprep.mubr.bf16.mxu0 %v6110_v7 }
 0xefd   : > { %6311 = vmatmul.mubr.bf16.gmra.mxu0 %v6109_v26 }
 0xf54   : > { %v6032_v19 = vpop.f32.mrf.mxu1 }
 0xf55   : > { %v6033_v3 = vadd.f32 %v6032_v19, %v10181_v27 }
 0xf56   : > { %v6034_v45 = vpop.f32.mrf.mxu1 }
 0xf57   : > { %v6035_v8 = vadd.f32 %v6034_v45, %v10179_v16  ;;  %v6087_v5 = vmax.f32 %v6033_v3, 0.0 }
 0xf58   : > { %v6036_v56 = vpop.f32.mrf.mxu1 }
 0xf59   : > { %v6037_v40 = vadd.f32 %v6036_v56, %v10181_v27  ;;  %v6088_v11 = vmax.f32 %v6035_v8, 0.0 }
 0xf5a   : > { %v6038_v43 = vpop.f32.mrf.mxu1 }
 0xf5b   : > { %v6039_v42 = vadd.f32 %v6038_v43, %v10179_v16  ;;  %v6089_v36 = vmax.f32 %v6037_v40, 0.0 }
 0xf5c   : > { %v6042_v6 = vpop.f32.mrf.mxu1 }
 0xf5d   : > { %v6090_v41 = vmax.f32 %v6039_v42, 0.0  ;;  %v6111_v63 = vpack.c.bf16 %v6089_v36, %v6087_v5  ;;  %v6043_v49 = vadd.f32 %v6042_v6, %v10181_v27 }
 0xf5e   : > { %v6044_v39 = vpop.f32.mrf.mxu1 }
 0xf5f   : > { %v6112_v32 = vpack.c.bf16 %v6090_v41, %v6088_v11  ;;  %v6045_v9 = vadd.f32 %v6044_v39, %v10179_v16  ;;  %v6091_v52 = vmax.f32 %v6043_v49, 0.0  ;;  %v10218_v41 = vld [vmem:[%s10476_s12] ss:$0 sm:$0xff] }
 0xf60   : > { %v6046_v55 = vpop.f32.mrf.mxu1 }
 0xf61   : > { %v6047_v58 = vadd.f32 %v6046_v55, %v10181_v27  ;;  %6318 = vmatprep.mubr.bf16.mxu0 %v6112_v32  ;;  %v6092_v59 = vmax.f32 %v6045_v9, 0.0 }
 0xf62   : > { %v6048_v61 = vpop.f32.mrf.mxu1  ;;  %6319 = vmatmul.mubr.bf16.gmra.mxu0 %v6111_v63 }
 0xf63   : > { %v6049_v28 = vadd.f32 %v6048_v61, %v10179_v16  ;;  %v6093_v18 = vmax.f32 %v6047_v58, 0.0 }
 0xf64   : > { %v6052_v15 = vpop.f32.mrf.mxu1 }
 0xf65   : > { %v6094_v29 = vmax.f32 %v6049_v28, 0.0  ;;  %v6113_v47 = vpack.c.bf16 %v6093_v18, %v6091_v52  ;;  %v6053_v57 = vadd.f32 %v6052_v15, %v10181_v27 }
 0xf66   : > { %v6054_v51 = vpop.f32.mrf.mxu1 }
 0xf67   : > { %v6114_v25 = vpack.c.bf16 %v6094_v29, %v6092_v59  ;;  %v6055_v35 = vadd.f32 %v6054_v51, %v10179_v16  ;;  %v6095_v13 = vmax.f32 %v6053_v57, 0.0 }
 0xf68   : > { %v6056_v33 = vpop.f32.mrf.mxu1 }
 0xf69   : > { %v6057_v21 = vadd.f32 %v6056_v33, %v10181_v27  ;;  %6326 = vmatprep.mubr.bf16.mxu0 %v6114_v25  ;;  %v6096_v37 = vmax.f32 %v6055_v35, 0.0 }
 0xf6a   : > { %v6058_v24 = vpop.f32.mrf.mxu1  ;;  %6327 = vmatmul.mubr.bf16.gmra.mxu0 %v6113_v47 }
 0xf6b   : > { %v6059_v38 = vadd.f32 %v6058_v24, %v10179_v16  ;;  %v6097_v23 = vmax.f32 %v6057_v21, 0.0 }
 0xf6c   : > { %v6062_v14 = vpop.f32.mrf.mxu1 }
 0xf6d   : > { %v6098_v12 = vmax.f32 %v6059_v38, 0.0  ;;  %v6115_v31 = vpack.c.bf16 %v6097_v23, %v6095_v13  ;;  %v6063_v45 = vadd.f32 %v6062_v14, %v10181_v27 }
 0xf6e   : > { %v6064_v22 = vpop.f32.mrf.mxu1 }
 0xf6f   : > { %v6116_v17 = vpack.c.bf16 %v6098_v12, %v6096_v37  ;;  %v6065_v26 = vadd.f32 %v6064_v22, %v10179_v16  ;;  %v6099_v42 = vmax.f32 %v6063_v45, 0.0 }
 0xf70   : > { %v6066_v7 = vpop.f32.mrf.mxu1 }
 0xf71   : > { %v6067_v19 = vadd.f32 %v6066_v7, %v10181_v27  ;;  %6334 = vmatprep.mubr.bf16.mxu0 %v6116_v17  ;;  %v6100_v3 = vmax.f32 %v6065_v26, 0.0 }
 0xf72   : > { %v6068_v56 = vpop.f32.mrf.mxu1  ;;  %6335 = vmatmul.mubr.bf16.gmra.mxu0 %v6115_v31 }
 0xf73   : > { %v6069_v8 = vadd.f32 %v6068_v56, %v10179_v16  ;;  %v6101_v40 = vmax.f32 %v6067_v19, 0.0 }
 0xf75   : > { %v6102_v43 = vmax.f32 %v6069_v8, 0.0  ;;  %v6117_v6 = vpack.c.bf16 %v6101_v40, %v6099_v42 }
 0xf77   : > { %v6118_v36 = vpack.c.bf16 %v6102_v43, %v6100_v3 }
 0xf79   : > { %6342 = vmatprep.mubr.bf16.mxu0 %v6118_v36 }
 0xf7a   : > { %6343 = vmatmul.mubr.bf16.gmra.mxu0 %v6117_v6 }
 0xfa5   : > { %v7079_v11 = vpop.f32.mrf.mxu0 }
 0xfa7   : > { %v7080_v5 = vpop.f32.mrf.mxu0 }
 0xfa8   : > { %v7081_v27 = vadd.f32 %v7080_v5, %v7079_v11 }
 0xfa9   : > { %v7082_v39 = vpop.f32.mrf.mxu0 }
 0xfaa   : > { %v6289_v32 = vadd.f32 %v7081_v27, %v10218_v41 }
 0xfab   : > { %v7083_v16 = vpop.f32.mrf.mxu0 }
 0xfac   : > { %v7084_v63 = vadd.f32 %v7083_v16, %v7082_v39  ;;  %v10222_v55 = vadd.f32 %v6289_v32, %v10030_v1 }
 0xfad   : > { %v7085_v9 = vpop.f32.mrf.mxu0 }
 0xfae   : > { %v6292_v58 = vadd.f32 %v7084_v63, %v10218_v41  ;;  %6369 = vadd.xlane.f32.xlu0 %v10222_v55 }
 0xfaf   : > { %v7086_v49 = vpop.f32.mrf.mxu0 }
 0xfb0   : > { %v7087_v61 = vadd.f32 %v7086_v49, %v7085_v9  ;;  %v10227_v28 = vadd.f32 %v6292_v58, %v10033_v30 }
 0xfb1   : > { %v7088_v18 = vpop.f32.mrf.mxu0 }
 0xfb2   : > { %v6297_v15 = vadd.f32 %v7087_v61, %v10218_v41  ;;  %6371 = vadd.xlane.f32.xlu1 %v10227_v28 }
 0xfb3   : > { %v7089_v59 = vpop.f32.mrf.mxu0 }
 0xfb4   : > { %v7090_v29 = vadd.f32 %v7089_v59, %v7088_v18  ;;  %v10232_v1 = vadd.f32 %v6297_v15, %v10047_v54 }
 0xfb5   : > { %v7091_v52 = vpop.f32.mrf.mxu0 }
 0xfb6   : > { %v6300_v51 = vadd.f32 %v7090_v29, %v10218_v41  ;;  %6373 = vadd.xlane.f32.xlu0 %v10232_v1 }
 0xfb7   : > { %v7092_v25 = vpop.f32.mrf.mxu0 }
 0xfb8   : > { %v7093_v47 = vadd.f32 %v7092_v25, %v7091_v52  ;;  %v10237_v30 = vadd.f32 %v6300_v51, %v10043_v34 }
 0xfb9   : > { %v7094_v33 = vpop.f32.mrf.mxu0 }
 0xfba   : > { %v6305_v35 = vadd.f32 %v7093_v47, %v10218_v41  ;;  %6375 = vadd.xlane.f32.xlu1 %v10237_v30 }
 0xfbb   : > { %v7095_v21 = vpop.f32.mrf.mxu0 }
 0xfbc   : > { %v7096_v57 = vadd.f32 %v7095_v21, %v7094_v33  ;;  %v10242_v54 = vadd.f32 %v6305_v35, %v10060_v53 }
 0xfbd   : > { %v7097_v24 = vpop.f32.mrf.mxu0 }
 0xfbe   : > { %v6308_v38 = vadd.f32 %v7096_v57, %v10218_v41  ;;  %6377 = vadd.xlane.f32.xlu0 %v10242_v54 }
 0xfbf   : > { %v7098_v23 = vpop.f32.mrf.mxu0 }
 0xfc0   : > { %v7099_v14 = vadd.f32 %v7098_v23, %v7097_v24  ;;  %v10247_v34 = vadd.f32 %v6308_v38, %v10056_v48 }
 0xfc1   : > { %v7100_v37 = vpop.f32.mrf.mxu0 }
 0xfc2   : > { %v6313_v12 = vadd.f32 %v7099_v14, %v10218_v41  ;;  %6379 = vadd.xlane.f32.xlu1 %v10247_v34 }
 0xfc3   : > { %v7101_v13 = vpop.f32.mrf.mxu0 }
 0xfc4   : > { %v7102_v22 = vadd.f32 %v7101_v13, %v7100_v37  ;;  %v10252_v53 = vadd.f32 %v6313_v12, %v10072_v46 }
 0xfc6   : > { %v6316_v17 = vadd.f32 %v7102_v22, %v10218_v41  ;;  %6381 = vadd.xlane.f32.xlu0 %v10252_v53 }
 0xfc8   : > { %v10257_v31 = vadd.f32 %v6316_v17, %v10069_v20 }
 0xfca   : > { %6383 = vadd.xlane.f32.xlu1 %v10257_v31 }
0x1022   : > { %v7103_v48 = vpop.f32.mrf.mxu0 }
0x1024   : > { %v7104_v7 = vpop.f32.mrf.mxu0 }
0x1025   : > { %v7105_v26 = vadd.f32 %v7104_v7, %v7103_v48 }
0x1026   : > { %v7106_v19 = vpop.f32.mrf.mxu0 }
0x1027   : > { %v6321_v45 = vadd.f32 %v7105_v26, %v10218_v41 }
0x1028   : > { %v7107_v56 = vpop.f32.mrf.mxu0 }
0x1029   : > { %v7108_v8 = vadd.f32 %v7107_v56, %v7106_v19  ;;  %v10262_v46 = vadd.f32 %v6321_v45, %v10130_v10 }
0x102a   : > { %v7109_v40 = vpop.f32.mrf.mxu0 }
0x102b   : > { %v6324_v3 = vadd.f32 %v7108_v8, %v10218_v41  ;;  %6385 = vadd.xlane.f32.xlu0 %v10262_v46 }
0x102c   : > { %v7110_v20 = vpop.f32.mrf.mxu0 }
0x102d   : > { %v7111_v43 = vadd.f32 %v7110_v20, %v7109_v40  ;;  %v10267_v42 = vadd.f32 %v6324_v3, %v10133_v4 }
0x102e   : > { %v7112_v36 = vpop.f32.mrf.mxu0 }
0x102f   : > { %v6329_v6 = vadd.f32 %v7111_v43, %v10218_v41  ;;  %6387 = vadd.xlane.f32.xlu1 %v10267_v42 }
0x1030   : > { %v7113_v11 = vpop.f32.mrf.mxu0 }
0x1031   : > { %v7114_v5 = vadd.f32 %v7113_v11, %v7112_v36  ;;  %v10272_v10 = vadd.f32 %v6329_v6, %v10147_v50 }
0x1032   : > { %v7115_v27 = vpop.f32.mrf.mxu0 }
0x1033   : > { %v6332_v39 = vadd.f32 %v7114_v5, %v10218_v41  ;;  %6389 = vadd.xlane.f32.xlu0 %v10272_v10 }
0x1034   : > { %v7116_v32 = vpop.f32.mrf.mxu0 }
0x1035   : > { %v7117_v16 = vadd.f32 %v7116_v32, %v7115_v27  ;;  %v10277_v4 = vadd.f32 %v6332_v39, %v10143_v2 }
0x1036   : > { %v7118_v63 = vpop.f32.mrf.mxu0 }
0x1037   : > { %v6337_v9 = vadd.f32 %v7117_v16, %v10218_v41  ;;  %6391 = vadd.xlane.f32.xlu1 %v10277_v4  ;;  %v6370_v49 = vpop.xlane.xlu0 %6369 }
0x1038   : > { %v7119_v58 = vpop.f32.mrf.mxu0  ;;  %v6401_v59 = vmul.f32 0.0078125, %v6370_v49 }
0x1039   : > { %v7120_v61 = vadd.f32 %v7119_v58, %v7118_v63  ;;  %v10282_v50 = vadd.f32 %v6337_v9, %v10160_v60 }
0x103a   : > { %v7121_v18 = vpop.f32.mrf.mxu0  ;;  %v10292_v60 = vsub.f32 %v10222_v55, %v6401_v59 }
0x103b   : > { %v6340_v15 = vadd.f32 %v7120_v61, %v10218_v41  ;;  %6393 = vadd.xlane.f32.xlu0 %v10282_v50  ;;  %v6372_v51 = vpop.xlane.xlu1 %6371 }
0x103c   : > { %v7122_v29 = vpop.f32.mrf.mxu0  ;;  %v6402_v21 = vmul.f32 0.0078125, %v6372_v51  ;;  %v6433_v14 = vmul.f32 %v10292_v60, %v10292_v60 }
0x103d   : > { %v7123_v2 = vadd.f32 %v7122_v29, %v7121_v18  ;;  %v10287_v52 = vadd.f32 %v6340_v15, %v10156_v44 }
0x103e   : > { %v7124_v25 = vpop.f32.mrf.mxu0  ;;  %v10302_v37 = vsub.f32 %v10227_v28, %v6402_v21 }
0x103f   : > { %v6345_v47 = vadd.f32 %v7123_v2, %v10218_v41  ;;  %6395 = vadd.xlane.f32.xlu1 %v10287_v52  ;;  %v6374_v33 = vpop.xlane.xlu0 %6373 }
0x1040   : > { %v7125_v35 = vpop.f32.mrf.mxu0  ;;  %v6403_v57 = vmul.f32 0.0078125, %v6374_v33  ;;  %v6434_v17 = vmul.f32 %v10302_v37, %v10302_v37 }
0x1041   : > { %v7126_v24 = vadd.f32 %v7125_v35, %v7124_v25  ;;  %v10295_v38 = vadd.f32 %v6345_v47, %v10172_v62 }
0x1042   : > { %v10305_v55 = vsub.f32 %v10232_v1, %v6403_v57 }
0x1043   : > { %v6348_v44 = vadd.f32 %v7126_v24, %v10218_v41  ;;  %v6376_v23 = vpop.xlane.xlu1 %6375  ;;  %6397 = vadd.xlane.f32.xlu0 %v10295_v38 }
0x1044   : > { %v6404_v12 = vmul.f32 0.0078125, %v6376_v23  ;;  %v6435_v28 = vmul.f32 %v10305_v55, %v10305_v55 }
0x1045   : > { %v10308_v13 = vadd.f32 %v6348_v44, %v10169_v0 }
0x1046   : > { %v10312_v22 = vsub.f32 %v10237_v30, %v6404_v12 }
0x1047   : > { %6399 = vadd.xlane.f32.xlu1 %v10308_v13  ;;  %6449 = vadd.xlane.f32.xlu0 %v6433_v14  ;;  %v6378_v62 = vpop.xlane.xlu0 %6377 }
0x1048   : > { %v6405_v41 = vmul.f32 0.0078125, %v6378_v62  ;;  %v6436_v30 = vmul.f32 %v10312_v22, %v10312_v22 }
0x104a   : > { %v10319_v1 = vsub.f32 %v10242_v54, %v6405_v41 }
0x104b   : > { %v6380_v48 = vpop.xlane.xlu1 %6379  ;;  %6451 = vadd.xlane.f32.xlu1 %v6434_v17  ;;  %6453 = vadd.xlane.f32.xlu0 %v6435_v28 }
0x104c   : > { %v6406_v0 = vmul.f32 0.0078125, %v6380_v48  ;;  %v6437_v7 = vmul.f32 %v10319_v1, %v10319_v1 }
0x104e   : > { %v10326_v26 = vsub.f32 %v10247_v34, %v6406_v0 }
0x104f   : > { %6455 = vadd.xlane.f32.xlu1 %v6436_v30  ;;  %6457 = vadd.xlane.f32.xlu0 %v6437_v7  ;;  %v6382_v19 = vpop.xlane.xlu0 %6381 }
0x1050   : > { %v6407_v45 = vmul.f32 0.0078125, %v6382_v19  ;;  %v6438_v54 = vmul.f32 %v10326_v26, %v10326_v26 }
0x1052   : > { %v10331_v56 = vsub.f32 %v10252_v53, %v6407_v45 }
0x1053   : > { %v6384_v8 = vpop.xlane.xlu1 %6383  ;;  %6459 = vadd.xlane.f32.xlu1 %v6438_v54 }
0x1054   : > { %v6408_v40 = vmul.f32 0.0078125, %v6384_v8  ;;  %v6439_v3 = vmul.f32 %v10331_v56, %v10331_v56 }
0x1056   : > { %v10336_v20 = vsub.f32 %v10257_v31, %v6408_v40  ;;  %6461 = vadd.xlane.f32.xlu0 %v6439_v3  ;;  %v10383_v40 = vld [vmem:[%s10479_s15] ss:$0 sm:$0xff] }
0x1058   : > { %v6440_v34 = vmul.f32 %v10336_v20, %v10336_v20 }
0x105a   : > { %6463 = vadd.xlane.f32.xlu1 %v6440_v34 }
0x10b4   : > { %v6386_v43 = vpop.xlane.xlu0 %6385 }
0x10b5   : > { %v6409_v36 = vmul.f32 0.0078125, %v6386_v43 }
0x10b7   : > { %v10341_v6 = vsub.f32 %v10262_v46, %v6409_v36  ;;  %v10389_v36 = vld [vmem:[%s10480_s16] ss:$0 sm:$0xff] }
0x10b8   : > { %v6388_v53 = vpop.xlane.xlu1 %6387 }
0x10b9   : > { %v6410_v11 = vmul.f32 0.0078125, %v6388_v53  ;;  %v6441_v5 = vmul.f32 %v10341_v6, %v10341_v6 }
0x10bb   : > { %v10346_v27 = vsub.f32 %v10267_v42, %v6410_v11  ;;  %6465 = vadd.xlane.f32.xlu0 %v6441_v5 }
0x10bc   : > { %v6390_v31 = vpop.xlane.xlu0 %6389 }
0x10bd   : > { %v6411_v39 = vmul.f32 0.0078125, %v6390_v31  ;;  %v6442_v32 = vmul.f32 %v10346_v27, %v10346_v27 }
0x10bf   : > { %v10351_v16 = vsub.f32 %v10272_v10, %v6411_v39  ;;  %6467 = vadd.xlane.f32.xlu1 %v6442_v32 }
0x10c0   : > { %v6392_v46 = vpop.xlane.xlu1 %6391 }
0x10c1   : > { %v6412_v63 = vmul.f32 0.0078125, %v6392_v46  ;;  %v6443_v9 = vmul.f32 %v10351_v16, %v10351_v16 }
0x10c3   : > { %v10356_v58 = vsub.f32 %v10277_v4, %v6412_v63  ;;  %6469 = vadd.xlane.f32.xlu0 %v6443_v9 }
0x10c4   : > { %v6394_v42 = vpop.xlane.xlu0 %6393 }
0x10c5   : > { %v6413_v49 = vmul.f32 0.0078125, %v6394_v42  ;;  %v6444_v61 = vmul.f32 %v10356_v58, %v10356_v58 }
0x10c7   : > { %v10361_v18 = vsub.f32 %v10282_v50, %v6413_v49  ;;  %6471 = vadd.xlane.f32.xlu1 %v6444_v61 }
0x10c8   : > { %v6396_v10 = vpop.xlane.xlu1 %6395 }
0x10c9   : > { %v6414_v15 = vmul.f32 0.0078125, %v6396_v10  ;;  %v6445_v59 = vmul.f32 %v10361_v18, %v10361_v18 }
0x10cb   : > { %v10366_v29 = vsub.f32 %v10287_v52, %v6414_v15  ;;  %6473 = vadd.xlane.f32.xlu0 %v6445_v59 }
0x10cc   : > { %v6398_v4 = vpop.xlane.xlu0 %6397 }
0x10cd   : > { %v6415_v2 = vmul.f32 0.0078125, %v6398_v4  ;;  %v6446_v51 = vmul.f32 %v10366_v29, %v10366_v29 }
0x10cf   : > { %v10371_v25 = vsub.f32 %v10295_v38, %v6415_v2  ;;  %6475 = vadd.xlane.f32.xlu1 %v6446_v51 }
0x10d0   : > { %v6400_v50 = vpop.xlane.xlu1 %6399  ;;  %v6450_v47 = vpop.xlane.xlu0 %6449 }
0x10d1   : > { %v6416_v33 = vmul.f32 0.0078125, %v6400_v50  ;;  %v6481_v35 = vmul.f32 0.0078125, %v6450_v47  ;;  %v6447_v21 = vmul.f32 %v10371_v25, %v10371_v25 }
0x10d3   : > { %v10376_v52 = vsub.f32 %v10308_v13, %v6416_v33  ;;  %v6497_v57 = vadd.f32 1e-05, %v6481_v35  ;;  %6477 = vadd.xlane.f32.xlu0 %v6447_v21 }
0x10d4   : > { %v6452_v24 = vpop.xlane.xlu1 %6451  ;;  %v6454_v44 = vpop.xlane.xlu0 %6453 }
0x10d5   : > { %8061 = vrsqrt.f32 %v6497_v57  ;;  %v6482_v23 = vmul.f32 0.0078125, %v6452_v24  ;;  %v6483_v14 = vmul.f32 0.0078125, %v6454_v44  ;;  %v6448_v38 = vmul.f32 %v10376_v52, %v10376_v52 }
0x10d7   : > { %v6498_v12 = vadd.f32 1e-05, %v6482_v23  ;;  %v6499_v62 = vadd.f32 1e-05, %v6483_v14  ;;  %6479 = vadd.xlane.f32.xlu1 %v6448_v38 }
0x10d8   : > { %v6456_v41 = vpop.xlane.xlu1 %6455  ;;  %v6458_v17 = vpop.xlane.xlu0 %6457 }
0x10d9   : > { %8063 = vrsqrt.f32 %v6498_v12  ;;  %v6484_v28 = vmul.f32 0.0078125, %v6456_v41  ;;  %v6485_v48 = vmul.f32 0.0078125, %v6458_v17 }
0x10da   : > { %8065 = vrsqrt.f32 %v6499_v62 }
0x10db   : > { %v6500_v13 = vadd.f32 1e-05, %v6484_v28  ;;  %v6501_v0 = vadd.f32 1e-05, %v6485_v48 }
0x10dc   : > { %v6460_v7 = vpop.xlane.xlu1 %6459 }
0x10dd   : > { %8067 = vrsqrt.f32 %v6500_v13  ;;  %v6486_v30 = vmul.f32 0.0078125, %v6460_v7 }
0x10de   : > { %8069 = vrsqrt.f32 %v6501_v0 }
0x10df   : > { %v6502_v19 = vadd.f32 1e-05, %v6486_v30  ;;  %v6462_v45 = vpop.xlane.xlu0 %6461 }
0x10e0   : > { %v6487_v54 = vmul.f32 0.0078125, %v6462_v45 }
0x10e1   : > { %8071 = vrsqrt.f32 %v6502_v19 }
0x10e2   : > { %v8062_v8 = vpop.eup %8061  ;;  %v6503_v3 = vadd.f32 1e-05, %v6487_v54 }
0x10e3   : > { %v6529_v34 = vmul.f32 %v8062_v8, %v10292_v60  ;;  %v6464_v43 = vpop.xlane.xlu1 %6463 }
0x10e4   : > { %8073 = vrsqrt.f32 %v6503_v3  ;;  %v6488_v53 = vmul.f32 0.0078125, %v6464_v43 }
0x10e5   : > { %v6551_v11 = vmul.f32 %v10383_v40, %v6529_v34 }
0x10e6   : > { %v8064_v5 = vpop.eup %8063  ;;  %v6504_v60 = vadd.f32 1e-05, %v6488_v53 }
0x10e7   : > { %v8066_v31 = vpop.eup %8065  ;;  %v6573_v39 = vadd.f32 %v10389_v36, %v6551_v11  ;;  %v6530_v32 = vmul.f32 %v8064_v5, %v10302_v37 }
0x10e8   : > { %v6531_v46 = vmul.f32 %v8066_v31, %v10305_v55  ;;  %8075 = vrsqrt.f32 %v6504_v60 }
0x10e9   : > { %6589 = vst [vmem:[%s10397_s20] sm:$0xff] %v6573_v39  ;;  %v6552_v63 = vmul.f32 %v10383_v40, %v6530_v32 }
0x10ea   : > { %v8068_v9 = vpop.eup %8067  ;;  %v6553_v42 = vmul.f32 %v10383_v40, %v6531_v46 }
0x10eb   : > { %v8070_v49 = vpop.eup %8069  ;;  %v6574_v61 = vadd.f32 %v10389_v36, %v6552_v63  ;;  %v6532_v10 = vmul.f32 %v8068_v9, %v10312_v22 }
0x10ec   : > { %v6575_v15 = vadd.f32 %v10389_v36, %v6553_v42  ;;  %v6533_v37 = vmul.f32 %v8070_v49, %v10319_v1 }
0x10ed   : > { %6590 = vst [vmem:[%s10397_s20 + $0x8] sm:$0xff] %v6574_v61  ;;  %v6554_v55 = vmul.f32 %v10383_v40, %v6532_v10 }
0x10ee   : > { %v8072_v59 = vpop.eup %8071  ;;  %6591 = vst [vmem:[%s10397_s20 + $0x10] sm:$0xff] %v6575_v15  ;;  %v6555_v4 = vmul.f32 %v10383_v40, %v6533_v37 }
0x10ef   : > { %v6576_v2 = vadd.f32 %v10389_v36, %v6554_v55  ;;  %v6534_v51 = vmul.f32 %v8072_v59, %v10326_v26 }
0x10f0   : > { %v6577_v22 = vadd.f32 %v10389_v36, %v6555_v4 }
0x10f1   : > { %v8074_v50 = vpop.eup %8073  ;;  %6592 = vst [vmem:[%s10397_s20 + $0x18] sm:$0xff] %v6576_v2  ;;  %v6556_v1 = vmul.f32 %v10383_v40, %v6534_v51 }
0x10f2   : > { %6593 = vst [vmem:[%s10397_s20 + $0x20] sm:$0xff] %v6577_v22  ;;  %v6535_v47 = vmul.f32 %v8074_v50, %v10331_v56 }
0x10f3   : > { %v6578_v33 = vadd.f32 %v10389_v36, %v6556_v1 }
0x10f4   : > { %v6557_v35 = vmul.f32 %v10383_v40, %v6535_v47 }
0x10f5   : > { %v8076_v21 = vpop.eup %8075  ;;  %6594 = vst [vmem:[%s10397_s20 + $0x28] sm:$0xff] %v6578_v33 }
0x10f6   : > { %v6579_v57 = vadd.f32 %v10389_v36, %v6557_v35  ;;  %v6536_v26 = vmul.f32 %v8076_v21, %v10336_v20 }
0x10f8   : > { %6595 = vst [vmem:[%s10397_s20 + $0x30] sm:$0xff] %v6579_v57  ;;  %v6558_v24 = vmul.f32 %v10383_v40, %v6536_v26 }
0x10fa   : > { %v6580_v44 = vadd.f32 %v10389_v36, %v6558_v24 }
0x10fc   : > { %6596 = vst [vmem:[%s10397_s20 + $0x38] sm:$0xff] %v6580_v44 }
0x1144   : > { %v6466_v23 = vpop.xlane.xlu0 %6465 }
0x1145   : > { %v6489_v14 = vmul.f32 0.0078125, %v6466_v23 }
0x1147   : > { %v6505_v38 = vadd.f32 1e-05, %v6489_v14 }
0x1148   : > { %v6468_v56 = vpop.xlane.xlu1 %6467 }
0x1149   : > { %8077 = vrsqrt.f32 %v6505_v38  ;;  %v6490_v12 = vmul.f32 0.0078125, %v6468_v56 }
0x114b   : > { %v6506_v62 = vadd.f32 1e-05, %v6490_v12 }
0x114c   : > { %v6470_v41 = vpop.xlane.xlu0 %6469 }
0x114d   : > { %8079 = vrsqrt.f32 %v6506_v62  ;;  %v6491_v17 = vmul.f32 0.0078125, %v6470_v41 }
0x114f   : > { %v6507_v28 = vadd.f32 1e-05, %v6491_v17 }
0x1150   : > { %v6472_v48 = vpop.xlane.xlu1 %6471 }
0x1151   : > { %8081 = vrsqrt.f32 %v6507_v28  ;;  %v6492_v20 = vmul.f32 0.0078125, %v6472_v48 }
0x1153   : > { %v6508_v13 = vadd.f32 1e-05, %v6492_v20 }
0x1154   : > { %v6474_v0 = vpop.xlane.xlu0 %6473 }
0x1155   : > { %8083 = vrsqrt.f32 %v6508_v13  ;;  %v6493_v7 = vmul.f32 0.0078125, %v6474_v0 }
0x1156   : > { %v8078_v30 = vpop.eup %8077 }
0x1157   : > { %v6537_v19 = vmul.f32 %v8078_v30, %v10341_v6  ;;  %v6509_v45 = vadd.f32 1e-05, %v6493_v7 }
0x1158   : > { %v6476_v54 = vpop.xlane.xlu1 %6475 }
0x1159   : > { %v6559_v8 = vmul.f32 %v10383_v40, %v6537_v19  ;;  %8085 = vrsqrt.f32 %v6509_v45  ;;  %v6494_v3 = vmul.f32 0.0078125, %v6476_v54 }
0x115a   : > { %v8080_v34 = vpop.eup %8079 }
0x115b   : > { %v6581_v43 = vadd.f32 %v10389_v36, %v6559_v8  ;;  %v6538_v53 = vmul.f32 %v8080_v34, %v10346_v27  ;;  %v6510_v11 = vadd.f32 1e-05, %v6494_v3 }
0x115c   : > { %v6478_v5 = vpop.xlane.xlu0 %6477 }
0x115d   : > { %6597 = vst [vmem:[%s10397_s20 + $0x40] sm:$0xff] %v6581_v43  ;;  %v6560_v60 = vmul.f32 %v10383_v40, %v6538_v53  ;;  %8087 = vrsqrt.f32 %v6510_v11  ;;  %v6495_v6 = vmul.f32 0.0078125, %v6478_v5 }
0x115e   : > { %v8082_v31 = vpop.eup %8081 }
0x115f   : > { %v6582_v39 = vadd.f32 %v10389_v36, %v6560_v60  ;;  %v6539_v32 = vmul.f32 %v8082_v31, %v10351_v16  ;;  %v6511_v46 = vadd.f32 1e-05, %v6495_v6 }
0x1160   : > { %v6480_v63 = vpop.xlane.xlu1 %6479 }
0x1161   : > { %6598 = vst [vmem:[%s10397_s20 + $0x48] sm:$0xff] %v6582_v39  ;;  %v6561_v9 = vmul.f32 %v10383_v40, %v6539_v32  ;;  %8089 = vrsqrt.f32 %v6511_v46  ;;  %v6496_v27 = vmul.f32 0.0078125, %v6480_v63 }
0x1162   : > { %v8084_v42 = vpop.eup %8083 }
0x1163   : > { %v6583_v49 = vadd.f32 %v10389_v36, %v6561_v9  ;;  %v6540_v61 = vmul.f32 %v8084_v42, %v10356_v58  ;;  %v6512_v10 = vadd.f32 1e-05, %v6496_v27 }
0x1165   : > { %6599 = vst [vmem:[%s10397_s20 + $0x50] sm:$0xff] %v6583_v49  ;;  %v6562_v15 = vmul.f32 %v10383_v40, %v6540_v61  ;;  %8091 = vrsqrt.f32 %v6512_v10 }
0x1166   : > { %v8086_v16 = vpop.eup %8085 }
0x1167   : > { %v6584_v37 = vadd.f32 %v10389_v36, %v6562_v15  ;;  %v6541_v55 = vmul.f32 %v8086_v16, %v10361_v18 }
0x1169   : > { %6600 = vst [vmem:[%s10397_s20 + $0x58] sm:$0xff] %v6584_v37  ;;  %v6563_v59 = vmul.f32 %v10383_v40, %v6541_v55 }
0x116a   : > { %v8088_v4 = vpop.eup %8087 }
0x116b   : > { %v6585_v2 = vadd.f32 %v10389_v36, %v6563_v59  ;;  %v6542_v58 = vmul.f32 %v8088_v4, %v10366_v29 }
0x116d   : > { %6601 = vst [vmem:[%s10397_s20 + $0x60] sm:$0xff] %v6585_v2  ;;  %v6564_v51 = vmul.f32 %v10383_v40, %v6542_v58 }
0x116e   : > { %v8090_v22 = vpop.eup %8089 }
0x116f   : > { %v6586_v50 = vadd.f32 %v10389_v36, %v6564_v51  ;;  %v6543_v1 = vmul.f32 %v8090_v22, %v10371_v25 }
0x1171   : > { %6602 = vst [vmem:[%s10397_s20 + $0x68] sm:$0xff] %v6586_v50  ;;  %v6565_v18 = vmul.f32 %v10383_v40, %v6543_v1 }
0x1172   : > { %v8092_v47 = vpop.eup %8091 }
0x1173   : > { %v6587_v33 = vadd.f32 %v10389_v36, %v6565_v18  ;;  %v6544_v35 = vmul.f32 %v8092_v47, %v10376_v52 }
0x1175   : > { %6603 = vst [vmem:[%s10397_s20 + $0x70] sm:$0xff] %v6587_v33  ;;  %v6566_v21 = vmul.f32 %v10383_v40, %v6544_v35 }
0x1177   : > { %v6588_v29 = vadd.f32 %v10389_v36, %v6566_v21 }
0x1179   : > { %6604 = vst [vmem:[%s10397_s20 + $0x78] sm:$0xff] %v6588_v29 }
0x117a PF: > { %s27_s24 = sadd.s32 1, %s8115_s24  }
0x117b   : > { %p24_p4 = scmp.ge.s32.totalorder %s27_s24, 4  }
0x117d   :  { %26 = sbr.rel (!%p24_p4) target bundleno = 3 (0x3), region = 118 }

// kernel: staeformer_forward.2
= control target key start
LH: loop header
LB: loop body
LE: loop exit
PB: predicated region body
PF: predicated region fallthrough
CT: control target
= control target key end

     0   :  { %s12100_s24 = smov 0   ;;  %s15126_s0 = inlined_call_operand.vmem [shape: f32[32,8,128], index: 0, kind: input, shape index: {}]   ;;  %s15127_s1 = inlined_call_operand.vmem [shape: bf16[128,128], index: 1, kind: input, shape index: {}]   ;;  %s15128_s2 = inlined_call_operand.vmem [shape: f32[1,128], index: 2, kind: input, shape index: {}]   ;;  %s15129_s3 = inlined_call_operand.vmem [shape: bf16[128,128], index: 3, kind: input, shape index: {}]   ;;  %s15130_s4 = inlined_call_operand.vmem [shape: f32[1,128], index: 4, kind: input, shape index: {}]   ;;  %s15131_s5 = inlined_call_operand.vmem [shape: bf16[128,128], index: 5, kind: input, shape index: {}]   ;;  %s15132_s6 = inlined_call_operand.vmem [shape: f32[1,128], index: 6, kind: input, shape index: {}]   ;;  %s15133_s7 = inlined_call_operand.vmem [shape: bf16[128,128], index: 7, kind: input, shape index: {}]   ;;  %s15134_s8 = inlined_call_operand.vmem [shape: f32[1,128], index: 8, kind: input, shape index: {}]   ;;  %s15135_s9 = inlined_call_operand.vmem [shape: bf16[128,256], index: 9, kind: input, shape index: {}]   ;;  %s15136_s10 = inlined_call_operand.vmem [shape: f32[1,256], index: 10, kind: input, shape index: {}]   ;;  %s15137_s11 = inlined_call_operand.vmem [shape: bf16[256,128], index: 11, kind: input, shape index: {}]   ;;  %s15138_s12 = inlined_call_operand.vmem [shape: f32[1,128], index: 12, kind: input, shape index: {}]   ;;  %s15139_s13 = inlined_call_operand.vmem [shape: f32[1,128], index: 13, kind: input, shape index: {}]   ;;  %s15140_s14 = inlined_call_operand.vmem [shape: f32[1,128], index: 14, kind: input, shape index: {}]   ;;  %s15141_s15 = inlined_call_operand.vmem [shape: f32[1,128], index: 15, kind: input, shape index: {}]   ;;  %s15142_s16 = inlined_call_operand.vmem [shape: f32[1,128], index: 16, kind: input, shape index: {}]   ;;  %s15143_s17 = inlined_call_operand.vmem [shape: f32[32,8,128], index: 17, kind: output, shape index: {}]  }
   0x1   :  { %15218 = sst [smem:[#allocation50_spill]] %s15126_s0 }
   0x2   :  { %15219 = sst [smem:[#allocation51_spill]] %s15127_s1 }
   0x3 LB: > { %s9881_s25 = sadd.s32 4294967295, %s12002_s24   ;;  %p9885_p0 = scmp.ge.s32.totalorder %s12002_s24, 1  ;;  %s12002_s24 = sphi %s12100_s24, %s27_s24  }
   0x4   : > { %p488_p1 = scmp.lt.s32.totalorder %s12002_s24, 3 }
   0x6   : > { %p489_p2 = pnand %p9885_p0, %p488_p1 }
   0x8   : > { %492 = sbr.rel (%p489_p2) target bundleno = 4628 (0x1214), region = 88 }
   0xd   : > { %v11587_v0 = vld [vmem:[%s15129_s3 + $0x38] sm:$0xff]   ;;  %s9886_s28 = sshll.u32 %s9881_s25, 4  ;;  %v11588_v1 = vld [vmem:[%s15129_s3 + $0x30] sm:$0xff]   ;;  %s15220_s19 = sld [smem:[#allocation51_spill]]  ;;  %v11590_v3 = vld [vmem:[%s15129_s3 + $0x28] sm:$0xff]   ;;  %v15145_v48 = vmov 0.0  }
   0xe   : > { %p541_p3 = scmp.lt.s32.totalorder %s9886_s28, 31  ;;  %10661 = vmatprep.subr.bf16.mxu1 %v11587_v0  ;;  %v11592_v6 = vld [vmem:[%s15129_s3 + $0x20] sm:$0xff]   ;;  %v11594_v8 = vld [vmem:[%s15129_s3 + $0x18] sm:$0xff]   ;;  %s15221_s22 = sld [smem:[#allocation50_spill]]  ;;  %v11596_v12 = vld [vmem:[%s15129_s3 + $0x10] sm:$0xff]   ;;  %vm12005_vm0 = vmmov 0  }
   0xf   : > { %10662 = vmatpush3.bf16.msra.mxu1 %v11587_v0  ;;  %v11598_v15 = vld [vmem:[%s15129_s3 + $0x8] sm:$0xff]   ;;  %v11600_v17 = vld [vmem:[%s15129_s3] sm:$0xff]   ;;  %v11603_v23 = vld [vmem:[%s15131_s5 + $0x38] sm:$0xff]   ;;  %vm1257_vm1 = vcmask 261120   ;;  %vm2190_vm2 = vcmask 1043456   ;;  %vm1994_vm3 = vcmask 64512  }
  0x10   : > { %10663 = vmatprep.subr.bf16.mxu1 %v11588_v1  ;;  %s15411_s28 = smov (!%p541_p3, %s9886_s28), 31  ;;  %v11604_v26 = vld [vmem:[%s15131_s5 + $0x30] sm:$0xff]   ;;  %v11605_v31 = vld [vmem:[%s15131_s5 + $0x28] sm:$0xff]   ;;  %v11606_v34 = vld [vmem:[%s15131_s5 + $0x20] sm:$0xff]   ;;  %s12006_s1 = smov 96  }
  0x11   : > { %s9887_s29 = sshll.u32 %s15411_s28, 3  ;;  %v11607_v39 = vld [vmem:[%s15131_s5 + $0x18] sm:$0xff]   ;;  %v11608_v42 = vld [vmem:[%s15131_s5 + $0x10] sm:$0xff]   ;;  %v11609_v46 = vld [vmem:[%s15131_s5 + $0x8] sm:$0xff]   ;;  %s12008_s21 = smov 32  }
  0x12   : > { %v11610_v47 = vld [vmem:[%s15131_s5] sm:$0xff]  }
  0x13   : > { %v11589_v2 = vld [vmem:[%s15220_s19 + $0x38] sm:$0xff]   ;;  %v11591_v4 = vld [vmem:[%s15220_s19 + $0x30] sm:$0xff]   ;;  %v11593_v5 = vld [vmem:[%s15220_s19 + $0x28] sm:$0xff]   ;;  %10664 = vmatpush3.bf16.msra.mxu1 %v11588_v1 }
  0x14   : > { %10629 = vmatprep.subr.bf16.mxu0 %v11589_v2  ;;  %10665 = vmatprep.subr.bf16.mxu1 %v11590_v3  ;;  %v11595_v7 = vld [vmem:[%s15220_s19 + $0x20] sm:$0xff]   ;;  %s12143_s23 = scalar_lea.vmem %s15221_s22, %s9887_s29  ;;  %v11597_v9 = vld [vmem:[%s15220_s19 + $0x18] sm:$0xff]   ;;  %v11599_v14 = vld [vmem:[%s15220_s19 + $0x10] sm:$0xff]   ;;  %s12007_s22 = smov 64  }
  0x15   : > { %10630 = vmatpush3.bf16.msra.mxu0 %v11589_v2  ;;  %v553_v10 = vld [vmem:[%s12143_s23] sm:$0xff]  ;;  %v554_v11 = vld [vmem:[%s12143_s23 + $0x8] sm:$0xff]  ;;  %v555_v18 = vld [vmem:[%s12143_s23 + $0x10] sm:$0xff] }
  0x16   : > { %10631 = vmatprep.subr.bf16.mxu0 %v11591_v4  ;;  %v12153_v13 = vpack.c.bf16 %v554_v11, %v553_v10  ;;  %v11601_v16 = vld [vmem:[%s15220_s19 + $0x8] sm:$0xff]   ;;  %v556_v19 = vld [vmem:[%s12143_s23 + $0x18] sm:$0xff]  ;;  %v11602_v20 = vld [vmem:[%s15220_s19] sm:$0xff]  }
  0x17   : > { %10666 = vmatpush3.bf16.msra.mxu1 %v11590_v3  ;;  %v557_v21 = vld [vmem:[%s12143_s23 + $0x20] sm:$0xff]  ;;  %v558_v22 = vld [vmem:[%s12143_s23 + $0x28] sm:$0xff]  ;;  %v570_v24 = vpack.c.bf16 %v556_v19, %v555_v18  ;;  %v559_v27 = vld [vmem:[%s12143_s23 + $0x30] sm:$0xff] }
  0x18   : > { %10667 = vmatprep.subr.bf16.mxu1 %v11592_v6  ;;  %10677 = vmatprep.mubr.bf16.mxu1 %v12153_v13  ;;  %v571_v25 = vpack.c.bf16 %v558_v22, %v557_v21  ;;  %v560_v28 = vld [vmem:[%s12143_s23 + $0x38] sm:$0xff]  ;;  %v561_v29 = vld [vmem:[%s12143_s23 + $0x40] sm:$0xff]  ;;  %v562_v30 = vld [vmem:[%s12143_s23 + $0x48] sm:$0xff] }
  0x19   : > { %10632 = vmatpush3.bf16.msra.mxu0 %v11591_v4  ;;  %10645 = vmatprep.mubr.bf16.mxu0 %v12153_v13  ;;  %v572_v32 = vpack.c.bf16 %v560_v28, %v559_v27  ;;  %v573_v33 = vpack.c.bf16 %v562_v30, %v561_v29  ;;  %v563_v35 = vld [vmem:[%s12143_s23 + $0x50] sm:$0xff]  ;;  %v564_v36 = vld [vmem:[%s12143_s23 + $0x58] sm:$0xff]  ;;  %v565_v37 = vld [vmem:[%s12143_s23 + $0x60] sm:$0xff] }
  0x1a   : > { %10633 = vmatprep.subr.bf16.mxu0 %v11593_v5  ;;  %v566_v38 = vld [vmem:[%s12143_s23 + $0x68] sm:$0xff]  ;;  %v574_v40 = vpack.c.bf16 %v564_v36, %v563_v35  ;;  %v567_v43 = vld [vmem:[%s12143_s23 + $0x70] sm:$0xff]  ;;  %v568_v44 = vld [vmem:[%s12143_s23 + $0x78] sm:$0xff] }
  0x1b   : > { %10668 = vmatpush3.bf16.msra.mxu1 %v11592_v6  ;;  %v575_v41 = vpack.c.bf16 %v566_v38, %v565_v37  ;;  %v576_v45 = vpack.c.bf16 %v568_v44, %v567_v43  ;;  %v12220_v50 = vld [vmem:[%s15130_s4] ss:$0 sm:$0xff] }
  0x1c   : > { %10669 = vmatprep.subr.bf16.mxu1 %v11594_v8  ;;  %v12226_v54 = vld [vmem:[%s15128_s2] ss:$0 sm:$0xff] }
  0x1d   : > { %10634 = vmatpush3.bf16.msra.mxu0 %v11593_v5 }
  0x1e   : > { %10635 = vmatprep.subr.bf16.mxu0 %v11595_v7 }
  0x1f   : > { %10670 = vmatpush3.bf16.msra.mxu1 %v11594_v8 }
  0x20   : > { %10671 = vmatprep.subr.bf16.mxu1 %v11596_v12 }
  0x21   : > { %10636 = vmatpush3.bf16.msra.mxu0 %v11595_v7 }
  0x22   : > { %10637 = vmatprep.subr.bf16.mxu0 %v11597_v9 }
  0x23   : > { %10672 = vmatpush3.bf16.msra.mxu1 %v11596_v12 }
  0x24   : > { %10673 = vmatprep.subr.bf16.mxu1 %v11598_v15 }
  0x25   : > { %10638 = vmatpush3.bf16.msra.mxu0 %v11597_v9 }
  0x26   : > { %10639 = vmatprep.subr.bf16.mxu0 %v11599_v14 }
  0x27   : > { %10674 = vmatpush3.bf16.msra.mxu1 %v11598_v15 }
  0x28   : > { %10675 = vmatprep.subr.bf16.mxu1 %v11600_v17 }
  0x29   : > { %10640 = vmatpush3.bf16.msra.mxu0 %v11599_v14 }
  0x2a   : > { %10641 = vmatprep.subr.bf16.mxu0 %v11601_v16 }
  0x2b   : > { %10676 = vmatpush3.bf16.msra.mxu1 %v11600_v17 }
  0x2c   : > { %10725 = vmatprep.subr.bf16.mxu1 %v15145_v48 }
  0x2d   : > { %10642 = vmatpush3.bf16.msra.mxu0 %v11601_v16 }
  0x2e   : > { %10643 = vmatprep.subr.bf16.mxu0 %v11602_v20  ;;  %10678 = vmatmul.mubr.bf16.vlgmr.msra.gmra.mxu1 %v570_v24 }
  0x2f   : > { %10681 = vmatprep.mubr.bf16.mxu1 %v571_v25 }
  0x31   : > { %10644 = vmatpush3.bf16.msra.mxu0 %v11602_v20 }
  0x32   : > { %10693 = vmatprep.subr.bf16.mxu0 %v11603_v23 }
  0x34   : > { %10646 = vmatmul.mubr.bf16.vlgmr.msra.gmra.mxu0 %v570_v24 }
  0x35   : > { %10649 = vmatprep.mubr.bf16.mxu0 %v571_v25  ;;  %10694 = vmatpush3.bf16.msra.mxu0 %v11603_v23 }
  0x36   : > { %10695 = vmatprep.subr.bf16.mxu0 %v11604_v26  ;;  %10682 = vmatmul.mubr.bf16.gmra.mxu1 %v572_v32 }
  0x37   : > { %10685 = vmatprep.mubr.bf16.mxu1 %v573_v33 }
  0x39   : > { %10696 = vmatpush3.bf16.msra.mxu0 %v11604_v26 }
  0x3a   : > { %10697 = vmatprep.subr.bf16.mxu0 %v11605_v31 }
  0x3c   : > { %10650 = vmatmul.mubr.bf16.gmra.mxu0 %v572_v32 }
  0x3d   : > { %10653 = vmatprep.mubr.bf16.mxu0 %v573_v33  ;;  %10698 = vmatpush3.bf16.msra.mxu0 %v11605_v31 }
  0x3e   : > { %10699 = vmatprep.subr.bf16.mxu0 %v11606_v34  ;;  %10686 = vmatmul.mubr.bf16.gmra.mxu1 %v574_v40 }
  0x3f   : > { %10689 = vmatprep.mubr.bf16.mxu1 %v575_v41 }
  0x41   : > { %10700 = vmatpush3.bf16.msra.mxu0 %v11606_v34 }
  0x42   : > { %10701 = vmatprep.subr.bf16.mxu0 %v11607_v39 }
  0x44   : > { %10654 = vmatmul.mubr.bf16.gmra.mxu0 %v574_v40 }
  0x45   : > { %10657 = vmatprep.mubr.bf16.mxu0 %v575_v41  ;;  %10702 = vmatpush3.bf16.msra.mxu0 %v11607_v39 }
  0x46   : > { %10703 = vmatprep.subr.bf16.mxu0 %v11608_v42  ;;  %10690 = vmatmul.mubr.bf16.gmra.mxu1 %v576_v45 }
  0x47   : > { %10727 = vmatprep.mubr.msk.bf16.mxu1 %vm12005_vm0, %v15145_v48 }
  0x49   : > { %10704 = vmatpush3.bf16.msra.mxu0 %v11608_v42 }
  0x4a   : > { %10705 = vmatprep.subr.bf16.mxu0 %v11609_v46 }
  0x4c   : > { %10658 = vmatmul.mubr.bf16.gmra.mxu0 %v576_v45 }
  0x4d   : > { %10706 = vmatpush3.bf16.msra.mxu0 %v11609_v46  ;;  %10709 = vmatprep.mubr.bf16.mxu0 %v12153_v13 }
  0x4e   : > { %10707 = vmatprep.subr.bf16.mxu0 %v11610_v47 }
  0x51   : > { %10708 = vmatpush3.bf16.msra.mxu0 %v11610_v47 }
  0x52   : > { %10749 = vmatprep.subr.bf16.mxu0 %v15145_v48 }
  0x54   : > { %10710 = vmatmul.mubr.bf16.vlgmr.msra.gmra.mxu0 %v570_v24 }
  0x55   : > { %10713 = vmatprep.mubr.bf16.mxu0 %v571_v25 }
  0x5c   : > { %10714 = vmatmul.mubr.bf16.gmra.mxu0 %v572_v32 }
  0x5d   : > { %10717 = vmatprep.mubr.bf16.mxu0 %v573_v33 }
  0x64   : > { %10718 = vmatmul.mubr.bf16.gmra.mxu0 %v574_v40 }
  0x65   : > { %10721 = vmatprep.mubr.bf16.mxu0 %v575_v41 }
  0x6c   : > { %10722 = vmatmul.mubr.bf16.gmra.mxu0 %v576_v45 }
  0x6d   : > { %10751 = vmatprep.mubr.msk.bf16.mxu0 %vm12005_vm0, %v15145_v48 }
  0xee   : > { %v10679_v49 = vpop.f32.mrf.mxu1 }
  0xef   : > { %v859_v17 = vadd.f32 %v10679_v49, %v12220_v50 }
  0xf0   : > { %v850_v51 = vpop.f32.mrf.mxu1 }
  0xf1   : > { %v851_v53 = vadd.f32 %v12220_v50, %v850_v51  ;;  %v12269_v27 = vpack.c.bf16 %v859_v17, %v859_v17 }
  0xf2   : > { %v10680_v55 = vpop.f32.mrf.mxu1 }
  0xf3   : > { %v12228_v57 = vpack.c.bf16 %v851_v53, %v851_v53  ;;  %v862_v36 = vadd.f32 %v10680_v55, %v12220_v50  ;;  %v1354_v37 = vsel %vm1257_vm1, %v12269_v27, 0 }
  0xf4   : > { %v10647_v52 = vpop.f32.mrf.mxu0  ;;  %v853_v58 = vpop.f32.mrf.mxu1 }
  0xf5   : > { %v854_v61 = vadd.f32 %v12220_v50, %v853_v58  ;;  %v1262_v63 = vsel %vm1257_vm1, %v12228_v57, 0  ;;  %v691_v31 = vadd.f32 %v10647_v52, %v12226_v54  ;;  %v12305_v45 = vpack.c.bf16 %v862_v36, %v862_v36 }
  0xf6   : > { %v682_v56 = vpop.f32.mrf.mxu0  ;;  %v10683_v62 = vpop.f32.mrf.mxu1  ;;  %10726 = vmatpush3.bf16.xpose.msra.mxu1 %v1262_v63 }
  0xf7   : > { %v683_v59 = vadd.f32 %v12226_v54, %v682_v56  ;;  %10731 = vmatprep.subr.bf16.mxu1 %v15145_v48  ;;  %v12238_v5 = vpack.c.bf16 %v854_v61, %v854_v61  ;;  %v875_v8 = vadd.f32 %v10683_v62, %v12220_v50  ;;  %v1083_v40 = vmul.f32 0.17677669, %v691_v31 }
  0xf8   : > { %v12231_v60 = vpop.f32.mrf.mxu0  ;;  %v866_v2 = vpop.f32.mrf.mxu1 }
  0xf9   : > { %v1081_v1 = vmul.f32 0.17677669, %v683_v59  ;;  %v867_v4 = vadd.f32 %v12220_v50, %v866_v2  ;;  %v1308_v18 = vsel %vm1257_vm1, %v12238_v5, 0  ;;  %v12260_v21 = vpack.c.bf16 %v875_v8, %v875_v8 }
  0xfa   : > { %v685_v0 = vpop.f32.mrf.mxu0  ;;  %v12240_v7 = vpop.f32.mrf.mxu1  ;;  %v12310_v51 = vpack.c.bf16 %v1083_v40, %v1083_v40  ;;  %v694_v52 = vadd.f32 %v12231_v60, %v12226_v54  ;;  %v1400_v59 = vsel %vm1257_vm1, %v12305_v45, 0  ;;  %v12328_v60 = vld [vmem:[%s15132_s6] ss:$0 sm:$0xff] }
  0xfb   : > { %v12243_v9 = vpack.c.bf16 %v867_v4, %v867_v4  ;;  %v12246_v11 = vpack.c.bf16 %v1081_v1, %v1081_v1  ;;  %v686_v12 = vadd.f32 %v12226_v54, %v685_v0  ;;  %v1538_v29 = vsel %vm1257_vm1, %v12260_v21, 0 }
  0xfc   : > { %v10651_v3 = vpop.f32.mrf.mxu0  ;;  %v869_v13 = vpop.f32.mrf.mxu1  ;;  %v1084_v63 = vmul.f32 0.17677669, %v694_v52 }
  0xfd   : > { %v1446_v16 = vsel %vm1257_vm1, %v12243_v9, 0  ;;  %10728 = vmatmul.mubr.msk.bf16.vlgmr.msra.gmra.mxu1 %vm1257_vm1, %v12246_v11  ;;  %v1082_v22 = vmul.f32 0.17677669, %v686_v12  ;;  %v707_v25 = vadd.f32 %v10651_v3, %v12226_v54  ;;  %v870_v58 = vadd.f32 %v12220_v50, %v869_v13 }
  0xfe   : > { %v698_v6 = vpop.f32.mrf.mxu0  ;;  %10750 = vmatpush3.bf16.xpose.msra.mxu0 %v1446_v16  ;;  %v10687_v19 = vpop.f32.mrf.mxu1  ;;  %10732 = vmatpush3.bf16.xpose.msra.mxu1 %v1308_v18  ;;  %v12351_v13 = vpack.c.bf16 %v1084_v63, %v1084_v63 }
  0xff   : > { %v699_v10 = vadd.f32 %v12226_v54, %v698_v6  ;;  %10733 = vmatprep.mubr.msk.bf16.mxu1 %vm12005_vm0, %v15145_v48  ;;  %10737 = vmatprep.subr.bf16.mxu1 %v15145_v48  ;;  %v12275_v32 = vpack.c.bf16 %v1082_v22, %v1082_v22  ;;  %v1087_v35 = vmul.f32 0.17677669, %v707_v25  ;;  %v891_v47 = vadd.f32 %v10687_v19, %v12220_v50 }
 0x100   : > { %v12249_v14 = vpop.f32.mrf.mxu0  ;;  %10761 = vmatprep.subr.bf16.mxu0 %v15145_v48  ;;  %v882_v23 = vpop.f32.mrf.mxu1  ;;  %v12344_v6 = vpack.c.bf16 %v870_v58, %v870_v58  ;;  %v878_v19 = vadd.f32 %v12240_v7, %v12220_v50 }
 0x101   : > { %v1085_v15 = vmul.f32 0.17677669, %v699_v10  ;;  %v883_v30 = vadd.f32 %v12220_v50, %v882_v23  ;;  %v12301_v43 = vpack.c.bf16 %v1087_v35, %v1087_v35  ;;  %v12330_v62 = vpack.c.bf16 %v891_v47, %v891_v47 }
 0x102   : > { %v12258_v20 = vpop.f32.mrf.mxu0  ;;  %v12277_v33 = vpop.f32.mrf.mxu1  ;;  %v1492_v22 = vsel %vm1257_vm1, %v12344_v6, 0  ;;  %v710_v40 = vadd.f32 %v12249_v14, %v12226_v54 }
 0x103   : > { %v12267_v26 = vpack.c.bf16 %v1085_v15, %v1085_v15  ;;  %v12290_v39 = vpack.c.bf16 %v883_v30, %v883_v30  ;;  %15222 = vst [vmem:[#allocation2_spill] sm:$0xff] %v12330_v62  ;;  %v1722_v10 = vsel %vm1257_vm1, %v12330_v62, 0  ;;  %v702_v15 = vadd.f32 %v12226_v54, %v12258_v20 }
 0x104   : > { %v10655_v24 = vpop.f32.mrf.mxu0  ;;  %v12297_v41 = vpop.f32.mrf.mxu1  ;;  %v12382_v30 = vpack.c.bf16 %v878_v19, %v878_v19  ;;  %v1088_v58 = vmul.f32 0.17677669, %v710_v40 }
 0x105   : > { %10752 = vmatmul.mubr.msk.bf16.vlgmr.msra.gmra.mxu0 %vm1257_vm1, %v12267_v26  ;;  %10734 = vmatmul.mubr.msk.bf16.vlgmr.msra.gmra.mxu1 %vm1257_vm1, %v12275_v32  ;;  %v1630_v49 = vsel %vm1257_vm1, %v12290_v39, 0  ;;  %v723_v2 = vadd.f32 %v10655_v24, %v12226_v54  ;;  %v1086_v24 = vmul.f32 0.17677669, %v702_v15  ;;  %v886_v52 = vadd.f32 %v12220_v50, %v12297_v41 }
 0x106   : > { %v714_v28 = vpop.f32.mrf.mxu0  ;;  %10762 = vmatpush3.bf16.xpose.msra.mxu0 %v1538_v29  ;;  %10738 = vmatpush3.bf16.xpose.msra.mxu1 %v1354_v37  ;;  %v10691_v53 = vpop.f32.mrf.mxu1  ;;  %v12429_v15 = vpack.c.bf16 %v1088_v58, %v1088_v58 }
 0x107   : > { %10739 = vmatprep.mubr.msk.bf16.mxu1 %vm12005_vm0, %v15145_v48  ;;  %10763 = vmatprep.mubr.msk.bf16.mxu0 %vm12005_vm0, %v15145_v48  ;;  %v715_v44 = vadd.f32 %v12226_v54, %v714_v28  ;;  %v1091_v17 = vmul.f32 0.17677669, %v723_v2  ;;  %v907_v35 = vadd.f32 %v10691_v53, %v12220_v50  ;;  %v1584_v53 = vsel %vm1257_vm1, %v12382_v30, 0 }
 0x108   : > { %v12279_v34 = vpop.f32.mrf.mxu0  ;;  %10743 = vmatprep.subr.bf16.mxu1 %v15145_v48  ;;  %10773 = vmatprep.subr.bf16.mxu0 %v15145_v48  ;;  %v898_v0 = vpop.f32.mrf.mxu1  ;;  %15229 = vst [vmem:[#allocation9_spill] sm:$0xff] %v12429_v15 }
 0x109   : > { %v1089_v56 = vmul.f32 0.17677669, %v715_v44  ;;  %v899_v12 = vadd.f32 %v12220_v50, %v898_v0  ;;  %v12375_v25 = vpack.c.bf16 %v1091_v17, %v1091_v17  ;;  %v12392_v44 = vpack.c.bf16 %v1086_v24, %v1086_v24 }
 0x10a   : > { %v12288_v38 = vpop.f32.mrf.mxu0  ;;  %v10692_v19 = vpop.f32.mrf.mxu1  ;;  %v894_v24 = vadd.f32 %v12277_v33, %v12220_v50 }
 0x10b   : > { %v12338_v3 = vpack.c.bf16 %v1089_v56, %v1089_v56  ;;  %v12368_v20 = vpack.c.bf16 %v899_v12, %v899_v12  ;;  %15225 = vst [vmem:[#allocation5_spill] sm:$0xff] %v12375_v25  ;;  %v12407_v56 = vpack.c.bf16 %v907_v35, %v907_v35 }
 0x10c   : > { %v12299_v42 = vpop.f32.mrf.mxu0  ;;  %v901_v35 = vpop.f32.mrf.mxu1  ;;  %v12457_v40 = vpack.c.bf16 %v894_v24, %v894_v24 }
 0x10d   : > { %10764 = vmatmul.mubr.msk.bf16.vlgmr.msra.gmra.mxu0 %vm1257_vm1, %v12301_v43  ;;  %10740 = vmatmul.mubr.msk.bf16.vlgmr.msra.gmra.mxu1 %vm1257_vm1, %v12310_v51  ;;  %15223 = vst [vmem:[#allocation3_spill] sm:$0xff] %v12338_v3  ;;  %15224 = vst [vmem:[#allocation4_spill] sm:$0xff] %v12368_v20  ;;  %v1814_v36 = vsel %vm1257_vm1, %v12368_v20, 0 }
 0x10e   : > { %v730_v46 = vpop.f32.mrf.mxu0  ;;  %10774 = vmatpush3.bf16.xpose.msra.mxu0 %v1630_v49  ;;  %10744 = vmatpush3.bf16.xpose.msra.mxu1 %v1400_v59  ;;  %15226 = vst [vmem:[#allocation6_spill] sm:$0xff] %v12407_v56  ;;  %v739_v59 = vadd.f32 %v12299_v42, %v12226_v54  ;;  %v718_v42 = vadd.f32 %v12226_v54, %v12288_v38  ;;  %15233 = vst [vmem:[#allocation13_spill] sm:$0xff] %v12457_v40 }
 0x10f   : > { %10745 = vmatprep.mubr.msk.bf16.mxu1 %vm12005_vm0, %v15145_v48  ;;  %10775 = vmatprep.mubr.msk.bf16.mxu0 %vm12005_vm0, %v15145_v48  ;;  %v731_v28 = vadd.f32 %v12226_v54, %v730_v46 }
 0x110   : > { %v12314_v55 = vpop.f32.mrf.mxu0  ;;  %10755 = vmatprep.subr.bf16.mxu1 %v15145_v48  ;;  %10785 = vmatprep.subr.bf16.mxu0 %v15145_v48  ;;  %v1095_v17 = vmul.f32 0.17677669, %v739_v59 }
 0x111   : > { %v1093_v47 = vmul.f32 0.17677669, %v731_v28  ;;  %v1090_v28 = vmul.f32 0.17677669, %v718_v42 }
 0x112   : > { %v12323_v61 = vpop.f32.mrf.mxu0 }
 0x113   : > { %v12416_v63 = vpack.c.bf16 %v1093_v47, %v1093_v47  ;;  %v12461_v47 = vpack.c.bf16 %v1090_v28, %v1090_v28 }
 0x114   : > { %v10711_v1 = vpop.f32.mrf.mxu0 }
 0x115   : > { %v12342_v4 = vadd.f32 %v10711_v1, %v12328_v60  ;;  %10776 = vmatmul.mubr.msk.bf16.vlgmr.msra.gmra.mxu0 %vm1257_vm1, %v12338_v3  ;;  %10746 = vmatmul.mubr.msk.bf16.vlgmr.msra.gmra.mxu1 %vm1257_vm1, %v12351_v13  ;;  %15227 = vst [vmem:[#allocation7_spill] sm:$0xff] %v12416_v63  ;;  %v12422_v1 = vpack.c.bf16 %v886_v52, %v886_v52  ;;  %15234 = vst [vmem:[#allocation14_spill] sm:$0xff] %v12461_v47 }
 0x116   : > { %v12346_v8 = vpop.f32.mrf.mxu0  ;;  %10786 = vmatpush3.bf16.xpose.msra.mxu0 %v1722_v10  ;;  %10756 = vmatpush3.bf16.xpose.msra.mxu1 %v1492_v22  ;;  %v1906_v10 = vsel %vm1257_vm1, %v12407_v56, 0  ;;  %v902_v52 = vadd.f32 %v12220_v50, %v901_v35 }
 0x117   : > { %10757 = vmatprep.mubr.msk.bf16.mxu1 %vm12005_vm0, %v15145_v48  ;;  %10787 = vmatprep.mubr.msk.bf16.mxu0 %vm12005_vm0, %v15145_v48  ;;  %15228 = vst [vmem:[#allocation8_spill] sm:$0xff] %v12422_v1 }
 0x118   : > { %v10712_v16 = vpop.f32.mrf.mxu0  ;;  %10767 = vmatprep.subr.bf16.mxu1 %v15145_v48  ;;  %10797 = vmatprep.subr.bf16.mxu0 %v15145_v48  ;;  %v12474_v58 = vpack.c.bf16 %v902_v52, %v902_v52 }
 0x119   : > { %v12358_v18 = vadd.f32 %v10712_v16, %v12328_v60 }
 0x11a   : > { %v12366_v23 = vpop.f32.mrf.mxu0  ;;  %15235 = vst [vmem:[#allocation15_spill] sm:$0xff] %v12474_v58 }
 0x11b   : > { %v1022_v35 = vadd.f32 %v12328_v60, %v12366_v23 }
 0x11c   : > { %v10715_v7 = vpop.f32.mrf.mxu0 }
 0x11d   : > { %v12380_v29 = vadd.f32 %v10715_v7, %v12328_v60  ;;  %10788 = vmatmul.mubr.msk.bf16.vlgmr.msra.gmra.mxu0 %vm1257_vm1, %v12375_v25  ;;  %10758 = vmatmul.mubr.msk.bf16.vlgmr.msra.gmra.mxu1 %vm1257_vm1, %v12392_v44  ;;  %v1676_v7 = vsel %vm1257_vm1, %v12422_v1, 0  ;;  %v12520_v52 = vpack.c.bf16 %v1022_v35, %v1022_v35 }
 0x11e   : > { %v1034_v31 = vpop.f32.mrf.mxu0  ;;  %10798 = vmatpush3.bf16.xpose.msra.mxu0 %v1814_v36  ;;  %10768 = vmatpush3.bf16.xpose.msra.mxu1 %v1584_v53  ;;  %v1768_v53 = vsel %vm1257_vm1, %v12457_v40, 0 }
 0x11f   : > { %v12388_v37 = vadd.f32 %v12328_v60, %v1034_v31  ;;  %10769 = vmatprep.mubr.msk.bf16.mxu1 %vm12005_vm0, %v15145_v48  ;;  %10799 = vmatprep.mubr.msk.bf16.mxu0 %vm12005_vm0, %v15145_v48  ;;  %v12451_v31 = vpack.c.bf16 %v1095_v17, %v1095_v17  ;;  %15243 = vst [vmem:[#allocation23_spill] sm:$0xff] %v12520_v52 }
 0x120   : > { %v10716_v46 = vpop.f32.mrf.mxu0  ;;  %10779 = vmatprep.subr.bf16.mxu1 %v15145_v48  ;;  %10809 = vmatprep.subr.bf16.mxu0 %v15145_v48 }
 0x121   : > { %v12397_v49 = vadd.f32 %v10716_v46, %v12328_v60  ;;  %15231 = vst [vmem:[#allocation11_spill] sm:$0xff] %v12451_v31  ;;  %v726_v46 = vadd.f32 %v12279_v34, %v12226_v54 }
 0x122   : > { %v12405_v14 = vpop.f32.mrf.mxu0 }
 0x123   : > { %v1092_v34 = vmul.f32 0.17677669, %v726_v46 }
 0x124   : > { %v10719_v41 = vpop.f32.mrf.mxu0 }
 0x125   : > { %v12420_v0 = vadd.f32 %v10719_v41, %v12328_v60  ;;  %10800 = vmatmul.mubr.msk.bf16.vlgmr.msra.gmra.mxu0 %vm1257_vm1, %v12416_v63  ;;  %10770 = vmatmul.mubr.msk.bf16.vlgmr.msra.gmra.mxu1 %vm1257_vm1, %v12429_v15  ;;  %v734_v41 = vadd.f32 %v12226_v54, %v12323_v61  ;;  %v12479_v59 = vpack.c.bf16 %v1092_v34, %v1092_v34  ;;  %v2238_v34 = vsel %vm2190_vm2, %v12520_v52, 0 }
 0x126   : > { %v1050_v2 = vpop.f32.mrf.mxu0  ;;  %10810 = vmatpush3.bf16.xpose.msra.mxu0 %v1906_v10  ;;  %10780 = vmatpush3.bf16.xpose.msra.mxu1 %v1676_v7  ;;  %v1860_v10 = vsel %vm1257_vm1, %v12474_v58, 0  ;;  %v742_v61 = vadd.f32 %v12314_v55, %v12226_v54 }
 0x127   : > { %v12427_v12 = vadd.f32 %v12328_v60, %v1050_v2  ;;  %10781 = vmatprep.mubr.msk.bf16.mxu1 %vm12005_vm0, %v15145_v48  ;;  %10811 = vmatprep.mubr.msk.bf16.mxu0 %vm12005_vm0, %v15145_v48  ;;  %15236 = vst [vmem:[#allocation16_spill] sm:$0xff] %v12479_v59  ;;  %v910_v2 = vadd.f32 %v10692_v19, %v12220_v50  ;;  %v1094_v42 = vmul.f32 0.17677669, %v734_v41 }
 0x128   : > { %v10720_v16 = vpop.f32.mrf.mxu0  ;;  %10791 = vmatprep.subr.bf16.mxu1 %v15145_v48  ;;  %10821 = vmatprep.subr.bf16.mxu0 %v15145_v48  ;;  %v1096_v19 = vmul.f32 0.17677669, %v742_v61 }
 0x129   : > { %v12436_v22 = vadd.f32 %v10720_v16, %v12328_v60  ;;  %v12488_v16 = vpack.c.bf16 %v910_v2, %v910_v2  ;;  %v12493_v17 = vpack.c.bf16 %v1094_v42, %v1094_v42 }
 0x12a   : > { %v12444_v38 = vpop.f32.mrf.mxu0  ;;  %v12508_v55 = vpack.c.bf16 %v1096_v19, %v1096_v19 }
 0x12b   : > { %15230 = vst [vmem:[#allocation10_spill] sm:$0xff] %v12436_v22  ;;  %15237 = vst [vmem:[#allocation17_spill] sm:$0xff] %v12488_v16  ;;  %v1952_v50 = vsel %vm1257_vm1, %v12488_v16, 0 }
 0x12c   : > { %v10723_v33 = vpop.f32.mrf.mxu0  ;;  %15238 = vst [vmem:[#allocation18_spill] sm:$0xff] %v12493_v17  ;;  %15241 = vst [vmem:[#allocation21_spill] sm:$0xff] %v12508_v55 }
 0x12d   : > { %v12454_v36 = vadd.f32 %v10723_v33, %v12328_v60  ;;  %10812 = vmatmul.mubr.msk.bf16.vlgmr.msra.gmra.mxu0 %vm1257_vm1, %v12451_v31  ;;  %10782 = vmatmul.mubr.msk.bf16.vlgmr.msra.gmra.mxu1 %vm1257_vm1, %v12461_v47  ;;  %v1019_v33 = vadd.f32 %v12328_v60, %v12346_v8 }
 0x12e   : > { %10823 = vmatprep.mubr.msk.bf16.mxu0 %vm12005_vm0, %v15145_v48  ;;  %10792 = vmatpush3.bf16.xpose.msra.mxu1 %v1768_v53  ;;  %v1066_v24 = vpop.f32.mrf.mxu0 }
 0x12f   : > { %15232 = vst [vmem:[#allocation12_spill] sm:$0xff] %v12454_v36  ;;  %10793 = vmatprep.mubr.msk.bf16.mxu1 %vm12005_vm0, %v15145_v48  ;;  %10803 = vmatprep.subr.bf16.mxu1 %v15145_v48  ;;  %v12502_v7 = vadd.f32 %v12328_v60, %v1066_v24  ;;  %v12518_v46 = vpack.c.bf16 %v1019_v33, %v1019_v33 }
 0x130   : > { %v10724_v28 = vpop.f32.mrf.mxu0 }
 0x131   : > { %15239 = vst [vmem:[#allocation19_spill] sm:$0xff] %v12502_v7  ;;  %v12506_v54 = vadd.f32 %v10724_v28, %v12328_v60  ;;  %15242 = vst [vmem:[#allocation22_spill] sm:$0xff] %v12518_v46  ;;  %v2192_v53 = vsel %vm2190_vm2, %v12518_v46, 0 }
 0x132   : > { %10822 = vmatpush3.bf16.msra.mxu0 %v2192_v53  ;;  %v12532_v2 = vpop.f32.mrf.mxu0 }
 0x133   : > { %15240 = vst [vmem:[#allocation20_spill] sm:$0xff] %v12506_v54  ;;  %10833 = vmatprep.subr.bf16.mxu0 %v15145_v48  ;;  %15244 = vst [vmem:[#allocation24_spill] sm:$0xff] %v12532_v2 }
 0x135   : > { %10794 = vmatmul.mubr.msk.bf16.vlgmr.msra.gmra.mxu1 %vm1257_vm1, %v12479_v59 }
 0x136   : > { %10804 = vmatpush3.bf16.xpose.msra.mxu1 %v1860_v10  ;;  %10805 = vmatprep.mubr.msk.bf16.mxu1 %vm12005_vm0, %v15145_v48 }
 0x137   : > { %10815 = vmatprep.subr.bf16.mxu1 %v15145_v48 }
 0x13d   : > { %10806 = vmatmul.mubr.msk.bf16.vlgmr.msra.gmra.mxu1 %vm1257_vm1, %v12493_v17 }
 0x13e   : > { %10816 = vmatpush3.bf16.xpose.msra.mxu1 %v1952_v50  ;;  %10817 = vmatprep.mubr.msk.bf16.mxu1 %vm12005_vm0, %v15145_v48 }
 0x13f   : > { %10827 = vmatprep.subr.bf16.mxu1 %v15145_v48 }
 0x145   : > { %10818 = vmatmul.mubr.msk.bf16.vlgmr.msra.gmra.mxu1 %vm1257_vm1, %v12508_v55 }
 0x146   : > { %10829 = vmatprep.mubr.msk.bf16.mxu1 %vm12005_vm0, %v15145_v48  ;;  %10828 = vmatpush3.bf16.msra.mxu1 %v2238_v34 }
 0x147   : > { %10839 = vmatprep.subr.bf16.mxu1 %v15145_v48 }
 0x1bd   : > { %v12528_v8 = vpop.f32.mrf.mxu1 }
 0x1be   : > { %v1995_v23 = vsel %vm1994_vm3, %v12528_v8, -inf }
 0x1bf   : > { %1996 = vmax.xlane.f32.xlu0 %v1995_v23  ;;  %v10729_v41 = vpop.f32.mrf.mxu1 }
 0x1c1   : > { %v1301_v10 = vpop.f32.mrf.mxu1 }
 0x1c3   : > { %v10730_v42 = vpop.f32.mrf.mxu1 }
 0x1c5   : > { %v12534_v61 = vpop.f32.mrf.mxu0  ;;  %v12536_v50 = vpop.f32.mrf.mxu1 }
 0x1c6   : > { %v1998_v24 = vsel %vm1994_vm3, %v12536_v50, -inf  ;;  %v2007_v35 = vsel %vm1994_vm3, %v12534_v61, -inf }
 0x1c7   : > { %v10753_v19 = vpop.f32.mrf.mxu0  ;;  %1999 = vmax.xlane.f32.xlu0 %v1998_v24  ;;  %v10735_v28 = vpop.f32.mrf.mxu1 }
 0x1c9   : > { %v1485_v33 = vpop.f32.mrf.mxu0  ;;  %v1347_v53 = vpop.f32.mrf.mxu1 }
 0x1cb   : > { %v10754_v34 = vpop.f32.mrf.mxu0  ;;  %2008 = vmax.xlane.f32.xlu0 %v2007_v35  ;;  %v10736_v23 = vpop.f32.mrf.mxu1 }
 0x1cd   : > { %v12542_v41 = vpop.f32.mrf.mxu0  ;;  %v12544_v10 = vpop.f32.mrf.mxu1 }
 0x1ce   : > { %v2013_v42 = vsel %vm1994_vm3, %v12542_v41, -inf  ;;  %v2001_v24 = vsel %vm1994_vm3, %v12544_v10, -inf }
 0x1cf   : > { %v10765_v19 = vpop.f32.mrf.mxu0  ;;  %2014 = vmax.xlane.f32.xlu0 %v2013_v42  ;;  %2002 = vmax.xlane.f32.xlu1 %v2001_v24  ;;  %v10741_v28 = vpop.f32.mrf.mxu1 }
 0x1d1   : > { %v1577_v33 = vpop.f32.mrf.mxu0  ;;  %v1393_v48 = vpop.f32.mrf.mxu1 }
 0x1d3   : > { %v10766_v53 = vpop.f32.mrf.mxu0  ;;  %v10742_v34 = vpop.f32.mrf.mxu1 }
 0x1d5   : > { %v12550_v35 = vpop.f32.mrf.mxu0  ;;  %v12552_v23 = vpop.f32.mrf.mxu1 }
 0x1d6   : > { %v2019_v54 = vsel %vm1994_vm3, %v12550_v35, -inf  ;;  %v2004_v19 = vsel %vm1994_vm3, %v12552_v23, -inf }
 0x1d7   : > { %v10777_v2 = vpop.f32.mrf.mxu0  ;;  %2020 = vmax.xlane.f32.xlu0 %v2019_v54  ;;  %2005 = vmax.xlane.f32.xlu1 %v2004_v19  ;;  %v10747_v42 = vpop.f32.mrf.mxu1 }
 0x1d9   : > { %v1669_v24 = vpop.f32.mrf.mxu0  ;;  %v1439_v28 = vpop.f32.mrf.mxu1 }
 0x1db   : > { %v10778_v33 = vpop.f32.mrf.mxu0  ;;  %v10748_v48 = vpop.f32.mrf.mxu1 }
 0x1dd   : > { %v12558_v53 = vpop.f32.mrf.mxu0  ;;  %v12560_v34 = vpop.f32.mrf.mxu1 }
 0x1de   : > { %v2025_v52 = vsel %vm1994_vm3, %v12558_v53, -inf  ;;  %v2010_v54 = vsel %vm1994_vm3, %v12560_v34, -inf }
 0x1df   : > { %v10789_v55 = vpop.f32.mrf.mxu0  ;;  %2026 = vmax.xlane.f32.xlu0 %v2025_v52  ;;  %2011 = vmax.xlane.f32.xlu1 %v2010_v54  ;;  %v10759_v2 = vpop.f32.mrf.mxu1 }
 0x1e1   : > { %v1761_v19 = vpop.f32.mrf.mxu0  ;;  %v1531_v42 = vpop.f32.mrf.mxu1 }
 0x1e3   : > { %v10790_v24 = vpop.f32.mrf.mxu0  ;;  %v10760_v28 = vpop.f32.mrf.mxu1 }
 0x1e5   : > { %v12566_v33 = vpop.f32.mrf.mxu0  ;;  %v12568_v48 = vpop.f32.mrf.mxu1 }
 0x1e6   : > { %v2031_v16 = vsel %vm1994_vm3, %v12566_v33, -inf  ;;  %v2016_v55 = vsel %vm1994_vm3, %v12568_v48, -inf }
 0x1e7   : > { %v10801_v17 = vpop.f32.mrf.mxu0  ;;  %2032 = vmax.xlane.f32.xlu0 %v2031_v16  ;;  %2017 = vmax.xlane.f32.xlu1 %v2016_v55  ;;  %v10771_v52 = vpop.f32.mrf.mxu1 }
 0x1e9   : > { %v1853_v54 = vpop.f32.mrf.mxu0  ;;  %v1623_v2 = vpop.f32.mrf.mxu1 }
 0x1eb   : > { %v10802_v19 = vpop.f32.mrf.mxu0  ;;  %v10772_v42 = vpop.f32.mrf.mxu1 }
 0x1ed   : > { %v12574_v24 = vpop.f32.mrf.mxu0  ;;  %v12576_v28 = vpop.f32.mrf.mxu1 }
 0x1ee   : > { %v2037_v58 = vsel %vm1994_vm3, %v12574_v24, -inf  ;;  %v2022_v16 = vsel %vm1994_vm3, %v12576_v28, -inf }
 0x1ef   : > { %2038 = vmax.xlane.f32.xlu0 %v2037_v58  ;;  %v10813_v17 = vpop.f32.mrf.mxu0  ;;  %2023 = vmax.xlane.f32.xlu1 %v2022_v16  ;;  %v10783_v59 = vpop.f32.mrf.mxu1 }
 0x1f1   : > { %v1945_v55 = vpop.f32.mrf.mxu0  ;;  %v1715_v52 = vpop.f32.mrf.mxu1 }
 0x1f3   : > { %v10814_v54 = vpop.f32.mrf.mxu0  ;;  %v10784_v2 = vpop.f32.mrf.mxu1 }
 0x1f5   : > { %v12582_v19 = vpop.f32.mrf.mxu1 }
 0x1f6   : > { %v2028_v42 = vsel %vm1994_vm3, %v12582_v19, -inf }
 0x1f7   : > { %2029 = vmax.xlane.f32.xlu1 %v2028_v42  ;;  %v10795_v40 = vpop.f32.mrf.mxu1 }
 0x1f9   : > { %v1807_v36 = vpop.f32.mrf.mxu1 }
 0x1fb   : > { %v10796_v47 = vpop.f32.mrf.mxu1 }
 0x1fd   : > { %v12586_v58 = vpop.f32.mrf.mxu1 }
 0x1fe   : > { %v2034_v17 = vsel %vm1994_vm3, %v12586_v58, -inf }
 0x1ff   : > { %2035 = vmax.xlane.f32.xlu1 %v2034_v17  ;;  %v10807_v59 = vpop.f32.mrf.mxu1 }
 0x201   : > { %v1899_v16 = vpop.f32.mrf.mxu1 }
 0x203   : > { %v10808_v55 = vpop.f32.mrf.mxu1 }
 0x205   : > { %v12590_v52 = vpop.f32.mrf.mxu1 }
 0x206   : > { %v2040_v54 = vsel %vm1994_vm3, %v12590_v52, -inf }
 0x207   : > { %2041 = vmax.xlane.f32.xlu1 %v2040_v54  ;;  %v10819_v2 = vpop.f32.mrf.mxu1 }
 0x209   : > { %v1991_v42 = vpop.f32.mrf.mxu1 }
 0x20b   : > { %v10820_v40 = vpop.f32.mrf.mxu1 }
 0x248   : > { %v1997_v36 = vpop.xlane.xlu0 %1996 }
 0x249   : > { %v2043_v47 = vsub.f32 %v12528_v8, %v1997_v36 }
 0x24b   : > { %v2059_v1 = vmul.f32 1.442695, %v2043_v47 }
 0x24d   : > { %11659 = vpow2.f32 %v2059_v1 }
 0x250   : > { %v2000_v7 = vpop.xlane.xlu0 %1999 }
 0x251   : > { %v2044_v17 = vsub.f32 %v12536_v50, %v2000_v7 }
 0x253   : > { %v2061_v59 = vmul.f32 1.442695, %v2044_v17 }
 0x254   : > { %v2009_v16 = vpop.xlane.xlu0 %2008 }
 0x255   : > { %11661 = vpow2.f32 %v2061_v59  ;;  %v2047_v55 = vsub.f32 %v12534_v61, %v2009_v16 }
 0x257   : > { %v2067_v40 = vmul.f32 1.442695, %v2047_v55 }
 0x258   : > { %v2003_v22 = vpop.xlane.xlu1 %2002  ;;  %v2015_v15 = vpop.xlane.xlu0 %2014 }
 0x259   : > { %v2045_v54 = vsub.f32 %v12544_v10, %v2003_v22  ;;  %v2049_v1 = vsub.f32 %v12542_v41, %v2015_v15 }
 0x25a   : > { %v12598_v2 = vpop.eup %11659 }
 0x25b   : > { %v2063_v42 = vmul.f32 1.442695, %v2045_v54  ;;  %v2091_v8 = vsel %vm1994_vm3, %v12598_v2, 0.0  ;;  %v2071_v50 = vmul.f32 1.442695, %v2049_v1 }
 0x25c   : > { %2092 = vadd.xlane.f32.xlu0 %v2091_v8 }
 0x25d   : > { %11663 = vpow2.f32 %v2063_v42 }
 0x25e   : > { %11665 = vpow2.f32 %v2067_v40 }
 0x25f   : > { %11667 = vpow2.f32 %v2071_v50 }
 0x260   : > { %v2021_v7 = vpop.xlane.xlu0 %2020  ;;  %v2006_v36 = vpop.xlane.xlu1 %2005 }
 0x261   : > { %v2051_v61 = vsub.f32 %v12550_v35, %v2021_v7  ;;  %v2046_v47 = vsub.f32 %v12552_v23, %v2006_v36 }
 0x262   : > { %v12605_v22 = vpop.eup %11661 }
 0x263   : > { %v2065_v10 = vmul.f32 1.442695, %v2046_v47  ;;  %v2094_v17 = vsel %vm1994_vm3, %v12605_v22, 0.0  ;;  %v2075_v59 = vmul.f32 1.442695, %v2051_v61 }
 0x264   : > { %2095 = vadd.xlane.f32.xlu1 %v2094_v17 }
 0x265   : > { %11669 = vpow2.f32 %v2065_v10 }
 0x266   : > { %11671 = vpow2.f32 %v2075_v59 }
 0x268   : > { %v2027_v15 = vpop.xlane.xlu0 %2026  ;;  %v2012_v16 = vpop.xlane.xlu1 %2011 }
 0x269   : > { %v2053_v41 = vsub.f32 %v12558_v53, %v2027_v15  ;;  %v2048_v35 = vsub.f32 %v12560_v34, %v2012_v16 }
 0x26a   : > { %v12611_v54 = vpop.eup %11663 }
 0x26b   : > { %v2079_v55 = vmul.f32 1.442695, %v2053_v41  ;;  %v2069_v23 = vmul.f32 1.442695, %v2048_v35  ;;  %v2097_v42 = vsel %vm1994_vm3, %v12611_v54, 0.0  ;;  %v12615_v8 = vpop.eup %11665 }
 0x26c   : > { %2098 = vadd.xlane.f32.xlu0 %v2097_v42  ;;  %v2103_v53 = vsel %vm1994_vm3, %v12615_v8, 0.0  ;;  %v12620_v34 = vpop.eup %11667 }
 0x26d   : > { %11673 = vpow2.f32 %v2079_v55 }
 0x26e   : > { %11675 = vpow2.f32 %v2069_v23 }
 0x270   : > { %v2033_v40 = vpop.xlane.xlu0 %2032  ;;  %v2018_v7 = vpop.xlane.xlu1 %2017  ;;  %2104 = vadd.xlane.f32.xlu0 %v2103_v53 }
 0x271   : > { %v2055_v1 = vsub.f32 %v12566_v33, %v2033_v40  ;;  %v2050_v50 = vsub.f32 %v12568_v48, %v2018_v7  ;;  %v2109_v33 = vsel %vm1994_vm3, %v12620_v34, 0.0 }
 0x272   : > { %v12623_v61 = vpop.eup %11669 }
 0x273   : > { %v2083_v36 = vmul.f32 1.442695, %v2055_v1  ;;  %v2073_v47 = vmul.f32 1.442695, %v2050_v50  ;;  %v2100_v10 = vsel %vm1994_vm3, %v12623_v61, 0.0  ;;  %v12629_v17 = vpop.eup %11671 }
 0x274   : > { %2101 = vadd.xlane.f32.xlu1 %v2100_v10  ;;  %2110 = vadd.xlane.f32.xlu0 %v2109_v33  ;;  %v2115_v48 = vsel %vm1994_vm3, %v12629_v17, 0.0 }
 0x275   : > { %11677 = vpow2.f32 %v2083_v36 }
 0x276   : > { %11679 = vpow2.f32 %v2073_v47 }
 0x278   : > { %v2039_v59 = vpop.xlane.xlu0 %2038  ;;  %v2024_v41 = vpop.xlane.xlu1 %2023  ;;  %2116 = vadd.xlane.f32.xlu0 %v2115_v48 }
 0x279   : > { %v2057_v15 = vsub.f32 %v12574_v24, %v2039_v59  ;;  %v2052_v35 = vsub.f32 %v12576_v28, %v2024_v41 }
 0x27a   : > { %v12634_v16 = vpop.eup %11673 }
 0x27b   : > { %v12637_v55 = vpop.eup %11675  ;;  %v2087_v23 = vmul.f32 1.442695, %v2057_v15  ;;  %v2121_v42 = vsel %vm1994_vm3, %v12634_v16, 0.0  ;;  %v2077_v40 = vmul.f32 1.442695, %v2052_v35 }
 0x27c   : > { %v2106_v1 = vsel %vm1994_vm3, %v12637_v55, 0.0  ;;  %2122 = vadd.xlane.f32.xlu0 %v2121_v42 }
 0x27d   : > { %11681 = vpow2.f32 %v2087_v23  ;;  %2107 = vadd.xlane.f32.xlu1 %v2106_v1  ;;  %v12707_v1 = vpack.c.bf16 %v12342_v4, %v12342_v4 }
 0x27e   : > { %11683 = vpow2.f32 %v2077_v40 }
 0x27f   : > { %15245 = vst [vmem:[#allocation25_spill] sm:$0xff] %v12707_v1 }
 0x280   : > { %v2030_v33 = vpop.xlane.xlu1 %2029 }
 0x281   : > { %v2054_v59 = vsub.f32 %v12582_v19, %v2030_v33  ;;  %v12720_v33 = vpack.c.bf16 %v12380_v29, %v12380_v29  ;;  %v2284_v29 = vsel %vm2190_vm2, %v12707_v1, 0 }
 0x282   : > { %v12643_v24 = vpop.eup %11677 }
 0x283   : > { %v12645_v53 = vpop.eup %11679  ;;  %v2127_v28 = vsel %vm1994_vm3, %v12643_v24, 0.0  ;;  %v2081_v48 = vmul.f32 1.442695, %v2054_v59  ;;  %15247 = vst [vmem:[#allocation27_spill] sm:$0xff] %v12720_v33 }
 0x284   : > { %2128 = vadd.xlane.f32.xlu0 %v2127_v28  ;;  %v2112_v7 = vsel %vm1994_vm3, %v12645_v53, 0.0 }
 0x285   : > { %2113 = vadd.xlane.f32.xlu1 %v2112_v7  ;;  %11685 = vpow2.f32 %v2081_v48  ;;  %v12714_v7 = vpack.c.bf16 %v12388_v37, %v12388_v37 }
 0x287   : > { %15246 = vst [vmem:[#allocation26_spill] sm:$0xff] %v12714_v7 }
 0x288   : > { %v2036_v15 = vpop.xlane.xlu1 %2035 }
 0x289   : > { %v2056_v41 = vsub.f32 %v12586_v58, %v2036_v15 }
 0x28a   : > { %v12651_v50 = vpop.eup %11681 }
 0x28b   : > { %v12653_v36 = vpop.eup %11683  ;;  %v2133_v47 = vsel %vm1994_vm3, %v12651_v50, 0.0  ;;  %v2085_v35 = vmul.f32 1.442695, %v2056_v41 }
 0x28c   : > { %2134 = vadd.xlane.f32.xlu0 %v2133_v47  ;;  %v2118_v10 = vsel %vm1994_vm3, %v12653_v36, 0.0 }
 0x28d   : > { %2119 = vadd.xlane.f32.xlu1 %v2118_v10  ;;  %11687 = vpow2.f32 %v2085_v35  ;;  %v15248_v35 = vmov 0.0  }
 0x290   : > { %v2042_v40 = vpop.xlane.xlu1 %2041 }
 0x291   : > { %v2058_v28 = vsub.f32 %v12590_v52, %v2042_v40 }
 0x292   : > { %v12677_v19 = vpop.eup %11685 }
 0x293   : > { %v2124_v58 = vsel %vm1994_vm3, %v12677_v19, 0.0  ;;  %v2089_v47 = vmul.f32 1.442695, %v2058_v28 }
 0x29a   : > { %v12683_v23 = vpop.eup %11687 }
 0x29b   : > { %v2130_v42 = vsel %vm1994_vm3, %v12683_v23, 0.0 }
 0x29e   : > { %2984 = vrot.lane.b32.xlu1 %v12238_v5, %s12006_s1 }
 0x2a2   : > { %2934 = vrot.lane.b32.xlu0 %v12228_v57, %s12006_s1 }
 0x2a6   : > { %3034 = vrot.lane.b32.xlu0 %v12269_v27, %s12006_s1 }
 0x2aa   : > { %3032 = vrot.lane.b32.xlu0 %v12310_v51, %s12006_s1 }
 0x2ae   : > { %3134 = vrot.lane.b32.xlu0 %v12243_v9, %s12006_s1 }
 0x2b2   : > { %3132 = vrot.lane.b32.xlu0 %v12267_v26, %s12006_s1 }
 0x2b6   : > { %3234 = vrot.lane.b32.xlu0 %v12260_v21, %s12006_s1 }
 0x2ba   : > { %3232 = vrot.lane.b32.xlu0 %v12301_v43, %s12006_s1 }
 0x2be   : > { %3334 = vrot.lane.b32.xlu0 %v12290_v39, %s12006_s1 }
 0x2c2   : > { %2125 = vadd.xlane.f32.xlu1 %v2124_v58  ;;  %3332 = vrot.lane.b32.xlu0 %v12338_v3, %s12006_s1 }
 0x2c6   : > { %2131 = vadd.xlane.f32.xlu1 %v2130_v42  ;;  %3434 = vrot.lane.b32.xlu0 %v12330_v62, %s12006_s1  ;;  %v12737_v42 = vpack.c.bf16 %v12358_v18, %v12358_v18 }
 0x2c8   : > { %15249 = vst [vmem:[#allocation28_spill] sm:$0xff] %v12737_v42 }
 0x2ca   : > { %3432 = vrot.lane.b32.xlu0 %v12375_v25, %s12006_s1 }
 0x2ce   : > { %3534 = vrot.lane.b32.xlu0 %v12368_v20, %s12006_s1 }
 0x2d2   : > { %3532 = vrot.lane.b32.xlu0 %v12416_v63, %s12006_s1 }
 0x2d6   : > { %3634 = vrot.lane.b32.xlu0 %v12407_v56, %s12006_s1 }
 0x2d7   : > { %2932 = vrot.lane.b32.xlu1 %v12246_v11, %s12006_s1 }
 0x2da   : > { %3632 = vrot.lane.b32.xlu0 %v12451_v31, %s12006_s1 }
 0x2de   : > { %3924 = vrot.lane.b32.xlu0 %v12518_v46, %s12006_s1 }
 0x2e2   : > { %4020 = vrot.lane.b32.xlu0 %v12707_v1, %s12006_s1 }
 0x2e5   : > { %v2093_v10 = vpop.xlane.xlu0 %2092 }
 0x2e6   : > { %4116 = vrot.lane.b32.xlu0 %v12714_v7, %s12006_s1  ;;  %11689 = vrcp.f32 %v2093_v10 }
 0x2e7   : > { %11691 = vpow2.f32 %v2089_v47 }
 0x2ea   : > { %4212 = vrot.lane.b32.xlu0 %v12720_v33, %s12006_s1 }
 0x2ed   : > { %v2096_v4 = vpop.xlane.xlu1 %2095 }
 0x2ee   : > { %11693 = vrcp.f32 %v2096_v4  ;;  %v2330_v4 = vsel %vm2190_vm2, %v12737_v42, 0 }
 0x2f3   : > { %v11690_v52 = vpop.eup %11689 }
 0x2f4   : > { %v2155_v37 = vmul.f32 %v11690_v52, %v12598_v2  ;;  %v12725_v59 = vpop.eup %11691 }
 0x2f5   : > { %v2099_v15 = vpop.xlane.xlu0 %2098  ;;  %v2136_v41 = vsel %vm1994_vm3, %v12725_v59, 0.0 }
 0x2f6   : > { %v2171_v48 = vpack.c.bf16 %v2155_v37, %v2155_v37  ;;  %11695 = vrcp.f32 %v2099_v15 }
 0x2f8   : > { %10824 = vmatmul.mubr.msk.bf16.vlgmr.msra.gmra.mxu0 %vm1994_vm3, %v2171_v48  ;;  %v1038_v48 = vadd.f32 %v12328_v60, %v12405_v14 }
 0x2f9   : > { %10834 = vmatpush3.bf16.msra.mxu0 %v2284_v29  ;;  %10835 = vmatprep.mubr.msk.bf16.mxu0 %vm12005_vm0, %v15248_v35  ;;  %v2105_v58 = vpop.xlane.xlu0 %2104 }
 0x2fa   : > { %10845 = vmatprep.subr.bf16.mxu0 %v15248_v35  ;;  %11697 = vrcp.f32 %v2105_v58  ;;  %v12758_v14 = vpack.c.bf16 %v1038_v48, %v1038_v48 }
 0x2fb   : > { %2137 = vadd.xlane.f32.xlu1 %v2136_v41  ;;  %v11694_v2 = vpop.eup %11693  ;;  %v2376_v41 = vsel %vm2190_vm2, %v12714_v7, 0 }
 0x2fc   : > { %v2156_v40 = vmul.f32 %v11694_v2, %v12605_v22  ;;  %15250 = vst [vmem:[#allocation29_spill] sm:$0xff] %v12758_v14 }
 0x2fd   : > { %v2102_v28 = vpop.xlane.xlu1 %2101  ;;  %v2111_v10 = vpop.xlane.xlu0 %2110 }
 0x2fe   : > { %11699 = vrcp.f32 %v2102_v28  ;;  %v2172_v47 = vpack.c.bf16 %v2156_v40, %v2156_v40 }
 0x2ff   : > { %11701 = vrcp.f32 %v2111_v10 }
 0x300   : > { %10830 = vmatmul.mubr.msk.bf16.vlgmr.msra.gmra.mxu1 %vm1994_vm3, %v2172_v47 }
 0x301   : > { %10840 = vmatpush3.bf16.msra.mxu1 %v2330_v4  ;;  %10841 = vmatprep.mubr.msk.bf16.mxu1 %vm12005_vm0, %v15248_v35  ;;  %v2117_v29 = vpop.xlane.xlu0 %2116 }
 0x302   : > { %10851 = vmatprep.subr.bf16.mxu1 %v15248_v35 }
 0x303   : > { %v11696_v18 = vpop.eup %11695 }
 0x304   : > { %v2157_v22 = vmul.f32 %v11696_v18, %v12611_v54  ;;  %v2422_v18 = vsel %vm2190_vm2, %v12758_v14, 0 }
 0x305   : > { %v2123_v4 = vpop.xlane.xlu0 %2122 }
 0x306   : > { %v2108_v52 = vpop.xlane.xlu1 %2107  ;;  %v2173_v37 = vpack.c.bf16 %v2157_v22, %v2157_v22  ;;  %v12777_v22 = vpack.c.bf16 %v12397_v49, %v12397_v49 }
 0x307   : > { %11703 = vrcp.f32 %v2108_v52  ;;  %v11698_v15 = vpop.eup %11697 }
 0x308   : > { %10836 = vmatmul.mubr.msk.bf16.vlgmr.msra.gmra.mxu0 %vm1994_vm3, %v2173_v37  ;;  %11705 = vrcp.f32 %v2117_v29  ;;  %v2159_v54 = vmul.f32 %v11698_v15, %v12615_v8  ;;  %v2468_v8 = vsel %vm2190_vm2, %v12720_v33, 0  ;;  %15251 = vst [vmem:[#allocation30_spill] sm:$0xff] %v12777_v22  ;;  %v12785_v15 = vpack.c.bf16 %v12427_v12, %v12427_v12 }
 0x309   : > { %10846 = vmatpush3.bf16.msra.mxu0 %v2376_v41  ;;  %10847 = vmatprep.mubr.msk.bf16.mxu0 %vm12005_vm0, %v15248_v35  ;;  %v1054_v41 = vadd.f32 %v12328_v60, %v12444_v38 }
 0x30a   : > { %10857 = vmatprep.subr.bf16.mxu0 %v15248_v35  ;;  %v2175_v47 = vpack.c.bf16 %v2159_v54, %v2159_v54  ;;  %15252 = vst [vmem:[#allocation31_spill] sm:$0xff] %v12785_v15  ;;  %v2560_v12 = vsel %vm2190_vm2, %v12785_v15, 0 }
 0x30b   : > { %v11700_v58 = vpop.eup %11699  ;;  %v12803_v38 = vpack.c.bf16 %v1054_v41, %v1054_v41 }
 0x30c   : > { %2982 = vrot.lane.b32.xlu1 %v12275_v32, %s12006_s1  ;;  %v2158_v2 = vmul.f32 %v11700_v58, %v12623_v61  ;;  %v11702_v10 = vpop.eup %11701 }
 0x30d   : > { %v2161_v52 = vmul.f32 %v11702_v10, %v12620_v34  ;;  %v2129_v58 = vpop.xlane.xlu0 %2128  ;;  %15253 = vst [vmem:[#allocation32_spill] sm:$0xff] %v12803_v38 }
 0x30e   : > { %v2114_v40 = vpop.xlane.xlu1 %2113  ;;  %v2174_v28 = vpack.c.bf16 %v2158_v2, %v2158_v2 }
 0x30f   : > { %11707 = vrcp.f32 %v2114_v40  ;;  %v2177_v34 = vpack.c.bf16 %v2161_v52, %v2161_v52  ;;  %v12811_v40 = vpack.c.bf16 %v12420_v0, %v12420_v0 }
 0x310   : > { %3084 = vrot.lane.b32.xlu1 %v12305_v45, %s12006_s1  ;;  %10842 = vmatmul.mubr.msk.bf16.vlgmr.msra.gmra.mxu1 %vm1994_vm3, %v2174_v28  ;;  %11709 = vrcp.f32 %v2123_v4  ;;  %v2606_v4 = vsel %vm2190_vm2, %v12803_v38, 0 }
 0x311   : > { %10848 = vmatmul.mubr.msk.bf16.vlgmr.msra.gmra.mxu0 %vm1994_vm3, %v2175_v47  ;;  %10852 = vmatpush3.bf16.msra.mxu1 %v2422_v18  ;;  %15254 = vst [vmem:[#allocation33_spill] sm:$0xff] %v12811_v40  ;;  %v15255_v18 = vld [vmem:[#allocation9_spill] sm:$0xff] }
 0x312   : > { %10858 = vmatpush3.bf16.msra.mxu0 %v2468_v8  ;;  %10859 = vmatprep.mubr.msk.bf16.mxu0 %vm12005_vm0, %v15248_v35 }
 0x313   : > { %10869 = vmatprep.subr.bf16.mxu0 %v15248_v35  ;;  %10853 = vmatprep.mubr.msk.bf16.mxu1 %vm12005_vm0, %v15248_v35 }
 0x314   : > { %v11704_v61 = vpop.eup %11703  ;;  %3082 = vrot.lane.b32.xlu1 %v12351_v13, %s12006_s1  ;;  %10863 = vmatprep.subr.bf16.mxu1 %v15248_v35 }
 0x315   : > { %v2160_v37 = vmul.f32 %v11704_v61, %v12637_v55  ;;  %v11706_v49 = vpop.eup %11705  ;;  %v2514_v55 = vsel %vm2190_vm2, %v12777_v22, 0  ;;  %v15256_v61 = vld [vmem:[#allocation10_spill] sm:$0xff] }
 0x316   : > { %v2120_v48 = vpop.xlane.xlu1 %2119  ;;  %v2163_v60 = vmul.f32 %v11706_v49, %v12629_v17  ;;  %v2135_v17 = vpop.xlane.xlu0 %2134  ;;  %v12829_v52 = vpack.c.bf16 %v15256_v61, %v15256_v61  ;;  %v15259_v49 = vld [vmem:[#allocation8_spill] sm:$0xff] }
 0x317   : > { %11711 = vrcp.f32 %v2120_v48  ;;  %v2176_v29 = vpack.c.bf16 %v2160_v37, %v2160_v37  ;;  %v15258_v48 = vld [vmem:[#allocation19_spill] sm:$0xff] }
 0x318   : > { %3184 = vrot.lane.b32.xlu1 %v12344_v6, %s12006_s1  ;;  %11713 = vrcp.f32 %v2129_v58  ;;  %v2179_v47 = vpack.c.bf16 %v2163_v60, %v2163_v60  ;;  %15257 = vst [vmem:[#allocation9_spill] sm:$0xff] %v12829_v52  ;;  %v2698_v58 = vsel %vm2190_vm2, %v12829_v52, 0 }
 0x319   : > { %10854 = vmatmul.mubr.msk.bf16.vlgmr.msra.gmra.mxu1 %vm1994_vm3, %v2176_v29  ;;  %10860 = vmatmul.mubr.msk.bf16.vlgmr.msra.gmra.mxu0 %vm1994_vm3, %v2177_v34  ;;  %11715 = vrcp.f32 %v2135_v17  ;;  %v12837_v29 = vpack.c.bf16 %v15258_v48, %v15258_v48  ;;  %v15263_v17 = vld [vmem:[#allocation16_spill] sm:$0xff]  ;;  %v15265_v48 = vld [vmem:[#allocation18_spill] sm:$0xff] }
 0x31a   : > { %10864 = vmatpush3.bf16.msra.mxu1 %v2514_v55  ;;  %10870 = vmatpush3.bf16.msra.mxu0 %v2560_v12  ;;  %v15260_v55 = vld [vmem:[#allocation14_spill] sm:$0xff] }
 0x31b   : > { %10871 = vmatprep.mubr.msk.bf16.mxu0 %vm12005_vm0, %v15248_v35  ;;  %10881 = vmatprep.subr.bf16.mxu0 %v15248_v35 }
 0x31c   : > { %v11708_v54 = vpop.eup %11707  ;;  %3182 = vrot.lane.b32.xlu1 %v12392_v44, %s12006_s1  ;;  %10865 = vmatprep.mubr.msk.bf16.mxu1 %vm12005_vm0, %v15248_v35 }
 0x31d   : > { %10875 = vmatprep.subr.bf16.mxu1 %v15248_v35  ;;  %v2162_v2 = vmul.f32 %v11708_v54, %v12645_v53  ;;  %v11710_v10 = vpop.eup %11709  ;;  %v2652_v53 = vsel %vm2190_vm2, %v12811_v40, 0  ;;  %v15261_v54 = vld [vmem:[#allocation12_spill] sm:$0xff] }
 0x31e   : > { %v2165_v8 = vmul.f32 %v11710_v10, %v12634_v16  ;;  %v12858_v60 = vpack.c.bf16 %v15261_v54, %v15261_v54 }
 0x31f   : > { %v2178_v28 = vpack.c.bf16 %v2162_v2, %v2162_v2  ;;  %v2935_v2 = vpop.permute.xlu0 %2934 }
 0x320   : > { %3284 = vrot.lane.b32.xlu1 %v12382_v30, %s12006_s1  ;;  %v2181_v16 = vpack.c.bf16 %v2165_v8, %v2165_v8  ;;  %v2940_v61 = vsel %vm1257_vm1, %v2935_v2, 0 }
 0x321   : > { %10866 = vmatmul.mubr.msk.bf16.vlgmr.msra.gmra.mxu1 %vm1994_vm3, %v2178_v28  ;;  %10872 = vmatmul.mubr.msk.bf16.vlgmr.msra.gmra.mxu0 %vm1994_vm3, %v2179_v47  ;;  %v15262_v28 = vld [vmem:[#allocation13_spill] sm:$0xff] }
 0x322   : > { %10876 = vmatpush3.bf16.msra.mxu1 %v2606_v4  ;;  %10882 = vmatpush3.bf16.msra.mxu0 %v2652_v53 }
 0x323   : > { %10883 = vmatprep.mubr.msk.bf16.mxu0 %vm12005_vm0, %v15248_v35  ;;  %10893 = vmatprep.subr.bf16.mxu0 %v15248_v35  ;;  %v3035_v53 = vpop.permute.xlu0 %3034 }
 0x324   : > { %v11712_v0 = vpop.eup %11711  ;;  %3282 = vrot.lane.b32.xlu1 %v15255_v18, %s12006_s1  ;;  %10877 = vmatprep.mubr.msk.bf16.mxu1 %vm12005_vm0, %v15248_v35 }
 0x325   : > { %10887 = vmatprep.subr.bf16.mxu1 %v15248_v35  ;;  %v2164_v37 = vmul.f32 %v11712_v0, %v12653_v36  ;;  %v11714_v41 = vpop.eup %11713  ;;  %v2744_v36 = vsel %vm2190_vm2, %v12837_v29, 0  ;;  %v15264_v0 = vld [vmem:[#allocation15_spill] sm:$0xff] }
 0x326   : > { %v2167_v12 = vmul.f32 %v11714_v41, %v12643_v24  ;;  %v11716_v10 = vpop.eup %11715  ;;  %v2836_v24 = vsel %vm2190_vm2, %v12858_v60, 0  ;;  %v12884_v41 = vpop.permute.xlu1 %2984 }
 0x327   : > { %v2180_v34 = vpack.c.bf16 %v2164_v37, %v2164_v37  ;;  %v2169_v4 = vmul.f32 %v11716_v10, %v12651_v50  ;;  %v3033_v37 = vpop.permute.xlu0 %3032  ;;  %v15266_v50 = vld [vmem:[#allocation17_spill] sm:$0xff] }
 0x328   : > { %3384 = vrot.lane.b32.xlu1 %v15259_v49, %s12006_s1  ;;  %v2183_v47 = vpack.c.bf16 %v2167_v12, %v2167_v12 }
 0x329   : > { %10878 = vmatmul.mubr.msk.bf16.vlgmr.msra.gmra.mxu1 %vm1994_vm3, %v2180_v34  ;;  %10884 = vmatmul.mubr.msk.bf16.vlgmr.msra.gmra.mxu0 %vm1994_vm3, %v2181_v16  ;;  %v2185_v8 = vpack.c.bf16 %v2169_v4, %v2169_v4  ;;  %v15267_v16 = vld [vmem:[#allocation21_spill] sm:$0xff]  ;;  %v11979_v4 = vld [vmem:[%s15132_s6] ss:$0 sm:$0xff] }
 0x32a   : > { %10888 = vmatpush3.bf16.msra.mxu1 %v2698_v58  ;;  %10894 = vmatpush3.bf16.msra.mxu0 %v2744_v36  ;;  %v15268_v36 = vld [vmem:[#allocation23_spill] sm:$0xff] }
 0x32b   : > { %10895 = vmatprep.mubr.msk.bf16.mxu0 %vm12005_vm0, %v15248_v35  ;;  %10905 = vmatprep.subr.bf16.mxu0 %v15248_v35  ;;  %v3135_v34 = vpop.permute.xlu0 %3134 }
 0x32c   : > { %3382 = vrot.lane.b32.xlu1 %v15260_v55, %s12006_s1  ;;  %10889 = vmatprep.mubr.msk.bf16.mxu1 %vm12005_vm0, %v15248_v35 }
 0x32d   : > { %10899 = vmatprep.subr.bf16.mxu1 %v15248_v35 }
 0x32f   : > { %v3133_v58 = vpop.permute.xlu0 %3132 }
 0x330   : > { %3484 = vrot.lane.b32.xlu1 %v15262_v28, %s12006_s1 }
 0x331   : > { %10896 = vmatmul.mubr.msk.bf16.vlgmr.msra.gmra.mxu0 %vm1994_vm3, %v2183_v47 }
 0x332   : > { %10906 = vmatpush3.bf16.msra.mxu0 %v2836_v24  ;;  %10907 = vmatprep.mubr.msk.bf16.mxu0 %vm12005_vm0, %v15248_v35  ;;  %v3040_v24 = vsel %vm1257_vm1, %v3035_v53, 0 }
 0x333   : > { %10917 = vmatprep.subr.bf16.mxu0 %v15248_v35  ;;  %v3235_v54 = vpop.permute.xlu0 %3234 }
 0x334   : > { %3482 = vrot.lane.b32.xlu1 %v15263_v17, %s12006_s1 }
 0x337   : > { %v3233_v47 = vpop.permute.xlu0 %3232 }
 0x338   : > { %3584 = vrot.lane.b32.xlu1 %v15264_v0, %s12006_s1 }
 0x339   : > { %10908 = vmatmul.mubr.msk.bf16.vlgmr.msra.gmra.mxu0 %vm1994_vm3, %v2185_v8  ;;  %v15269_v8 = vld [vmem:[#allocation24_spill] sm:$0xff] }
 0x33a   : > { %10918 = vmatpush3.bf16.xpose.msra.mxu0 %v2940_v61  ;;  %10919 = vmatprep.mubr.msk.bf16.mxu0 %vm12005_vm0, %v15248_v35  ;;  %v1070_v61 = vadd.f32 %v11979_v4, %v15269_v8 }
 0x33b   : > { %10929 = vmatprep.subr.bf16.mxu0 %v15248_v35 }
 0x33c   : > { %3582 = vrot.lane.b32.xlu1 %v15265_v48, %s12006_s1  ;;  %v12903_v53 = vpack.c.bf16 %v1070_v61, %v1070_v61 }
 0x33e   : > { %v2790_v4 = vsel %vm2190_vm2, %v12903_v53, 0 }
 0x340   : > { %3684 = vrot.lane.b32.xlu1 %v15266_v50, %s12006_s1 }
 0x344   : > { %3682 = vrot.lane.b32.xlu1 %v15267_v16, %s12006_s1 }
 0x348   : > { %3972 = vrot.lane.b32.xlu1 %v15268_v36, %s12006_s1 }
 0x34b   : > { %v2126_v12 = vpop.xlane.xlu1 %2125 }
 0x34c   : > { %11717 = vrcp.f32 %v2126_v12  ;;  %4068 = vrot.lane.b32.xlu1 %v12737_v42, %s12006_s1 }
 0x34f   : > { %v2132_v2 = vpop.xlane.xlu1 %2131 }
 0x350   : > { %11719 = vrcp.f32 %v2132_v2  ;;  %4164 = vrot.lane.b32.xlu1 %v12758_v14, %s12006_s1  ;;  %v3335_v2 = vpop.permute.xlu0 %3334 }
 0x353   : > { %v2933_v10 = vpop.permute.xlu1 %2932 }
 0x354   : > { %4260 = vrot.lane.b32.xlu1 %v12777_v22, %s12006_s1  ;;  %10920 = vmatmul.mubr.msk.bf16.vlgmr.msra.gmra.mxu0 %vm1257_vm1, %v2933_v10  ;;  %v3140_v10 = vsel %vm1257_vm1, %v3135_v34, 0  ;;  %v3333_v8 = vpop.permute.xlu0 %3332  ;;  %v3240_v34 = vsel %vm1257_vm1, %v3235_v54, 0 }
 0x355   : > { %10930 = vmatpush3.bf16.xpose.msra.mxu0 %v3040_v24  ;;  %10931 = vmatprep.mubr.msk.bf16.mxu0 %vm12005_vm0, %v15248_v35 }
 0x356   : > { %10941 = vmatprep.subr.bf16.mxu0 %v15248_v35 }
 0x359   : > { %v11718_v12 = vpop.eup %11717 }
 0x35a   : > { %v2166_v33 = vmul.f32 %v11718_v12, %v12677_v19  ;;  %v3435_v12 = vpop.permute.xlu0 %3434 }
 0x35b   : > { %v3440_v54 = vsel %vm1257_vm1, %v3435_v12, 0 }
 0x35c   : > { %10932 = vmatmul.mubr.msk.bf16.vlgmr.msra.gmra.mxu0 %vm1257_vm1, %v3033_v37  ;;  %v2182_v24 = vpack.c.bf16 %v2166_v33, %v2166_v33  ;;  %v15270_v33 = vld [vmem:[#allocation20_spill] sm:$0xff] }
 0x35d   : > { %v11720_v22 = vpop.eup %11719  ;;  %10942 = vmatpush3.bf16.xpose.msra.mxu0 %v3140_v10  ;;  %10943 = vmatprep.mubr.msk.bf16.mxu0 %vm12005_vm0, %v15248_v35  ;;  %v12920_v37 = vpack.c.bf16 %v15270_v33, %v15270_v33 }
 0x35e   : > { %10890 = vmatmul.mubr.msk.bf16.vlgmr.msra.gmra.mxu1 %vm1994_vm3, %v2182_v24  ;;  %10953 = vmatprep.subr.bf16.mxu0 %v15248_v35  ;;  %v2168_v19 = vmul.f32 %v11720_v22, %v12683_v23  ;;  %v3433_v23 = vpop.permute.xlu0 %3432  ;;  %v3340_v22 = vsel %vm1257_vm1, %v3335_v2, 0 }
 0x35f   : > { %10900 = vmatpush3.bf16.msra.mxu1 %v2790_v4  ;;  %10901 = vmatprep.mubr.msk.bf16.mxu1 %vm12005_vm0, %v15248_v35  ;;  %v2882_v10 = vsel %vm2190_vm2, %v12920_v37, 0 }
 0x360   : > { %10911 = vmatprep.subr.bf16.mxu1 %v15248_v35  ;;  %v2184_v61 = vpack.c.bf16 %v2168_v19, %v2168_v19 }
 0x364   : > { %10944 = vmatmul.mubr.msk.bf16.vlgmr.msra.gmra.mxu0 %vm1257_vm1, %v3133_v58  ;;  %v3535_v58 = vpop.permute.xlu0 %3534 }
 0x365   : > { %10954 = vmatpush3.bf16.xpose.msra.mxu0 %v3240_v34  ;;  %10955 = vmatprep.mubr.msk.bf16.mxu0 %vm12005_vm0, %v15248_v35 }
 0x366   : > { %10902 = vmatmul.mubr.msk.bf16.vlgmr.msra.gmra.mxu1 %vm1994_vm3, %v2184_v61  ;;  %10965 = vmatprep.subr.bf16.mxu0 %v15248_v35 }
 0x367   : > { %10912 = vmatpush3.bf16.msra.mxu1 %v2882_v10  ;;  %10913 = vmatprep.mubr.msk.bf16.mxu1 %vm12005_vm0, %v15248_v35 }
 0x368   : > { %10923 = vmatprep.subr.bf16.mxu1 %v15248_v35  ;;  %v3533_v2 = vpop.permute.xlu0 %3532 }
 0x36c   : > { %10956 = vmatmul.mubr.msk.bf16.vlgmr.msra.gmra.mxu0 %vm1257_vm1, %v3233_v47  ;;  %v3540_v47 = vsel %vm1257_vm1, %v3535_v58, 0  ;;  %v3635_v24 = vpop.permute.xlu0 %3634 }
 0x36d   : > { %10966 = vmatpush3.bf16.xpose.msra.mxu0 %v3340_v22  ;;  %10967 = vmatprep.mubr.msk.bf16.mxu0 %vm12005_vm0, %v15248_v35 }
 0x36e   : > { %10977 = vmatprep.subr.bf16.mxu0 %v15248_v35 }
 0x370   : > { %v3633_v4 = vpop.permute.xlu0 %3632 }
 0x374   : > { %10968 = vmatmul.mubr.msk.bf16.vlgmr.msra.gmra.mxu0 %vm1257_vm1, %v3333_v8  ;;  %v3640_v8 = vsel %vm1257_vm1, %v3635_v24, 0  ;;  %v3925_v34 = vpop.permute.xlu0 %3924 }
 0x375   : > { %10978 = vmatpush3.bf16.xpose.msra.mxu0 %v3440_v54  ;;  %10979 = vmatprep.mubr.msk.bf16.mxu0 %vm12005_vm0, %v15248_v35  ;;  %v3930_v61 = vsel %vm2190_vm2, %v3925_v34, 0 }
 0x376   : > { %10989 = vmatprep.subr.bf16.mxu0 %v15248_v35 }
 0x378   : > { %v13107_v63 = vpop.permute.xlu0 %4020 }
 0x37c   : > { %10980 = vmatmul.mubr.msk.bf16.vlgmr.msra.gmra.mxu0 %vm1257_vm1, %v3433_v23 }
 0x37d   : > { %10990 = vmatpush3.bf16.xpose.msra.mxu0 %v3540_v47  ;;  %10991 = vmatprep.mubr.msk.bf16.mxu0 %vm12005_vm0, %v15248_v35 }
 0x37e   : > { %11001 = vmatprep.subr.bf16.mxu0 %v15248_v35 }
 0x384   : > { %10992 = vmatmul.mubr.msk.bf16.vlgmr.msra.gmra.mxu0 %vm1257_vm1, %v3533_v2  ;;  %v2138_v19 = vpop.xlane.xlu1 %2137  ;;  %v2990_v2 = vsel %vm1257_vm1, %v12884_v41, 0 }
 0x385   : > { %11002 = vmatpush3.bf16.xpose.msra.mxu0 %v3640_v8  ;;  %11721 = vrcp.f32 %v2138_v19  ;;  %11003 = vmatprep.mubr.msk.bf16.mxu0 %vm12005_vm0, %v15248_v35 }
 0x386   : > { %11013 = vmatprep.subr.bf16.mxu0 %v15248_v35 }
 0x388   : > { %v2983_v33 = vpop.permute.xlu1 %2982 }
 0x38c   : > { %11004 = vmatmul.mubr.msk.bf16.vlgmr.msra.gmra.mxu0 %vm1257_vm1, %v3633_v4  ;;  %v3085_v12 = vpop.permute.xlu1 %3084 }
 0x38d   : > { %11014 = vmatpush3.bf16.msra.mxu0 %v3930_v61  ;;  %11015 = vmatprep.mubr.msk.bf16.mxu0 %vm12005_vm0, %v15248_v35  ;;  %v3090_v4 = vsel %vm1257_vm1, %v3085_v12, 0 }
 0x38e   : > { %11025 = vmatprep.subr.bf16.mxu0 %v15248_v35 }
 0x390   : > { %v3083_v10 = vpop.permute.xlu1 %3082 }
 0x392   : > { %v11722_v23 = vpop.eup %11721 }
 0x393   : > { %v2170_v22 = vmul.f32 %v11722_v23, %v12725_v59 }
 0x394   : > { %v3185_v58 = vpop.permute.xlu1 %3184 }
 0x395   : > { %v2186_v54 = vpack.c.bf16 %v2170_v22, %v2170_v22  ;;  %v3190_v8 = vsel %vm1257_vm1, %v3185_v58, 0 }
 0x397   : > { %10914 = vmatmul.mubr.msk.bf16.vlgmr.msra.gmra.mxu1 %vm1994_vm3, %v2186_v54 }
 0x398   : > { %10924 = vmatpush3.bf16.xpose.msra.mxu1 %v2990_v2  ;;  %v3183_v47 = vpop.permute.xlu1 %3182  ;;  %10925 = vmatprep.mubr.msk.bf16.mxu1 %vm12005_vm0, %v15248_v35 }
 0x399   : > { %10935 = vmatprep.subr.bf16.mxu1 %v15248_v35 }
 0x39c   : > { %v3285_v24 = vpop.permute.xlu1 %3284 }
 0x39f   : > { %10926 = vmatmul.mubr.msk.bf16.vlgmr.msra.gmra.mxu1 %vm1257_vm1, %v2983_v33  ;;  %v3290_v33 = vsel %vm1257_vm1, %v3285_v24, 0 }
 0x3a0   : > { %10936 = vmatpush3.bf16.xpose.msra.mxu1 %v3090_v4  ;;  %v3283_v59 = vpop.permute.xlu1 %3282  ;;  %10937 = vmatprep.mubr.msk.bf16.mxu1 %vm12005_vm0, %v15248_v35 }
 0x3a1   : > { %10947 = vmatprep.subr.bf16.mxu1 %v15248_v35 }
 0x3a4   : > { %v3385_v41 = vpop.permute.xlu1 %3384 }
 0x3a5   : > { %v3390_v12 = vsel %vm1257_vm1, %v3385_v41, 0 }
 0x3a7   : > { %10938 = vmatmul.mubr.msk.bf16.vlgmr.msra.gmra.mxu1 %vm1257_vm1, %v3083_v10 }
 0x3a8   : > { %10948 = vmatpush3.bf16.xpose.msra.mxu1 %v3190_v8  ;;  %10949 = vmatprep.mubr.msk.bf16.mxu1 %vm12005_vm0, %v15248_v35  ;;  %v3383_v19 = vpop.permute.xlu1 %3382 }
 0x3a9   : > { %10959 = vmatprep.subr.bf16.mxu1 %v15248_v35 }
 0x3ac   : > { %v3485_v34 = vpop.permute.xlu1 %3484 }
 0x3ad   : > { %v3490_v54 = vsel %vm1257_vm1, %v3485_v34, 0 }
 0x3af   : > { %10950 = vmatmul.mubr.msk.bf16.vlgmr.msra.gmra.mxu1 %vm1257_vm1, %v3183_v47 }
 0x3b0   : > { %10960 = vmatpush3.bf16.xpose.msra.mxu1 %v3290_v33  ;;  %10961 = vmatprep.mubr.msk.bf16.mxu1 %vm12005_vm0, %v15248_v35  ;;  %v3483_v61 = vpop.permute.xlu1 %3482 }
 0x3b1   : > { %10971 = vmatprep.subr.bf16.mxu1 %v15248_v35 }
 0x3b4   : > { %v3585_v22 = vpop.permute.xlu1 %3584 }
 0x3b5   : > { %v3590_v8 = vsel %vm1257_vm1, %v3585_v22, 0 }
 0x3b7   : > { %10962 = vmatmul.mubr.msk.bf16.vlgmr.msra.gmra.mxu1 %vm1257_vm1, %v3283_v59 }
 0x3b8   : > { %10972 = vmatpush3.bf16.xpose.msra.mxu1 %v3390_v12  ;;  %10973 = vmatprep.mubr.msk.bf16.mxu1 %vm12005_vm0, %v15248_v35  ;;  %v12984_v10 = vpop.f32.mrf.mxu0  ;;  %v3583_v24 = vpop.permute.xlu1 %3582 }
 0x3b9   : > { %15271 = vst [vmem:[#allocation10_spill] sm:$0xff] %v12984_v10  ;;  %10983 = vmatprep.subr.bf16.mxu1 %v15248_v35 }
 0x3ba   : > { %v10825_v23 = vpop.f32.mrf.mxu0 }
 0x3bc   : > { %v2231_v58 = vpop.f32.mrf.mxu0 }
 0x3be   : > { %v10826_v2 = vpop.f32.mrf.mxu0 }
 0x3bf   : > { %10974 = vmatmul.mubr.msk.bf16.vlgmr.msra.gmra.mxu1 %vm1257_vm1, %v3383_v19  ;;  %v3685_v19 = vpop.permute.xlu1 %3684 }
 0x3c0   : > { %10984 = vmatpush3.bf16.xpose.msra.mxu1 %v3490_v54  ;;  %10985 = vmatprep.mubr.msk.bf16.mxu1 %vm12005_vm0, %v15248_v35  ;;  %v12991_v47 = vpop.f32.mrf.mxu1  ;;  %v3690_v54 = vsel %vm1257_vm1, %v3685_v19, 0 }
 0x3c1   : > { %15272 = vst [vmem:[#allocation19_spill] sm:$0xff] %v12991_v47  ;;  %10995 = vmatprep.subr.bf16.mxu1 %v15248_v35 }
 0x3c2   : > { %v10831_v59 = vpop.f32.mrf.mxu1 }
 0x3c3   : > { %v3683_v23 = vpop.permute.xlu1 %3682 }
 0x3c4   : > { %v2277_v41 = vpop.f32.mrf.mxu1 }
 0x3c6   : > { %v10832_v33 = vpop.f32.mrf.mxu1 }
 0x3c7   : > { %10986 = vmatmul.mubr.msk.bf16.vlgmr.msra.gmra.mxu1 %vm1257_vm1, %v3483_v61 }
 0x3c8   : > { %10996 = vmatpush3.bf16.xpose.msra.mxu1 %v3590_v8  ;;  %10997 = vmatprep.mubr.msk.bf16.mxu1 %vm12005_vm0, %v15248_v35  ;;  %v13001_v34 = vpop.f32.mrf.mxu0  ;;  %v3973_v8 = vpop.permute.xlu1 %3972 }
 0x3c9   : > { %11007 = vmatprep.subr.bf16.mxu1 %v15248_v35  ;;  %15273 = vst [vmem:[#allocation8_spill] sm:$0xff] %v13001_v34 }
 0x3ca   : > { %v10837_v12 = vpop.f32.mrf.mxu0 }
 0x3cc   : > { %v2323_v58 = vpop.f32.mrf.mxu0 }
 0x3ce   : > { %v10838_v22 = vpop.f32.mrf.mxu0 }
 0x3cf   : > { %10998 = vmatmul.mubr.msk.bf16.vlgmr.msra.gmra.mxu1 %vm1257_vm1, %v3583_v24  ;;  %v3978_v24 = vsel %vm2190_vm2, %v3973_v8, 0 }
 0x3d0   : > { %11008 = vmatpush3.bf16.xpose.msra.mxu1 %v3690_v54  ;;  %11009 = vmatprep.mubr.msk.bf16.mxu1 %vm12005_vm0, %v15248_v35  ;;  %v13007_v61 = vpop.f32.mrf.mxu1 }
 0x3d1   : > { %15274 = vst [vmem:[#allocation14_spill] sm:$0xff] %v13007_v61  ;;  %11019 = vmatprep.subr.bf16.mxu1 %v15248_v35  ;;  %v13012_v59 = vpop.f32.mrf.mxu0 }
 0x3d2   : > { %15275 = vst [vmem:[#allocation12_spill] sm:$0xff] %v13012_v59  ;;  %v10843_v41 = vpop.f32.mrf.mxu1 }
 0x3d3   : > { %v10849_v33 = vpop.f32.mrf.mxu0 }
 0x3d4   : > { %v2369_v19 = vpop.f32.mrf.mxu1 }
 0x3d5   : > { %v2415_v12 = vpop.f32.mrf.mxu0 }
 0x3d6   : > { %v10844_v58 = vpop.f32.mrf.mxu1 }
 0x3d7   : > { %11010 = vmatmul.mubr.msk.bf16.vlgmr.msra.gmra.mxu1 %vm1257_vm1, %v3683_v23  ;;  %v10850_v54 = vpop.f32.mrf.mxu0 }
 0x3d8   : > { %11020 = vmatpush3.bf16.msra.mxu1 %v3978_v24  ;;  %11021 = vmatprep.mubr.msk.bf16.mxu1 %vm12005_vm0, %v15248_v35 }
 0x3d9   : > { %v13018_v22 = vpop.f32.mrf.mxu1  ;;  %11031 = vmatprep.subr.bf16.mxu1 %v15248_v35  ;;  %v13023_v33 = vpop.f32.mrf.mxu0 }
 0x3da   : > { %15276 = vst [vmem:[#allocation13_spill] sm:$0xff] %v13018_v22  ;;  %15277 = vst [vmem:[#allocation16_spill] sm:$0xff] %v13023_v33 }
 0x3db   : > { %v10855_v19 = vpop.f32.mrf.mxu1  ;;  %v10861_v12 = vpop.f32.mrf.mxu0 }
 0x3dd   : > { %v2461_v8 = vpop.f32.mrf.mxu1  ;;  %v2507_v58 = vpop.f32.mrf.mxu0 }
 0x3df   : > { %v10856_v2 = vpop.f32.mrf.mxu1  ;;  %v10862_v23 = vpop.f32.mrf.mxu0 }
 0x3e1   : > { %v13025_v54 = vpop.f32.mrf.mxu1  ;;  %v13029_v4 = vpop.f32.mrf.mxu0 }
 0x3e2   : > { %15278 = vst [vmem:[#allocation15_spill] sm:$0xff] %v13025_v54  ;;  %15279 = vst [vmem:[#allocation18_spill] sm:$0xff] %v13029_v4 }
 0x3e3   : > { %v10867_v7 = vpop.f32.mrf.mxu1  ;;  %v10873_v14 = vpop.f32.mrf.mxu0 }
 0x3e5   : > { %v2553_v34 = vpop.f32.mrf.mxu1  ;;  %v2599_v61 = vpop.f32.mrf.mxu0 }
 0x3e7   : > { %v10868_v41 = vpop.f32.mrf.mxu1  ;;  %v10874_v59 = vpop.f32.mrf.mxu0 }
 0x3e9   : > { %v13031_v22 = vpop.f32.mrf.mxu1  ;;  %v13035_v2 = vpop.f32.mrf.mxu0 }
 0x3ea   : > { %15280 = vst [vmem:[#allocation24_spill] sm:$0xff] %v13031_v22  ;;  %15281 = vst [vmem:[#allocation20_spill] sm:$0xff] %v13035_v2 }
 0x3eb   : > { %v10879_v12 = vpop.f32.mrf.mxu1  ;;  %v10885_v8 = vpop.f32.mrf.mxu0 }
 0x3ed   : > { %v2645_v58 = vpop.f32.mrf.mxu1  ;;  %v2691_v23 = vpop.f32.mrf.mxu0 }
 0x3ef   : > { %v10880_v24 = vpop.f32.mrf.mxu1  ;;  %v10886_v33 = vpop.f32.mrf.mxu0 }
 0x3f1   : > { %v13037_v54 = vpop.f32.mrf.mxu0 }
 0x3f2   : > { %15282 = vst [vmem:[#allocation34_spill] sm:$0xff] %v13037_v54 }
 0x3f3   : > { %v10897_v7 = vpop.f32.mrf.mxu0 }
 0x3f5   : > { %v2783_v14 = vpop.f32.mrf.mxu0 }
 0x3f7   : > { %v10898_v34 = vpop.f32.mrf.mxu0 }
 0x3f9   : > { %v13039_v61 = vpop.f32.mrf.mxu0 }
 0x3fa   : > { %15283 = vst [vmem:[#allocation35_spill] sm:$0xff] %v13039_v61 }
 0x3fb   : > { %v10909_v59 = vpop.f32.mrf.mxu0 }
 0x3fd   : > { %v2875_v41 = vpop.f32.mrf.mxu0 }
 0x3ff   : > { %v10910_v10 = vpop.f32.mrf.mxu0 }
 0x414   : > { %v13041_v47 = vpop.f32.mrf.mxu0 }
 0x415   : > { %v3732_v12 = vsel %vm1994_vm3, %v13041_v47, -inf }
 0x416   : > { %3733 = vmax.xlane.f32.xlu0 %v3732_v12  ;;  %v10921_v8 = vpop.f32.mrf.mxu0 }
 0x418   : > { %v2979_v58 = vpop.f32.mrf.mxu0 }
 0x41a   : > { %v10922_v24 = vpop.f32.mrf.mxu0 }
 0x41c   : > { %v13045_v33 = vpop.f32.mrf.mxu0 }
 0x41d   : > { %v3738_v23 = vsel %vm1994_vm3, %v13045_v33, -inf }
 0x41e   : > { %3739 = vmax.xlane.f32.xlu0 %v3738_v23  ;;  %v13049_v7 = vpop.f32.mrf.mxu1  ;;  %v10933_v14 = vpop.f32.mrf.mxu0 }
 0x41f   : > { %15284 = vst [vmem:[#allocation36_spill] sm:$0xff] %v13049_v7 }
 0x420   : > { %v10891_v34 = vpop.f32.mrf.mxu1  ;;  %v3079_v59 = vpop.f32.mrf.mxu0 }
 0x422   : > { %v2737_v41 = vpop.f32.mrf.mxu1  ;;  %v10934_v19 = vpop.f32.mrf.mxu0 }
 0x424   : > { %v10892_v12 = vpop.f32.mrf.mxu1  ;;  %v13053_v8 = vpop.f32.mrf.mxu0 }
 0x426   : > { %v13055_v58 = vpop.f32.mrf.mxu1  ;;  %v10945_v24 = vpop.f32.mrf.mxu0 }
 0x427   : > { %15285 = vst [vmem:[#allocation37_spill] sm:$0xff] %v13055_v58 }
 0x428   : > { %v10903_v23 = vpop.f32.mrf.mxu1  ;;  %v3179_v4 = vpop.f32.mrf.mxu0 }
 0x42a   : > { %v2829_v22 = vpop.f32.mrf.mxu1  ;;  %v10946_v14 = vpop.f32.mrf.mxu0 }
 0x42c   : > { %v10904_v1 = vpop.f32.mrf.mxu1  ;;  %v13059_v46 = vpop.f32.mrf.mxu0 }
 0x42e   : > { %v10957_v34 = vpop.f32.mrf.mxu0 }
 0x430   : > { %v3279_v59 = vpop.f32.mrf.mxu0 }
 0x432   : > { %v10958_v41 = vpop.f32.mrf.mxu0 }
 0x434   : > { %v13061_v19 = vpop.f32.mrf.mxu0 }
 0x436   : > { %v10969_v12 = vpop.f32.mrf.mxu0 }
 0x438   : > { %v3379_v10 = vpop.f32.mrf.mxu0 }
 0x43a   : > { %v10970_v2 = vpop.f32.mrf.mxu0 }
 0x43c   : > { %v13063_v7 = vpop.f32.mrf.mxu0 }
 0x43e   : > { %v10981_v24 = vpop.f32.mrf.mxu0 }
 0x440   : > { %v3479_v31 = vpop.f32.mrf.mxu0 }
 0x442   : > { %v10982_v61 = vpop.f32.mrf.mxu0 }
 0x444   : > { %v13065_v23 = vpop.f32.mrf.mxu0 }
 0x446   : > { %v10993_v4 = vpop.f32.mrf.mxu0 }
 0x448   : > { %v3579_v22 = vpop.f32.mrf.mxu0 }
 0x44a   : > { %v10994_v1 = vpop.f32.mrf.mxu0 }
 0x44c   : > { %v13067_v14 = vpop.f32.mrf.mxu0 }
 0x44e   : > { %v11005_v34 = vpop.f32.mrf.mxu0 }
 0x450   : > { %v3679_v59 = vpop.f32.mrf.mxu0 }
 0x452   : > { %v11006_v41 = vpop.f32.mrf.mxu0 }
 0x453   : > { %v3744_v41 = vsel %vm1994_vm3, %v13053_v8, -inf }
 0x457   : > { %v13069_v54 = vpop.f32.mrf.mxu1 }
 0x458   : > { %15286 = vst [vmem:[#allocation38_spill] sm:$0xff] %v13069_v54 }
 0x459   : > { %v10915_v12 = vpop.f32.mrf.mxu1 }
 0x45b   : > { %v2921_v10 = vpop.f32.mrf.mxu1 }
 0x45d   : > { %v10916_v2 = vpop.f32.mrf.mxu1 }
 0x45e   : > { %v3750_v2 = vsel %vm1994_vm3, %v13059_v46, -inf }
 0x45f   : > { %v13071_v58 = vpop.f32.mrf.mxu1 }
 0x460   : > { %v3735_v31 = vsel %vm1994_vm3, %v13071_v58, -inf }
 0x461   : > { %3736 = vmax.xlane.f32.xlu1 %v3735_v31  ;;  %v10927_v61 = vpop.f32.mrf.mxu1 }
 0x463   : > { %v3029_v24 = vpop.f32.mrf.mxu1 }
 0x465   : > { %v10928_v4 = vpop.f32.mrf.mxu1 }
 0x466   : > { %v3756_v4 = vsel %vm1994_vm3, %v13061_v19, -inf }
 0x467   : > { %v13075_v22 = vpop.f32.mrf.mxu1 }
 0x468   : > { %v3741_v1 = vsel %vm1994_vm3, %v13075_v22, -inf }
 0x469   : > { %3742 = vmax.xlane.f32.xlu0 %v3741_v1  ;;  %v10939_v34 = vpop.f32.mrf.mxu1 }
 0x46b   : > { %v3129_v59 = vpop.f32.mrf.mxu1 }
 0x46c   : > { %v3762_v59 = vsel %vm1994_vm3, %v13063_v7, -inf }
 0x46d   : > { %3745 = vmax.xlane.f32.xlu0 %v3744_v41  ;;  %v10940_v12 = vpop.f32.mrf.mxu1 }
 0x46f   : > { %v13081_v10 = vpop.f32.mrf.mxu1 }
 0x470   : > { %v3747_v31 = vsel %vm1994_vm3, %v13081_v10, -inf }
 0x471   : > { %3751 = vmax.xlane.f32.xlu0 %v3750_v2  ;;  %3748 = vmax.xlane.f32.xlu1 %v3747_v31  ;;  %v10951_v61 = vpop.f32.mrf.mxu1  ;;  %v3768_v31 = vsel %vm1994_vm3, %v13065_v23, -inf }
 0x473   : > { %v3229_v24 = vpop.f32.mrf.mxu1 }
 0x475   : > { %3757 = vmax.xlane.f32.xlu0 %v3756_v4  ;;  %v10952_v1 = vpop.f32.mrf.mxu1  ;;  %v3774_v4 = vsel %vm1994_vm3, %v13067_v14, -inf }
 0x477   : > { %v13089_v34 = vpop.f32.mrf.mxu1 }
 0x478   : > { %v3753_v41 = vsel %vm1994_vm3, %v13089_v34, -inf }
 0x479   : > { %3763 = vmax.xlane.f32.xlu0 %v3762_v59  ;;  %3754 = vmax.xlane.f32.xlu1 %v3753_v41  ;;  %v10963_v12 = vpop.f32.mrf.mxu1 }
 0x47b   : > { %v3329_v2 = vpop.f32.mrf.mxu1 }
 0x47d   : > { %3769 = vmax.xlane.f32.xlu0 %v3768_v31  ;;  %v10964_v61 = vpop.f32.mrf.mxu1 }
 0x47f   : > { %v13097_v24 = vpop.f32.mrf.mxu1 }
 0x480   : > { %v3759_v1 = vsel %vm1994_vm3, %v13097_v24, -inf }
 0x481   : > { %3775 = vmax.xlane.f32.xlu0 %v3774_v4  ;;  %3760 = vmax.xlane.f32.xlu1 %v3759_v1  ;;  %v10975_v54 = vpop.f32.mrf.mxu1 }
 0x483   : > { %v3429_v59 = vpop.f32.mrf.mxu1 }
 0x484   : > { %v13113_v59 = vpop.permute.xlu0 %4116 }
 0x485   : > { %v10976_v41 = vpop.f32.mrf.mxu1 }
 0x487   : > { %v13103_v12 = vpop.f32.mrf.mxu1 }
 0x488   : > { %v3765_v2 = vsel %vm1994_vm3, %v13103_v12, -inf }
 0x489   : > { %3766 = vmax.xlane.f32.xlu1 %v3765_v2  ;;  %v10987_v31 = vpop.f32.mrf.mxu1 }
 0x48b   : > { %v3529_v61 = vpop.f32.mrf.mxu1 }
 0x48d   : > { %v10988_v56 = vpop.f32.mrf.mxu1 }
 0x48e   : > { %v13119_v56 = vpop.permute.xlu0 %4212 }
 0x48f   : > { %v13109_v20 = vpop.f32.mrf.mxu1 }
 0x490   : > { %v3771_v4 = vsel %vm1994_vm3, %v13109_v20, -inf }
 0x491   : > { %3772 = vmax.xlane.f32.xlu1 %v3771_v4  ;;  %v10999_v54 = vpop.f32.mrf.mxu1 }
 0x493   : > { %v3629_v1 = vpop.f32.mrf.mxu1 }
 0x495   : > { %v11000_v41 = vpop.f32.mrf.mxu1 }
 0x497   : > { %4308 = vrot.lane.b32.xlu0 %v12785_v15, %s12006_s1  ;;  %v13117_v2 = vpop.f32.mrf.mxu1 }
 0x499   : > { %v11011_v31 = vpop.f32.mrf.mxu1 }
 0x49b   : > { %v3729_v61 = vpop.f32.mrf.mxu1 }
 0x49d   : > { %v11012_v25 = vpop.f32.mrf.mxu1 }
 0x49f   : > { %v3734_v42 = vpop.xlane.xlu0 %3733 }
 0x4a0   : > { %v3780_v62 = vsub.f32 %v13041_v47, %v3734_v42  ;;  %v3777_v47 = vsel %vm1994_vm3, %v13117_v2, -inf }
 0x4a2   : > { %v3796_v36 = vmul.f32 1.442695, %v3780_v62  ;;  %4356 = vrot.lane.b32.xlu1 %v12803_v38, %s12006_s1 }
 0x4a4   : > { %11723 = vpow2.f32 %v3796_v36 }
 0x4a6   : > { %4404 = vrot.lane.b32.xlu1 %v12811_v40, %s12006_s1 }
 0x4a7   : > { %v3740_v4 = vpop.xlane.xlu0 %3739 }
 0x4a8   : > { %v3782_v54 = vsub.f32 %v13045_v33, %v3740_v4  ;;  %v13139_v33 = vpop.permute.xlu1 %4068 }
 0x4aa   : > { %v3800_v1 = vmul.f32 1.442695, %v3782_v54  ;;  %4452 = vrot.lane.b32.xlu1 %v12829_v52, %s12006_s1 }
 0x4ac   : > { %11725 = vpow2.f32 %v3800_v1  ;;  %v13141_v41 = vpop.permute.xlu1 %4164 }
 0x4b0   : > { %v13143_v31 = vpop.permute.xlu1 %4260 }
 0x4b1   : > { %v13129_v25 = vpop.eup %11723  ;;  %15287 = vst [vmem:[#allocation39_spill] sm:$0xff] %v13143_v31 }
 0x4b2   : > { %v3828_v62 = vsel %vm1994_vm3, %v13129_v25, 0.0 }
 0x4b6   : > { %3829 = vadd.xlane.f32.xlu0 %v3828_v62 }
 0x4b9   : > { %v13133_v42 = vpop.eup %11725 }
 0x4ba   : > { %v3834_v36 = vsel %vm1994_vm3, %v13133_v42, 0.0 }
 0x4bb   : > { %3835 = vadd.xlane.f32.xlu0 %v3834_v36 }
 0x4ce   : > { %3778 = vmax.xlane.f32.xlu1 %v3777_v47 }
 0x4ea   : > { %v3737_v61 = vpop.xlane.xlu1 %3736 }
 0x4eb   : > { %v3781_v4 = vsub.f32 %v13071_v58, %v3737_v61 }
 0x4ed   : > { %v3798_v54 = vmul.f32 1.442695, %v3781_v4 }
 0x4ef   : > { %11727 = vpow2.f32 %v3798_v54 }
 0x4f2   : > { %v3743_v1 = vpop.xlane.xlu0 %3742 }
 0x4f3   : > { %v3783_v62 = vsub.f32 %v13075_v22, %v3743_v1 }
 0x4f5   : > { %v3802_v15 = vmul.f32 1.442695, %v3783_v62 }
 0x4f6   : > { %v3746_v36 = vpop.xlane.xlu0 %3745 }
 0x4f7   : > { %11729 = vpow2.f32 %v3802_v15  ;;  %v3784_v52 = vsub.f32 %v13053_v8, %v3746_v36 }
 0x4f9   : > { %v3804_v47 = vmul.f32 1.442695, %v3784_v52 }
 0x4fa   : > { %v3752_v40 = vpop.xlane.xlu0 %3751  ;;  %v3749_v38 = vpop.xlane.xlu1 %3748 }
 0x4fb   : > { %11731 = vpow2.f32 %v3804_v47  ;;  %v3786_v3 = vsub.f32 %v13059_v46, %v3752_v40  ;;  %v3785_v31 = vsub.f32 %v13081_v10, %v3749_v38 }
 0x4fc   : > { %v13150_v16 = vpop.eup %11727 }
 0x4fd   : > { %v3808_v58 = vmul.f32 1.442695, %v3786_v3  ;;  %v3806_v61 = vmul.f32 1.442695, %v3785_v31  ;;  %v3831_v22 = vsel %vm1994_vm3, %v13150_v16, 0.0 }
 0x4fe   : > { %v3758_v4 = vpop.xlane.xlu0 %3757  ;;  %3832 = vadd.xlane.f32.xlu1 %v3831_v22 }
 0x4ff   : > { %11733 = vpow2.f32 %v3808_v58  ;;  %v3788_v15 = vsub.f32 %v13061_v19, %v3758_v4 }
 0x500   : > { %11735 = vpow2.f32 %v3806_v61 }
 0x501   : > { %v3812_v40 = vmul.f32 1.442695, %v3788_v15 }
 0x502   : > { %v3755_v52 = vpop.xlane.xlu1 %3754  ;;  %v3764_v8 = vpop.xlane.xlu0 %3763 }
 0x503   : > { %v3787_v54 = vsub.f32 %v13089_v34, %v3755_v52  ;;  %v3790_v10 = vsub.f32 %v13063_v7, %v3764_v8 }
 0x504   : > { %v13156_v46 = vpop.eup %11729 }
 0x505   : > { %v3810_v38 = vmul.f32 1.442695, %v3787_v54  ;;  %v3837_v3 = vsel %vm1994_vm3, %v13156_v46, 0.0  ;;  %v3816_v1 = vmul.f32 1.442695, %v3790_v10 }
 0x506   : > { %3838 = vadd.xlane.f32.xlu1 %v3837_v3 }
 0x507   : > { %11737 = vpow2.f32 %v3810_v38 }
 0x508   : > { %v13161_v31 = vpop.eup %11731  ;;  %11739 = vpow2.f32 %v3812_v40 }
 0x509   : > { %v3840_v19 = vsel %vm1994_vm3, %v13161_v31, 0.0  ;;  %11741 = vpow2.f32 %v3816_v1  ;;  %v3770_v1 = vpop.xlane.xlu0 %3769 }
 0x50a   : > { %3841 = vadd.xlane.f32.xlu0 %v3840_v19  ;;  %v3761_v34 = vpop.xlane.xlu1 %3760 }
 0x50b   : > { %v3789_v62 = vsub.f32 %v13097_v24, %v3761_v34 }
 0x50c   : > { %v13166_v36 = vpop.eup %11733 }
 0x50d   : > { %v13168_v47 = vpop.eup %11735  ;;  %v3814_v58 = vmul.f32 1.442695, %v3789_v62  ;;  %v3846_v7 = vsel %vm1994_vm3, %v13166_v36, 0.0  ;;  %v3776_v34 = vpop.xlane.xlu0 %3775  ;;  %v3792_v62 = vsub.f32 %v13065_v23, %v3770_v1 }
 0x50e   : > { %3847 = vadd.xlane.f32.xlu0 %v3846_v7  ;;  %v3843_v61 = vsel %vm1994_vm3, %v13168_v47, 0.0 }
 0x50f   : > { %3844 = vadd.xlane.f32.xlu1 %v3843_v61  ;;  %11743 = vpow2.f32 %v3814_v58  ;;  %v3820_v7 = vmul.f32 1.442695, %v3792_v62  ;;  %v3794_v61 = vsub.f32 %v13067_v14, %v3776_v34 }
 0x511   : > { %v13198_v58 = vpop.permute.xlu0 %4308 }
 0x512   : > { %v3767_v22 = vpop.xlane.xlu1 %3766 }
 0x513   : > { %v3791_v4 = vsub.f32 %v13103_v12, %v3767_v22 }
 0x514   : > { %v13175_v15 = vpop.eup %11737 }
 0x515   : > { %v3818_v24 = vmul.f32 1.442695, %v3791_v4  ;;  %v3849_v52 = vsel %vm1994_vm3, %v13175_v15, 0.0  ;;  %v13179_v8 = vpop.eup %11739 }
 0x516   : > { %3850 = vadd.xlane.f32.xlu1 %v3849_v52  ;;  %v3852_v54 = vsel %vm1994_vm3, %v13179_v8, 0.0  ;;  %v13183_v38 = vpop.eup %11741  ;;  %v3824_v52 = vmul.f32 1.442695, %v3794_v61 }
 0x517   : > { %11745 = vpow2.f32 %v3818_v24  ;;  %v3858_v40 = vsel %vm1994_vm3, %v13183_v38, 0.0 }
 0x51a   : > { %3853 = vadd.xlane.f32.xlu1 %v3852_v54  ;;  %v3773_v22 = vpop.xlane.xlu1 %3772 }
 0x51b   : > { %v3793_v24 = vsub.f32 %v13109_v20, %v3773_v22  ;;  %v4026_v20 = vsel %vm2190_vm2, %v13107_v63, 0 }
 0x51c   : > { %v13185_v3 = vpop.eup %11743 }
 0x51d   : > { %v3855_v12 = vsel %vm1994_vm3, %v13185_v3, 0.0 }
 0x51e   : > { %3856 = vadd.xlane.f32.xlu0 %v3855_v12  ;;  %3859 = vadd.xlane.f32.xlu1 %v3858_v40  ;;  %v3822_v12 = vmul.f32 1.442695, %v3793_v24  ;;  %v13204_v23 = vpop.permute.xlu1 %4356 }
 0x524   : > { %v13191_v10 = vpop.eup %11745 }
 0x525   : > { %v3861_v19 = vsel %vm1994_vm3, %v13191_v10, 0.0 }
 0x526   : > { %3862 = vadd.xlane.f32.xlu0 %v3861_v19  ;;  %v13206_v19 = vpop.permute.xlu1 %4404 }
 0x52f   : > { %4548 = vrot.lane.b32.xlu1 %v12903_v53, %s12006_s1 }
 0x53c   : > { %4500 = vrot.lane.b32.xlu0 %v12837_v29, %s12006_s1 }
 0x53f   : > { %v3830_v4 = vpop.xlane.xlu0 %3829 }
 0x540   : > { %11747 = vrcp.f32 %v3830_v4 }
 0x541   : > { %11749 = vpow2.f32 %v3820_v7  ;;  %v13214_v7 = vpop.permute.xlu1 %4452 }
 0x544   : > { %v3836_v54 = vpop.xlane.xlu0 %3835 }
 0x545   : > { %11751 = vrcp.f32 %v3836_v54 }
 0x546   : > { %11753 = vpow2.f32 %v3824_v52 }
 0x547   : > { %11755 = vpow2.f32 %v3822_v12  ;;  %v4122_v12 = vsel %vm2190_vm2, %v13113_v59, 0 }
 0x54d   : > { %v11748_v40 = vpop.eup %11747 }
 0x54e   : > { %v3892_v1 = vmul.f32 %v11748_v40, %v13129_v25  ;;  %v13209_v14 = vpop.eup %11749 }
 0x54f   : > { %v3864_v61 = vsel %vm1994_vm3, %v13209_v14, 0.0 }
 0x550   : > { %v3908_v34 = vpack.c.bf16 %v3892_v1, %v3892_v1 }
 0x552   : > { %v11752_v62 = vpop.eup %11751  ;;  %11016 = vmatmul.mubr.msk.bf16.vlgmr.msra.gmra.mxu0 %vm1994_vm3, %v3908_v34 }
 0x553   : > { %11026 = vmatpush3.bf16.msra.mxu0 %v4026_v20  ;;  %11027 = vmatprep.mubr.msk.bf16.mxu0 %vm12005_vm0, %v15248_v35  ;;  %v13220_v22 = vpop.eup %11753  ;;  %v3894_v25 = vmul.f32 %v11752_v62, %v13133_v42 }
 0x554   : > { %3865 = vadd.xlane.f32.xlu1 %v3864_v61  ;;  %11037 = vmatprep.subr.bf16.mxu0 %v15248_v35  ;;  %v13224_v4 = vpop.eup %11755  ;;  %v3870_v63 = vsel %vm1994_vm3, %v13220_v22, 0.0 }
 0x555   : > { %v3910_v52 = vpack.c.bf16 %v3894_v25, %v3894_v25  ;;  %v3867_v42 = vsel %vm1994_vm3, %v13224_v4, 0.0 }
 0x557   : > { %v3779_v24 = vpop.xlane.xlu1 %3778 }
 0x558   : > { %3871 = vadd.xlane.f32.xlu1 %v3870_v63  ;;  %v3795_v54 = vsub.f32 %v13117_v2, %v3779_v24 }
 0x55a   : > { %v3826_v40 = vmul.f32 1.442695, %v3795_v54  ;;  %11028 = vmatmul.mubr.msk.bf16.vlgmr.msra.gmra.mxu0 %vm1994_vm3, %v3910_v52  ;;  %v4074_v52 = vsel %vm2190_vm2, %v13139_v33, 0 }
 0x55b   : > { %11038 = vmatpush3.bf16.msra.mxu0 %v4122_v12  ;;  %3868 = vadd.xlane.f32.xlu0 %v3867_v42  ;;  %v4170_v42 = vsel %vm2190_vm2, %v13141_v41, 0 }
 0x55c   : > { %11757 = vpow2.f32 %v3826_v40  ;;  %11039 = vmatprep.mubr.msk.bf16.mxu0 %vm12005_vm0, %v15248_v35  ;;  %11049 = vmatprep.subr.bf16.mxu0 %v15248_v35 }
 0x569   : > { %v13237_v1 = vpop.eup %11757  ;;  %4644 = vrot.lane.b32.xlu1 %v12920_v37, %s12006_s1 }
 0x56a   : > { %v3873_v59 = vsel %vm1994_vm3, %v13237_v1, 0.0 }
 0x56b   : > { %3874 = vadd.xlane.f32.xlu0 %v3873_v59 }
 0x56d   : > { %5018 = vrot.lane.b32.xlu1 %v12238_v5, %s12007_s22 }
 0x571   : > { %5016 = vrot.lane.b32.xlu1 %v12275_v32, %s12007_s22 }
 0x575   : > { %5118 = vrot.lane.b32.xlu1 %v12305_v45, %s12007_s22 }
 0x579   : > { %5116 = vrot.lane.b32.xlu1 %v12351_v13, %s12007_s22 }
 0x57d   : > { %5218 = vrot.lane.b32.xlu1 %v12344_v6, %s12007_s22 }
 0x581   : > { %5216 = vrot.lane.b32.xlu1 %v12392_v44, %s12007_s22  ;;  %4596 = vrot.lane.b32.xlu0 %v12858_v60, %s12006_s1 }
 0x585   : > { %5318 = vrot.lane.b32.xlu1 %v12382_v30, %s12007_s22  ;;  %4968 = vrot.lane.b32.xlu0 %v12228_v57, %s12007_s22 }
 0x587   : > { %v3833_v2 = vpop.xlane.xlu1 %3832 }
 0x588   : > { %11759 = vrcp.f32 %v3833_v2 }
 0x589   : > { %5316 = vrot.lane.b32.xlu1 %v15255_v18, %s12007_s22  ;;  %4966 = vrot.lane.b32.xlu0 %v12246_v11, %s12007_s22 }
 0x58d   : > { %5418 = vrot.lane.b32.xlu1 %v15259_v49, %s12007_s22  ;;  %5068 = vrot.lane.b32.xlu0 %v12269_v27, %s12007_s22 }
 0x58f   : > { %v3839_v34 = vpop.xlane.xlu1 %3838 }
 0x590   : > { %11761 = vrcp.f32 %v3839_v34 }
 0x591   : > { %5416 = vrot.lane.b32.xlu1 %v15260_v55, %s12007_s22  ;;  %5066 = vrot.lane.b32.xlu0 %v12310_v51, %s12007_s22 }
 0x593   : > { %v3842_v62 = vpop.xlane.xlu0 %3841 }
 0x594   : > { %11763 = vrcp.f32 %v3842_v62 }
 0x595   : > { %v11760_v20 = vpop.eup %11759  ;;  %5518 = vrot.lane.b32.xlu1 %v15262_v28, %s12007_s22  ;;  %5168 = vrot.lane.b32.xlu0 %v12243_v9, %s12007_s22 }
 0x596   : > { %v3893_v61 = vmul.f32 %v11760_v20, %v13150_v16 }
 0x597   : > { %v3848_v25 = vpop.xlane.xlu0 %3847 }
 0x598   : > { %v3909_v63 = vpack.c.bf16 %v3893_v61, %v3893_v61  ;;  %11765 = vrcp.f32 %v3848_v25  ;;  %v3845_v24 = vpop.xlane.xlu1 %3844 }
 0x599   : > { %11767 = vrcp.f32 %v3845_v24  ;;  %5516 = vrot.lane.b32.xlu1 %v15263_v17, %s12007_s22  ;;  %5166 = vrot.lane.b32.xlu0 %v12267_v26, %s12007_s22  ;;  %v15288_v24 = vld [vmem:[#allocation21_spill] sm:$0xff] }
 0x59a   : > { %11022 = vmatmul.mubr.msk.bf16.vlgmr.msra.gmra.mxu1 %vm1994_vm3, %v3909_v63 }
 0x59b   : > { %11032 = vmatpush3.bf16.msra.mxu1 %v4074_v52  ;;  %11033 = vmatprep.mubr.msk.bf16.mxu1 %vm12005_vm0, %v15248_v35 }
 0x59c   : > { %11043 = vmatprep.subr.bf16.mxu1 %v15248_v35 }
 0x59d   : > { %v11762_v16 = vpop.eup %11761  ;;  %5618 = vrot.lane.b32.xlu1 %v15264_v0, %s12007_s22  ;;  %5268 = vrot.lane.b32.xlu0 %v12260_v21, %s12007_s22 }
 0x59e   : > { %v3895_v54 = vmul.f32 %v11762_v16, %v13156_v46 }
 0x59f   : > { %v3851_v40 = vpop.xlane.xlu1 %3850 }
 0x5a0   : > { %v3911_v12 = vpack.c.bf16 %v3895_v54, %v3895_v54  ;;  %11769 = vrcp.f32 %v3851_v40  ;;  %v15292_v54 = vld [vmem:[#allocation2_spill] sm:$0xff]  ;;  %v4314_v40 = vsel %vm2190_vm2, %v13198_v58, 0  ;;  %v15294_v58 = vld [vmem:[#allocation5_spill] sm:$0xff] }
 0x5a1   : > { %v11764_v33 = vpop.eup %11763  ;;  %5616 = vrot.lane.b32.xlu1 %v15265_v48, %s12007_s22  ;;  %5266 = vrot.lane.b32.xlu0 %v12301_v43, %s12007_s22 }
 0x5a2   : > { %v3896_v59 = vmul.f32 %v11764_v33, %v13161_v31  ;;  %11034 = vmatmul.mubr.msk.bf16.vlgmr.msra.gmra.mxu1 %vm1994_vm3, %v3911_v12  ;;  %v4218_v31 = vsel %vm2190_vm2, %v13119_v56, 0  ;;  %v15289_v56 = vld [vmem:[#allocation3_spill] sm:$0xff] }
 0x5a3   : > { %11044 = vmatpush3.bf16.msra.mxu1 %v4170_v42  ;;  %11045 = vmatprep.mubr.msk.bf16.mxu1 %vm12005_vm0, %v15248_v35  ;;  %v3854_v2 = vpop.xlane.xlu1 %3853 }
 0x5a4   : > { %v3912_v46 = vpack.c.bf16 %v3896_v59, %v3896_v59  ;;  %11055 = vmatprep.subr.bf16.mxu1 %v15248_v35  ;;  %11771 = vrcp.f32 %v3854_v2 }
 0x5a5   : > { %v11766_v34 = vpop.eup %11765  ;;  %5718 = vrot.lane.b32.xlu1 %v15266_v50, %s12007_s22  ;;  %5368 = vrot.lane.b32.xlu0 %v12290_v39, %s12007_s22 }
 0x5a6   : > { %v11768_v41 = vpop.eup %11767  ;;  %11040 = vmatmul.mubr.msk.bf16.vlgmr.msra.gmra.mxu0 %vm1994_vm3, %v3912_v46  ;;  %v3898_v20 = vmul.f32 %v11766_v34, %v13166_v36  ;;  %v15291_v36 = vld [vmem:[#allocation23_spill] sm:$0xff]  ;;  %v15293_v46 = vld [vmem:[#allocation28_spill] sm:$0xff]  ;;  %v4362_v34 = vsel %vm2190_vm2, %v13204_v23, 0 }
 0x5a7   : > { %v3897_v62 = vmul.f32 %v11768_v41, %v13168_v47  ;;  %11050 = vmatpush3.bf16.msra.mxu0 %v4218_v31  ;;  %11051 = vmatprep.mubr.msk.bf16.mxu0 %vm12005_vm0, %v15248_v35  ;;  %v3857_v61 = vpop.xlane.xlu0 %3856  ;;  %v3860_v25 = vpop.xlane.xlu1 %3859  ;;  %v15290_v47 = vld [vmem:[#allocation39_spill] sm:$0xff]  ;;  %v15295_v31 = vld [vmem:[#allocation4_spill] sm:$0xff] }
 0x5a8   : > { %11061 = vmatprep.subr.bf16.mxu0 %v15248_v35  ;;  %11773 = vrcp.f32 %v3857_v61  ;;  %v4266_v52 = vsel %vm2190_vm2, %v15290_v47, 0  ;;  %v3914_v16 = vpack.c.bf16 %v3898_v20, %v3898_v20  ;;  %v4410_v61 = vsel %vm2190_vm2, %v13206_v19, 0 }
 0x5a9   : > { %v3913_v63 = vpack.c.bf16 %v3897_v62, %v3897_v62  ;;  %5716 = vrot.lane.b32.xlu1 %v15288_v24, %s12007_s22  ;;  %5366 = vrot.lane.b32.xlu0 %v15289_v56, %s12007_s22  ;;  %11775 = vrcp.f32 %v3860_v25  ;;  %v4458_v47 = vsel %vm2190_vm2, %v13214_v7, 0 }
 0x5ab   : > { %11046 = vmatmul.mubr.msk.bf16.vlgmr.msra.gmra.mxu1 %vm1994_vm3, %v3913_v63  ;;  %v15296_v63 = vld [vmem:[#allocation7_spill] sm:$0xff]  ;;  %v4549_v7 = vpop.permute.xlu1 %4548 }
 0x5ac   : > { %11056 = vmatpush3.bf16.msra.mxu1 %v4266_v52  ;;  %11057 = vmatprep.mubr.msk.bf16.mxu1 %vm12005_vm0, %v15248_v35 }
 0x5ad   : > { %6006 = vrot.lane.b32.xlu1 %v15291_v36, %s12007_s22  ;;  %5468 = vrot.lane.b32.xlu0 %v15292_v54, %s12007_s22  ;;  %v11770_v12 = vpop.eup %11769 }
 0x5ae   : > { %11052 = vmatmul.mubr.msk.bf16.vlgmr.msra.gmra.mxu0 %vm1994_vm3, %v3914_v16  ;;  %11067 = vmatprep.subr.bf16.mxu1 %v15248_v35  ;;  %v3899_v33 = vmul.f32 %v11770_v12, %v13175_v15  ;;  %v15297_v16 = vld [vmem:[#allocation6_spill] sm:$0xff] }
 0x5af   : > { %11062 = vmatpush3.bf16.msra.mxu0 %v4314_v40  ;;  %v3863_v42 = vpop.xlane.xlu0 %3862  ;;  %11063 = vmatprep.mubr.msk.bf16.mxu0 %vm12005_vm0, %v15248_v35 }
 0x5b0   : > { %11777 = vrcp.f32 %v3863_v42  ;;  %11073 = vmatprep.subr.bf16.mxu0 %v15248_v35  ;;  %v3915_v59 = vpack.c.bf16 %v3899_v33, %v3899_v33  ;;  %v15298_v33 = vld [vmem:[#allocation11_spill] sm:$0xff]  ;;  %v4554_v42 = vsel %vm2190_vm2, %v4549_v7, 0 }
 0x5b1   : > { %6102 = vrot.lane.b32.xlu1 %v15293_v46, %s12007_s22  ;;  %5466 = vrot.lane.b32.xlu0 %v15294_v58, %s12007_s22  ;;  %v11772_v2 = vpop.eup %11771 }
 0x5b2   : > { %v3900_v15 = vmul.f32 %v11772_v2, %v13179_v8 }
 0x5b3   : > { %11058 = vmatmul.mubr.msk.bf16.vlgmr.msra.gmra.mxu1 %vm1994_vm3, %v3915_v59  ;;  %v15300_v59 = vld [vmem:[#allocation25_spill] sm:$0xff] }
 0x5b4   : > { %11068 = vmatpush3.bf16.msra.mxu1 %v4362_v34  ;;  %11069 = vmatprep.mubr.msk.bf16.mxu1 %vm12005_vm0, %v15248_v35  ;;  %v3916_v41 = vpack.c.bf16 %v3900_v15, %v3900_v15 }
 0x5b5   : > { %5568 = vrot.lane.b32.xlu0 %v15295_v31, %s12007_s22  ;;  %11079 = vmatprep.subr.bf16.mxu1 %v15248_v35  ;;  %v11774_v62 = vpop.eup %11773 }
 0x5b6   : > { %v11776_v20 = vpop.eup %11775  ;;  %v3901_v23 = vmul.f32 %v11774_v62, %v13185_v3  ;;  %11064 = vmatmul.mubr.msk.bf16.vlgmr.msra.gmra.mxu0 %vm1994_vm3, %v3916_v41  ;;  %v4501_v3 = vpop.permute.xlu0 %4500 }
 0x5b7   : > { %11074 = vmatpush3.bf16.msra.mxu0 %v4410_v61  ;;  %11075 = vmatprep.mubr.msk.bf16.mxu0 %vm12005_vm0, %v15248_v35  ;;  %v3902_v25 = vmul.f32 %v11776_v20, %v13183_v38  ;;  %v4506_v12 = vsel %vm2190_vm2, %v4501_v3, 0 }
 0x5b8   : > { %v3917_v8 = vpack.c.bf16 %v3901_v23, %v3901_v23  ;;  %11085 = vmatprep.subr.bf16.mxu0 %v15248_v35 }
 0x5b9   : > { %5566 = vrot.lane.b32.xlu0 %v15296_v63, %s12007_s22  ;;  %v3918_v52 = vpack.c.bf16 %v3902_v25, %v3902_v25 }
 0x5bb   : > { %11070 = vmatmul.mubr.msk.bf16.vlgmr.msra.gmra.mxu1 %vm1994_vm3, %v3917_v8 }
 0x5bc   : > { %11080 = vmatpush3.bf16.msra.mxu1 %v4458_v47  ;;  %11081 = vmatprep.mubr.msk.bf16.mxu1 %vm12005_vm0, %v15248_v35 }
 0x5bd   : > { %v11778_v19 = vpop.eup %11777  ;;  %5668 = vrot.lane.b32.xlu0 %v15297_v16, %s12007_s22  ;;  %11091 = vmatprep.subr.bf16.mxu1 %v15248_v35 }
 0x5be   : > { %v3903_v38 = vmul.f32 %v11778_v19, %v13191_v10  ;;  %11076 = vmatmul.mubr.msk.bf16.vlgmr.msra.gmra.mxu0 %vm1994_vm3, %v3918_v52  ;;  %v15299_v10 = vld [vmem:[#allocation22_spill] sm:$0xff]  ;;  %v11611_v19 = vld [vmem:[%s15133_s7 + $0x8] sm:$0xff]  }
 0x5bf   : > { %11086 = vmatpush3.bf16.msra.mxu0 %v4506_v12  ;;  %11087 = vmatprep.mubr.msk.bf16.mxu0 %vm12005_vm0, %v15248_v35 }
 0x5c0   : > { %v3919_v40 = vpack.c.bf16 %v3903_v38, %v3903_v38  ;;  %11097 = vmatprep.subr.bf16.mxu0 %v15248_v35  ;;  %v11613_v38 = vld [vmem:[%s15133_s7 + $0x18] sm:$0xff]  }
 0x5c1   : > { %5666 = vrot.lane.b32.xlu0 %v15298_v33, %s12007_s22 }
 0x5c3   : > { %11082 = vmatmul.mubr.msk.bf16.vlgmr.msra.gmra.mxu1 %vm1994_vm3, %v3919_v40 }
 0x5c4   : > { %11092 = vmatpush3.bf16.msra.mxu1 %v4554_v42  ;;  %11093 = vmatprep.mubr.msk.bf16.mxu1 %vm12005_vm0, %v15248_v35 }
 0x5c5   : > { %5958 = vrot.lane.b32.xlu0 %v15299_v10, %s12007_s22  ;;  %11103 = vmatprep.subr.bf16.mxu1 %v15248_v35 }
 0x5c9   : > { %6054 = vrot.lane.b32.xlu0 %v15300_v59, %s12007_s22 }
 0x5dd   : > { %v3866_v2 = vpop.xlane.xlu1 %3865 }
 0x5de   : > { %11779 = vrcp.f32 %v3866_v2 }
 0x5e1   : > { %v3872_v34 = vpop.xlane.xlu1 %3871 }
 0x5e4   : > { %v3869_v15 = vpop.xlane.xlu0 %3868 }
 0x5e5   : > { %11781 = vrcp.f32 %v3869_v15  ;;  %v4645_v25 = vpop.permute.xlu1 %4644  ;;  %v11612_v15 = vld [vmem:[%s15133_s7] sm:$0xff]  }
 0x5e6   : > { %11783 = vrcp.f32 %v3872_v34  ;;  %v4650_v52 = vsel %vm2190_vm2, %v4645_v25, 0 }
 0x5e9   : > { %v5019_v2 = vpop.permute.xlu1 %5018 }
 0x5eb   : > { %v11780_v41 = vpop.eup %11779 }
 0x5ec   : > { %v3904_v62 = vmul.f32 %v11780_v41, %v13209_v14  ;;  %v15301_v41 = vld [vmem:[#allocation19_spill] sm:$0xff] }
 0x5ee   : > { %v3920_v20 = vpack.c.bf16 %v3904_v62, %v3904_v62  ;;  %v15302_v62 = vld [vmem:[#allocation10_spill] sm:$0xff] }
 0x5f0   : > { %11088 = vmatmul.mubr.msk.bf16.vlgmr.msra.gmra.mxu0 %vm1994_vm3, %v3920_v20  ;;  %v15303_v20 = vpack.c.bf16 %v15301_v41, %v15302_v62 }
 0x5f1   : > { %11099 = vmatprep.mubr.msk.bf16.mxu0 %vm12005_vm0, %v15248_v35 }
 0x5f2   : > { %v11782_v61 = vpop.eup %11781 }
 0x5f3   : > { %v3905_v23 = vmul.f32 %v11782_v61, %v13224_v4  ;;  %v11784_v8 = vpop.eup %11783  ;;  %v5017_v61 = vpop.permute.xlu1 %5016 }
 0x5f4   : > { %v3875_v47 = vpop.xlane.xlu0 %3874  ;;  %v3906_v14 = vmul.f32 %v11784_v8, %v13220_v22  ;;  %v11614_v22 = vld [vmem:[%s15133_s7 + $0x10] sm:$0xff]  }
 0x5f5   : > { %v3921_v3 = vpack.c.bf16 %v3905_v23, %v3905_v23  ;;  %11785 = vrcp.f32 %v3875_v47  ;;  %v15304_v23 = vld [vmem:[#allocation14_spill] sm:$0xff]  ;;  %v15305_v8 = vld [vmem:[#allocation8_spill] sm:$0xff] }
 0x5f6   : > { %v3922_v7 = vpack.c.bf16 %v3906_v14, %v3906_v14  ;;  %v15306_v25 = vpack.c.bf16 %v15304_v23, %v15305_v8  ;;  %v15316_v23 = vld [vmem:[#allocation36_spill] sm:$0xff] }
 0x5f7   : > { %11094 = vmatmul.mubr.msk.bf16.vlgmr.msra.gmra.mxu1 %vm1994_vm3, %v3921_v3  ;;  %v5119_v47 = vpop.permute.xlu1 %5118  ;;  %v15307_v3 = vld [vmem:[#allocation13_spill] sm:$0xff]  ;;  %v15317_v8 = vld [vmem:[#allocation20_spill] sm:$0xff] }
 0x5f8   : > { %11104 = vmatpush3.bf16.msra.mxu1 %v4650_v52  ;;  %v4597_v4 = vpop.permute.xlu0 %4596  ;;  %11105 = vmatprep.mubr.msk.bf16.mxu1 %vm12005_vm0, %v15248_v35 }
 0x5f9   : > { %v4602_v12 = vsel %vm2190_vm2, %v4597_v4, 0  ;;  %11129 = vmatprep.subr.bf16.mxu1 %v11611_v19 }
 0x5fa   : > { %11098 = vmatpush3.bf16.msra.mxu0 %v4602_v12 }
 0x5fb   : > { %11109 = vmatprep.subr.bf16.mxu0 %v11613_v38  ;;  %v5117_v4 = vpop.permute.xlu1 %5116 }
 0x5fd   : > { %11100 = vmatmul.mubr.msk.bf16.vlgmr.msra.gmra.mxu0 %vm1994_vm3, %v3922_v7  ;;  %v15310_v7 = vld [vmem:[#allocation15_spill] sm:$0xff] }
 0x5fe   : > { %11110 = vmatpush3.bf16.msra.mxu0 %v11613_v38 }
 0x5ff   : > { %11111 = vmatprep.subr.bf16.mxu0 %v11614_v22  ;;  %v5219_v62 = vpop.permute.xlu1 %5218 }
 0x602   : > { %v11786_v40 = vpop.eup %11785  ;;  %11112 = vmatpush3.bf16.msra.mxu0 %v11614_v22  ;;  %v15311_v22 = vld [vmem:[#allocation16_spill] sm:$0xff] }
 0x603   : > { %v3907_v42 = vmul.f32 %v11786_v40, %v13237_v1  ;;  %11149 = vmatprep.subr.bf16.mxu0 %v15248_v35  ;;  %v5024_v1 = vsel %vm1257_vm1, %v5019_v2, 0  ;;  %v15312_v40 = vpack.c.bf16 %v15310_v7, %v15311_v22  ;;  %v15313_v2 = vld [vmem:[#allocation24_spill] sm:$0xff]  ;;  %v15322_v7 = vld [vmem:[#allocation35_spill] sm:$0xff]  ;;  %v15323_v22 = vld [vmem:[#allocation38_spill] sm:$0xff] }
 0x605   : > { %v3923_v34 = vpack.c.bf16 %v3907_v42, %v3907_v42 }
 0x607   : > { %11106 = vmatmul.mubr.msk.bf16.vlgmr.msra.gmra.mxu1 %vm1994_vm3, %v3923_v34  ;;  %v15314_v34 = vld [vmem:[#allocation18_spill] sm:$0xff] }
 0x608   : > { %11130 = vmatpush3.bf16.msra.mxu1 %v11611_v19  ;;  %11133 = vmatprep.mubr.msk.bf16.mxu1 %vm1257_vm1, %v15303_v20  ;;  %v15308_v19 = vld [vmem:[#allocation12_spill] sm:$0xff] }
 0x609   : > { %11131 = vmatprep.subr.bf16.mxu1 %v11612_v15  ;;  %v15309_v14 = vpack.c.bf16 %v15307_v3, %v15308_v19  ;;  %v15319_v19 = vld [vmem:[#allocation37_spill] sm:$0xff] }
 0x60c   : > { %11132 = vmatpush3.bf16.msra.mxu1 %v11612_v15  ;;  %v15315_v15 = vpack.c.bf16 %v15313_v2, %v15314_v34  ;;  %v5124_v34 = vsel %vm1257_vm1, %v5119_v47, 0 }
 0x60d   : > { %11155 = vmatprep.subr.bf16.mxu1 %v15248_v35 }
 0x60f   : > { %11134 = vmatmul.mubr.msk.bf16.vlgmr.msra.gmra.mxu1 %vm1257_vm1, %v15306_v25  ;;  %v15318_v25 = vpack.c.bf16 %v15316_v23, %v15317_v8 }
 0x610   : > { %11156 = vmatpush3.bf16.xpose.msra.mxu1 %v5024_v1  ;;  %11137 = vmatprep.mubr.msk.bf16.mxu1 %vm1257_vm1, %v15309_v14  ;;  %v15320_v14 = vld [vmem:[#allocation34_spill] sm:$0xff] }
 0x611   : > { %11167 = vmatprep.subr.bf16.mxu1 %v15248_v35 }
 0x612   : > { %v3966_v52 = vpop.f32.mrf.mxu0 }
 0x614   : > { %v11017_v38 = vpop.f32.mrf.mxu0 }
 0x615   : > { %v15321_v38 = vpack.c.bf16 %v15319_v19, %v15320_v14 }
 0x616   : > { %v3969_v12 = vpop.f32.mrf.mxu0 }
 0x617   : > { %11138 = vmatmul.mubr.msk.bf16.gmra.mxu1 %vm1257_vm1, %v15312_v40  ;;  %v5217_v12 = vpop.permute.xlu1 %5216  ;;  %v2931_v40 = vpack.c.bf16 %v15323_v22, %v15322_v7 }
 0x618   : > { %v11018_v42 = vpop.f32.mrf.mxu0  ;;  %11141 = vmatprep.mubr.msk.bf16.mxu1 %vm1257_vm1, %v15315_v15 }
 0x61a   : > { %v13435_v41 = vpop.f32.mrf.mxu0 }
 0x61b   : > { %v5319_v42 = vpop.permute.xlu1 %5318 }
 0x61c   : > { %v11029_v20 = vpop.f32.mrf.mxu0 }
 0x61d   : > { %v5224_v20 = vsel %vm1257_vm1, %v5219_v62, 0 }
 0x61e   : > { %v4065_v1 = vpop.f32.mrf.mxu0 }
 0x61f   : > { %11142 = vmatmul.mubr.msk.bf16.gmra.mxu1 %vm1257_vm1, %v15318_v25  ;;  %v5317_v2 = vpop.permute.xlu1 %5316 }
 0x620   : > { %v11030_v3 = vpop.f32.mrf.mxu0  ;;  %11145 = vmatprep.mubr.msk.bf16.mxu1 %vm1257_vm1, %v15321_v38 }
 0x623   : > { %v5419_v15 = vpop.permute.xlu1 %5418 }
 0x627   : > { %11146 = vmatmul.mubr.msk.bf16.gmra.mxu1 %vm1257_vm1, %v2931_v40  ;;  %v5417_v47 = vpop.permute.xlu1 %5416 }
 0x628   : > { %11157 = vmatprep.mubr.msk.bf16.mxu1 %vm12005_vm0, %v15248_v35 }
 0x62b   : > { %v5519_v1 = vpop.permute.xlu1 %5518 }
 0x62c   : > { %v5524_v8 = vsel %vm1257_vm1, %v5519_v1, 0 }
 0x62f   : > { %11158 = vmatmul.mubr.msk.bf16.vlgmr.msra.gmra.mxu1 %vm1257_vm1, %v5017_v61  ;;  %v5324_v61 = vsel %vm1257_vm1, %v5319_v42, 0  ;;  %v5517_v62 = vpop.permute.xlu1 %5516 }
 0x630   : > { %11168 = vmatpush3.bf16.xpose.msra.mxu1 %v5124_v34  ;;  %11169 = vmatprep.mubr.msk.bf16.mxu1 %vm12005_vm0, %v15248_v35 }
 0x631   : > { %11179 = vmatprep.subr.bf16.mxu1 %v15248_v35 }
 0x633   : > { %v5619_v23 = vpop.permute.xlu1 %5618 }
 0x634   : > { %v5624_v3 = vsel %vm1257_vm1, %v5619_v23, 0 }
 0x637   : > { %11170 = vmatmul.mubr.msk.bf16.vlgmr.msra.gmra.mxu1 %vm1257_vm1, %v5117_v4  ;;  %v5424_v4 = vsel %vm1257_vm1, %v5419_v15, 0  ;;  %v5617_v25 = vpop.permute.xlu1 %5616 }
 0x638   : > { %11180 = vmatpush3.bf16.xpose.msra.mxu1 %v5224_v20  ;;  %11181 = vmatprep.mubr.msk.bf16.mxu1 %vm12005_vm0, %v15248_v35 }
 0x639   : > { %11191 = vmatprep.subr.bf16.mxu1 %v15248_v35 }
 0x63b   : > { %v5719_v19 = vpop.permute.xlu1 %5718 }
 0x63c   : > { %v5724_v40 = vsel %vm1257_vm1, %v5719_v19, 0 }
 0x63f   : > { %11182 = vmatmul.mubr.msk.bf16.vlgmr.msra.gmra.mxu1 %vm1257_vm1, %v5217_v12  ;;  %v5717_v7 = vpop.permute.xlu1 %5716 }
 0x640   : > { %11192 = vmatpush3.bf16.xpose.msra.mxu1 %v5324_v61  ;;  %11193 = vmatprep.mubr.msk.bf16.mxu1 %vm12005_vm0, %v15248_v35 }
 0x641   : > { %11203 = vmatprep.subr.bf16.mxu1 %v15248_v35 }
 0x643   : > { %v6007_v15 = vpop.permute.xlu1 %6006 }
 0x647   : > { %11194 = vmatmul.mubr.msk.bf16.vlgmr.msra.gmra.mxu1 %vm1257_vm1, %v5317_v2  ;;  %v4969_v2 = vpop.permute.xlu0 %4968 }
 0x648   : > { %11204 = vmatpush3.bf16.xpose.msra.mxu1 %v5424_v4  ;;  %11205 = vmatprep.mubr.msk.bf16.mxu1 %vm12005_vm0, %v15248_v35 }
 0x649   : > { %11215 = vmatprep.subr.bf16.mxu1 %v15248_v35 }
 0x64f   : > { %11206 = vmatmul.mubr.msk.bf16.vlgmr.msra.gmra.mxu1 %vm1257_vm1, %v5417_v47  ;;  %v4974_v47 = vsel %vm1257_vm1, %v4969_v2, 0 }
 0x650   : > { %11216 = vmatpush3.bf16.xpose.msra.mxu1 %v5524_v8  ;;  %11217 = vmatprep.mubr.msk.bf16.mxu1 %vm12005_vm0, %v15248_v35 }
 0x651   : > { %11227 = vmatprep.subr.bf16.mxu1 %v15248_v35 }
 0x657   : > { %11218 = vmatmul.mubr.msk.bf16.vlgmr.msra.gmra.mxu1 %vm1257_vm1, %v5517_v62  ;;  %v6012_v62 = vsel %vm2190_vm2, %v6007_v15, 0 }
 0x658   : > { %11228 = vmatpush3.bf16.xpose.msra.mxu1 %v5624_v3  ;;  %11229 = vmatprep.mubr.msk.bf16.mxu1 %vm12005_vm0, %v15248_v35 }
 0x659   : > { %11239 = vmatprep.subr.bf16.mxu1 %v15248_v35 }
 0x65a   : > { %v4014_v14 = vpop.f32.mrf.mxu1 }
 0x65b   : > { %v4692_v38 = vpack.c.bf16 %v4014_v14, %v3966_v52 }
 0x65c   : > { %v11023_v12 = vpop.f32.mrf.mxu1 }
 0x65d   : > { %11113 = vmatprep.mubr.msk.bf16.mxu0 %vm1257_vm1, %v4692_v38 }
 0x65e   : > { %v4017_v22 = vpop.f32.mrf.mxu1 }
 0x65f   : > { %11230 = vmatmul.mubr.msk.bf16.vlgmr.msra.gmra.mxu1 %vm1257_vm1, %v5617_v25 }
 0x660   : > { %11240 = vmatpush3.bf16.xpose.msra.mxu1 %v5724_v40  ;;  %v11024_v42 = vpop.f32.mrf.mxu1  ;;  %11241 = vmatprep.mubr.msk.bf16.mxu1 %vm12005_vm0, %v15248_v35 }
 0x661   : > { %11251 = vmatprep.subr.bf16.mxu1 %v15248_v35 }
 0x662   : > { %v4110_v34 = vpop.f32.mrf.mxu1 }
 0x663   : > { %v4693_v52 = vpack.c.bf16 %v4110_v34, %v13435_v41 }
 0x664   : > { %v11035_v20 = vpop.f32.mrf.mxu1 }
 0x665   : > { %11114 = vmatmul.mubr.msk.bf16.vlgmr.msra.gmra.mxu0 %vm1257_vm1, %v4693_v52 }
 0x666   : > { %11150 = vmatpush3.bf16.xpose.msra.mxu0 %v4974_v47  ;;  %v4113_v61 = vpop.f32.mrf.mxu1  ;;  %v4158_v1 = vpop.f32.mrf.mxu0 }
 0x667   : > { %11242 = vmatmul.mubr.msk.bf16.vlgmr.msra.gmra.mxu1 %vm1257_vm1, %v5717_v7  ;;  %11161 = vmatprep.subr.bf16.mxu0 %v15248_v35 }
 0x668   : > { %11252 = vmatpush3.bf16.msra.mxu1 %v6012_v62  ;;  %v11036_v4 = vpop.f32.mrf.mxu1  ;;  %v11041_v23 = vpop.f32.mrf.mxu0  ;;  %11253 = vmatprep.mubr.msk.bf16.mxu1 %vm12005_vm0, %v15248_v35 }
 0x669   : > { %11263 = vmatprep.subr.bf16.mxu1 %v15248_v35 }
 0x66a   : > { %v4161_v41 = vpop.f32.mrf.mxu0 }
 0x66b   : > { %v4206_v8 = vpop.f32.mrf.mxu1 }
 0x66c   : > { %v4694_v25 = vpack.c.bf16 %v4206_v8, %v4158_v1  ;;  %v11042_v3 = vpop.f32.mrf.mxu0 }
 0x66d   : > { %v11047_v19 = vpop.f32.mrf.mxu1 }
 0x66e   : > { %11117 = vmatprep.mubr.msk.bf16.mxu0 %vm1257_vm1, %v4694_v25  ;;  %v4254_v14 = vpop.f32.mrf.mxu0 }
 0x66f   : > { %v4209_v38 = vpop.f32.mrf.mxu1 }
 0x670   : > { %v11053_v12 = vpop.f32.mrf.mxu0 }
 0x671   : > { %v11048_v7 = vpop.f32.mrf.mxu1 }
 0x672   : > { %v4257_v22 = vpop.f32.mrf.mxu0 }
 0x673   : > { %v4302_v40 = vpop.f32.mrf.mxu1 }
 0x674   : > { %v4695_v42 = vpack.c.bf16 %v4302_v40, %v4254_v14  ;;  %v11054_v2 = vpop.f32.mrf.mxu0 }
 0x675   : > { %v11059_v34 = vpop.f32.mrf.mxu1 }
 0x676   : > { %11118 = vmatmul.mubr.msk.bf16.gmra.mxu0 %vm1257_vm1, %v4695_v42  ;;  %v4350_v15 = vpop.f32.mrf.mxu0  ;;  %v4967_v42 = vpop.permute.xlu0 %4966 }
 0x677   : > { %v4305_v52 = vpop.f32.mrf.mxu1 }
 0x678   : > { %v11065_v47 = vpop.f32.mrf.mxu0 }
 0x679   : > { %v11060_v20 = vpop.f32.mrf.mxu1 }
 0x67a   : > { %v4353_v61 = vpop.f32.mrf.mxu0  ;;  %v5069_v52 = vpop.permute.xlu0 %5068 }
 0x67b   : > { %v4398_v1 = vpop.f32.mrf.mxu1 }
 0x67c   : > { %v4696_v62 = vpack.c.bf16 %v4398_v1, %v4350_v15  ;;  %v11066_v4 = vpop.f32.mrf.mxu0 }
 0x67d   : > { %v11071_v23 = vpop.f32.mrf.mxu1 }
 0x67e   : > { %11121 = vmatprep.mubr.msk.bf16.mxu0 %vm1257_vm1, %v4696_v62  ;;  %v4446_v8 = vpop.f32.mrf.mxu0  ;;  %v5067_v1 = vpop.permute.xlu0 %5066 }
 0x67f   : > { %v4401_v41 = vpop.f32.mrf.mxu1 }
 0x680   : > { %v11077_v3 = vpop.f32.mrf.mxu0 }
 0x681   : > { %v11072_v25 = vpop.f32.mrf.mxu1 }
 0x682   : > { %v4449_v19 = vpop.f32.mrf.mxu0 }
 0x683   : > { %v4494_v14 = vpop.f32.mrf.mxu1 }
 0x684   : > { %v4697_v38 = vpack.c.bf16 %v4494_v14, %v4446_v8  ;;  %v11078_v12 = vpop.f32.mrf.mxu0  ;;  %v5169_v8 = vpop.permute.xlu0 %5168 }
 0x685   : > { %v11083_v7 = vpop.f32.mrf.mxu1 }
 0x686   : > { %11122 = vmatmul.mubr.msk.bf16.gmra.mxu0 %vm1257_vm1, %v4697_v38 }
 0x687   : > { %v4497_v22 = vpop.f32.mrf.mxu1 }
 0x688   : > { %v5167_v14 = vpop.permute.xlu0 %5166 }
 0x689   : > { %v11084_v40 = vpop.f32.mrf.mxu1 }
 0x68c   : > { %v5269_v22 = vpop.permute.xlu0 %5268 }
 0x6b0   : > { %v4542_v2 = vpop.f32.mrf.mxu0 }
 0x6b2   : > { %v11089_v34 = vpop.f32.mrf.mxu0 }
 0x6b4   : > { %v4545_v15 = vpop.f32.mrf.mxu0 }
 0x6b5   : > { %v5267_v15 = vpop.permute.xlu0 %5266 }
 0x6b6   : > { %v11090_v20 = vpop.f32.mrf.mxu0 }
 0x6b7   : > { %v4590_v47 = vpop.f32.mrf.mxu1 }
 0x6b8   : > { %v4698_v61 = vpack.c.bf16 %v4590_v47, %v4542_v2  ;;  %v5074_v47 = vsel %vm1257_vm1, %v5069_v52, 0 }
 0x6b9   : > { %v11095_v62 = vpop.f32.mrf.mxu1 }
 0x6ba   : > { %11125 = vmatprep.mubr.msk.bf16.mxu0 %vm1257_vm1, %v4698_v61 }
 0x6bb   : > { %v4593_v4 = vpop.f32.mrf.mxu1 }
 0x6bc   : > { %v5369_v4 = vpop.permute.xlu0 %5368 }
 0x6bd   : > { %v11096_v23 = vpop.f32.mrf.mxu1  ;;  %v4638_v41 = vpop.f32.mrf.mxu0 }
 0x6bf   : > { %v11101_v25 = vpop.f32.mrf.mxu0 }
 0x6c0   : > { %v5174_v25 = vsel %vm1257_vm1, %v5169_v8, 0  ;;  %v5367_v52 = vpop.permute.xlu0 %5366 }
 0x6c1   : > { %v4641_v3 = vpop.f32.mrf.mxu0 }
 0x6c3   : > { %v11102_v19 = vpop.f32.mrf.mxu0 }
 0x6c7   : > { %v4686_v38 = vpop.f32.mrf.mxu1 }
 0x6c8   : > { %v4699_v12 = vpack.c.bf16 %v4686_v38, %v4638_v41 }
 0x6c9   : > { %v11107_v7 = vpop.f32.mrf.mxu1 }
 0x6ca   : > { %11126 = vmatmul.mubr.msk.bf16.gmra.mxu0 %vm1257_vm1, %v4699_v12  ;;  %v5274_v12 = vsel %vm1257_vm1, %v5269_v22, 0  ;;  %v5374_v22 = vsel %vm1257_vm1, %v5369_v4, 0 }
 0x6cb   : > { %v4689_v40 = vpop.f32.mrf.mxu1  ;;  %11151 = vmatprep.mubr.msk.bf16.mxu0 %vm12005_vm0, %v15248_v35 }
 0x6cd   : > { %v11108_v2 = vpop.f32.mrf.mxu1 }
 0x6cf   : > { %v13503_v34 = vpop.f32.mrf.mxu1 }
 0x6d0   : > { %15324 = vst [vmem:[#allocation3_spill] sm:$0xff] %v13503_v34 }
 0x6d1   : > { %v13505_v20 = vpop.f32.mrf.mxu1 }
 0x6d2   : > { %15325 = vst [vmem:[#allocation39_spill] sm:$0xff] %v13505_v20  ;;  %11152 = vmatmul.mubr.msk.bf16.vlgmr.msra.gmra.mxu0 %vm1257_vm1, %v4967_v42 }
 0x6d3   : > { %11162 = vmatpush3.bf16.xpose.msra.mxu0 %v5074_v47  ;;  %v13509_v61 = vpop.f32.mrf.mxu1  ;;  %11163 = vmatprep.mubr.msk.bf16.mxu0 %vm12005_vm0, %v15248_v35 }
 0x6d4   : > { %15326 = vst [vmem:[#allocation2_spill] sm:$0xff] %v13509_v61  ;;  %11173 = vmatprep.subr.bf16.mxu0 %v15248_v35 }
 0x6d5   : > { %v13514_v62 = vpop.f32.mrf.mxu1 }
 0x6d6   : > { %15327 = vst [vmem:[#allocation5_spill] sm:$0xff] %v13514_v62 }
 0x6d7   : > { %v13516_v23 = vpop.f32.mrf.mxu1 }
 0x6d8   : > { %15328 = vst [vmem:[#allocation4_spill] sm:$0xff] %v13516_v23 }
 0x6d9   : > { %v13518_v41 = vpop.f32.mrf.mxu1 }
 0x6da   : > { %15329 = vst [vmem:[#allocation7_spill] sm:$0xff] %v13518_v41  ;;  %11164 = vmatmul.mubr.msk.bf16.vlgmr.msra.gmra.mxu0 %vm1257_vm1, %v5067_v1  ;;  %v5469_v1 = vpop.permute.xlu0 %5468 }
 0x6db   : > { %11174 = vmatpush3.bf16.xpose.msra.mxu0 %v5174_v25  ;;  %v13522_v42 = vpop.f32.mrf.mxu1  ;;  %11175 = vmatprep.mubr.msk.bf16.mxu0 %vm12005_vm0, %v15248_v35 }
 0x6dc   : > { %15330 = vst [vmem:[#allocation19_spill] sm:$0xff] %v13522_v42  ;;  %11185 = vmatprep.subr.bf16.mxu0 %v15248_v35 }
 0x6dd   : > { %v13527_v3 = vpop.f32.mrf.mxu1 }
 0x6de   : > { %15331 = vst [vmem:[#allocation10_spill] sm:$0xff] %v13527_v3  ;;  %v5467_v2 = vpop.permute.xlu0 %5466 }
 0x6df   : > { %v13529_v19 = vpop.f32.mrf.mxu1 }
 0x6e0   : > { %15332 = vst [vmem:[#allocation14_spill] sm:$0xff] %v13529_v19 }
 0x6e1   : > { %v13531_v38 = vpop.f32.mrf.mxu1 }
 0x6e2   : > { %15333 = vst [vmem:[#allocation8_spill] sm:$0xff] %v13531_v38  ;;  %11176 = vmatmul.mubr.msk.bf16.vlgmr.msra.gmra.mxu0 %vm1257_vm1, %v5167_v14 }
 0x6e3   : > { %11186 = vmatpush3.bf16.xpose.msra.mxu0 %v5274_v12  ;;  %v13535_v8 = vpop.f32.mrf.mxu1  ;;  %11187 = vmatprep.mubr.msk.bf16.mxu0 %vm12005_vm0, %v15248_v35  ;;  %v5569_v12 = vpop.permute.xlu0 %5568 }
 0x6e4   : > { %15334 = vst [vmem:[#allocation13_spill] sm:$0xff] %v13535_v8  ;;  %11197 = vmatprep.subr.bf16.mxu0 %v15248_v35 }
 0x6e5   : > { %v13540_v7 = vpop.f32.mrf.mxu1 }
 0x6e6   : > { %15335 = vst [vmem:[#allocation12_spill] sm:$0xff] %v13540_v7 }
 0x6e7   : > { %v13542_v40 = vpop.f32.mrf.mxu1 }
 0x6e8   : > { %15336 = vst [vmem:[#allocation15_spill] sm:$0xff] %v13542_v40 }
 0x6e9   : > { %v13544_v47 = vpop.f32.mrf.mxu1 }
 0x6ea   : > { %15337 = vst [vmem:[#allocation16_spill] sm:$0xff] %v13544_v47  ;;  %11188 = vmatmul.mubr.msk.bf16.vlgmr.msra.gmra.mxu0 %vm1257_vm1, %v5267_v15  ;;  %v5474_v15 = vsel %vm1257_vm1, %v5469_v1, 0  ;;  %v5574_v1 = vsel %vm1257_vm1, %v5569_v12, 0 }
 0x6eb   : > { %11198 = vmatpush3.bf16.xpose.msra.mxu0 %v5374_v22  ;;  %v13548_v14 = vpop.f32.mrf.mxu1  ;;  %11199 = vmatprep.mubr.msk.bf16.mxu0 %vm12005_vm0, %v15248_v35 }
 0x6ec   : > { %15338 = vst [vmem:[#allocation24_spill] sm:$0xff] %v13548_v14  ;;  %11209 = vmatprep.subr.bf16.mxu0 %v15248_v35 }
 0x6ed   : > { %v13553_v25 = vpop.f32.mrf.mxu1 }
 0x6ee   : > { %15339 = vst [vmem:[#allocation18_spill] sm:$0xff] %v13553_v25  ;;  %v5567_v25 = vpop.permute.xlu0 %5566 }
 0x6ef   : > { %v13555_v7 = vpop.f32.mrf.mxu1 }
 0x6f0   : > { %v5769_v3 = vsel %vm1994_vm3, %v13555_v7, -inf }
 0x6f1   : > { %5770 = vmax.xlane.f32.xlu1 %v5769_v3  ;;  %v11159_v4 = vpop.f32.mrf.mxu1 }
 0x6f2   : > { %11200 = vmatmul.mubr.msk.bf16.vlgmr.msra.gmra.mxu0 %vm1257_vm1, %v5367_v52  ;;  %v5669_v52 = vpop.permute.xlu0 %5668 }
 0x6f3   : > { %11210 = vmatpush3.bf16.xpose.msra.mxu0 %v5474_v15  ;;  %v5063_v22 = vpop.f32.mrf.mxu1  ;;  %11211 = vmatprep.mubr.msk.bf16.mxu0 %vm12005_vm0, %v15248_v35  ;;  %v5674_v12 = vsel %vm1257_vm1, %v5669_v52, 0 }
 0x6f4   : > { %11221 = vmatprep.subr.bf16.mxu0 %v15248_v35 }
 0x6f5   : > { %v11160_v62 = vpop.f32.mrf.mxu1 }
 0x6f7   : > { %v13564_v14 = vpop.f32.mrf.mxu1 }
 0x6f8   : > { %v5775_v47 = vsel %vm1994_vm3, %v13564_v14, -inf }
 0x6f9   : > { %5776 = vmax.xlane.f32.xlu0 %v5775_v47  ;;  %v11171_v3 = vpop.f32.mrf.mxu1  ;;  %v5667_v47 = vpop.permute.xlu0 %5666 }
 0x6fa   : > { %11212 = vmatmul.mubr.msk.bf16.vlgmr.msra.gmra.mxu0 %vm1257_vm1, %v5467_v2 }
 0x6fb   : > { %11222 = vmatpush3.bf16.xpose.msra.mxu0 %v5574_v1  ;;  %v5163_v4 = vpop.f32.mrf.mxu1  ;;  %11223 = vmatprep.mubr.msk.bf16.mxu0 %vm12005_vm0, %v15248_v35 }
 0x6fc   : > { %11233 = vmatprep.subr.bf16.mxu0 %v15248_v35 }
 0x6fd   : > { %v11172_v62 = vpop.f32.mrf.mxu1  ;;  %v5959_v4 = vpop.permute.xlu0 %5958 }
 0x6fe   : > { %v5964_v52 = vsel %vm2190_vm2, %v5959_v4, 0 }
 0x6ff   : > { %v13573_v15 = vpop.f32.mrf.mxu1 }
 0x700   : > { %v5781_v22 = vsel %vm1994_vm3, %v13573_v15, -inf }
 0x701   : > { %5782 = vmax.xlane.f32.xlu1 %v5781_v22  ;;  %v11183_v3 = vpop.f32.mrf.mxu1  ;;  %v13628_v20 = vpop.permute.xlu0 %6054 }
 0x702   : > { %11224 = vmatmul.mubr.msk.bf16.vlgmr.msra.gmra.mxu0 %vm1257_vm1, %v5567_v25 }
 0x703   : > { %11234 = vmatpush3.bf16.xpose.msra.mxu0 %v5674_v12  ;;  %v5263_v2 = vpop.f32.mrf.mxu1  ;;  %11235 = vmatprep.mubr.msk.bf16.mxu0 %vm12005_vm0, %v15248_v35 }
 0x704   : > { %11245 = vmatprep.subr.bf16.mxu0 %v15248_v35 }
 0x705   : > { %v11184_v1 = vpop.f32.mrf.mxu1 }
 0x707   : > { %v13582_v62 = vpop.f32.mrf.mxu1 }
 0x708   : > { %v5787_v40 = vsel %vm1994_vm3, %v13582_v62, -inf }
 0x709   : > { %5788 = vmax.xlane.f32.xlu1 %v5787_v40  ;;  %v11195_v22 = vpop.f32.mrf.mxu1 }
 0x70a   : > { %11236 = vmatmul.mubr.msk.bf16.vlgmr.msra.gmra.mxu0 %vm1257_vm1, %v5667_v47 }
 0x70b   : > { %11246 = vmatpush3.bf16.msra.mxu0 %v5964_v52  ;;  %v5363_v25 = vpop.f32.mrf.mxu1  ;;  %11247 = vmatprep.mubr.msk.bf16.mxu0 %vm12005_vm0, %v15248_v35 }
 0x70c   : > { %11257 = vmatprep.subr.bf16.mxu0 %v15248_v35 }
 0x70d   : > { %v11196_v3 = vpop.f32.mrf.mxu1 }
 0x70f   : > { %v13591_v12 = vpop.f32.mrf.mxu1 }
 0x710   : > { %v5793_v2 = vsel %vm1994_vm3, %v13591_v12, -inf }
 0x711   : > { %5794 = vmax.xlane.f32.xlu1 %v5793_v2  ;;  %v11207_v40 = vpop.f32.mrf.mxu1 }
 0x713   : > { %v5463_v1 = vpop.f32.mrf.mxu1 }
 0x715   : > { %v11208_v22 = vpop.f32.mrf.mxu1 }
 0x717   : > { %v13595_v4 = vpop.f32.mrf.mxu1 }
 0x718   : > { %v5799_v47 = vsel %vm1994_vm3, %v13595_v4, -inf }
 0x719   : > { %5800 = vmax.xlane.f32.xlu1 %v5799_v47  ;;  %v11219_v52 = vpop.f32.mrf.mxu1 }
 0x71b   : > { %v5563_v25 = vpop.f32.mrf.mxu1 }
 0x71d   : > { %v11220_v8 = vpop.f32.mrf.mxu1 }
 0x71f   : > { %v13599_v38 = vpop.f32.mrf.mxu1 }
 0x720   : > { %v5805_v3 = vsel %vm1994_vm3, %v13599_v38, -inf }
 0x721   : > { %5806 = vmax.xlane.f32.xlu1 %v5805_v3  ;;  %v11231_v19 = vpop.f32.mrf.mxu1 }
 0x723   : > { %v5663_v2 = vpop.f32.mrf.mxu1 }
 0x724   : > { %v13619_v2 = vpop.permute.xlu1 %6102 }
 0x725   : > { %v11232_v40 = vpop.f32.mrf.mxu1  ;;  %v13607_v25 = vpop.f32.mrf.mxu0 }
 0x726   : > { %15340 = vst [vmem:[#allocation36_spill] sm:$0xff] %v13607_v25 }
 0x727   : > { %v13603_v1 = vpop.f32.mrf.mxu1  ;;  %v13609_v8 = vpop.f32.mrf.mxu0 }
 0x728   : > { %v5811_v22 = vsel %vm1994_vm3, %v13603_v1, -inf  ;;  %15341 = vst [vmem:[#allocation20_spill] sm:$0xff] %v13609_v8 }
 0x729   : > { %5812 = vmax.xlane.f32.xlu1 %v5811_v22  ;;  %v11243_v42 = vpop.f32.mrf.mxu1  ;;  %v13611_v41 = vpop.f32.mrf.mxu0 }
 0x72a   : > { %15342 = vst [vmem:[#allocation37_spill] sm:$0xff] %v13611_v41 }
 0x72b   : > { %v5763_v47 = vpop.f32.mrf.mxu1  ;;  %v13613_v23 = vpop.f32.mrf.mxu0 }
 0x72c   : > { %15343 = vst [vmem:[#allocation34_spill] sm:$0xff] %v13613_v23 }
 0x72d   : > { %v11244_v52 = vpop.f32.mrf.mxu1 }
 0x736   : > { %v13615_v19 = vpop.f32.mrf.mxu0 }
 0x737   : > { %15344 = vst [vmem:[#allocation35_spill] sm:$0xff] %v13615_v19 }
 0x738   : > { %v13617_v3 = vpop.f32.mrf.mxu0 }
 0x739   : > { %15345 = vst [vmem:[#allocation38_spill] sm:$0xff] %v13617_v3 }
 0x73a   : > { %v13621_v40 = vpop.f32.mrf.mxu0 }
 0x73b   : > { %15346 = vst [vmem:[#allocation40_spill] sm:$0xff] %v13621_v40 }
 0x73c   : > { %v13623_v22 = vpop.f32.mrf.mxu0 }
 0x73d   : > { %15347 = vst [vmem:[#allocation41_spill] sm:$0xff] %v13623_v22 }
 0x746   : > { %v13626_v52 = vpop.f32.mrf.mxu0 }
 0x747   : > { %15348 = vst [vmem:[#allocation42_spill] sm:$0xff] %v13626_v52 }
 0x748   : > { %v13630_v23 = vpop.f32.mrf.mxu0 }
 0x749   : > { %15349 = vst [vmem:[#allocation43_spill] sm:$0xff] %v13630_v23 }
 0x74a   : > { %v13633_v41 = vpop.f32.mrf.mxu0 }
 0x74b   : > { %15350 = vst [vmem:[#allocation44_spill] sm:$0xff] %v13633_v41 }
 0x74c   : > { %v13635_v40 = vpop.f32.mrf.mxu0 }
 0x74d   : > { %15351 = vst [vmem:[#allocation45_spill] sm:$0xff] %v13635_v40 }
 0x77a   : > { %v5771_v42 = vpop.xlane.xlu1 %5770 }
 0x77b   : > { %v5815_v47 = vsub.f32 %v13555_v7, %v5771_v42 }
 0x77d   : > { %v5832_v61 = vmul.f32 1.442695, %v5815_v47 }
 0x77f   : > { %11787 = vpow2.f32 %v5832_v61 }
 0x782   : > { %v5777_v19 = vpop.xlane.xlu0 %5776 }
 0x783   : > { %v5817_v3 = vsub.f32 %v13564_v14, %v5777_v19 }
 0x785   : > { %v5836_v8 = vmul.f32 1.442695, %v5817_v3 }
 0x787   : > { %11789 = vpow2.f32 %v5836_v8 }
 0x78a   : > { %v13637_v22 = vpop.f32.mrf.mxu0  ;;  %v5783_v59 = vpop.xlane.xlu1 %5782 }
 0x78b   : > { %15352 = vst [vmem:[#allocation46_spill] sm:$0xff] %v13637_v22  ;;  %v5819_v10 = vsub.f32 %v13573_v15, %v5783_v59 }
 0x78c   : > { %v13639_v7 = vpop.eup %11787  ;;  %v13641_v42 = vpop.f32.mrf.mxu0 }
 0x78d   : > { %15353 = vst [vmem:[#allocation47_spill] sm:$0xff] %v13641_v42  ;;  %v5865_v61 = vsel %vm1994_vm3, %v13639_v7, 0.0 }
 0x78e   : > { %v13645_v47 = vpop.f32.mrf.mxu0  ;;  %5866 = vadd.xlane.f32.xlu1 %v5865_v61 }
 0x78f   : > { %15354 = vst [vmem:[#allocation48_spill] sm:$0xff] %v13645_v47 }
 0x790   : > { %v13647_v23 = vpop.f32.mrf.mxu0 }
 0x791   : > { %15355 = vst [vmem:[#allocation49_spill] sm:$0xff] %v13647_v23 }
 0x792   : > { %v13649_v14 = vpop.f32.mrf.mxu0 }
 0x793   : > { %v5766_v8 = vsel %vm1994_vm3, %v13649_v14, -inf }
 0x794   : > { %v13653_v19 = vpop.eup %11789  ;;  %v11153_v3 = vpop.f32.mrf.mxu0  ;;  %5767 = vmax.xlane.f32.xlu0 %v5766_v8  ;;  %v15356_v8 = vld [vmem:[#allocation29_spill] sm:$0xff] }
 0x795   : > { %v5871_v40 = vsel %vm1994_vm3, %v13653_v19, 0.0 }
 0x796   : > { %v5013_v42 = vpop.f32.mrf.mxu0  ;;  %5872 = vadd.xlane.f32.xlu1 %v5871_v40 }
 0x798   : > { %v11154_v22 = vpop.f32.mrf.mxu0 }
 0x79a   : > { %v13657_v41 = vpop.f32.mrf.mxu0 }
 0x79b   : > { %v5772_v61 = vsel %vm1994_vm3, %v13657_v41, -inf }
 0x79c   : > { %v11165_v23 = vpop.f32.mrf.mxu0  ;;  %5773 = vmax.xlane.f32.xlu0 %v5772_v61  ;;  %v5840_v61 = vmul.f32 1.442695, %v5819_v10 }
 0x79e   : > { %v5113_v47 = vpop.f32.mrf.mxu0  ;;  %11791 = vpow2.f32 %v5840_v61 }
 0x79f   : > { %v5789_v47 = vpop.xlane.xlu1 %5788 }
 0x7a0   : > { %v11166_v52 = vpop.f32.mrf.mxu0 }
 0x7a1   : > { %v15357_v52 = vld [vmem:[#allocation26_spill] sm:$0xff] }
 0x7a2   : > { %v13661_v34 = vpop.f32.mrf.mxu0 }
 0x7a4   : > { %v11177_v25 = vpop.f32.mrf.mxu0 }
 0x7a6   : > { %v5213_v3 = vpop.f32.mrf.mxu0 }
 0x7a7   : > { %6198 = vrot.lane.b32.xlu1 %v15356_v8, %s12007_s22  ;;  %v5821_v3 = vsub.f32 %v13582_v62, %v5789_v47 }
 0x7a8   : > { %v11178_v46 = vpop.f32.mrf.mxu0 }
 0x7a9   : > { %v5844_v24 = vmul.f32 1.442695, %v5821_v3 }
 0x7aa   : > { %v13665_v42 = vpop.f32.mrf.mxu0 }
 0x7ab   : > { %11793 = vpow2.f32 %v5844_v24  ;;  %v13678_v62 = vpop.eup %11791 }
 0x7ac   : > { %v11189_v40 = vpop.f32.mrf.mxu0  ;;  %v5877_v24 = vsel %vm1994_vm3, %v13678_v62, 0.0 }
 0x7ae   : > { %v5313_v22 = vpop.f32.mrf.mxu0 }
 0x7b0   : > { %v11190_v36 = vpop.f32.mrf.mxu0 }
 0x7b1   : > { %v5795_v36 = vpop.xlane.xlu1 %5794 }
 0x7b2   : > { %v13668_v23 = vpop.f32.mrf.mxu0  ;;  %6150 = vrot.lane.b32.xlu0 %v15357_v52, %s12007_s22  ;;  %v5823_v15 = vsub.f32 %v13591_v12, %v5795_v36  ;;  %v5778_v36 = vsel %vm1994_vm3, %v13661_v34, -inf }
 0x7b4   : > { %v11201_v25 = vpop.f32.mrf.mxu0  ;;  %v5848_v52 = vmul.f32 1.442695, %v5823_v15  ;;  %v5784_v15 = vsel %vm1994_vm3, %v13665_v42, -inf }
 0x7b5   : > { %v5801_v10 = vpop.xlane.xlu1 %5800 }
 0x7b6   : > { %v5413_v8 = vpop.f32.mrf.mxu0  ;;  %11795 = vpow2.f32 %v5848_v52 }
 0x7b7   : > { %v5825_v8 = vsub.f32 %v13595_v4, %v5801_v10 }
 0x7b8   : > { %v11202_v46 = vpop.f32.mrf.mxu0  ;;  %v13685_v3 = vpop.eup %11793 }
 0x7b9   : > { %v5807_v46 = vpop.xlane.xlu1 %5806 }
 0x7ba   : > { %v13673_v40 = vpop.f32.mrf.mxu0  ;;  %v5827_v4 = vsub.f32 %v13599_v38, %v5807_v46  ;;  %v5790_v38 = vsel %vm1994_vm3, %v13668_v23, -inf }
 0x7bc   : > { %v11213_v22 = vpop.f32.mrf.mxu0 }
 0x7be   : > { %v5513_v59 = vpop.f32.mrf.mxu0 }
 0x7bf   : > { %v5856_v59 = vmul.f32 1.442695, %v5827_v4  ;;  %v15361_v4 = vld [vmem:[#allocation9_spill] sm:$0xff] }
 0x7c0   : > { %v11214_v33 = vpop.f32.mrf.mxu0 }
 0x7c1   : > { %v5852_v33 = vmul.f32 1.442695, %v5825_v8 }
 0x7c2   : > { %v13676_v50 = vpop.f32.mrf.mxu0 }
 0x7c3   : > { %11797 = vpow2.f32 %v5852_v33  ;;  %v15359_v33 = vld [vmem:[#allocation32_spill] sm:$0xff] }
 0x7c4   : > { %v11225_v25 = vpop.f32.mrf.mxu0  ;;  %11799 = vpow2.f32 %v5856_v59  ;;  %v13722_v59 = vpop.xlane.xlu1 %5812 }
 0x7c5   : > { %v13694_v25 = vpop.eup %11795 }
 0x7c6   : > { %v5613_v16 = vpop.f32.mrf.mxu0  ;;  %v5889_v10 = vsel %vm1994_vm3, %v13694_v25, 0.0 }
 0x7c7   : > { %v5883_v16 = vsel %vm1994_vm3, %v13685_v3, 0.0 }
 0x7c8   : > { %v11226_v47 = vpop.f32.mrf.mxu0 }
 0x7c9   : > { %v15358_v47 = vld [vmem:[#allocation30_spill] sm:$0xff] }
 0x7ca   : > { %v13681_v61 = vpop.f32.mrf.mxu0 }
 0x7cb   : > { %5878 = vadd.xlane.f32.xlu1 %v5877_v24 }
 0x7cc   : > { %v11237_v12 = vpop.f32.mrf.mxu0 }
 0x7cd   : > { %v5796_v12 = vsel %vm1994_vm3, %v13673_v40, -inf }
 0x7ce   : > { %v5713_v22 = vpop.f32.mrf.mxu0 }
 0x7cf   : > { %5884 = vadd.xlane.f32.xlu1 %v5883_v16  ;;  %v15360_v22 = vld [vmem:[#allocation33_spill] sm:$0xff] }
 0x7d0   : > { %v11238_v52 = vpop.f32.mrf.mxu0  ;;  %v13700_v8 = vpop.eup %11797 }
 0x7d1   : > { %5779 = vmax.xlane.f32.xlu0 %v5778_v36  ;;  %v5895_v24 = vsel %vm1994_vm3, %v13700_v8, 0.0  ;;  %v13710_v46 = vpop.eup %11799  ;;  %v5802_v52 = vsel %vm1994_vm3, %v13676_v50, -inf  ;;  %v5808_v36 = vsel %vm1994_vm3, %v13681_v61, -inf }
 0x7d2   : > { %v5901_v16 = vsel %vm1994_vm3, %v13710_v46, 0.0 }
 0x7d5   : > { %5785 = vmax.xlane.f32.xlu0 %v5784_v15 }
 0x7d9   : > { %5890 = vadd.xlane.f32.xlu0 %v5889_v10 }
 0x7dd   : > { %5791 = vmax.xlane.f32.xlu0 %v5790_v38 }
 0x7e0   : > { %6294 = vrot.lane.b32.xlu1 %v15358_v47, %s12007_s22 }
 0x7e1   : > { %5896 = vadd.xlane.f32.xlu0 %v5895_v24 }
 0x7e4   : > { %6390 = vrot.lane.b32.xlu1 %v15359_v33, %s12007_s22 }
 0x7e5   : > { %5797 = vmax.xlane.f32.xlu0 %v5796_v12 }
 0x7e8   : > { %6438 = vrot.lane.b32.xlu1 %v15360_v22, %s12007_s22 }
 0x7e9   : > { %5902 = vadd.xlane.f32.xlu0 %v5901_v16 }
 0x7ec   : > { %6486 = vrot.lane.b32.xlu1 %v15361_v4, %s12007_s22 }
 0x7ed   : > { %5803 = vmax.xlane.f32.xlu0 %v5802_v52 }
 0x7f1   : > { %5809 = vmax.xlane.f32.xlu0 %v5808_v36  ;;  %v6108_v36 = vsel %vm2190_vm2, %v13619_v2, 0 }
 0x817   : > { %v5867_v15 = vpop.xlane.xlu1 %5866 }
 0x818   : > { %11801 = vrcp.f32 %v5867_v15 }
 0x81d   : > { %v5768_v10 = vpop.xlane.xlu0 %5767 }
 0x81e   : > { %v5814_v38 = vsub.f32 %v13649_v14, %v5768_v10 }
 0x81f   : > { %v5873_v24 = vpop.xlane.xlu1 %5872 }
 0x820   : > { %v5830_v12 = vmul.f32 1.442695, %v5814_v38  ;;  %11803 = vrcp.f32 %v5873_v24 }
 0x822   : > { %11805 = vpow2.f32 %v5830_v12 }
 0x825   : > { %v11802_v16 = vpop.eup %11801  ;;  %v5774_v4 = vpop.xlane.xlu0 %5773 }
 0x826   : > { %v5927_v22 = vmul.f32 %v11802_v16, %v13639_v7  ;;  %v5816_v52 = vsub.f32 %v13657_v41, %v5774_v4  ;;  %v6199_v41 = vpop.permute.xlu1 %6198 }
 0x827   : > { %v6204_v2 = vsel %vm2190_vm2, %v6199_v41, 0 }
 0x828   : > { %v5943_v33 = vpack.c.bf16 %v5927_v22, %v5927_v22  ;;  %v5834_v47 = vmul.f32 1.442695, %v5816_v52 }
 0x829   : > { %v13747_v10 = vpop.permute.xlu0 %6150 }
 0x82a   : > { %11807 = vpow2.f32 %v5834_v47  ;;  %11254 = vmatmul.mubr.msk.bf16.vlgmr.msra.gmra.mxu1 %vm1994_vm3, %v5943_v33 }
 0x82b   : > { %11264 = vmatpush3.bf16.msra.mxu1 %v6108_v36  ;;  %11265 = vmatprep.mubr.msk.bf16.mxu1 %vm12005_vm0, %v15248_v35 }
 0x82c   : > { %11275 = vmatprep.subr.bf16.mxu1 %v15248_v35 }
 0x82d   : > { %v11804_v14 = vpop.eup %11803 }
 0x82e   : > { %v5929_v15 = vmul.f32 %v11804_v14, %v13653_v19 }
 0x82f   : > { %v13734_v7 = vpop.eup %11805 }
 0x830   : > { %v5945_v22 = vpack.c.bf16 %v5929_v15, %v5929_v15  ;;  %v5862_v4 = vsel %vm1994_vm3, %v13734_v7, 0.0 }
 0x831   : > { %5863 = vadd.xlane.f32.xlu0 %v5862_v4 }
 0x832   : > { %11266 = vmatmul.mubr.msk.bf16.vlgmr.msra.gmra.mxu1 %vm1994_vm3, %v5945_v22 }
 0x833   : > { %11276 = vmatpush3.bf16.msra.mxu1 %v6204_v2  ;;  %11277 = vmatprep.mubr.msk.bf16.mxu1 %vm12005_vm0, %v15248_v35 }
 0x834   : > { %11287 = vmatprep.subr.bf16.mxu1 %v15248_v35 }
 0x837   : > { %v13743_v47 = vpop.eup %11807 }
 0x838   : > { %v5868_v19 = vsel %vm1994_vm3, %v13743_v47, 0.0 }
 0x839   : > { %5869 = vadd.xlane.f32.xlu0 %v5868_v19 }
 0x854   : > { %v5879_v33 = vpop.xlane.xlu1 %5878 }
 0x855   : > { %11809 = vrcp.f32 %v5879_v33 }
 0x858   : > { %v5885_v38 = vpop.xlane.xlu1 %5884 }
 0x859   : > { %11811 = vrcp.f32 %v5885_v38 }
 0x85a   : > { %v5780_v24 = vpop.xlane.xlu0 %5779 }
 0x85b   : > { %v5818_v12 = vsub.f32 %v13661_v34, %v5780_v24 }
 0x85c   : > { %v6295_v14 = vpop.permute.xlu1 %6294 }
 0x85d   : > { %v5838_v16 = vmul.f32 1.442695, %v5818_v12  ;;  %v6300_v19 = vsel %vm2190_vm2, %v6295_v14, 0 }
 0x85e   : > { %v5786_v52 = vpop.xlane.xlu0 %5785 }
 0x85f   : > { %11813 = vpow2.f32 %v5838_v16 }
 0x860   : > { %v6391_v38 = vpop.permute.xlu1 %6390 }
 0x861   : > { %v6396_v14 = vsel %vm2190_vm2, %v6391_v38, 0 }
 0x862   : > { %v11810_v36 = vpop.eup %11809  ;;  %v5891_v15 = vpop.xlane.xlu0 %5890 }
 0x863   : > { %v5931_v41 = vmul.f32 %v11810_v36, %v13678_v62  ;;  %11815 = vrcp.f32 %v5891_v15 }
 0x864   : > { %v13762_v36 = vpop.permute.xlu1 %6438 }
 0x865   : > { %v5947_v22 = vpack.c.bf16 %v5931_v41, %v5931_v41 }
 0x866   : > { %v11812_v4 = vpop.eup %11811  ;;  %v5792_v2 = vpop.xlane.xlu0 %5791 }
 0x867   : > { %v5822_v33 = vsub.f32 %v13668_v23, %v5792_v2  ;;  %11278 = vmatmul.mubr.msk.bf16.vlgmr.msra.gmra.mxu1 %vm1994_vm3, %v5947_v22  ;;  %v5933_v34 = vmul.f32 %v11812_v4, %v13685_v3 }
 0x868   : > { %11288 = vmatpush3.bf16.msra.mxu1 %v6300_v19  ;;  %11289 = vmatprep.mubr.msk.bf16.mxu1 %vm12005_vm0, %v15248_v35  ;;  %v6487_v41 = vpop.permute.xlu1 %6486 }
 0x869   : > { %v5846_v24 = vmul.f32 1.442695, %v5822_v33  ;;  %11299 = vmatprep.subr.bf16.mxu1 %v15248_v35  ;;  %v5949_v16 = vpack.c.bf16 %v5933_v34, %v5933_v34  ;;  %v6492_v4 = vsel %vm2190_vm2, %v6487_v41, 0  ;;  %v15362_v34 = vld [vmem:[#allocation27_spill] sm:$0xff] }
 0x86a   : > { %v5897_v62 = vpop.xlane.xlu0 %5896 }
 0x86b   : > { %11817 = vpow2.f32 %v5846_v24 }
 0x86c   : > { %v13758_v12 = vpop.eup %11813  ;;  %11819 = vrcp.f32 %v5897_v62  ;;  %v5820_v62 = vsub.f32 %v13665_v42, %v5786_v52 }
 0x86d   : > { %v5874_v23 = vsel %vm1994_vm3, %v13758_v12, 0.0 }
 0x86e   : > { %5875 = vadd.xlane.f32.xlu0 %v5874_v23  ;;  %v5798_v24 = vpop.xlane.xlu0 %5797 }
 0x86f   : > { %11290 = vmatmul.mubr.msk.bf16.vlgmr.msra.gmra.mxu1 %vm1994_vm3, %v5949_v16  ;;  %v5829_v16 = vsub.f32 %v13603_v1, %v13722_v59 }
 0x870   : > { %11300 = vmatpush3.bf16.msra.mxu1 %v6396_v14  ;;  %11301 = vmatprep.mubr.msk.bf16.mxu1 %vm12005_vm0, %v15248_v35  ;;  %v11816_v3 = vpop.eup %11815 }
 0x871   : > { %11311 = vmatprep.subr.bf16.mxu1 %v15248_v35  ;;  %v5935_v15 = vmul.f32 %v11816_v3, %v13694_v25  ;;  %v5860_v14 = vmul.f32 1.442695, %v5829_v16 }
 0x872   : > { %v13790_v23 = vpop.xlane.xlu0 %5902 }
 0x873   : > { %v5951_v22 = vpack.c.bf16 %v5935_v15, %v5935_v15  ;;  %v5824_v15 = vsub.f32 %v13673_v40, %v5798_v24 }
 0x875   : > { %v5850_v41 = vmul.f32 1.442695, %v5824_v15 }
 0x876   : > { %v5804_v3 = vpop.xlane.xlu0 %5803 }
 0x877   : > { %11302 = vmatmul.mubr.msk.bf16.vlgmr.msra.gmra.mxu1 %vm1994_vm3, %v5951_v22  ;;  %v5826_v22 = vsub.f32 %v13676_v50, %v5804_v3 }
 0x878   : > { %v13772_v2 = vpop.eup %11817  ;;  %11312 = vmatpush3.bf16.msra.mxu1 %v6492_v4  ;;  %11313 = vmatprep.mubr.msk.bf16.mxu1 %vm12005_vm0, %v15248_v35 }
 0x879   : > { %v11820_v19 = vpop.eup %11819  ;;  %v5886_v33 = vsel %vm1994_vm3, %v13772_v2, 0.0  ;;  %11323 = vmatprep.subr.bf16.mxu1 %v15248_v35  ;;  %v5854_v42 = vmul.f32 1.442695, %v5826_v22  ;;  %v6060_v22 = vsel %vm2190_vm2, %v13628_v20, 0  ;;  %v15369_v20 = vld [vmem:[#allocation23_spill] sm:$0xff] }
 0x87a   : > { %v5937_v25 = vmul.f32 %v11820_v19, %v13700_v8  ;;  %5887 = vadd.xlane.f32.xlu1 %v5886_v33  ;;  %v5842_v8 = vmul.f32 1.442695, %v5820_v62  ;;  %v5810_v4 = vpop.xlane.xlu0 %5809 }
 0x87b   : > { %v5828_v52 = vsub.f32 %v13681_v61, %v5810_v4 }
 0x87c   : > { %v5953_v38 = vpack.c.bf16 %v5937_v25, %v5937_v25  ;;  %11821 = vpow2.f32 %v5842_v8  ;;  %v15363_v8 = vld [vmem:[#allocation31_spill] sm:$0xff] }
 0x87d   : > { %11823 = vpow2.f32 %v5860_v14  ;;  %v5858_v1 = vmul.f32 1.442695, %v5828_v52 }
 0x87e   : > { %11825 = vpow2.f32 %v5850_v41 }
 0x87f   : > { %11314 = vmatmul.mubr.msk.bf16.vlgmr.msra.gmra.mxu1 %vm1994_vm3, %v5953_v38  ;;  %11827 = vpow2.f32 %v5854_v42 }
 0x880   : > { %11325 = vmatprep.mubr.msk.bf16.mxu1 %vm12005_vm0, %v15248_v35  ;;  %11829 = vpow2.f32 %v5858_v1 }
 0x884   : > { %6246 = vrot.lane.b32.xlu0 %v15362_v34, %s12007_s22 }
 0x889   : > { %v13795_v19 = vpop.eup %11821 }
 0x88a   : > { %v5880_v59 = vsel %vm1994_vm3, %v13795_v19, 0.0  ;;  %v13799_v33 = vpop.eup %11823 }
 0x88b   : > { %6582 = vrot.lane.b32.xlu1 %v12903_v53, %s12007_s22  ;;  %v5907_v40 = vsel %vm1994_vm3, %v13799_v33, 0.0  ;;  %v13803_v50 = vpop.eup %11825 }
 0x88c   : > { %v5892_v61 = vsel %vm1994_vm3, %v13803_v50, 0.0  ;;  %v13807_v25 = vpop.eup %11827 }
 0x88d   : > { %v5898_v38 = vsel %vm1994_vm3, %v13807_v25, 0.0  ;;  %v13811_v24 = vpop.eup %11829 }
 0x88e   : > { %v5904_v62 = vsel %vm1994_vm3, %v13811_v24, 0.0 }
 0x8a3   : > { %5881 = vadd.xlane.f32.xlu0 %v5880_v59 }
 0x8a7   : > { %5908 = vadd.xlane.f32.xlu0 %v5907_v40 }
 0x8af   : > { %5893 = vadd.xlane.f32.xlu1 %v5892_v61 }
 0x8b3   : > { %5899 = vadd.xlane.f32.xlu1 %v5898_v38 }
 0x8b7   : > { %5905 = vadd.xlane.f32.xlu1 %v5904_v62 }
 0x8ba   : > { %v5864_v16 = vpop.xlane.xlu0 %5863 }
 0x8bb   : > { %11831 = vrcp.f32 %v5864_v16 }
 0x8bd   : > { %6342 = vrot.lane.b32.xlu0 %v15363_v8, %s12007_s22 }
 0x8c1   : > { %6534 = vrot.lane.b32.xlu0 %v12837_v29, %s12007_s22 }
 0x8c2   : > { %v5870_v14 = vpop.xlane.xlu0 %5869 }
 0x8c3   : > { %11833 = vrcp.f32 %v5870_v14 }
 0x8c4   : > { %11835 = vrcp.f32 %v13790_v23 }
 0x8c5   : > { %6630 = vrot.lane.b32.xlu0 %v12858_v60, %s12007_s22 }
 0x8c8   : > { %v11832_v3 = vpop.eup %11831  ;;  %6678 = vrot.lane.b32.xlu1 %v12920_v37, %s12007_s22  ;;  %s15059_s22 = scalar_lea.vmem %s15143_s17, %s9887_s29 }
 0x8c9   : > { %v5926_v15 = vmul.f32 %v11832_v3, %v13734_v7  ;;  %6885 = vrot.lane.b32.xlu0 %v12228_v57, %s12008_s21 }
 0x8cb   : > { %v5942_v41 = vpack.c.bf16 %v5926_v15, %v5926_v15 }
 0x8cc   : > { %6883 = vrot.lane.b32.xlu1 %v12246_v11, %s12008_s21 }
 0x8cd   : > { %11248 = vmatmul.mubr.msk.bf16.vlgmr.msra.gmra.mxu0 %vm1994_vm3, %v5942_v41  ;;  %6935 = vrot.lane.b32.xlu0 %v12238_v5, %s12008_s21  ;;  %v6156_v5 = vsel %vm2190_vm2, %v13747_v10, 0 }
 0x8ce   : > { %11258 = vmatpush3.bf16.msra.mxu0 %v6060_v22  ;;  %11259 = vmatprep.mubr.msk.bf16.mxu0 %vm12005_vm0, %v15248_v35 }
 0x8cf   : > { %11269 = vmatprep.subr.bf16.mxu0 %v15248_v35 }
 0x8d0   : > { %v11834_v7 = vpop.eup %11833  ;;  %6933 = vrot.lane.b32.xlu1 %v12275_v32, %s12008_s21 }
 0x8d1   : > { %v5928_v57 = vmul.f32 %v11834_v7, %v13743_v47  ;;  %6985 = vrot.lane.b32.xlu0 %v12269_v27, %s12008_s21  ;;  %v15371_v47 = vld [vmem:[#allocation28_spill] sm:$0xff] }
 0x8d3   : > { %v5944_v11 = vpack.c.bf16 %v5928_v57, %v5928_v57 }
 0x8d4   : > { %6983 = vrot.lane.b32.xlu1 %v12310_v51, %s12008_s21 }
 0x8d5   : > { %11260 = vmatmul.mubr.msk.bf16.vlgmr.msra.gmra.mxu0 %vm1994_vm3, %v5944_v11  ;;  %7035 = vrot.lane.b32.xlu0 %v12305_v45, %s12008_s21 }
 0x8d6   : > { %11270 = vmatpush3.bf16.msra.mxu0 %v6156_v5  ;;  %11271 = vmatprep.mubr.msk.bf16.mxu0 %vm12005_vm0, %v15248_v35 }
 0x8d7   : > { %11281 = vmatprep.subr.bf16.mxu0 %v15248_v35 }
 0x8d8   : > { %7033 = vrot.lane.b32.xlu1 %v12351_v13, %s12008_s21  ;;  %v11836_v13 = vpop.eup %11835 }
 0x8d9   : > { %7085 = vrot.lane.b32.xlu0 %v12243_v9, %s12008_s21 }
 0x8dc   : > { %7135 = vrot.lane.b32.xlu1 %v12344_v6, %s12008_s21  ;;  %v15364_v6 = vld [vmem:[#allocation6_spill] sm:$0xff] }
 0x8dd   : > { %7083 = vrot.lane.b32.xlu0 %v12267_v26, %s12008_s21 }
 0x8e0   : > { %7133 = vrot.lane.b32.xlu1 %v12392_v44, %s12008_s21  ;;  %v15365_v44 = vld [vmem:[#allocation17_spill] sm:$0xff] }
 0x8e1   : > { %7185 = vrot.lane.b32.xlu0 %v12260_v21, %s12008_s21 }
 0x8e4   : > { %7235 = vrot.lane.b32.xlu1 %v12382_v30, %s12008_s21 }
 0x8e5   : > { %7183 = vrot.lane.b32.xlu0 %v12301_v43, %s12008_s21 }
 0x8e8   : > { %7233 = vrot.lane.b32.xlu1 %v15255_v18, %s12008_s21 }
 0x8e9   : > { %7285 = vrot.lane.b32.xlu0 %v12290_v39, %s12008_s21 }
 0x8ea   : > { %v13871_v9 = vpop.f32.mrf.mxu1 }
 0x8ec   : > { %7335 = vrot.lane.b32.xlu1 %v15259_v49, %s12008_s21  ;;  %v11255_v26 = vpop.f32.mrf.mxu1  ;;  %v15366_v49 = vld [vmem:[#allocation11_spill] sm:$0xff] }
 0x8ed   : > { %7283 = vrot.lane.b32.xlu0 %v15289_v56, %s12008_s21 }
 0x8ee   : > { %v6051_v21 = vpop.f32.mrf.mxu1 }
 0x8f0   : > { %7333 = vrot.lane.b32.xlu1 %v15260_v55, %s12008_s21  ;;  %v11256_v27 = vpop.f32.mrf.mxu1  ;;  %v5939_v55 = vmul.f32 %v11836_v13, %v13710_v46  ;;  %v15370_v46 = vld [vmem:[#allocation25_spill] sm:$0xff] }
 0x8f1   : > { %7385 = vrot.lane.b32.xlu0 %v15292_v54, %s12008_s21  ;;  %v15367_v54 = vld [vmem:[#allocation21_spill] sm:$0xff] }
 0x8f2   : > { %v13881_v32 = vpop.f32.mrf.mxu1 }
 0x8f4   : > { %7435 = vrot.lane.b32.xlu1 %v15262_v28, %s12008_s21  ;;  %v11267_v39 = vpop.f32.mrf.mxu1 }
 0x8f5   : > { %7383 = vrot.lane.b32.xlu0 %v15294_v58, %s12008_s21  ;;  %v15368_v58 = vld [vmem:[#allocation22_spill] sm:$0xff] }
 0x8f6   : > { %v6147_v43 = vpop.f32.mrf.mxu1 }
 0x8f7   : > { %v5876_v45 = vpop.xlane.xlu0 %5875 }
 0x8f8   : > { %11837 = vrcp.f32 %v5876_v45  ;;  %7433 = vrot.lane.b32.xlu1 %v15263_v17, %s12008_s21  ;;  %v11268_v51 = vpop.f32.mrf.mxu1 }
 0x8f9   : > { %7485 = vrot.lane.b32.xlu0 %v15295_v31, %s12008_s21  ;;  %v5955_v31 = vpack.c.bf16 %v5939_v55, %v5939_v55 }
 0x8fb   : > { %v6247_v17 = vpop.permute.xlu0 %6246 }
 0x8fc   : > { %7535 = vrot.lane.b32.xlu1 %v15264_v0, %s12008_s21 }
 0x8fd   : > { %7483 = vrot.lane.b32.xlu0 %v15296_v63, %s12008_s21  ;;  %v6252_v63 = vsel %vm2190_vm2, %v6247_v17, 0 }
 0x900   : > { %7533 = vrot.lane.b32.xlu1 %v15265_v48, %s12008_s21 }
 0x901   : > { %7585 = vrot.lane.b32.xlu0 %v15364_v6, %s12008_s21 }
 0x903   : > { %v5888_v30 = vpop.xlane.xlu1 %5887 }
 0x904   : > { %7635 = vrot.lane.b32.xlu1 %v15365_v44, %s12008_s21 }
 0x905   : > { %v11838_v18 = vpop.eup %11837  ;;  %7583 = vrot.lane.b32.xlu0 %v15366_v49, %s12008_s21 }
 0x906   : > { %v5930_v28 = vmul.f32 %v11838_v18, %v13758_v12 }
 0x907   : > { %v6583_v0 = vpop.permute.xlu1 %6582 }
 0x908   : > { %v5946_v56 = vpack.c.bf16 %v5930_v28, %v5930_v28  ;;  %v6588_v48 = vsel %vm2190_vm2, %v6583_v0, 0  ;;  %7633 = vrot.lane.b32.xlu1 %v15367_v54, %s12008_s21  ;;  %v6444_v28 = vsel %vm2190_vm2, %v13762_v36, 0 }
 0x909   : > { %7875 = vrot.lane.b32.xlu0 %v15368_v58, %s12008_s21  ;;  %11324 = vmatpush3.bf16.msra.mxu1 %v6588_v48 }
 0x90a   : > { %11272 = vmatmul.mubr.msk.bf16.vlgmr.msra.gmra.mxu0 %vm1994_vm3, %v5946_v56  ;;  %11335 = vmatprep.subr.bf16.mxu1 %v15248_v35 }
 0x90b   : > { %11282 = vmatpush3.bf16.msra.mxu0 %v6252_v63  ;;  %11283 = vmatprep.mubr.msk.bf16.mxu0 %vm12005_vm0, %v15248_v35 }
 0x90c   : > { %7923 = vrot.lane.b32.xlu1 %v15369_v20, %s12008_s21  ;;  %11326 = vmatmul.mubr.msk.bf16.vlgmr.msra.gmra.mxu1 %vm1994_vm3, %v5955_v31 }
 0x90d   : > { %7971 = vrot.lane.b32.xlu0 %v15370_v46, %s12008_s21  ;;  %11293 = vmatprep.subr.bf16.mxu0 %v15248_v35 }
 0x90e   : > { %11337 = vmatprep.mubr.msk.bf16.mxu1 %vm12005_vm0, %v15248_v35 }
 0x910   : > { %8019 = vrot.lane.b32.xlu1 %v15371_v47, %s12008_s21  ;;  %v11615_v47 = vld [vmem:[%s15133_s7 + $0x28] sm:$0xff]  }
 0x927   : > { %v13926_v10 = vpop.f32.mrf.mxu1 }
 0x929   : > { %v11279_v12 = vpop.f32.mrf.mxu1 }
 0x92b   : > { %v6243_v23 = vpop.f32.mrf.mxu1 }
 0x92c   : > { %v5882_v4 = vpop.xlane.xlu0 %5881 }
 0x92d   : > { %11839 = vrcp.f32 %v5882_v4  ;;  %v11280_v42 = vpop.f32.mrf.mxu1 }
 0x92e   : > { %11841 = vrcp.f32 %v5888_v30 }
 0x92f   : > { %v13928_v52 = vpop.f32.mrf.mxu1 }
 0x930   : > { %v5909_v1 = vpop.xlane.xlu0 %5908 }
 0x931   : > { %v11291_v59 = vpop.f32.mrf.mxu1  ;;  %11843 = vrcp.f32 %v5909_v1 }
 0x933   : > { %v6339_v40 = vpop.f32.mrf.mxu1 }
 0x934   : > { %v6343_v61 = vpop.permute.xlu0 %6342 }
 0x935   : > { %v11292_v38 = vpop.f32.mrf.mxu1  ;;  %v6348_v26 = vsel %vm2190_vm2, %v6343_v61, 0  ;;  %v11616_v61 = vld [vmem:[%s15133_s7 + $0x20] sm:$0xff]  }
 0x937   : > { %v13930_v62 = vpop.f32.mrf.mxu1 }
 0x938   : > { %v5894_v16 = vpop.xlane.xlu1 %5893  ;;  %v6535_v15 = vpop.permute.xlu0 %6534 }
 0x939   : > { %11845 = vrcp.f32 %v5894_v16  ;;  %v11303_v14 = vpop.f32.mrf.mxu1  ;;  %v6540_v58 = vsel %vm2190_vm2, %v6535_v15, 0 }
 0x93a   : > { %v11840_v3 = vpop.eup %11839 }
 0x93b   : > { %v5932_v41 = vmul.f32 %v11840_v3, %v13795_v19  ;;  %v6435_v22 = vpop.f32.mrf.mxu1  ;;  %v11842_v5 = vpop.eup %11841 }
 0x93c   : > { %v5900_v7 = vpop.xlane.xlu1 %5899  ;;  %v6631_v39 = vpop.permute.xlu0 %6630  ;;  %v5934_v19 = vmul.f32 %v11842_v5, %v13772_v2 }
 0x93d   : > { %v5948_v57 = vpack.c.bf16 %v5932_v41, %v5932_v41  ;;  %v11304_v11 = vpop.f32.mrf.mxu1  ;;  %11847 = vrcp.f32 %v5900_v7  ;;  %v6636_v23 = vsel %vm2190_vm2, %v6631_v39, 0 }
 0x93e   : > { %v11844_v27 = vpop.eup %11843  ;;  %v5950_v30 = vpack.c.bf16 %v5934_v19, %v5934_v19 }
 0x93f   : > { %11284 = vmatmul.mubr.msk.bf16.vlgmr.msra.gmra.mxu0 %vm1994_vm3, %v5948_v57  ;;  %v13935_v21 = vpop.f32.mrf.mxu1  ;;  %v5941_v51 = vmul.f32 %v11844_v27, %v13799_v33 }
 0x940   : > { %11294 = vmatpush3.bf16.msra.mxu0 %v6348_v26  ;;  %v5906_v43 = vpop.xlane.xlu1 %5905  ;;  %11295 = vmatprep.mubr.msk.bf16.mxu0 %vm12005_vm0, %v15248_v35  ;;  %v6886_v55 = vpop.permute.xlu0 %6885 }
 0x941   : > { %v11315_v45 = vpop.f32.mrf.mxu1  ;;  %11305 = vmatprep.subr.bf16.mxu0 %v15248_v35  ;;  %v5957_v17 = vpack.c.bf16 %v5941_v51, %v5941_v51  ;;  %v6891_v0 = vsel %vm1257_vm1, %v6886_v55, 0  ;;  %11849 = vrcp.f32 %v5906_v43 }
 0x943   : > { %v6531_v6 = vpop.f32.mrf.mxu1 }
 0x944   : > { %v6679_v13 = vpop.permute.xlu1 %6678  ;;  %v6936_v54 = vpop.permute.xlu0 %6935 }
 0x945   : > { %v6684_v44 = vsel %vm2190_vm2, %v6679_v13, 0  ;;  %v11316_v18 = vpop.f32.mrf.mxu1  ;;  %v6941_v63 = vsel %vm1257_vm1, %v6936_v54, 0 }
 0x946   : > { %v11846_v49 = vpop.eup %11845  ;;  %11336 = vmatpush3.bf16.msra.mxu1 %v6684_v44 }
 0x947   : > { %11296 = vmatmul.mubr.msk.bf16.vlgmr.msra.gmra.mxu0 %vm1994_vm3, %v5950_v30  ;;  %11361 = vmatprep.subr.bf16.mxu1 %v15248_v35  ;;  %v5936_v33 = vmul.f32 %v11846_v49, %v13803_v50 }
 0x948   : > { %11306 = vmatpush3.bf16.msra.mxu0 %v6444_v28  ;;  %v6884_v2 = vpop.permute.xlu1 %6883  ;;  %11307 = vmatprep.mubr.msk.bf16.mxu0 %vm12005_vm0, %v15248_v35 }
 0x949   : > { %11338 = vmatmul.mubr.msk.bf16.vlgmr.msra.gmra.mxu1 %vm1994_vm3, %v5957_v17  ;;  %11317 = vmatprep.subr.bf16.mxu0 %v15248_v35  ;;  %v5952_v56 = vpack.c.bf16 %v5936_v33, %v5936_v33 }
 0x94a   : > { %11362 = vmatpush3.bf16.xpose.msra.mxu1 %v6891_v0  ;;  %11363 = vmatprep.mubr.msk.bf16.mxu1 %vm12005_vm0, %v15248_v35  ;;  %v11848_v48 = vpop.eup %11847 }
 0x94b   : > { %11367 = vmatprep.subr.bf16.mxu1 %v15248_v35  ;;  %v5938_v31 = vmul.f32 %v11848_v48, %v13807_v25  ;;  %v6986_v25 = vpop.permute.xlu0 %6985 }
 0x94c   : > { %v6934_v36 = vpop.permute.xlu1 %6933  ;;  %v6991_v1 = vsel %vm1257_vm1, %v6986_v25, 0 }
 0x94d   : > { %v5954_v46 = vpack.c.bf16 %v5938_v31, %v5938_v31 }
 0x94e   : > { %v11850_v12 = vpop.eup %11849 }
 0x94f   : > { %11308 = vmatmul.mubr.msk.bf16.vlgmr.msra.gmra.mxu0 %vm1994_vm3, %v5952_v56  ;;  %v5940_v42 = vmul.f32 %v11850_v12, %v13811_v24  ;;  %v7036_v38 = vpop.permute.xlu0 %7035 }
 0x950   : > { %11318 = vmatpush3.bf16.msra.mxu0 %v6540_v58  ;;  %v6984_v50 = vpop.permute.xlu1 %6983  ;;  %11319 = vmatprep.mubr.msk.bf16.mxu0 %vm12005_vm0, %v15248_v35  ;;  %v7041_v16 = vsel %vm1257_vm1, %v7036_v38, 0 }
 0x951   : > { %11364 = vmatmul.mubr.msk.bf16.vlgmr.msra.gmra.mxu1 %vm1257_vm1, %v6884_v2  ;;  %11329 = vmatprep.subr.bf16.mxu0 %v15248_v35  ;;  %v5956_v40 = vpack.c.bf16 %v5940_v42, %v5940_v42 }
 0x952   : > { %11368 = vmatpush3.bf16.xpose.msra.mxu1 %v6941_v63  ;;  %11369 = vmatprep.mubr.msk.bf16.mxu1 %vm12005_vm0, %v15248_v35 }
 0x953   : > { %11373 = vmatprep.subr.bf16.mxu1 %v15248_v35  ;;  %v7086_v18 = vpop.permute.xlu0 %7085 }
 0x954   : > { %v7034_v20 = vpop.permute.xlu1 %7033  ;;  %v7091_v17 = vsel %vm1257_vm1, %v7086_v18, 0 }
 0x957   : > { %11320 = vmatmul.mubr.msk.bf16.vlgmr.msra.gmra.mxu0 %vm1994_vm3, %v5954_v46 }
 0x958   : > { %11330 = vmatpush3.bf16.msra.mxu0 %v6636_v23  ;;  %v7136_v4 = vpop.permute.xlu1 %7135  ;;  %11331 = vmatprep.mubr.msk.bf16.mxu0 %vm12005_vm0, %v15248_v35 }
 0x959   : > { %11370 = vmatmul.mubr.msk.bf16.vlgmr.msra.gmra.mxu1 %vm1257_vm1, %v6934_v36  ;;  %11341 = vmatprep.subr.bf16.mxu0 %v11615_v47  ;;  %v7141_v15 = vsel %vm1257_vm1, %v7136_v4, 0 }
 0x95a   : > { %11374 = vmatpush3.bf16.xpose.msra.mxu1 %v6991_v1  ;;  %11375 = vmatprep.mubr.msk.bf16.mxu1 %vm12005_vm0, %v15248_v35 }
 0x95b   : > { %11379 = vmatprep.subr.bf16.mxu1 %v15248_v35 }
 0x95c   : > { %v7134_v59 = vpop.permute.xlu1 %7133 }
 0x95f   : > { %11332 = vmatmul.mubr.msk.bf16.vlgmr.msra.gmra.mxu0 %vm1994_vm3, %v5956_v40  ;;  %v7084_v40 = vpop.permute.xlu0 %7083 }
 0x960   : > { %v7236_v24 = vpop.permute.xlu1 %7235  ;;  %11342 = vmatpush3.bf16.msra.mxu0 %v11615_v47 }
 0x961   : > { %11376 = vmatmul.mubr.msk.bf16.vlgmr.msra.gmra.mxu1 %vm1257_vm1, %v6984_v50  ;;  %11343 = vmatprep.subr.bf16.mxu0 %v11616_v61  ;;  %v7241_v22 = vsel %vm1257_vm1, %v7236_v24, 0 }
 0x962   : > { %11380 = vmatpush3.bf16.xpose.msra.mxu1 %v7041_v16  ;;  %11381 = vmatprep.mubr.msk.bf16.mxu1 %vm12005_vm0, %v15248_v35 }
 0x963   : > { %11391 = vmatprep.subr.bf16.mxu1 %v15248_v35 }
 0x964   : > { %v7234_v14 = vpop.permute.xlu1 %7233  ;;  %11344 = vmatpush3.bf16.msra.mxu0 %v11616_v61 }
 0x965   : > { %11385 = vmatprep.subr.bf16.mxu0 %v15248_v35 }
 0x968   : > { %v7336_v3 = vpop.permute.xlu1 %7335 }
 0x969   : > { %11382 = vmatmul.mubr.msk.bf16.vlgmr.msra.gmra.mxu1 %vm1257_vm1, %v7034_v20  ;;  %v7341_v11 = vsel %vm1257_vm1, %v7336_v3, 0 }
 0x96a   : > { %11392 = vmatpush3.bf16.xpose.msra.mxu1 %v7141_v15  ;;  %11393 = vmatprep.mubr.msk.bf16.mxu1 %vm12005_vm0, %v15248_v35  ;;  %v7186_v15 = vpop.permute.xlu0 %7185 }
 0x96b   : > { %11403 = vmatprep.subr.bf16.mxu1 %v15248_v35 }
 0x96c   : > { %v7334_v41 = vpop.permute.xlu1 %7333 }
 0x970   : > { %v7436_v7 = vpop.permute.xlu1 %7435 }
 0x971   : > { %11394 = vmatmul.mubr.msk.bf16.vlgmr.msra.gmra.mxu1 %vm1257_vm1, %v7134_v59  ;;  %v7441_v26 = vsel %vm1257_vm1, %v7436_v7, 0 }
 0x972   : > { %11404 = vmatpush3.bf16.xpose.msra.mxu1 %v7241_v22  ;;  %11405 = vmatprep.mubr.msk.bf16.mxu1 %vm12005_vm0, %v15248_v35 }
 0x973   : > { %11415 = vmatprep.subr.bf16.mxu1 %v15248_v35 }
 0x974   : > { %v7434_v57 = vpop.permute.xlu1 %7433 }
 0x978   : > { %v7536_v5 = vpop.permute.xlu1 %7535 }
 0x979   : > { %11406 = vmatmul.mubr.msk.bf16.vlgmr.msra.gmra.mxu1 %vm1257_vm1, %v7234_v14  ;;  %v7541_v39 = vsel %vm1257_vm1, %v7536_v5, 0 }
 0x97a   : > { %11416 = vmatpush3.bf16.xpose.msra.mxu1 %v7341_v11  ;;  %11417 = vmatprep.mubr.msk.bf16.mxu1 %vm12005_vm0, %v15248_v35 }
 0x97b   : > { %11427 = vmatprep.subr.bf16.mxu1 %v15248_v35 }
 0x97c   : > { %v7534_v27 = vpop.permute.xlu1 %7533 }
 0x980   : > { %v7636_v43 = vpop.permute.xlu1 %7635 }
 0x981   : > { %11418 = vmatmul.mubr.msk.bf16.vlgmr.msra.gmra.mxu1 %vm1257_vm1, %v7334_v41  ;;  %v7641_v13 = vsel %vm1257_vm1, %v7636_v43, 0 }
 0x982   : > { %11428 = vmatpush3.bf16.xpose.msra.mxu1 %v7441_v26  ;;  %11429 = vmatprep.mubr.msk.bf16.mxu1 %vm12005_vm0, %v15248_v35  ;;  %v7184_v26 = vpop.permute.xlu0 %7183 }
 0x983   : > { %11439 = vmatprep.subr.bf16.mxu1 %v15248_v35 }
 0x984   : > { %v7634_v6 = vpop.permute.xlu1 %7633 }
 0x988   : > { %v7924_v55 = vpop.permute.xlu1 %7923 }
 0x989   : > { %11430 = vmatmul.mubr.msk.bf16.vlgmr.msra.gmra.mxu1 %vm1257_vm1, %v7434_v57  ;;  %v7929_v2 = vsel %vm2190_vm2, %v7924_v55, 0 }
 0x98a   : > { %11440 = vmatpush3.bf16.xpose.msra.mxu1 %v7541_v39  ;;  %11441 = vmatprep.mubr.msk.bf16.mxu1 %vm12005_vm0, %v15248_v35 }
 0x98b   : > { %11451 = vmatprep.subr.bf16.mxu1 %v15248_v35 }
 0x98d   : > { %v6000_v19 = vpop.f32.mrf.mxu0 }
 0x98e   : > { %v6726_v45 = vpack.c.bf16 %v13871_v9, %v6000_v19 }
 0x98f   : > { %v11249_v51 = vpop.f32.mrf.mxu0 }
 0x990   : > { %11345 = vmatprep.mubr.msk.bf16.mxu0 %vm1257_vm1, %v6726_v45 }
 0x991   : > { %v6003_v30 = vpop.f32.mrf.mxu0  ;;  %11442 = vmatmul.mubr.msk.bf16.vlgmr.msra.gmra.mxu1 %vm1257_vm1, %v7534_v27 }
 0x992   : > { %11452 = vmatpush3.bf16.xpose.msra.mxu1 %v7641_v13  ;;  %11453 = vmatprep.mubr.msk.bf16.mxu1 %vm12005_vm0, %v15248_v35  ;;  %v7286_v13 = vpop.permute.xlu0 %7285 }
 0x993   : > { %v11250_v44 = vpop.f32.mrf.mxu0  ;;  %11463 = vmatprep.subr.bf16.mxu1 %v15248_v35 }
 0x995   : > { %v6096_v49 = vpop.f32.mrf.mxu0 }
 0x996   : > { %v6727_v9 = vpack.c.bf16 %v13881_v32, %v6096_v49 }
 0x997   : > { %v11261_v28 = vpop.f32.mrf.mxu0 }
 0x998   : > { %11346 = vmatmul.mubr.msk.bf16.vlgmr.msra.gmra.mxu0 %vm1257_vm1, %v6727_v9 }
 0x999   : > { %11386 = vmatpush3.bf16.xpose.msra.mxu0 %v7091_v17  ;;  %v6099_v33 = vpop.f32.mrf.mxu0  ;;  %11454 = vmatmul.mubr.msk.bf16.vlgmr.msra.gmra.mxu1 %vm1257_vm1, %v7634_v6 }
 0x99a   : > { %11464 = vmatpush3.bf16.msra.mxu1 %v7929_v2  ;;  %11397 = vmatprep.subr.bf16.mxu0 %v15248_v35  ;;  %v7284_v2 = vpop.permute.xlu0 %7283 }
 0x99b   : > { %v11262_v0 = vpop.f32.mrf.mxu0  ;;  %11465 = vmatprep.mubr.msk.bf16.mxu1 %vm12005_vm0, %v15248_v35  ;;  %11475 = vmatprep.subr.bf16.mxu1 %v15248_v35 }
 0x9ca   : > { %v6192_v32 = vpop.f32.mrf.mxu0 }
 0x9cb   : > { %v6728_v36 = vpack.c.bf16 %v13926_v10, %v6192_v32 }
 0x9cc   : > { %v11273_v56 = vpop.f32.mrf.mxu0  ;;  %v6624_v48 = vpop.f32.mrf.mxu1 }
 0x9cd   : > { %11349 = vmatprep.mubr.msk.bf16.mxu0 %vm1257_vm1, %v6728_v36  ;;  %v7191_v56 = vsel %vm1257_vm1, %v7186_v15, 0 }
 0x9ce   : > { %v6195_v54 = vpop.f32.mrf.mxu0  ;;  %v11327_v58 = vpop.f32.mrf.mxu1 }
 0x9cf   : > { %v7386_v54 = vpop.permute.xlu0 %7385 }
 0x9d0   : > { %v11274_v50 = vpop.f32.mrf.mxu0  ;;  %v6627_v31 = vpop.f32.mrf.mxu1 }
 0x9d2   : > { %v11328_v63 = vpop.f32.mrf.mxu1 }
 0x9d3   : > { %v7384_v63 = vpop.permute.xlu0 %7383 }
 0x9ff   : > { %v6288_v20 = vpop.f32.mrf.mxu0 }
 0xa00   : > { %v6729_v46 = vpack.c.bf16 %v13928_v52, %v6288_v20 }
 0xa01   : > { %v11285_v47 = vpop.f32.mrf.mxu0 }
 0xa02   : > { %11350 = vmatmul.mubr.msk.bf16.gmra.mxu0 %vm1257_vm1, %v6729_v46  ;;  %v7291_v46 = vsel %vm1257_vm1, %v7286_v13, 0  ;;  %v15372_v13 = vld [vmem:[#allocation36_spill] sm:$0xff] }
 0xa03   : > { %v6291_v12 = vpop.f32.mrf.mxu0 }
 0xa05   : > { %v11286_v25 = vpop.f32.mrf.mxu0 }
 0xa07   : > { %v6384_v23 = vpop.f32.mrf.mxu0 }
 0xa08   : > { %v6730_v10 = vpack.c.bf16 %v13930_v62, %v6384_v23  ;;  %v7486_v23 = vpop.permute.xlu0 %7485 }
 0xa09   : > { %v11297_v4 = vpop.f32.mrf.mxu0  ;;  %v6720_v42 = vpop.f32.mrf.mxu1 }
 0xa0a   : > { %11353 = vmatprep.mubr.msk.bf16.mxu0 %vm1257_vm1, %v6730_v10 }
 0xa0b   : > { %v6387_v1 = vpop.f32.mrf.mxu0  ;;  %v11339_v59 = vpop.f32.mrf.mxu1 }
 0xa0d   : > { %v11298_v61 = vpop.f32.mrf.mxu0  ;;  %v6723_v38 = vpop.f32.mrf.mxu1 }
 0xa0f   : > { %v6480_v24 = vpop.f32.mrf.mxu0  ;;  %v11340_v16 = vpop.f32.mrf.mxu1 }
 0xa10   : > { %v6731_v52 = vpack.c.bf16 %v13935_v21, %v6480_v24  ;;  %v7491_v16 = vsel %vm1257_vm1, %v7486_v23, 0 }
 0xa11   : > { %v11309_v14 = vpop.f32.mrf.mxu0  ;;  %v14038_v3 = vpop.f32.mrf.mxu1 }
 0xa12   : > { %11354 = vmatmul.mubr.msk.bf16.gmra.mxu0 %vm1257_vm1, %v6731_v52  ;;  %v7683_v62 = vsel %vm1994_vm3, %v14038_v3, -inf }
 0xa13   : > { %v6483_v41 = vpop.f32.mrf.mxu0  ;;  %7684 = vmax.xlane.f32.xlu0 %v7683_v62  ;;  %v11365_v22 = vpop.f32.mrf.mxu1 }
 0xa15   : > { %v11310_v7 = vpop.f32.mrf.mxu0  ;;  %v6930_v57 = vpop.f32.mrf.mxu1 }
 0xa17   : > { %v6576_v11 = vpop.f32.mrf.mxu0  ;;  %v11366_v5 = vpop.f32.mrf.mxu1 }
 0xa18   : > { %v6732_v27 = vpack.c.bf16 %v6624_v48, %v6576_v11 }
 0xa19   : > { %v11321_v39 = vpop.f32.mrf.mxu0  ;;  %v14043_v21 = vpop.f32.mrf.mxu1 }
 0xa1a   : > { %11357 = vmatprep.mubr.msk.bf16.mxu0 %vm1257_vm1, %v6732_v27  ;;  %v7686_v43 = vsel %vm1994_vm3, %v14043_v21, -inf }
 0xa1b   : > { %v6579_v19 = vpop.f32.mrf.mxu0  ;;  %7687 = vmax.xlane.f32.xlu1 %v7686_v43  ;;  %v11371_v45 = vpop.f32.mrf.mxu1 }
 0xa1d   : > { %v11322_v51 = vpop.f32.mrf.mxu0  ;;  %v6980_v6 = vpop.f32.mrf.mxu1 }
 0xa1f   : > { %v6672_v30 = vpop.f32.mrf.mxu0  ;;  %v11372_v44 = vpop.f32.mrf.mxu1 }
 0xa20   : > { %v6733_v18 = vpack.c.bf16 %v6720_v42, %v6672_v30  ;;  %v7391_v42 = vsel %vm1257_vm1, %v7386_v54, 0  ;;  %v15373_v30 = vld [vmem:[#allocation3_spill] sm:$0xff] }
 0xa21   : > { %v11333_v49 = vpop.f32.mrf.mxu0  ;;  %v14048_v55 = vpop.f32.mrf.mxu1  ;;  %v4912_v44 = vadd.f32 %v15373_v30, %v15372_v13 }
 0xa22   : > { %11358 = vmatmul.mubr.msk.bf16.gmra.mxu0 %vm1257_vm1, %v6733_v18  ;;  %v7689_v9 = vsel %vm1994_vm3, %v14048_v55, -inf }
 0xa23   : > { %v6675_v28 = vpop.f32.mrf.mxu0  ;;  %7690 = vmax.xlane.f32.xlu0 %v7689_v9  ;;  %v11377_v17 = vpop.f32.mrf.mxu1  ;;  %11387 = vmatprep.mubr.msk.bf16.mxu0 %vm12005_vm0, %v15248_v35  ;;  %v15374_v9 = vld [vmem:[#allocation20_spill] sm:$0xff] }
 0xa24   : > { %v15375_v28 = vld [vmem:[#allocation39_spill] sm:$0xff] }
 0xa25   : > { %v11334_v33 = vpop.f32.mrf.mxu0  ;;  %v7030_v0 = vpop.f32.mrf.mxu1  ;;  %v4904_v17 = vadd.f32 %v15375_v28, %v15374_v9 }
 0xa27   : > { %v11378_v32 = vpop.f32.mrf.mxu1 }
 0xa29   : > { %v14055_v36 = vpop.f32.mrf.mxu1 }
 0xa2a   : > { %11388 = vmatmul.mubr.msk.bf16.vlgmr.msra.gmra.mxu0 %vm1257_vm1, %v7084_v40  ;;  %v7692_v48 = vsel %vm1994_vm3, %v14055_v36, -inf  ;;  %v7484_v40 = vpop.permute.xlu0 %7483 }
 0xa2b   : > { %11398 = vmatpush3.bf16.xpose.msra.mxu0 %v7191_v56  ;;  %7693 = vmax.xlane.f32.xlu0 %v7692_v48  ;;  %v11383_v58 = vpop.f32.mrf.mxu1  ;;  %v15376_v56 = vld [vmem:[#allocation37_spill] sm:$0xff]  ;;  %v15377_v48 = vld [vmem:[#allocation2_spill] sm:$0xff] }
 0xa2c   : > { %11399 = vmatprep.mubr.msk.bf16.mxu0 %vm12005_vm0, %v15248_v35  ;;  %11409 = vmatprep.subr.bf16.mxu0 %v15248_v35  ;;  %v4915_v54 = vadd.f32 %v15377_v48, %v15376_v56 }
 0xa2d   : > { %v7080_v50 = vpop.f32.mrf.mxu1 }
 0xa2e   : > { %v7586_v14 = vpop.permute.xlu0 %7585 }
 0xa2f   : > { %v11384_v31 = vpop.f32.mrf.mxu1  ;;  %v7591_v57 = vsel %vm1257_vm1, %v7586_v14, 0 }
 0xa31   : > { %v14064_v20 = vpop.f32.mrf.mxu1 }
 0xa32   : > { %11400 = vmatmul.mubr.msk.bf16.vlgmr.msra.gmra.mxu0 %vm1257_vm1, %v7184_v26  ;;  %v7698_v47 = vsel %vm1994_vm3, %v14064_v20, -inf  ;;  %v7584_v22 = vpop.permute.xlu0 %7583 }
 0xa33   : > { %11410 = vmatpush3.bf16.xpose.msra.mxu0 %v7291_v46  ;;  %7699 = vmax.xlane.f32.xlu1 %v7698_v47  ;;  %v11395_v12 = vpop.f32.mrf.mxu1 }
 0xa34   : > { %11411 = vmatprep.mubr.msk.bf16.mxu0 %vm12005_vm0, %v15248_v35  ;;  %11421 = vmatprep.subr.bf16.mxu0 %v15248_v35 }
 0xa35   : > { %v7180_v25 = vpop.f32.mrf.mxu1 }
 0xa36   : > { %v7876_v27 = vpop.permute.xlu0 %7875 }
 0xa37   : > { %v11396_v10 = vpop.f32.mrf.mxu1  ;;  %v7881_v19 = vsel %vm2190_vm2, %v7876_v27, 0  ;;  %v15379_v27 = vld [vmem:[#allocation4_spill] sm:$0xff] }
 0xa39   : > { %v14073_v4 = vpop.f32.mrf.mxu1 }
 0xa3a   : > { %11412 = vmatmul.mubr.msk.bf16.vlgmr.msra.gmra.mxu0 %vm1257_vm1, %v7284_v2  ;;  %v7704_v1 = vsel %vm1994_vm3, %v14073_v4, -inf  ;;  %v14125_v12 = vpop.permute.xlu0 %7971 }
 0xa3b   : > { %11422 = vmatpush3.bf16.xpose.msra.mxu0 %v7391_v42  ;;  %7705 = vmax.xlane.f32.xlu1 %v7704_v1  ;;  %v11407_v59 = vpop.f32.mrf.mxu1  ;;  %v14128_v42 = vpop.permute.xlu1 %8019 }
 0xa3c   : > { %11423 = vmatprep.mubr.msk.bf16.mxu0 %vm12005_vm0, %v15248_v35  ;;  %11433 = vmatprep.subr.bf16.mxu0 %v15248_v35 }
 0xa3d   : > { %v7280_v61 = vpop.f32.mrf.mxu1 }
 0xa3f   : > { %v11408_v38 = vpop.f32.mrf.mxu1 }
 0xa41   : > { %v14082_v24 = vpop.f32.mrf.mxu1 }
 0xa42   : > { %11424 = vmatmul.mubr.msk.bf16.vlgmr.msra.gmra.mxu0 %vm1257_vm1, %v7384_v63  ;;  %v7710_v52 = vsel %vm1994_vm3, %v14082_v24, -inf }
 0xa43   : > { %11434 = vmatpush3.bf16.xpose.msra.mxu0 %v7491_v16  ;;  %7711 = vmax.xlane.f32.xlu1 %v7710_v52  ;;  %v11419_v15 = vpop.f32.mrf.mxu1 }
 0xa44   : > { %11435 = vmatprep.mubr.msk.bf16.mxu0 %vm12005_vm0, %v15248_v35  ;;  %11445 = vmatprep.subr.bf16.mxu0 %v15248_v35 }
 0xa45   : > { %v7380_v62 = vpop.f32.mrf.mxu1 }
 0xa47   : > { %v11420_v41 = vpop.f32.mrf.mxu1 }
 0xa49   : > { %v14091_v7 = vpop.f32.mrf.mxu1 }
 0xa4a   : > { %11436 = vmatmul.mubr.msk.bf16.vlgmr.msra.gmra.mxu0 %vm1257_vm1, %v7484_v40  ;;  %v7716_v11 = vsel %vm1994_vm3, %v14091_v7, -inf }
 0xa4b   : > { %11446 = vmatpush3.bf16.xpose.msra.mxu0 %v7591_v57  ;;  %7717 = vmax.xlane.f32.xlu1 %v7716_v11  ;;  %v11431_v5 = vpop.f32.mrf.mxu1 }
 0xa4c   : > { %11447 = vmatprep.mubr.msk.bf16.mxu0 %vm12005_vm0, %v15248_v35  ;;  %11457 = vmatprep.subr.bf16.mxu0 %v15248_v35 }
 0xa4d   : > { %v7480_v26 = vpop.f32.mrf.mxu1 }
 0xa4f   : > { %v11432_v39 = vpop.f32.mrf.mxu1 }
 0xa51   : > { %v14100_v43 = vpop.f32.mrf.mxu1 }
 0xa52   : > { %11448 = vmatmul.mubr.msk.bf16.vlgmr.msra.gmra.mxu0 %vm1257_vm1, %v7584_v22  ;;  %v7722_v45 = vsel %vm1994_vm3, %v14100_v43, -inf }
 0xa53   : > { %11458 = vmatpush3.bf16.msra.mxu0 %v7881_v19  ;;  %7723 = vmax.xlane.f32.xlu1 %v7722_v45  ;;  %v11443_v51 = vpop.f32.mrf.mxu1  ;;  %v15380_v45 = vld [vmem:[#allocation38_spill] sm:$0xff] }
 0xa54   : > { %11459 = vmatprep.mubr.msk.bf16.mxu0 %vm12005_vm0, %v15248_v35  ;;  %11469 = vmatprep.subr.bf16.mxu0 %v15248_v35  ;;  %v15381_v51 = vld [vmem:[#allocation7_spill] sm:$0xff] }
 0xa55   : > { %v7580_v6 = vpop.f32.mrf.mxu1 }
 0xa56   : > { %v4920_v6 = vadd.f32 %v15381_v51, %v15380_v45  ;;  %v15391_v45 = vld [vmem:[#allocation15_spill] sm:$0xff] }
 0xa57   : > { %v11444_v18 = vpop.f32.mrf.mxu1 }
 0xa58   : > { %v11347_v49 = vpop.f32.mrf.mxu0  ;;  %v15383_v18 = vld [vmem:[#allocation19_spill] sm:$0xff] }
 0xa59   : > { %v14113_v2 = vadd.f32 %v11347_v49, %v4912_v44  ;;  %v14115_v33 = vpop.f32.mrf.mxu1  ;;  %v15382_v44 = vld [vmem:[#allocation40_spill] sm:$0xff] }
 0xa5a   : > { %v6804_v0 = vpop.f32.mrf.mxu0  ;;  %v7728_v32 = vsel %vm1994_vm3, %v14115_v33, -inf  ;;  %v4931_v49 = vadd.f32 %v15383_v18, %v15382_v44 }
 0xa5b   : > { %v14121_v58 = vadd.f32 %v6804_v0, %v4904_v17  ;;  %7729 = vmax.xlane.f32.xlu1 %v7728_v32  ;;  %v11455_v50 = vpop.f32.mrf.mxu1 }
 0xa5c   : > { %v11348_v31 = vpop.f32.mrf.mxu0 }
 0xa5d   : > { %v14123_v63 = vadd.f32 %v11348_v31, %v4915_v54  ;;  %v7680_v46 = vpop.f32.mrf.mxu1 }
 0xa5e   : > { %v14146_v26 = vpop.f32.mrf.mxu0 }
 0xa5f   : > { %v11456_v47 = vpop.f32.mrf.mxu1 }
 0xa9c   : > { %v7685_v25 = vpop.xlane.xlu0 %7684 }
 0xa9d   : > { %v7731_v23 = vsub.f32 %v14038_v3, %v7685_v25  ;;  %v15384_v25 = vld [vmem:[#allocation42_spill] sm:$0xff] }
 0xa9f   : > { %v7747_v10 = vmul.f32 1.442695, %v7731_v23  ;;  %v15385_v23 = vld [vmem:[#allocation14_spill] sm:$0xff] }
 0xaa1   : > { %11851 = vpow2.f32 %v7747_v10  ;;  %v4944_v10 = vadd.f32 %v15385_v23, %v15384_v25  ;;  %v15396_v23 = vld [vmem:[#allocation29_spill] sm:$0xff] }
 0xaa4   : > { %v7688_v1 = vpop.xlane.xlu1 %7687 }
 0xaa5   : > { %v7732_v59 = vsub.f32 %v14043_v21, %v7688_v1 }
 0xaa7   : > { %v7749_v40 = vmul.f32 1.442695, %v7732_v59  ;;  %v15386_v59 = vld [vmem:[#allocation43_spill] sm:$0xff] }
 0xaa9   : > { %11853 = vpow2.f32 %v7749_v40  ;;  %v15387_v40 = vld [vmem:[#allocation8_spill] sm:$0xff] }
 0xaac   : > { %v7691_v61 = vpop.xlane.xlu0 %7690 }
 0xaad   : > { %v7733_v38 = vsub.f32 %v14048_v55, %v7691_v61  ;;  %v4936_v61 = vadd.f32 %v15387_v40, %v15386_v59  ;;  %v15397_v40 = vld [vmem:[#allocation30_spill] sm:$0xff] }
 0xaae   : > { %v14132_v16 = vpop.eup %11851 }
 0xaaf   : > { %v7751_v52 = vmul.f32 1.442695, %v7733_v38  ;;  %v7779_v14 = vsel %vm1994_vm3, %v14132_v16, 0.0 }
 0xab0   : > { %7780 = vadd.xlane.f32.xlu0 %v7779_v14  ;;  %v15388_v14 = vld [vmem:[#allocation44_spill] sm:$0xff] }
 0xab1   : > { %11855 = vpow2.f32 %v7751_v52 }
 0xab4   : > { %v7694_v3 = vpop.xlane.xlu0 %7693 }
 0xab5   : > { %v7734_v15 = vsub.f32 %v14055_v36, %v7694_v3  ;;  %v15378_v36 = vld [vmem:[#allocation35_spill] sm:$0xff]  ;;  %v15389_v3 = vld [vmem:[#allocation13_spill] sm:$0xff] }
 0xab6   : > { %v14137_v62 = vpop.eup %11853  ;;  %v4928_v39 = vadd.f32 %v15379_v27, %v15378_v36 }
 0xab7   : > { %v7753_v41 = vmul.f32 1.442695, %v7734_v15  ;;  %v7782_v21 = vsel %vm1994_vm3, %v14137_v62, 0.0  ;;  %v4947_v15 = vadd.f32 %v15389_v3, %v15388_v14 }
 0xab8   : > { %7783 = vadd.xlane.f32.xlu1 %v7782_v21 }
 0xab9   : > { %11857 = vpow2.f32 %v7753_v41 }
 0xabc   : > { %v7700_v55 = vpop.xlane.xlu1 %7699 }
 0xabd   : > { %v7736_v22 = vsub.f32 %v14064_v20, %v7700_v55 }
 0xabe   : > { %v14142_v57 = vpop.eup %11855 }
 0xabf   : > { %v7757_v11 = vmul.f32 1.442695, %v7736_v22  ;;  %v7785_v5 = vsel %vm1994_vm3, %v14142_v57, 0.0 }
 0xac0   : > { %7786 = vadd.xlane.f32.xlu0 %v7785_v5 }
 0xac1   : > { %11859 = vpow2.f32 %v7757_v11 }
 0xac2   : > { %v11351_v19 = vpop.f32.mrf.mxu0 }
 0xac3   : > { %v14152_v13 = vadd.f32 %v11351_v19, %v4928_v39 }
 0xac4   : > { %v6820_v20 = vpop.f32.mrf.mxu0  ;;  %v7706_v30 = vpop.xlane.xlu1 %7705 }
 0xac5   : > { %v14156_v9 = vadd.f32 %v6820_v20, %v4920_v6  ;;  %v7738_v28 = vsub.f32 %v14073_v4, %v7706_v30  ;;  %v15392_v20 = vld [vmem:[#allocation47_spill] sm:$0xff]  ;;  %v15393_v30 = vld [vmem:[#allocation16_spill] sm:$0xff] }
 0xac6   : > { %v14159_v17 = vpop.eup %11857  ;;  %v11352_v0 = vpop.f32.mrf.mxu0  ;;  %v4952_v44 = vadd.f32 %v15393_v30, %v15392_v20 }
 0xac7   : > { %v7761_v32 = vmul.f32 1.442695, %v7738_v28  ;;  %v14161_v56 = vadd.f32 %v11352_v0, %v4931_v49  ;;  %v7788_v48 = vsel %vm1994_vm3, %v14159_v17, 0.0  ;;  %v15394_v28 = vld [vmem:[#allocation48_spill] sm:$0xff] }
 0xac8   : > { %7789 = vadd.xlane.f32.xlu1 %v7788_v48  ;;  %v14170_v47 = vpop.f32.mrf.mxu0  ;;  %v15395_v0 = vld [vmem:[#allocation24_spill] sm:$0xff] }
 0xac9   : > { %11861 = vpow2.f32 %v7761_v32  ;;  %v4963_v32 = vadd.f32 %v15395_v0, %v15394_v28 }
 0xacc   : > { %v7712_v54 = vpop.xlane.xlu1 %7711 }
 0xacd   : > { %v7740_v50 = vsub.f32 %v14082_v24, %v7712_v54 }
 0xace   : > { %v14166_v31 = vpop.eup %11859 }
 0xacf   : > { %v7765_v46 = vmul.f32 1.442695, %v7740_v50  ;;  %v7794_v4 = vsel %vm1994_vm3, %v14166_v31, 0.0 }
 0xad0   : > { %7795 = vadd.xlane.f32.xlu1 %v7794_v4 }
 0xad1   : > { %11863 = vpow2.f32 %v7765_v46 }
 0xad2   : > { %v11355_v1 = vpop.f32.mrf.mxu0 }
 0xad3   : > { %v14176_v38 = vadd.f32 %v11355_v1, %v4944_v10 }
 0xad4   : > { %v6836_v24 = vpop.f32.mrf.mxu0  ;;  %v7718_v52 = vpop.xlane.xlu1 %7717 }
 0xad5   : > { %v14180_v41 = vadd.f32 %v6836_v24, %v4936_v61  ;;  %v7742_v21 = vsub.f32 %v14091_v7, %v7718_v52  ;;  %v15390_v7 = vld [vmem:[#allocation46_spill] sm:$0xff]  ;;  %v15398_v52 = vld [vmem:[#allocation32_spill] sm:$0xff] }
 0xad6   : > { %v14183_v55 = vpop.eup %11861  ;;  %v11356_v22 = vpop.f32.mrf.mxu0  ;;  %v4960_v51 = vadd.f32 %v15391_v45, %v15390_v7 }
 0xad7   : > { %v7769_v11 = vmul.f32 1.442695, %v7742_v21  ;;  %v14185_v5 = vadd.f32 %v11356_v22, %v4947_v15  ;;  %v7800_v36 = vsel %vm1994_vm3, %v14183_v55, 0.0  ;;  %v15399_v21 = vld [vmem:[#allocation33_spill] sm:$0xff] }
 0xad8   : > { %7801 = vadd.xlane.f32.xlu1 %v7800_v36  ;;  %v14193_v19 = vpop.f32.mrf.mxu0  ;;  %v15400_v36 = vld [vmem:[#allocation9_spill] sm:$0xff] }
 0xad9   : > { %11865 = vpow2.f32 %v7769_v11 }
 0xade   : > { %v14189_v27 = vpop.eup %11863 }
 0xadf   : > { %v7806_v39 = vsel %vm1994_vm3, %v14189_v27, 0.0 }
 0xae0   : > { %7807 = vadd.xlane.f32.xlu0 %v7806_v39 }
 0xae2   : > { %v11359_v6 = vpop.f32.mrf.mxu0 }
 0xae3   : > { %v14199_v18 = vadd.f32 %v11359_v6, %v4960_v51 }
 0xae4   : > { %v6852_v49 = vpop.f32.mrf.mxu0 }
 0xae5   : > { %v14203_v48 = vadd.f32 %v6852_v49, %v4952_v44 }
 0xae6   : > { %v14205_v54 = vpop.eup %11865  ;;  %v11360_v50 = vpop.f32.mrf.mxu0 }
 0xae7   : > { %v14207_v46 = vadd.f32 %v11360_v50, %v4963_v32  ;;  %v7812_v4 = vsel %vm1994_vm3, %v14205_v54, 0.0 }
 0xae8   : > { %v14211_v25 = vpop.f32.mrf.mxu0  ;;  %7813 = vadd.xlane.f32.xlu0 %v7812_v4 }
 0xae9   : > { %8115 = vrot.lane.b32.xlu1 %v15396_v23, %s12008_s21 }
 0xaea   : > { %v14215_v10 = vpop.f32.mrf.mxu0 }
 0xaeb   : > { %v7695_v1 = vsel %vm1994_vm3, %v14215_v10, -inf }
 0xaec   : > { %v11389_v59 = vpop.f32.mrf.mxu0  ;;  %7696 = vmax.xlane.f32.xlu0 %v7695_v1 }
 0xaed   : > { %8211 = vrot.lane.b32.xlu1 %v15397_v40, %s12008_s21 }
 0xaee   : > { %v7130_v61 = vpop.f32.mrf.mxu0 }
 0xaef   : > { %v15401_v61 = vld [vmem:[#allocation26_spill] sm:$0xff] }
 0xaf0   : > { %v11390_v24 = vpop.f32.mrf.mxu0 }
 0xaf1   : > { %8307 = vrot.lane.b32.xlu1 %v15398_v52, %s12008_s21  ;;  %v7724_v24 = vpop.xlane.xlu1 %7723 }
 0xaf2   : > { %v14223_v14 = vpop.f32.mrf.mxu0  ;;  %v7744_v52 = vsub.f32 %v14100_v43, %v7724_v24 }
 0xaf3   : > { %v7701_v3 = vsel %vm1994_vm3, %v14223_v14, -inf }
 0xaf4   : > { %v11401_v15 = vpop.f32.mrf.mxu0  ;;  %7702 = vmax.xlane.f32.xlu0 %v7701_v3  ;;  %v7773_v3 = vmul.f32 1.442695, %v7744_v52 }
 0xaf5   : > { %8355 = vrot.lane.b32.xlu1 %v15399_v21, %s12008_s21 }
 0xaf6   : > { %v7230_v22 = vpop.f32.mrf.mxu0  ;;  %11867 = vpow2.f32 %v7773_v3 }
 0xaf8   : > { %v11402_v11 = vpop.f32.mrf.mxu0 }
 0xaf9   : > { %8403 = vrot.lane.b32.xlu1 %v15400_v36, %s12008_s21  ;;  %v14252_v36 = vpop.xlane.xlu1 %7729 }
 0xafa   : > { %v14231_v39 = vpop.f32.mrf.mxu0 }
 0xafb   : > { %v7707_v7 = vsel %vm1994_vm3, %v14231_v39, -inf }
 0xafc   : > { %v11413_v45 = vpop.f32.mrf.mxu0  ;;  %7708 = vmax.xlane.f32.xlu0 %v7707_v7 }
 0xafe   : > { %v7330_v51 = vpop.f32.mrf.mxu0 }
 0xb00   : > { %v11414_v6 = vpop.f32.mrf.mxu0 }
 0xb02   : > { %v14235_v20 = vpop.f32.mrf.mxu0 }
 0xb03   : > { %v7713_v30 = vsel %vm1994_vm3, %v14235_v20, -inf  ;;  %v14248_v21 = vpop.eup %11867 }
 0xb04   : > { %v11425_v44 = vpop.f32.mrf.mxu0  ;;  %7714 = vmax.xlane.f32.xlu0 %v7713_v30  ;;  %v7818_v11 = vsel %vm1994_vm3, %v14248_v21, 0.0 }
 0xb05   : > { %v7977_v44 = vsel %vm2190_vm2, %v14125_v12, 0 }
 0xb06   : > { %v7430_v49 = vpop.f32.mrf.mxu0 }
 0xb08   : > { %v11426_v28 = vpop.f32.mrf.mxu0 }
 0xb0a   : > { %v14239_v0 = vpop.f32.mrf.mxu0 }
 0xb0b   : > { %v7719_v15 = vsel %vm1994_vm3, %v14239_v0, -inf }
 0xb0c   : > { %v11437_v32 = vpop.f32.mrf.mxu0 }
 0xb0e   : > { %v7530_v50 = vpop.f32.mrf.mxu0 }
 0xb10   : > { %v11438_v4 = vpop.f32.mrf.mxu0 }
 0xb12   : > { %v14241_v23 = vpop.f32.mrf.mxu0 }
 0xb13   : > { %v7725_v7 = vsel %vm1994_vm3, %v14241_v23, -inf }
 0xb14   : > { %v11449_v1 = vpop.f32.mrf.mxu0 }
 0xb16   : > { %v7630_v59 = vpop.f32.mrf.mxu0 }
 0xb18   : > { %v11450_v40 = vpop.f32.mrf.mxu0 }
 0xb1a   : > { %8067 = vrot.lane.b32.xlu0 %v15401_v61, %s12008_s21 }
 0xb39   : > { %v7781_v22 = vpop.xlane.xlu0 %7780  ;;  %7720 = vmax.xlane.f32.xlu0 %v7719_v15 }
 0xb3a   : > { %11869 = vrcp.f32 %v7781_v22 }
 0xb3d   : > { %7819 = vadd.xlane.f32.xlu0 %v7818_v11 }
 0xb41   : > { %7726 = vmax.xlane.f32.xlu0 %v7725_v7  ;;  %v7784_v43 = vpop.xlane.xlu1 %7783 }
 0xb42   : > { %11871 = vrcp.f32 %v7784_v43 }
 0xb47   : > { %v11870_v45 = vpop.eup %11869 }
 0xb48   : > { %v7843_v51 = vmul.f32 %v11870_v45, %v14132_v16  ;;  %v8025_v16 = vsel %vm2190_vm2, %v14128_v42, 0 }
 0xb49   : > { %v7787_v6 = vpop.xlane.xlu0 %7786 }
 0xb4a   : > { %v7859_v30 = vpack.c.bf16 %v7843_v51, %v7843_v51  ;;  %11873 = vrcp.f32 %v7787_v6 }
 0xb4c   : > { %11460 = vmatmul.mubr.msk.bf16.vlgmr.msra.gmra.mxu0 %vm1994_vm3, %v7859_v30 }
 0xb4d   : > { %11470 = vmatpush3.bf16.msra.mxu0 %v7977_v44  ;;  %11471 = vmatprep.mubr.msk.bf16.mxu0 %vm12005_vm0, %v15248_v35 }
 0xb4e   : > { %11481 = vmatprep.subr.bf16.mxu0 %v15248_v35 }
 0xb4f   : > { %v11872_v49 = vpop.eup %11871 }
 0xb50   : > { %v7844_v28 = vmul.f32 %v11872_v49, %v14137_v62 }
 0xb51   : > { %v7790_v32 = vpop.xlane.xlu1 %7789 }
 0xb52   : > { %v7860_v50 = vpack.c.bf16 %v7844_v28, %v7844_v28  ;;  %11875 = vrcp.f32 %v7790_v32 }
 0xb54   : > { %11466 = vmatmul.mubr.msk.bf16.vlgmr.msra.gmra.mxu1 %vm1994_vm3, %v7860_v50 }
 0xb55   : > { %11476 = vmatpush3.bf16.msra.mxu1 %v8025_v16  ;;  %11477 = vmatprep.mubr.msk.bf16.mxu1 %vm12005_vm0, %v15248_v35 }
 0xb56   : > { %11487 = vmatprep.subr.bf16.mxu1 %v15248_v35 }
 0xb57   : > { %v11874_v12 = vpop.eup %11873 }
 0xb58   : > { %v7845_v4 = vmul.f32 %v11874_v12, %v14142_v57 }
 0xb59   : > { %v7796_v1 = vpop.xlane.xlu1 %7795 }
 0xb5a   : > { %v7861_v59 = vpack.c.bf16 %v7845_v4, %v7845_v4  ;;  %11877 = vrcp.f32 %v7796_v1 }
 0xb5c   : > { %11472 = vmatmul.mubr.msk.bf16.vlgmr.msra.gmra.mxu0 %vm1994_vm3, %v7861_v59 }
 0xb5d   : > { %11483 = vmatprep.mubr.msk.bf16.mxu0 %vm12005_vm0, %v15248_v35 }
 0xb5f   : > { %v11876_v42 = vpop.eup %11875 }
 0xb60   : > { %v7846_v62 = vmul.f32 %v11876_v42, %v14159_v17 }
 0xb61   : > { %v7802_v40 = vpop.xlane.xlu1 %7801 }
 0xb62   : > { %v7862_v61 = vpack.c.bf16 %v7846_v62, %v7846_v62  ;;  %11879 = vrcp.f32 %v7802_v40 }
 0xb64   : > { %11478 = vmatmul.mubr.msk.bf16.vlgmr.msra.gmra.mxu1 %vm1994_vm3, %v7862_v61 }
 0xb65   : > { %v8116_v24 = vpop.permute.xlu1 %8115  ;;  %11489 = vmatprep.mubr.msk.bf16.mxu1 %vm12005_vm0, %v15248_v35 }
 0xb66   : > { %v8121_v57 = vsel %vm2190_vm2, %v8116_v24, 0 }
 0xb67   : > { %v11878_v52 = vpop.eup %11877  ;;  %11488 = vmatpush3.bf16.msra.mxu1 %v8121_v57 }
 0xb68   : > { %v7848_v3 = vmul.f32 %v11878_v52, %v14166_v31  ;;  %11499 = vmatprep.subr.bf16.mxu1 %v15248_v35 }
 0xb69   : > { %v7808_v15 = vpop.xlane.xlu0 %7807  ;;  %v8212_v22 = vpop.permute.xlu1 %8211 }
 0xb6a   : > { %v7864_v17 = vpack.c.bf16 %v7848_v3, %v7848_v3  ;;  %11881 = vrcp.f32 %v7808_v15  ;;  %v8217_v11 = vsel %vm2190_vm2, %v8212_v22, 0  ;;  %v7746_v15 = vsub.f32 %v14115_v33, %v14252_v36 }
 0xb6c   : > { %11490 = vmatmul.mubr.msk.bf16.vlgmr.msra.gmra.mxu1 %vm1994_vm3, %v7864_v17  ;;  %v7777_v17 = vmul.f32 1.442695, %v7746_v15 }
 0xb6d   : > { %11500 = vmatpush3.bf16.msra.mxu1 %v8217_v11  ;;  %v8308_v7 = vpop.permute.xlu1 %8307  ;;  %11501 = vmatprep.mubr.msk.bf16.mxu1 %vm12005_vm0, %v15248_v35 }
 0xb6e   : > { %11511 = vmatprep.subr.bf16.mxu1 %v15248_v35  ;;  %v8313_v30 = vsel %vm2190_vm2, %v8308_v7, 0 }
 0xb6f   : > { %v11880_v43 = vpop.eup %11879 }
 0xb70   : > { %v7850_v31 = vmul.f32 %v11880_v43, %v14183_v55 }
 0xb71   : > { %v7814_v45 = vpop.xlane.xlu0 %7813  ;;  %v14287_v6 = vpop.permute.xlu1 %8355 }
 0xb72   : > { %v7866_v51 = vpack.c.bf16 %v7850_v31, %v7850_v31  ;;  %11883 = vrcp.f32 %v7814_v45 }
 0xb74   : > { %11502 = vmatmul.mubr.msk.bf16.vlgmr.msra.gmra.mxu1 %vm1994_vm3, %v7866_v51 }
 0xb75   : > { %11512 = vmatpush3.bf16.msra.mxu1 %v8313_v30  ;;  %v7697_v44 = vpop.xlane.xlu0 %7696  ;;  %11513 = vmatprep.mubr.msk.bf16.mxu1 %vm12005_vm0, %v15248_v35  ;;  %v8404_v50 = vpop.permute.xlu1 %8403 }
 0xb76   : > { %v7735_v49 = vsub.f32 %v14215_v10, %v7697_v44  ;;  %11523 = vmatprep.subr.bf16.mxu1 %v15248_v35  ;;  %v8409_v12 = vsel %vm2190_vm2, %v8404_v50, 0 }
 0xb77   : > { %v11882_v28 = vpop.eup %11881 }
 0xb78   : > { %v7852_v55 = vmul.f32 %v11882_v28, %v14189_v27  ;;  %v7755_v32 = vmul.f32 1.442695, %v7735_v49 }
 0xb7a   : > { %v7868_v16 = vpack.c.bf16 %v7852_v55, %v7852_v55  ;;  %11885 = vpow2.f32 %v7755_v32 }
 0xb7c   : > { %11514 = vmatmul.mubr.msk.bf16.vlgmr.msra.gmra.mxu1 %vm1994_vm3, %v7868_v16 }
 0xb7d   : > { %11524 = vmatpush3.bf16.msra.mxu1 %v8409_v12  ;;  %11525 = vmatprep.mubr.msk.bf16.mxu1 %vm12005_vm0, %v15248_v35  ;;  %v7703_v1 = vpop.xlane.xlu0 %7702 }
 0xb7e   : > { %11535 = vmatprep.subr.bf16.mxu1 %v15248_v35  ;;  %v7737_v3 = vsub.f32 %v14223_v14, %v7703_v1 }
 0xb7f   : > { %v11884_v10 = vpop.eup %11883 }
 0xb80   : > { %v7854_v4 = vmul.f32 %v11884_v10, %v14205_v54  ;;  %v7759_v22 = vmul.f32 1.442695, %v7737_v3 }
 0xb82   : > { %v7870_v59 = vpack.c.bf16 %v7854_v4, %v7854_v4 }
 0xb84   : > { %11526 = vmatmul.mubr.msk.bf16.vlgmr.msra.gmra.mxu1 %vm1994_vm3, %v7870_v59 }
 0xb85   : > { %v7709_v27 = vpop.xlane.xlu0 %7708  ;;  %11537 = vmatprep.mubr.msk.bf16.mxu1 %vm12005_vm0, %v15248_v35 }
 0xb86   : > { %v7739_v42 = vsub.f32 %v14231_v39, %v7709_v27 }
 0xb87   : > { %v14306_v62 = vpop.eup %11885 }
 0xb88   : > { %v7763_v40 = vmul.f32 1.442695, %v7739_v42  ;;  %v7791_v61 = vsel %vm1994_vm3, %v14306_v62, 0.0 }
 0xb89   : > { %7792 = vadd.xlane.f32.xlu0 %v7791_v61 }
 0xb8a   : > { %11887 = vpow2.f32 %v7763_v40 }
 0xb8b   : > { %11889 = vpow2.f32 %v7759_v22 }
 0xb8c   : > { %11891 = vpow2.f32 %v7777_v17 }
 0xb8d   : > { %v7715_v24 = vpop.xlane.xlu0 %7714 }
 0xb8e   : > { %v7741_v11 = vsub.f32 %v14235_v20, %v7715_v24 }
 0xb90   : > { %v7767_v7 = vmul.f32 1.442695, %v7741_v11 }
 0xb91   : > { %v8068_v54 = vpop.permute.xlu0 %8067 }
 0xb92   : > { %v8073_v57 = vsel %vm2190_vm2, %v8068_v54, 0  ;;  %11893 = vpow2.f32 %v7767_v7 }
 0xb93   : > { %11482 = vmatpush3.bf16.msra.mxu0 %v8073_v57 }
 0xb94   : > { %11493 = vmatprep.subr.bf16.mxu0 %v15248_v35 }
 0xb97   : > { %v14312_v52 = vpop.eup %11887 }
 0xb98   : > { %v7803_v39 = vsel %vm1994_vm3, %v14312_v52, 0.0  ;;  %v14324_v43 = vpop.eup %11889 }
 0xb99   : > { %7804 = vadd.xlane.f32.xlu1 %v7803_v39  ;;  %v14328_v14 = vpop.eup %11891 }
 0xb9a   : > { %v7824_v33 = vsel %vm1994_vm3, %v14328_v14, 0.0 }
 0xb9f   : > { %8163 = vrot.lane.b32.xlu0 %v15362_v34, %s12008_s21  ;;  %v7797_v34 = vsel %vm1994_vm3, %v14324_v43, 0.0  ;;  %v14333_v20 = vpop.eup %11893 }
 0xba0   : > { %v7809_v49 = vsel %vm1994_vm3, %v14333_v20, 0.0 }
 0xbaa   : > { %8499 = vrot.lane.b32.xlu1 %v12903_v53, %s12008_s21 }
 0xbbe   : > { %7798 = vadd.xlane.f32.xlu0 %v7797_v34 }
 0xbc2   : > { %v7721_v36 = vpop.xlane.xlu0 %7720  ;;  %7825 = vadd.xlane.f32.xlu0 %v7824_v33 }
 0xbc3   : > { %v7743_v53 = vsub.f32 %v14239_v0, %v7721_v36 }
 0xbc5   : > { %v7771_v31 = vmul.f32 1.442695, %v7743_v53 }
 0xbc6   : > { %v7820_v45 = vpop.xlane.xlu0 %7819 }
 0xbc7   : > { %11895 = vpow2.f32 %v7771_v31 }
 0xbca   : > { %v7727_v51 = vpop.xlane.xlu0 %7726 }
 0xbcb   : > { %v7745_v30 = vsub.f32 %v14241_v23, %v7727_v51 }
 0xbcd   : > { %v7775_v44 = vmul.f32 1.442695, %v7745_v30 }
 0xbce   : > { %7810 = vadd.xlane.f32.xlu1 %v7809_v49 }
 0xbcf   : > { %11897 = vpow2.f32 %v7775_v44 }
 0xbd4   : > { %v14338_v28 = vpop.eup %11895 }
 0xbd5   : > { %v7815_v55 = vsel %vm1994_vm3, %v14338_v28, 0.0 }
 0xbd6   : > { %7816 = vadd.xlane.f32.xlu1 %v7815_v55 }
 0xbd8   : > { %8259 = vrot.lane.b32.xlu0 %v15363_v8, %s12008_s21 }
 0xbdc   : > { %v14344_v0 = vpop.eup %11897  ;;  %8451 = vrot.lane.b32.xlu0 %v12837_v29, %s12008_s21 }
 0xbdd   : > { %v7821_v23 = vsel %vm1994_vm3, %v14344_v0, 0.0 }
 0xbde   : > { %7822 = vadd.xlane.f32.xlu1 %v7821_v23 }
 0xbe0   : > { %8547 = vrot.lane.b32.xlu0 %v12858_v60, %s12008_s21 }
 0xbef   : > { %8595 = vrot.lane.b32.xlu1 %v12920_v37, %s12008_s21 }
 0xc0c   : > { %v14354_v32 = vpop.f32.mrf.mxu0 }
 0xc0e   : > { %v11461_v50 = vpop.f32.mrf.mxu0 }
 0xc10   : > { %v7920_v16 = vpop.f32.mrf.mxu0 }
 0xc12   : > { %v11462_v8 = vpop.f32.mrf.mxu0  ;;  %v7793_v12 = vpop.xlane.xlu0 %7792 }
 0xc13   : > { %11899 = vrcp.f32 %v7793_v12 }
 0xc14   : > { %v14356_v10 = vpop.f32.mrf.mxu1  ;;  %11901 = vrcp.f32 %v7820_v45 }
 0xc15   : > { %v8643_v29 = vpack.c.bf16 %v14356_v10, %v14354_v32 }
 0xc16   : > { %v11467_v4 = vpop.f32.mrf.mxu1  ;;  %v8164_v61 = vpop.permute.xlu0 %8163 }
 0xc17   : > { %v8169_v22 = vsel %vm2190_vm2, %v8164_v61, 0 }
 0xc18   : > { %v7968_v1 = vpop.f32.mrf.mxu1 }
 0xc1a   : > { %v11468_v59 = vpop.f32.mrf.mxu1 }
 0xc1c   : > { %v14360_v60 = vpop.f32.mrf.mxu0 }
 0xc1e   : > { %v11473_v27 = vpop.f32.mrf.mxu0 }
 0xc20   : > { %v11900_v37 = vpop.eup %11899  ;;  %v8016_v42 = vpop.f32.mrf.mxu0 }
 0xc21   : > { %v7847_v40 = vmul.f32 %v11900_v37, %v14306_v62  ;;  %v11902_v24 = vpop.eup %11901 }
 0xc22   : > { %v11474_v54 = vpop.f32.mrf.mxu0  ;;  %v7805_v57 = vpop.xlane.xlu1 %7804  ;;  %v7856_v15 = vmul.f32 %v11902_v24, %v14248_v21 }
 0xc23   : > { %v7863_v39 = vpack.c.bf16 %v7847_v40, %v7847_v40 }
 0xc24   : > { %v14363_v3 = vpop.f32.mrf.mxu1  ;;  %v7872_v21 = vpack.c.bf16 %v7856_v15, %v7856_v15 }
 0xc25   : > { %v8644_v17 = vpack.c.bf16 %v14363_v3, %v14360_v60  ;;  %11484 = vmatmul.mubr.msk.bf16.vlgmr.msra.gmra.mxu0 %vm1994_vm3, %v7863_v39 }
 0xc26   : > { %11494 = vmatpush3.bf16.msra.mxu0 %v8169_v22  ;;  %v8500_v11 = vpop.permute.xlu1 %8499  ;;  %v11479_v7 = vpop.f32.mrf.mxu1  ;;  %11495 = vmatprep.mubr.msk.bf16.mxu0 %vm12005_vm0, %v15248_v35  ;;  %v8361_v22 = vsel %vm2190_vm2, %v14287_v6, 0 }
 0xc27   : > { %v8505_v62 = vsel %vm2190_vm2, %v8500_v11, 0  ;;  %11505 = vmatprep.subr.bf16.mxu0 %v15248_v35 }
 0xc28   : > { %v8064_v34 = vpop.f32.mrf.mxu1  ;;  %11536 = vmatpush3.bf16.msra.mxu1 %v8505_v62 }
 0xc29   : > { %11547 = vmatprep.subr.bf16.mxu1 %v15248_v35 }
 0xc2a   : > { %v11480_v33 = vpop.f32.mrf.mxu1 }
 0xc2b   : > { %11538 = vmatmul.mubr.msk.bf16.vlgmr.msra.gmra.mxu1 %vm1994_vm3, %v7872_v21 }
 0xc2c   : > { %v14376_v36 = vpop.f32.mrf.mxu1  ;;  %11549 = vmatprep.mubr.msk.bf16.mxu1 %vm12005_vm0, %v15248_v35 }
 0xc2e   : > { %v11491_v53 = vpop.f32.mrf.mxu1 }
 0xc30   : > { %v8160_v31 = vpop.f32.mrf.mxu1 }
 0xc32   : > { %v11492_v45 = vpop.f32.mrf.mxu1 }
 0xc34   : > { %v14380_v51 = vpop.f32.mrf.mxu1 }
 0xc36   : > { %v11503_v30 = vpop.f32.mrf.mxu1 }
 0xc38   : > { %v8256_v44 = vpop.f32.mrf.mxu1 }
 0xc3a   : > { %v11504_v49 = vpop.f32.mrf.mxu1 }
 0xc3b   : > { %v11617_v49 = vld [vmem:[%s15133_s7 + $0x38] sm:$0xff]  }
 0xc3c   : > { %v14382_v55 = vpop.f32.mrf.mxu1 }
 0xc3e   : > { %v11515_v23 = vpop.f32.mrf.mxu1 }
 0xc40   : > { %v8352_v50 = vpop.f32.mrf.mxu1 }
 0xc42   : > { %v11516_v16 = vpop.f32.mrf.mxu1 }
 0xc44   : > { %v14384_v8 = vpop.f32.mrf.mxu1 }
 0xc46   : > { %v11527_v12 = vpop.f32.mrf.mxu1 }
 0xc47   : > { %v7799_v4 = vpop.xlane.xlu0 %7798  ;;  %v11618_v12 = vld [vmem:[%s15133_s7 + $0x30] sm:$0xff]  }
 0xc48   : > { %11903 = vrcp.f32 %v7799_v4  ;;  %v8448_v1 = vpop.f32.mrf.mxu1 }
 0xc49   : > { %11905 = vrcp.f32 %v7805_v57 }
 0xc4a   : > { %v11528_v59 = vpop.f32.mrf.mxu1 }
 0xc4b   : > { %v7826_v27 = vpop.xlane.xlu0 %7825 }
 0xc4f   : > { %v8260_v40 = vpop.permute.xlu0 %8259 }
 0xc50   : > { %v8265_v39 = vsel %vm2190_vm2, %v8260_v40, 0 }
 0xc53   : > { %v8452_v62 = vpop.permute.xlu0 %8451 }
 0xc54   : > { %v8457_v6 = vsel %vm2190_vm2, %v8452_v62, 0 }
 0xc55   : > { %v11904_v37 = vpop.eup %11903 }
 0xc56   : > { %v7849_v42 = vmul.f32 %v11904_v37, %v14324_v43  ;;  %v11906_v54 = vpop.eup %11905 }
 0xc57   : > { %v7811_v61 = vpop.xlane.xlu1 %7810  ;;  %v7851_v57 = vmul.f32 %v11906_v54, %v14312_v52  ;;  %v8548_v44 = vpop.permute.xlu0 %8547 }
 0xc58   : > { %v7865_v24 = vpack.c.bf16 %v7849_v42, %v7849_v42  ;;  %11907 = vrcp.f32 %v7811_v61  ;;  %v8553_v23 = vsel %vm2190_vm2, %v8548_v44, 0  ;;  %v15402_v44 = vld [vmem:[#allocation34_spill] sm:$0xff] }
 0xc59   : > { %11909 = vrcp.f32 %v7826_v27  ;;  %v7867_v43 = vpack.c.bf16 %v7851_v57, %v7851_v57 }
 0xc5a   : > { %11496 = vmatmul.mubr.msk.bf16.vlgmr.msra.gmra.mxu0 %vm1994_vm3, %v7865_v24 }
 0xc5b   : > { %11506 = vmatpush3.bf16.msra.mxu0 %v8265_v39  ;;  %11507 = vmatprep.mubr.msk.bf16.mxu0 %vm12005_vm0, %v15248_v35 }
 0xc5c   : > { %11517 = vmatprep.subr.bf16.mxu0 %v15248_v35 }
 0xc5f   : > { %v7817_v15 = vpop.xlane.xlu1 %7816 }
 0xc60   : > { %11911 = vrcp.f32 %v7817_v15 }
 0xc62   : > { %11508 = vmatmul.mubr.msk.bf16.vlgmr.msra.gmra.mxu0 %vm1994_vm3, %v7867_v43 }
 0xc63   : > { %11518 = vmatpush3.bf16.msra.mxu0 %v8361_v22  ;;  %11519 = vmatprep.mubr.msk.bf16.mxu0 %vm12005_vm0, %v15248_v35 }
 0xc64   : > { %11529 = vmatprep.subr.bf16.mxu0 %v15248_v35 }
 0xc65   : > { %v11908_v11 = vpop.eup %11907 }
 0xc66   : > { %v7853_v7 = vmul.f32 %v11908_v11, %v14333_v20  ;;  %v11910_v52 = vpop.eup %11909 }
 0xc67   : > { %v7823_v34 = vpop.xlane.xlu1 %7822  ;;  %v7858_v33 = vmul.f32 %v11910_v52, %v14328_v14 }
 0xc68   : > { %v7869_v21 = vpack.c.bf16 %v7853_v7, %v7853_v7  ;;  %11913 = vrcp.f32 %v7823_v34 }
 0xc69   : > { %v7874_v45 = vpack.c.bf16 %v7858_v33, %v7858_v33 }
 0xc6a   : > { %11520 = vmatmul.mubr.msk.bf16.vlgmr.msra.gmra.mxu0 %vm1994_vm3, %v7869_v21 }
 0xc6b   : > { %11530 = vmatpush3.bf16.msra.mxu0 %v8457_v6  ;;  %v8596_v53 = vpop.permute.xlu1 %8595  ;;  %11531 = vmatprep.mubr.msk.bf16.mxu0 %vm12005_vm0, %v15248_v35 }
 0xc6c   : > { %v8601_v31 = vsel %vm2190_vm2, %v8596_v53, 0  ;;  %11541 = vmatprep.subr.bf16.mxu0 %v15248_v35 }
 0xc6d   : > { %v11912_v20 = vpop.eup %11911  ;;  %11548 = vmatpush3.bf16.msra.mxu1 %v8601_v31 }
 0xc6e   : > { %v7855_v30 = vmul.f32 %v11912_v20, %v14338_v28 }
 0xc70   : > { %v7871_v14 = vpack.c.bf16 %v7855_v30, %v7855_v30  ;;  %11550 = vmatmul.mubr.msk.bf16.vlgmr.msra.gmra.mxu1 %vm1994_vm3, %v7874_v45 }
 0xc72   : > { %11532 = vmatmul.mubr.msk.bf16.vlgmr.msra.gmra.mxu0 %vm1994_vm3, %v7871_v14  ;;  %v15403_v14 = vld [vmem:[#allocation5_spill] sm:$0xff] }
 0xc73   : > { %11542 = vmatpush3.bf16.msra.mxu0 %v8553_v23  ;;  %11543 = vmatprep.mubr.msk.bf16.mxu0 %vm12005_vm0, %v15248_v35 }
 0xc74   : > { %11553 = vmatprep.subr.bf16.mxu0 %v11617_v49 }
 0xc75   : > { %v11914_v50 = vpop.eup %11913 }
 0xc76   : > { %v7857_v28 = vmul.f32 %v11914_v50, %v14344_v0 }
 0xc78   : > { %v7873_v16 = vpack.c.bf16 %v7857_v28, %v7857_v28  ;;  %v14446_v28 = vld [vmem:[%s15134_s8] ss:$0 sm:$0xff] }
 0xc7a   : > { %11544 = vmatmul.mubr.msk.bf16.vlgmr.msra.gmra.mxu0 %vm1994_vm3, %v7873_v16 }
 0xc7b   : > { %11554 = vmatpush3.bf16.msra.mxu0 %v11617_v49  ;;  %11557 = vmatprep.mubr.msk.bf16.mxu0 %vm1257_vm1, %v8643_v29  ;;  %v4907_v49 = vadd.f32 %v15403_v14, %v15402_v44 }
 0xc7c   : > { %11555 = vmatprep.subr.bf16.mxu0 %v11618_v12 }
 0xc7f   : > { %11556 = vmatpush3.bf16.msra.mxu0 %v11618_v12  ;;  %v6868_v12 = vadd.f32 %v14146_v26, %v4907_v49 }
 0xc82   : > { %11558 = vmatmul.mubr.msk.bf16.vlgmr.msra.gmra.mxu0 %vm1257_vm1, %v8644_v17 }
 0xce5   : > { %v8109_v35 = vpop.f32.mrf.mxu0 }
 0xce6   : > { %v8645_v0 = vpack.c.bf16 %v14376_v36, %v8109_v35 }
 0xce7   : > { %v11485_v4 = vpop.f32.mrf.mxu0 }
 0xce8   : > { %11561 = vmatprep.mubr.msk.bf16.mxu0 %vm1257_vm1, %v8645_v0 }
 0xce9   : > { %v8112_v1 = vpop.f32.mrf.mxu0 }
 0xceb   : > { %v11486_v59 = vpop.f32.mrf.mxu0  ;;  %v8541_v27 = vpop.f32.mrf.mxu1 }
 0xcec   : > { %v11980_v59 = vld [vmem:[%s12143_s23] sm:$0xff] }
 0xced   : > { %v11539_v37 = vpop.f32.mrf.mxu1 }
 0xcef   : > { %v8544_v32 = vpop.f32.mrf.mxu1 }
 0xcf0   : > { %v11981_v32 = vld [vmem:[%s12143_s23 + $0x8] sm:$0xff] }
 0xcf1   : > { %v11540_v10 = vpop.f32.mrf.mxu1 }
 0xcf2   : > { %v11982_v10 = vld [vmem:[%s12143_s23 + $0x10] sm:$0xff] }
 0xd1a   : > { %v8205_v29 = vpop.f32.mrf.mxu0 }
 0xd1b   : > { %v8646_v42 = vpack.c.bf16 %v14380_v51, %v8205_v29 }
 0xd1c   : > { %v11497_v40 = vpop.f32.mrf.mxu0 }
 0xd1d   : > { %11562 = vmatmul.mubr.msk.bf16.gmra.mxu0 %vm1257_vm1, %v8646_v42 }
 0xd1e   : > { %v8208_v60 = vpop.f32.mrf.mxu0 }
 0xd20   : > { %v11498_v3 = vpop.f32.mrf.mxu0 }
 0xd21   : > { %v15404_v3 = vld [vmem:[#allocation41_spill] sm:$0xff] }
 0xd22   : > { %v8301_v17 = vpop.f32.mrf.mxu0 }
 0xd23   : > { %v8647_v36 = vpack.c.bf16 %v14382_v55, %v8301_v17  ;;  %v15405_v17 = vld [vmem:[#allocation10_spill] sm:$0xff] }
 0xd24   : > { %v11509_v61 = vpop.f32.mrf.mxu0 }
 0xd25   : > { %11565 = vmatprep.mubr.msk.bf16.mxu0 %vm1257_vm1, %v8647_v36  ;;  %v4923_v36 = vadd.f32 %v15405_v17, %v15404_v3 }
 0xd26   : > { %v8304_v24 = vpop.f32.mrf.mxu0 }
 0xd28   : > { %v11510_v54 = vpop.f32.mrf.mxu0 }
 0xd2a   : > { %v8397_v39 = vpop.f32.mrf.mxu0 }
 0xd2b   : > { %v8648_v57 = vpack.c.bf16 %v14384_v8, %v8397_v39  ;;  %v6872_v39 = vadd.f32 %v14170_v47, %v4923_v36 }
 0xd2c   : > { %v11521_v15 = vpop.f32.mrf.mxu0 }
 0xd2d   : > { %11566 = vmatmul.mubr.msk.bf16.gmra.mxu0 %vm1257_vm1, %v8648_v57 }
 0xd2e   : > { %v8400_v51 = vpop.f32.mrf.mxu0 }
 0xd30   : > { %v11522_v43 = vpop.f32.mrf.mxu0  ;;  %v8637_v22 = vpop.f32.mrf.mxu1 }
 0xd32   : > { %v8493_v11 = vpop.f32.mrf.mxu0  ;;  %v11551_v7 = vpop.f32.mrf.mxu1 }
 0xd33   : > { %v8649_v52 = vpack.c.bf16 %v8541_v27, %v8493_v11  ;;  %v11984_v11 = vld [vmem:[%s12143_s23 + $0x20] sm:$0xff] }
 0xd34   : > { %v11533_v62 = vpop.f32.mrf.mxu0  ;;  %v8640_v34 = vpop.f32.mrf.mxu1 }
 0xd35   : > { %11569 = vmatprep.mubr.msk.bf16.mxu0 %vm1257_vm1, %v8649_v52  ;;  %v11985_v52 = vld [vmem:[%s12143_s23 + $0x28] sm:$0xff]  ;;  %v11986_v62 = vld [vmem:[%s12143_s23 + $0x30] sm:$0xff] }
 0xd36   : > { %v8496_v55 = vpop.f32.mrf.mxu0  ;;  %v11552_v21 = vpop.f32.mrf.mxu1 }
 0xd38   : > { %v11534_v33 = vpop.f32.mrf.mxu0 }
 0xd3a   : > { %v8589_v6 = vpop.f32.mrf.mxu0 }
 0xd3b   : > { %v8650_v53 = vpack.c.bf16 %v8637_v22, %v8589_v6  ;;  %v15406_v6 = vld [vmem:[#allocation45_spill] sm:$0xff] }
 0xd3c   : > { %v11545_v31 = vpop.f32.mrf.mxu0 }
 0xd3d   : > { %11570 = vmatmul.mubr.msk.bf16.gmra.mxu0 %vm1257_vm1, %v8650_v53  ;;  %v15407_v53 = vld [vmem:[#allocation12_spill] sm:$0xff] }
 0xd3e   : > { %v8592_v8 = vpop.f32.mrf.mxu0  ;;  %v4939_v31 = vadd.f32 %v15407_v53, %v15406_v6 }
 0xd40   : > { %v11546_v20 = vpop.f32.mrf.mxu0 }
 0xd42   : > { %v11559_v45 = vpop.f32.mrf.mxu0 }
 0xd43   : > { %v8786_v23 = vadd.f32 %v11559_v45, %v14113_v2 }
 0xd44   : > { %v8721_v30 = vpop.f32.mrf.mxu0 }
 0xd45   : > { %v8784_v50 = vadd.f32 %v8721_v30, %v14121_v58  ;;  %v8809_v4 = vadd.f32 %v14446_v28, %v8786_v23  ;;  %v6876_v30 = vadd.f32 %v14193_v19, %v4939_v31 }
 0xd46   : > { %v11560_v16 = vpop.f32.mrf.mxu0 }
 0xd47   : > { %v8807_v35 = vadd.f32 %v14446_v28, %v8784_v50  ;;  %v8787_v1 = vadd.f32 %v11560_v16, %v14123_v63  ;;  %v14462_v29 = vadd.f32 %v11982_v10, %v8809_v4  ;;  %v11983_v63 = vld [vmem:[%s12143_s23 + $0x18] sm:$0xff]  ;;  %v11988_v16 = vld [vmem:[%s12143_s23 + $0x40] sm:$0xff] }
 0xd48   : > { %v8724_v0 = vpop.f32.mrf.mxu0 }
 0xd49   : > { %v8785_v2 = vadd.f32 %v8724_v0, %v6868_v12  ;;  %v14453_v58 = vadd.f32 %v11980_v59, %v8807_v35  ;;  %v8810_v37 = vadd.f32 %v14446_v28, %v8787_v1  ;;  %v11989_v35 = vld [vmem:[%s12143_s23 + $0x48] sm:$0xff]  ;;  %v11990_v0 = vld [vmem:[%s12143_s23 + $0x50] sm:$0xff] }
 0xd4b   : > { %v8808_v27 = vadd.f32 %v14446_v28, %v8785_v2  ;;  %8841 = vadd.xlane.f32.xlu0 %v14453_v58  ;;  %v14467_v42 = vadd.f32 %v11983_v63, %v8810_v37  ;;  %v15408_v37 = vld [vmem:[#allocation49_spill] sm:$0xff] }
 0xd4d   : > { %v14459_v26 = vadd.f32 %v11981_v32, %v8808_v27  ;;  %v15409_v32 = vld [vmem:[#allocation18_spill] sm:$0xff] }
 0xd4e   : > { %v4955_v10 = vadd.f32 %v15409_v32, %v15408_v37 }
 0xd4f   : > { %8843 = vadd.xlane.f32.xlu1 %v14459_v26  ;;  %8845 = vadd.xlane.f32.xlu0 %v14462_v29 }
 0xd50   : > { %v6880_v3 = vadd.f32 %v14211_v25, %v4955_v10 }
 0xd53   : > { %8847 = vadd.xlane.f32.xlu0 %v14467_v42 }
 0xdd4   : > { %v8842_v2 = vpop.xlane.xlu0 %8841 }
 0xdd5   : > { %v8874_v36 = vmul.f32 0.0078125, %v8842_v2  ;;  %v11640_v2 = vld [vmem:[%s15135_s9] ss:$8 sps:$4 sm:$0xff]  }
 0xdd7   : > { %v14536_v25 = vsub.f32 %v14453_v58, %v8874_v36 }
 0xddd   : > { %v11563_v40 = vpop.f32.mrf.mxu0 }
 0xdde   : > { %v8790_v61 = vadd.f32 %v11563_v40, %v14152_v13 }
 0xddf   : > { %v8737_v60 = vpop.f32.mrf.mxu0 }
 0xde0   : > { %v8788_v24 = vadd.f32 %v8737_v60, %v14156_v9  ;;  %v8813_v51 = vadd.f32 %v14446_v28, %v8790_v61  ;;  %v8846_v61 = vpop.xlane.xlu0 %8845 }
 0xde1   : > { %v11564_v54 = vpop.f32.mrf.mxu0 }
 0xde2   : > { %v8811_v57 = vadd.f32 %v14446_v28, %v8788_v24  ;;  %v8791_v43 = vadd.f32 %v11564_v54, %v14161_v56  ;;  %v14488_v34 = vadd.f32 %v11986_v62, %v8813_v51  ;;  %v11987_v56 = vld [vmem:[%s12143_s23 + $0x38] sm:$0xff]  ;;  %v8844_v54 = vpop.xlane.xlu1 %8843  ;;  %v11992_v51 = vld [vmem:[%s12143_s23 + $0x60] sm:$0xff] }
 0xde3   : > { %v8740_v15 = vpop.f32.mrf.mxu0 }
 0xde4   : > { %v8789_v22 = vadd.f32 %v8740_v15, %v6872_v39  ;;  %v14479_v7 = vadd.f32 %v11984_v11, %v8811_v57  ;;  %v8814_v9 = vadd.f32 %v14446_v28, %v8791_v43  ;;  %v8875_v43 = vmul.f32 0.0078125, %v8844_v54  ;;  %v8848_v62 = vpop.xlane.xlu0 %8847 }
 0xde6   : > { %v8812_v13 = vadd.f32 %v14446_v28, %v8789_v22  ;;  %8849 = vadd.xlane.f32.xlu0 %v14479_v7  ;;  %v14493_v55 = vadd.f32 %v11987_v56, %v8814_v9  ;;  %v8876_v22 = vmul.f32 0.0078125, %v8846_v61  ;;  %v8906_v56 = vmul.f32 %v14536_v25, %v14536_v25 }
 0xde7   : > { %v14550_v58 = vsub.f32 %v14459_v26, %v8875_v43 }
 0xde8   : > { %v14485_v47 = vadd.f32 %v11985_v52, %v8812_v13  ;;  %v11993_v13 = vld [vmem:[%s12143_s23 + $0x68] sm:$0xff] }
 0xde9   : > { %v8907_v31 = vmul.f32 %v14550_v58, %v14550_v58 }
 0xdea   : > { %8851 = vadd.xlane.f32.xlu1 %v14485_v47  ;;  %8853 = vadd.xlane.f32.xlu0 %v14488_v34 }
 0xded   : > { %v11567_v21 = vpop.f32.mrf.mxu0 }
 0xdee   : > { %8855 = vadd.xlane.f32.xlu1 %v14493_v55  ;;  %v8794_v8 = vadd.f32 %v11567_v21, %v14176_v38  ;;  %v14553_v21 = vsub.f32 %v14462_v29, %v8876_v22 }
 0xdef   : > { %v8753_v33 = vpop.f32.mrf.mxu0 }
 0xdf0   : > { %v8792_v20 = vadd.f32 %v8753_v33, %v14180_v41  ;;  %v8817_v49 = vadd.f32 %v14446_v28, %v8794_v8  ;;  %v11995_v33 = vld [vmem:[%s12143_s23 + $0x78] sm:$0xff]  ;;  %v8908_v26 = vmul.f32 %v14553_v21, %v14553_v21 }
 0xdf1   : > { %v11568_v45 = vpop.f32.mrf.mxu0  ;;  %v11619_v8 = vld [vmem:[%s15135_s9 + $0x70] ss:$8 sps:$4 sm:$0xff]  }
 0xdf2   : > { %v8815_v44 = vadd.f32 %v14446_v28, %v8792_v20  ;;  %v8795_v23 = vadd.f32 %v11568_v45, %v14185_v5  ;;  %v14514_v4 = vadd.f32 %v11990_v0, %v8817_v49  ;;  %v11991_v5 = vld [vmem:[%s12143_s23 + $0x58] sm:$0xff]  ;;  %v11624_v20 = vld [vmem:[%s15135_s9 + $0x64] ss:$8 sps:$4 sm:$0xff]   ;;  %v11622_v45 = vld [vmem:[%s15135_s9 + $0x60] ss:$8 sps:$4 sm:$0xff]  }
 0xdf3   : > { %v8756_v14 = vpop.f32.mrf.mxu0  ;;  %v11628_v49 = vld [vmem:[%s15135_s9 + $0x40] ss:$8 sps:$4 sm:$0xff]   ;;  %v11642_v0 = vld [vmem:[%s15135_s9 + $0x4] ss:$8 sps:$4 sm:$0xff]  }
 0xdf4   : > { %v8793_v50 = vadd.f32 %v8756_v14, %v6876_v30  ;;  %v14505_v12 = vadd.f32 %v11988_v16, %v8815_v44  ;;  %v8818_v41 = vadd.f32 %v14446_v28, %v8795_v23  ;;  %v11627_v30 = vld [vmem:[%s15135_s9 + $0x54] ss:$8 sps:$4 sm:$0xff]   ;;  %v11625_v44 = vld [vmem:[%s15135_s9 + $0x50] ss:$8 sps:$4 sm:$0xff]   ;;  %v11630_v14 = vld [vmem:[%s15135_s9 + $0x44] ss:$8 sps:$4 sm:$0xff]  }
 0xdf5   : > { %v11633_v23 = vld [vmem:[%s15135_s9 + $0x34] ss:$8 sps:$4 sm:$0xff]   ;;  %v11636_v16 = vld [vmem:[%s15135_s9 + $0x24] ss:$8 sps:$4 sm:$0xff]  }
 0xdf6   : > { %v8816_v38 = vadd.f32 %v14446_v28, %v8793_v50  ;;  %8857 = vadd.xlane.f32.xlu0 %v14505_v12  ;;  %v14519_v1 = vadd.f32 %v11991_v5, %v8818_v41  ;;  %v11631_v50 = vld [vmem:[%s15135_s9 + $0x30] ss:$8 sps:$4 sm:$0xff]   ;;  %v12009_v5 = vmov 0  }
 0xdf7   : > { %v11637_v41 = vld [vmem:[%s15135_s9 + $0x10] ss:$8 sps:$4 sm:$0xff]   ;;  %9210 = vmatprep.mubr.bf16.mxu1 %v12009_v5 }
 0xdf8   : > { %v14511_v19 = vadd.f32 %v11989_v35, %v8816_v38  ;;  %v11634_v38 = vld [vmem:[%s15135_s9 + $0x20] ss:$8 sps:$4 sm:$0xff]   ;;  %v11639_v35 = vld [vmem:[%s15135_s9 + $0x14] ss:$8 sps:$4 sm:$0xff]  }
 0xdfa   : > { %8859 = vadd.xlane.f32.xlu1 %v14511_v19  ;;  %8861 = vadd.xlane.f32.xlu0 %v14514_v4 }
 0xdfd   : > { %v11571_v59 = vpop.f32.mrf.mxu0 }
 0xdfe   : > { %8863 = vadd.xlane.f32.xlu1 %v14519_v1  ;;  %v8798_v63 = vadd.f32 %v11571_v59, %v14199_v18 }
 0xdff   : > { %v8769_v27 = vpop.f32.mrf.mxu0 }
 0xe00   : > { %v8796_v40 = vadd.f32 %v8769_v27, %v14203_v48  ;;  %v8821_v39 = vadd.f32 %v14446_v28, %v8798_v63 }
 0xe01   : > { %v11572_v60 = vpop.f32.mrf.mxu0 }
 0xe02   : > { %v8819_v17 = vadd.f32 %v14446_v28, %v8796_v40  ;;  %v8799_v57 = vadd.f32 %v11572_v60, %v14207_v46  ;;  %v11994_v46 = vld [vmem:[%s12143_s23 + $0x70] sm:$0xff] }
 0xe03   : > { %v8772_v24 = vpop.f32.mrf.mxu0  ;;  %v14543_v52 = vadd.f32 %v11994_v46, %v8821_v39 }
 0xe04   : > { %v8797_v15 = vadd.f32 %v8772_v24, %v6880_v3  ;;  %v14531_v18 = vadd.f32 %v11992_v51, %v8819_v17  ;;  %v8822_v11 = vadd.f32 %v14446_v28, %v8799_v57 }
 0xe06   : > { %v8820_v48 = vadd.f32 %v14446_v28, %v8797_v15  ;;  %8865 = vadd.xlane.f32.xlu0 %v14531_v18  ;;  %v8877_v28 = vmul.f32 0.0078125, %v8848_v62  ;;  %v14556_v6 = vadd.f32 %v11995_v33, %v8822_v11 }
 0xe08   : > { %v14540_v9 = vadd.f32 %v11993_v13, %v8820_v48  ;;  %v14560_v53 = vsub.f32 %v14467_v42, %v8877_v28  ;;  %v11621_v42 = vld [vmem:[%s15135_s9 + $0x74] ss:$8 sps:$4 sm:$0xff]  }
 0xe09   : > { %9178 = vmatprep.subr.bf16.mxu1 %v11621_v42 }
 0xe0a   : > { %8867 = vadd.xlane.f32.xlu1 %v14540_v9  ;;  %8869 = vadd.xlane.f32.xlu0 %v14543_v52  ;;  %v8909_v29 = vmul.f32 %v14560_v53, %v14560_v53 }
 0xe0b   : > { %9179 = vmatpush1.bf16.msra.mxu1 %v11619_v8 }
 0xe0c   : > { %9180 = vmatprep.subr.bf16.mxu1 %v11624_v20 }
 0xe0e   : > { %8871 = vadd.xlane.f32.xlu1 %v14556_v6  ;;  %8922 = vadd.xlane.f32.xlu0 %v8906_v56 }
 0xe0f   : > { %9181 = vmatpush1.bf16.msra.mxu1 %v11622_v45 }
 0xe10   : > { %9182 = vmatprep.subr.bf16.mxu1 %v11627_v30 }
 0xe12   : > { %8924 = vadd.xlane.f32.xlu1 %v8907_v31  ;;  %8926 = vadd.xlane.f32.xlu0 %v8908_v26 }
 0xe13   : > { %9183 = vmatpush1.bf16.msra.mxu1 %v11625_v44 }
 0xe14   : > { %9184 = vmatprep.subr.bf16.mxu1 %v11630_v14 }
 0xe16   : > { %8928 = vadd.xlane.f32.xlu1 %v8909_v29 }
 0xe17   : > { %9185 = vmatpush1.bf16.msra.mxu1 %v11628_v49 }
 0xe18   : > { %9186 = vmatprep.subr.bf16.mxu1 %v11633_v23 }
 0xe1b   : > { %9187 = vmatpush1.bf16.msra.mxu1 %v11631_v50 }
 0xe1c   : > { %9188 = vmatprep.subr.bf16.mxu1 %v11636_v16 }
 0xe1f   : > { %9189 = vmatpush1.bf16.msra.mxu1 %v11634_v38 }
 0xe20   : > { %9190 = vmatprep.subr.bf16.mxu1 %v11639_v35 }
 0xe23   : > { %9191 = vmatpush1.bf16.msra.mxu1 %v11637_v41 }
 0xe24   : > { %9192 = vmatprep.subr.bf16.mxu1 %v11642_v0 }
 0xe27   : > { %9193 = vmatpush1.bf16.msra.mxu1 %v11640_v2 }
 0xe6f   : > { %v8850_v59 = vpop.xlane.xlu0 %8849 }
 0xe70   : > { %v8878_v27 = vmul.f32 0.0078125, %v8850_v59 }
 0xe72   : > { %v14618_v37 = vsub.f32 %v14479_v7, %v8878_v27 }
 0xe73   : > { %v8852_v32 = vpop.xlane.xlu1 %8851  ;;  %v8854_v10 = vpop.xlane.xlu0 %8853 }
 0xe74   : > { %v8879_v63 = vmul.f32 0.0078125, %v8852_v32  ;;  %v8880_v40 = vmul.f32 0.0078125, %v8854_v10  ;;  %v8910_v60 = vmul.f32 %v14618_v37, %v14618_v37  ;;  %v14681_v10 = vld [vmem:[%s15139_s13] ss:$0 sm:$0xff] }
 0xe76   : > { %v14623_v3 = vsub.f32 %v14485_v47, %v8879_v63  ;;  %v14626_v17 = vsub.f32 %v14488_v34, %v8880_v40  ;;  %8930 = vadd.xlane.f32.xlu0 %v8910_v60 }
 0xe77   : > { %v8856_v36 = vpop.xlane.xlu1 %8855 }
 0xe78   : > { %v8881_v61 = vmul.f32 0.0078125, %v8856_v36  ;;  %v8911_v7 = vmul.f32 %v14623_v3, %v14623_v3  ;;  %v8912_v24 = vmul.f32 %v14626_v17, %v14626_v17 }
 0xe7a   : > { %v14633_v54 = vsub.f32 %v14493_v55, %v8881_v61  ;;  %8932 = vadd.xlane.f32.xlu1 %v8911_v7  ;;  %8934 = vadd.xlane.f32.xlu0 %v8912_v24  ;;  %v14688_v61 = vld [vmem:[%s15140_s14] ss:$0 sm:$0xff] }
 0xe7c   : > { %v8913_v47 = vmul.f32 %v14633_v54, %v14633_v54 }
 0xe7e   : > { %8936 = vadd.xlane.f32.xlu1 %v8913_v47 }
 0xe7f   : > { %v8858_v34 = vpop.xlane.xlu0 %8857 }
 0xe80   : > { %v8882_v39 = vmul.f32 0.0078125, %v8858_v34 }
 0xe82   : > { %v14638_v57 = vsub.f32 %v14505_v12, %v8882_v39 }
 0xe83   : > { %v8860_v15 = vpop.xlane.xlu1 %8859  ;;  %v8862_v51 = vpop.xlane.xlu0 %8861 }
 0xe84   : > { %v8883_v48 = vmul.f32 0.0078125, %v8860_v15  ;;  %v8884_v43 = vmul.f32 0.0078125, %v8862_v51  ;;  %v8914_v22 = vmul.f32 %v14638_v57, %v14638_v57 }
 0xe86   : > { %v14643_v55 = vsub.f32 %v14511_v19, %v8883_v48  ;;  %v14646_v11 = vsub.f32 %v14514_v4, %v8884_v43  ;;  %8938 = vadd.xlane.f32.xlu0 %v8914_v22  ;;  %v11644_v22 = vld [vmem:[%s15137_s11 + $0x38] sm:$0xff]  }
 0xe87   : > { %v8864_v13 = vpop.xlane.xlu1 %8863 }
 0xe88   : > { %v8885_v46 = vmul.f32 0.0078125, %v8864_v13  ;;  %v8915_v12 = vmul.f32 %v14643_v55, %v14643_v55  ;;  %v8916_v62 = vmul.f32 %v14646_v11, %v14646_v11  ;;  %v11645_v13 = vld [vmem:[%s15137_s11 + $0x70] sm:$0xff]  }
 0xe8a   : > { %v14653_v56 = vsub.f32 %v14519_v1, %v8885_v46  ;;  %8940 = vadd.xlane.f32.xlu1 %v8915_v12  ;;  %8942 = vadd.xlane.f32.xlu0 %v8916_v62  ;;  %v11646_v46 = vld [vmem:[%s15137_s11 + $0x30] sm:$0xff]   ;;  %v11647_v12 = vld [vmem:[%s15137_s11 + $0x68] sm:$0xff]  }
 0xe8b   : > { %v11648_v62 = vld [vmem:[%s15137_s11 + $0x28] sm:$0xff]  }
 0xe8c   : > { %v8917_v19 = vmul.f32 %v14653_v56, %v14653_v56 }
 0xe8e   : > { %8944 = vadd.xlane.f32.xlu1 %v8917_v19  ;;  %v11649_v19 = vld [vmem:[%s15137_s11 + $0x60] sm:$0xff]  }
 0xe8f   : > { %v8866_v4 = vpop.xlane.xlu0 %8865 }
 0xe90   : > { %v8886_v28 = vmul.f32 0.0078125, %v8866_v4  ;;  %v11650_v4 = vld [vmem:[%s15137_s11 + $0x20] sm:$0xff]  }
 0xe92   : > { %v14658_v33 = vsub.f32 %v14531_v18, %v8886_v28  ;;  %v11651_v28 = vld [vmem:[%s15137_s11 + $0x58] sm:$0xff]  }
 0xe93   : > { %v8868_v31 = vpop.xlane.xlu1 %8867  ;;  %v8870_v26 = vpop.xlane.xlu0 %8869 }
 0xe94   : > { %v8887_v29 = vmul.f32 0.0078125, %v8868_v31  ;;  %v8888_v8 = vmul.f32 0.0078125, %v8870_v26  ;;  %v8918_v42 = vmul.f32 %v14658_v33, %v14658_v33  ;;  %v11652_v31 = vld [vmem:[%s15137_s11 + $0x18] sm:$0xff]   ;;  %v11653_v26 = vld [vmem:[%s15137_s11 + $0x50] sm:$0xff]  }
 0xe96   : > { %v14663_v1 = vsub.f32 %v14540_v9, %v8887_v29  ;;  %v14666_v20 = vsub.f32 %v14543_v52, %v8888_v8  ;;  %8946 = vadd.xlane.f32.xlu0 %v8918_v42  ;;  %v11654_v29 = vld [vmem:[%s15137_s11 + $0x10] sm:$0xff]   ;;  %v11655_v8 = vld [vmem:[%s15137_s11 + $0x48] sm:$0xff]  }
 0xe97   : > { %v8872_v45 = vpop.xlane.xlu1 %8871  ;;  %v8923_v30 = vpop.xlane.xlu0 %8922  ;;  %v11656_v42 = vld [vmem:[%s15137_s11 + $0x8] sm:$0xff]  }
 0xe98   : > { %v8889_v44 = vmul.f32 0.0078125, %v8872_v45  ;;  %v8954_v14 = vmul.f32 0.0078125, %v8923_v30  ;;  %v8919_v18 = vmul.f32 %v14663_v1, %v14663_v1  ;;  %v8920_v49 = vmul.f32 %v14666_v20, %v14666_v20 }
 0xe9a   : > { %v14673_v23 = vsub.f32 %v14556_v6, %v8889_v44  ;;  %v8970_v50 = vadd.f32 1e-05, %v8954_v14  ;;  %8948 = vadd.xlane.f32.xlu1 %v8919_v18  ;;  %8950 = vadd.xlane.f32.xlu0 %v8920_v49  ;;  %v11657_v44 = vld [vmem:[%s15137_s11 + $0x40] sm:$0xff]  }
 0xe9b   : > { %v8925_v9 = vpop.xlane.xlu1 %8924  ;;  %v8927_v52 = vpop.xlane.xlu0 %8926  ;;  %v11658_v14 = vld [vmem:[%s15137_s11] sm:$0xff]  }
 0xe9c   : > { %11915 = vrsqrt.f32 %v8970_v50  ;;  %v8955_v16 = vmul.f32 0.0078125, %v8925_v9  ;;  %v8956_v38 = vmul.f32 0.0078125, %v8927_v52  ;;  %v8921_v41 = vmul.f32 %v14673_v23, %v14673_v23 }
 0xe9e   : > { %v8971_v35 = vadd.f32 1e-05, %v8955_v16  ;;  %v8972_v0 = vadd.f32 1e-05, %v8956_v38  ;;  %8952 = vadd.xlane.f32.xlu1 %v8921_v41 }
 0xe9f   : > { %v8929_v2 = vpop.xlane.xlu1 %8928 }
 0xea0   : > { %11917 = vrsqrt.f32 %v8971_v35  ;;  %v8957_v59 = vmul.f32 0.0078125, %v8929_v2 }
 0xea1   : > { %11919 = vrsqrt.f32 %v8972_v0 }
 0xea2   : > { %v8973_v6 = vadd.f32 1e-05, %v8957_v59 }
 0xea4   : > { %11921 = vrsqrt.f32 %v8973_v6 }
 0xea9   : > { %v11916_v27 = vpop.eup %11915 }
 0xeaa   : > { %v9002_v32 = vmul.f32 %v11916_v27, %v14536_v25 }
 0xeac   : > { %v9024_v60 = vmul.f32 %v14681_v10, %v9002_v32 }
 0xead   : > { %v11918_v63 = vpop.eup %11917 }
 0xeae   : > { %v9003_v40 = vmul.f32 %v11918_v63, %v14550_v58  ;;  %v11920_v36 = vpop.eup %11919  ;;  %v14692_v25 = vadd.f32 %v14688_v61, %v9024_v60 }
 0xeaf   : > { %v9004_v34 = vmul.f32 %v11920_v36, %v14553_v21 }
 0xeb0   : > { %v9025_v7 = vmul.f32 %v14681_v10, %v9003_v40 }
 0xeb1   : > { %v11922_v24 = vpop.eup %11921  ;;  %v9026_v51 = vmul.f32 %v14681_v10, %v9004_v34 }
 0xeb2   : > { %v14695_v47 = vadd.f32 %v14688_v61, %v9025_v7  ;;  %v9005_v58 = vmul.f32 %v11922_v24, %v14560_v53  ;;  %v11643_v53 = vld [vmem:[%s15137_s11 + $0x78] sm:$0xff]  }
 0xeb3   : > { %v14708_v43 = vadd.f32 %v14688_v61, %v9026_v51  ;;  %10565 = vmatprep.subr.bf16.mxu0 %v11643_v53 }
 0xeb4   : > { %v9062_v39 = vpack.c.bf16 %v14695_v47, %v14692_v25  ;;  %v9027_v15 = vmul.f32 %v14681_v10, %v9005_v58  ;;  %10566 = vmatpush3.bf16.msra.mxu0 %v11644_v22 }
 0xeb5   : > { %10567 = vmatprep.subr.bf16.mxu0 %v11645_v13 }
 0xeb6   : > { %9211 = vmatmul.mubr.bf16.vlgmr.msra.gmra.mxu1 %v9062_v39  ;;  %v14705_v48 = vadd.f32 %v14688_v61, %v9027_v15 }
 0xeb7   : > { %9220 = vmatprep.mubr.bf16.mxu1 %v12009_v5 }
 0xeb8   : > { %v9063_v21 = vpack.c.bf16 %v14705_v48, %v14708_v43  ;;  %10568 = vmatpush3.bf16.msra.mxu0 %v11646_v46 }
 0xeb9   : > { %10569 = vmatprep.subr.bf16.mxu0 %v11647_v12 }
 0xebc   : > { %10570 = vmatpush3.bf16.msra.mxu0 %v11648_v62 }
 0xebd   : > { %10571 = vmatprep.subr.bf16.mxu0 %v11649_v19 }
 0xebe   : > { %9221 = vmatmul.mubr.bf16.gmra.mxu1 %v9063_v21 }
 0xebf   : > { %9230 = vmatprep.mubr.bf16.mxu1 %v12009_v5 }
 0xec0   : > { %10572 = vmatpush3.bf16.msra.mxu0 %v11650_v4 }
 0xec1   : > { %10573 = vmatprep.subr.bf16.mxu0 %v11651_v28 }
 0xec4   : > { %10574 = vmatpush3.bf16.msra.mxu0 %v11652_v31 }
 0xec5   : > { %10575 = vmatprep.subr.bf16.mxu0 %v11653_v26 }
 0xec8   : > { %10576 = vmatpush3.bf16.msra.mxu0 %v11654_v29 }
 0xec9   : > { %10577 = vmatprep.subr.bf16.mxu0 %v11655_v8 }
 0xecc   : > { %10578 = vmatpush3.bf16.msra.mxu0 %v11656_v42 }
 0xecd   : > { %10579 = vmatprep.subr.bf16.mxu0 %v11657_v44 }
 0xed0   : > { %10580 = vmatpush3.bf16.msra.mxu0 %v11658_v14 }
 0xeff   : > { %v8931_v45 = vpop.xlane.xlu0 %8930 }
 0xf00   : > { %v8958_v30 = vmul.f32 0.0078125, %v8931_v45 }
 0xf02   : > { %v8974_v18 = vadd.f32 1e-05, %v8958_v30 }
 0xf03   : > { %v8933_v49 = vpop.xlane.xlu1 %8932  ;;  %v8935_v50 = vpop.xlane.xlu0 %8934 }
 0xf04   : > { %11923 = vrsqrt.f32 %v8974_v18  ;;  %v8959_v9 = vmul.f32 0.0078125, %v8933_v49  ;;  %v8960_v52 = vmul.f32 0.0078125, %v8935_v50 }
 0xf06   : > { %v8975_v16 = vadd.f32 1e-05, %v8959_v9  ;;  %v8976_v38 = vadd.f32 1e-05, %v8960_v52 }
 0xf07   : > { %v8937_v41 = vpop.xlane.xlu1 %8936 }
 0xf08   : > { %11925 = vrsqrt.f32 %v8975_v16  ;;  %v8961_v35 = vmul.f32 0.0078125, %v8937_v41 }
 0xf09   : > { %11927 = vrsqrt.f32 %v8976_v38 }
 0xf0a   : > { %v8977_v0 = vadd.f32 1e-05, %v8961_v35 }
 0xf0c   : > { %11929 = vrsqrt.f32 %v8977_v0 }
 0xf0f   : > { %v8939_v2 = vpop.xlane.xlu0 %8938 }
 0xf10   : > { %v8962_v59 = vmul.f32 0.0078125, %v8939_v2 }
 0xf11   : > { %v11924_v6 = vpop.eup %11923 }
 0xf12   : > { %v8978_v27 = vadd.f32 1e-05, %v8962_v59  ;;  %v9006_v32 = vmul.f32 %v11924_v6, %v14618_v37 }
 0xf13   : > { %v8941_v63 = vpop.xlane.xlu1 %8940  ;;  %v8943_v40 = vpop.xlane.xlu0 %8942 }
 0xf14   : > { %11931 = vrsqrt.f32 %v8978_v27  ;;  %v8963_v60 = vmul.f32 0.0078125, %v8941_v63  ;;  %v8964_v36 = vmul.f32 0.0078125, %v8943_v40  ;;  %v9028_v24 = vmul.f32 %v14681_v10, %v9006_v32 }
 0xf15   : > { %v11926_v7 = vpop.eup %11925 }
 0xf16   : > { %v8979_v34 = vadd.f32 1e-05, %v8963_v60  ;;  %v8980_v58 = vadd.f32 1e-05, %v8964_v36  ;;  %v9007_v39 = vmul.f32 %v11926_v7, %v14623_v3  ;;  %v11928_v15 = vpop.eup %11927  ;;  %v14766_v37 = vadd.f32 %v14688_v61, %v9028_v24 }
 0xf17   : > { %v8945_v51 = vpop.xlane.xlu1 %8944  ;;  %v9008_v12 = vmul.f32 %v11928_v15, %v14626_v17 }
 0xf18   : > { %11933 = vrsqrt.f32 %v8979_v34  ;;  %v8965_v21 = vmul.f32 0.0078125, %v8945_v51  ;;  %v9029_v53 = vmul.f32 %v14681_v10, %v9007_v39 }
 0xf19   : > { %v11930_v22 = vpop.eup %11929  ;;  %11935 = vrsqrt.f32 %v8980_v58  ;;  %v9030_v4 = vmul.f32 %v14681_v10, %v9008_v12 }
 0xf1a   : > { %v8981_v13 = vadd.f32 1e-05, %v8965_v21  ;;  %v14769_v46 = vadd.f32 %v14688_v61, %v9029_v53  ;;  %v9009_v62 = vmul.f32 %v11930_v22, %v14633_v54 }
 0xf1b   : > { %v14782_v54 = vadd.f32 %v14688_v61, %v9030_v4 }
 0xf1c   : > { %11937 = vrsqrt.f32 %v8981_v13  ;;  %v9064_v3 = vpack.c.bf16 %v14769_v46, %v14766_v37  ;;  %v9031_v19 = vmul.f32 %v14681_v10, %v9009_v62 }
 0xf1e   : > { %9231 = vmatmul.mubr.bf16.gmra.mxu1 %v9064_v3  ;;  %v14779_v26 = vadd.f32 %v14688_v61, %v9031_v19 }
 0xf1f   : > { %v8947_v28 = vpop.xlane.xlu0 %8946  ;;  %9240 = vmatprep.mubr.bf16.mxu1 %v12009_v5 }
 0xf20   : > { %v8966_v31 = vmul.f32 0.0078125, %v8947_v28  ;;  %v9065_v14 = vpack.c.bf16 %v14779_v26, %v14782_v54 }
 0xf21   : > { %v11932_v29 = vpop.eup %11931 }
 0xf22   : > { %v8982_v17 = vadd.f32 1e-05, %v8966_v31  ;;  %v9010_v8 = vmul.f32 %v11932_v29, %v14638_v57 }
 0xf23   : > { %v8949_v42 = vpop.xlane.xlu1 %8948  ;;  %v8951_v45 = vpop.xlane.xlu0 %8950 }
 0xf24   : > { %11939 = vrsqrt.f32 %v8982_v17  ;;  %v8967_v30 = vmul.f32 0.0078125, %v8949_v42  ;;  %v8968_v44 = vmul.f32 0.0078125, %v8951_v45  ;;  %v9032_v49 = vmul.f32 %v14681_v10, %v9010_v8 }
 0xf25   : > { %v11934_v18 = vpop.eup %11933 }
 0xf26   : > { %v11936_v50 = vpop.eup %11935  ;;  %v8983_v9 = vadd.f32 1e-05, %v8967_v30  ;;  %v8984_v52 = vadd.f32 1e-05, %v8968_v44  ;;  %9241 = vmatmul.mubr.bf16.gmra.mxu1 %v9065_v14  ;;  %v9011_v16 = vmul.f32 %v11934_v18, %v14643_v55  ;;  %v14792_v0 = vadd.f32 %v14688_v61, %v9032_v49 }
 0xf27   : > { %v8953_v38 = vpop.xlane.xlu1 %8952  ;;  %9250 = vmatprep.mubr.bf16.mxu1 %v12009_v5  ;;  %v9012_v2 = vmul.f32 %v11936_v50, %v14646_v11 }
 0xf28   : > { %11941 = vrsqrt.f32 %v8983_v9  ;;  %v8969_v57 = vmul.f32 0.0078125, %v8953_v38  ;;  %v9033_v41 = vmul.f32 %v14681_v10, %v9011_v16 }
 0xf29   : > { %v11938_v35 = vpop.eup %11937  ;;  %11943 = vrsqrt.f32 %v8984_v52  ;;  %v9034_v63 = vmul.f32 %v14681_v10, %v9012_v2 }
 0xf2a   : > { %v8985_v59 = vadd.f32 1e-05, %v8969_v57  ;;  %v14796_v6 = vadd.f32 %v14688_v61, %v9033_v41  ;;  %v9013_v55 = vmul.f32 %v11938_v35, %v14653_v56 }
 0xf2b   : > { %v14808_v60 = vadd.f32 %v14688_v61, %v9034_v63 }
 0xf2c   : > { %11945 = vrsqrt.f32 %v8985_v59  ;;  %v9066_v27 = vpack.c.bf16 %v14796_v6, %v14792_v0  ;;  %v9035_v32 = vmul.f32 %v14681_v10, %v9013_v55 }
 0xf2e   : > { %9251 = vmatmul.mubr.bf16.gmra.mxu1 %v9066_v27  ;;  %v14805_v11 = vadd.f32 %v14688_v61, %v9035_v32 }
 0xf2f   : > { %9260 = vmatprep.mubr.bf16.mxu1 %v12009_v5 }
 0xf30   : > { %v9067_v36 = vpack.c.bf16 %v14805_v11, %v14808_v60 }
 0xf31   : > { %v11940_v40 = vpop.eup %11939 }
 0xf32   : > { %v9014_v56 = vmul.f32 %v11940_v40, %v14658_v33 }
 0xf34   : > { %v9036_v34 = vmul.f32 %v14681_v10, %v9014_v56 }
 0xf35   : > { %v11942_v7 = vpop.eup %11941 }
 0xf36   : > { %9261 = vmatmul.mubr.bf16.gmra.mxu1 %v9067_v36  ;;  %v9015_v24 = vmul.f32 %v11942_v7, %v14663_v1  ;;  %v11944_v58 = vpop.eup %11943  ;;  %v14818_v51 = vadd.f32 %v14688_v61, %v9036_v34 }
 0xf37   : > { %9270 = vmatprep.mubr.bf16.mxu1 %v12009_v5  ;;  %v9016_v21 = vmul.f32 %v11944_v58, %v14666_v20 }
 0xf38   : > { %v9037_v39 = vmul.f32 %v14681_v10, %v9015_v24 }
 0xf39   : > { %v11946_v15 = vpop.eup %11945  ;;  %v9038_v13 = vmul.f32 %v14681_v10, %v9016_v21 }
 0xf3a   : > { %v14821_v33 = vadd.f32 %v14688_v61, %v9037_v39  ;;  %v9017_v53 = vmul.f32 %v11946_v15, %v14673_v23  ;;  %v9088_v23 = vlaneseq }
 0xf3b   : > { %v14834_v62 = vadd.f32 %v14688_v61, %v9038_v13 }
 0xf3c   : > { %v9068_v1 = vpack.c.bf16 %v14821_v33, %v14818_v51  ;;  %v9039_v22 = vmul.f32 %v14681_v10, %v9017_v53  ;;  %v9089_v3 = vshrl.u32 %v9088_v23, 7  ;;  %v9086_v10 = vld [vmem:[%s15136_s10] sm:$0x3] }
 0xf3e   : > { %9271 = vmatmul.mubr.bf16.gmra.mxu1 %v9068_v1  ;;  %v14831_v12 = vadd.f32 %v14688_v61, %v9039_v22  ;;  %v9094_v19 = vsub.s32 1, %v9089_v3  ;;  %v9090_v4 = vsub.s32 0, %v9089_v3 }
 0xf3f   : > { %9280 = vmatprep.mubr.bf16.mxu1 %v12009_v5 }
 0xf40   : > { %v9069_v20 = vpack.c.bf16 %v14831_v12, %v14834_v62  ;;  %v14841_v5 = vrot.slane %v9086_v10, %v9094_v19  ;;  %v14843_v31 = vrot.slane %v9086_v10, %v9090_v4 }
 0xf46   : > { %9281 = vmatmul.mubr.bf16.gmra.mxu1 %v9069_v20 }
 0xf76   : > { %v9212_v28 = vpop.f32.mrf.mxu1 }
 0xf77   : > { %v9213_v42 = vadd.f32 %v9212_v28, %v14843_v31 }
 0xf78   : > { %v9214_v29 = vpop.f32.mrf.mxu1 }
 0xf79   : > { %v9215_v17 = vadd.f32 %v9214_v29, %v14841_v5  ;;  %v9291_v50 = vmax.f32 %v9213_v42, 0.0 }
 0xf7a   : > { %v9216_v61 = vpop.f32.mrf.mxu1 }
 0xf7b   : > { %v9217_v8 = vadd.f32 %v9216_v61, %v14843_v31  ;;  %v9292_v18 = vmax.f32 %v9215_v17, 0.0 }
 0xf7c   : > { %v9218_v45 = vpop.f32.mrf.mxu1 }
 0xf7d   : > { %v9219_v30 = vadd.f32 %v9218_v45, %v14841_v5  ;;  %v9293_v44 = vmax.f32 %v9217_v8, 0.0 }
 0xf7e   : > { %v9222_v14 = vpop.f32.mrf.mxu1 }
 0xf7f   : > { %v9294_v49 = vmax.f32 %v9219_v30, 0.0  ;;  %v9323_v16 = vpack.c.bf16 %v9293_v44, %v9291_v50  ;;  %v9223_v35 = vadd.f32 %v9222_v14, %v14843_v31 }
 0xf80   : > { %v9224_v9 = vpop.f32.mrf.mxu1 }
 0xf81   : > { %v9324_v52 = vpack.c.bf16 %v9294_v49, %v9292_v18  ;;  %v9225_v57 = vadd.f32 %v9224_v9, %v14841_v5  ;;  %v9295_v63 = vmax.f32 %v9223_v35, 0.0 }
 0xf82   : > { %v9226_v38 = vpop.f32.mrf.mxu1 }
 0xf83   : > { %v9227_v41 = vadd.f32 %v9226_v38, %v14843_v31  ;;  %9506 = vmatprep.mubr.bf16.mxu0 %v9324_v52  ;;  %v9296_v27 = vmax.f32 %v9225_v57, 0.0 }
 0xf84   : > { %v9228_v2 = vpop.f32.mrf.mxu1  ;;  %9507 = vmatmul.mubr.bf16.vlgmr.msra.gmra.mxu0 %v9323_v16 }
 0xf85   : > { %v9229_v59 = vadd.f32 %v9228_v2, %v14841_v5  ;;  %v9297_v55 = vmax.f32 %v9227_v41, 0.0 }
 0xf87   : > { %v9298_v32 = vmax.f32 %v9229_v59, 0.0  ;;  %v9325_v56 = vpack.c.bf16 %v9297_v55, %v9295_v63 }
 0xf89   : > { %v9326_v40 = vpack.c.bf16 %v9298_v32, %v9296_v27 }
 0xf8b   : > { %9514 = vmatprep.mubr.bf16.mxu0 %v9326_v40 }
 0xf8c   : > { %9515 = vmatmul.mubr.bf16.gmra.mxu0 %v9325_v56 }
 0xfde   : > { %v9232_v36 = vpop.f32.mrf.mxu1 }
 0xfdf   : > { %v9233_v39 = vadd.f32 %v9232_v36, %v14843_v31 }
 0xfe0   : > { %v9234_v7 = vpop.f32.mrf.mxu1 }
 0xfe1   : > { %v9235_v34 = vadd.f32 %v9234_v7, %v14841_v5  ;;  %v9299_v20 = vmax.f32 %v9233_v39, 0.0 }
 0xfe2   : > { %v9236_v24 = vpop.f32.mrf.mxu1 }
 0xfe3   : > { %v9237_v58 = vadd.f32 %v9236_v24, %v14843_v31  ;;  %v9300_v22 = vmax.f32 %v9235_v34, 0.0 }
 0xfe4   : > { %v9238_v15 = vpop.f32.mrf.mxu1 }
 0xfe5   : > { %v9239_v21 = vadd.f32 %v9238_v15, %v14841_v5  ;;  %v9301_v53 = vmax.f32 %v9237_v58, 0.0 }
 0xfe6   : > { %v9242_v1 = vpop.f32.mrf.mxu1 }
 0xfe7   : > { %v9302_v13 = vmax.f32 %v9239_v21, 0.0  ;;  %v9327_v19 = vpack.c.bf16 %v9301_v53, %v9299_v20  ;;  %v9243_v29 = vadd.f32 %v9242_v1, %v14843_v31 }
 0xfe8   : > { %v9244_v23 = vpop.f32.mrf.mxu1 }
 0xfe9   : > { %v9328_v3 = vpack.c.bf16 %v9302_v13, %v9300_v22  ;;  %v9245_v10 = vadd.f32 %v9244_v23, %v14841_v5  ;;  %v9303_v44 = vmax.f32 %v9243_v29, 0.0 }
 0xfea   : > { %v9246_v4 = vpop.f32.mrf.mxu1 }
 0xfeb   : > { %v9247_v28 = vadd.f32 %v9246_v4, %v14843_v31  ;;  %9522 = vmatprep.mubr.bf16.mxu0 %v9328_v3  ;;  %v9304_v45 = vmax.f32 %v9245_v10, 0.0 }
 0xfec   : > { %v9248_v61 = vpop.f32.mrf.mxu1  ;;  %9523 = vmatmul.mubr.bf16.gmra.mxu0 %v9327_v19 }
 0xfed   : > { %v9249_v17 = vadd.f32 %v9248_v61, %v14841_v5  ;;  %v9305_v8 = vmax.f32 %v9247_v28, 0.0 }
 0xfee   : > { %v9252_v42 = vpop.f32.mrf.mxu1 }
 0xfef   : > { %v9306_v30 = vmax.f32 %v9249_v17, 0.0  ;;  %v9329_v49 = vpack.c.bf16 %v9305_v8, %v9303_v44  ;;  %v9253_v16 = vadd.f32 %v9252_v42, %v14843_v31 }
 0xff0   : > { %v9254_v14 = vpop.f32.mrf.mxu1 }
 0xff1   : > { %v9330_v18 = vpack.c.bf16 %v9306_v30, %v9304_v45  ;;  %v9255_v9 = vadd.f32 %v9254_v14, %v14841_v5  ;;  %v9307_v55 = vmax.f32 %v9253_v16, 0.0 }
 0xff2   : > { %v9256_v50 = vpop.f32.mrf.mxu1 }
 0xff3   : > { %v9257_v52 = vadd.f32 %v9256_v50, %v14843_v31  ;;  %9530 = vmatprep.mubr.bf16.mxu0 %v9330_v18  ;;  %v9308_v2 = vmax.f32 %v9255_v9, 0.0 }
 0xff4   : > { %v9258_v38 = vpop.f32.mrf.mxu1  ;;  %9531 = vmatmul.mubr.bf16.gmra.mxu0 %v9329_v49 }
 0xff5   : > { %v9259_v57 = vadd.f32 %v9258_v38, %v14841_v5  ;;  %v9309_v41 = vmax.f32 %v9257_v52, 0.0 }
 0xff6   : > { %v9262_v35 = vpop.f32.mrf.mxu1 }
 0xff7   : > { %v9310_v59 = vmax.f32 %v9259_v57, 0.0  ;;  %v9331_v63 = vpack.c.bf16 %v9309_v41, %v9307_v55  ;;  %v9263_v7 = vadd.f32 %v9262_v35, %v14843_v31 }
 0xff8   : > { %v9264_v27 = vpop.f32.mrf.mxu1 }
 0xff9   : > { %v9332_v32 = vpack.c.bf16 %v9310_v59, %v9308_v2  ;;  %v9265_v56 = vadd.f32 %v9264_v27, %v14841_v5  ;;  %v9311_v53 = vmax.f32 %v9263_v7, 0.0  ;;  %v14880_v59 = vld [vmem:[%s15138_s12] ss:$0 sm:$0xff] }
 0xffa   : > { %v9266_v40 = vpop.f32.mrf.mxu1 }
 0xffb   : > { %v9267_v36 = vadd.f32 %v9266_v40, %v14843_v31  ;;  %9538 = vmatprep.mubr.bf16.mxu0 %v9332_v32  ;;  %v9312_v15 = vmax.f32 %v9265_v56, 0.0 }
 0xffc   : > { %v9268_v24 = vpop.f32.mrf.mxu1  ;;  %9539 = vmatmul.mubr.bf16.gmra.mxu0 %v9331_v63 }
 0xffd   : > { %v9269_v34 = vadd.f32 %v9268_v24, %v14841_v5  ;;  %v9313_v58 = vmax.f32 %v9267_v36, 0.0 }
 0xffe   : > { %v9272_v39 = vpop.f32.mrf.mxu1 }
 0xfff   : > { %v9314_v21 = vmax.f32 %v9269_v34, 0.0  ;;  %v9333_v13 = vpack.c.bf16 %v9313_v58, %v9311_v53  ;;  %v9273_v19 = vadd.f32 %v9272_v39, %v14843_v31 }
0x1000   : > { %v9274_v1 = vpop.f32.mrf.mxu1 }
0x1001   : > { %v9334_v22 = vpack.c.bf16 %v9314_v21, %v9312_v15  ;;  %v9275_v23 = vadd.f32 %v9274_v1, %v14841_v5  ;;  %v9315_v8 = vmax.f32 %v9273_v19, 0.0 }
0x1002   : > { %v9276_v20 = vpop.f32.mrf.mxu1 }
0x1003   : > { %v9277_v3 = vadd.f32 %v9276_v20, %v14843_v31  ;;  %9546 = vmatprep.mubr.bf16.mxu0 %v9334_v22  ;;  %v9316_v61 = vmax.f32 %v9275_v23, 0.0 }
0x1004   : > { %v9278_v4 = vpop.f32.mrf.mxu1  ;;  %9547 = vmatmul.mubr.bf16.gmra.mxu0 %v9333_v13 }
0x1005   : > { %v9279_v10 = vadd.f32 %v9278_v4, %v14841_v5  ;;  %v9317_v28 = vmax.f32 %v9277_v3, 0.0 }
0x1006   : > { %v9282_v29 = vpop.f32.mrf.mxu1 }
0x1007   : > { %v9318_v17 = vmax.f32 %v9279_v10, 0.0  ;;  %v9335_v30 = vpack.c.bf16 %v9317_v28, %v9315_v8  ;;  %v9283_v49 = vadd.f32 %v9282_v29, %v14843_v31 }
0x1008   : > { %v9284_v42 = vpop.f32.mrf.mxu1 }
0x1009   : > { %v9336_v45 = vpack.c.bf16 %v9318_v17, %v9316_v61  ;;  %v9285_v14 = vadd.f32 %v9284_v42, %v14841_v5  ;;  %v9319_v57 = vmax.f32 %v9283_v49, 0.0 }
0x100a   : > { %v9286_v44 = vpop.f32.mrf.mxu1 }
0x100b   : > { %v9287_v18 = vadd.f32 %v9286_v44, %v14843_v31  ;;  %9554 = vmatprep.mubr.bf16.mxu0 %v9336_v45  ;;  %v9320_v16 = vmax.f32 %v9285_v14, 0.0 }
0x100c   : > { %v9288_v50 = vpop.f32.mrf.mxu1  ;;  %9555 = vmatmul.mubr.bf16.gmra.mxu0 %v9335_v30 }
0x100d   : > { %v9289_v9 = vadd.f32 %v9288_v50, %v14841_v5  ;;  %v9321_v52 = vmax.f32 %v9287_v18, 0.0 }
0x100f   : > { %v9322_v38 = vmax.f32 %v9289_v9, 0.0  ;;  %v9337_v35 = vpack.c.bf16 %v9321_v52, %v9319_v57 }
0x1011   : > { %v9338_v41 = vpack.c.bf16 %v9322_v38, %v9320_v16 }
0x1013   : > { %9562 = vmatprep.mubr.bf16.mxu0 %v9338_v41 }
0x1014   : > { %9563 = vmatmul.mubr.bf16.gmra.mxu0 %v9337_v35 }
0x1044   : > { %v10581_v2 = vpop.f32.mrf.mxu0 }
0x1046   : > { %v10582_v55 = vpop.f32.mrf.mxu0 }
0x1047   : > { %v10583_v31 = vadd.f32 %v10582_v55, %v10581_v2 }
0x1048   : > { %v10584_v27 = vpop.f32.mrf.mxu0 }
0x1049   : > { %v9509_v32 = vadd.f32 %v10583_v31, %v14880_v59 }
0x104a   : > { %v10585_v5 = vpop.f32.mrf.mxu0 }
0x104b   : > { %v10586_v63 = vadd.f32 %v10585_v5, %v10584_v27  ;;  %v14884_v40 = vadd.f32 %v9509_v32, %v14692_v25 }
0x104c   : > { %v10587_v56 = vpop.f32.mrf.mxu0 }
0x104d   : > { %v9512_v36 = vadd.f32 %v10586_v63, %v14880_v59  ;;  %9589 = vadd.xlane.f32.xlu0 %v14884_v40 }
0x104e   : > { %v10588_v7 = vpop.f32.mrf.mxu0 }
0x104f   : > { %v10589_v24 = vadd.f32 %v10588_v7, %v10587_v56  ;;  %v14889_v34 = vadd.f32 %v9512_v36, %v14695_v47 }
0x1050   : > { %v10590_v58 = vpop.f32.mrf.mxu0 }
0x1051   : > { %v9517_v39 = vadd.f32 %v10589_v24, %v14880_v59  ;;  %9591 = vadd.xlane.f32.xlu1 %v14889_v34 }
0x1052   : > { %v10591_v15 = vpop.f32.mrf.mxu0 }
0x1053   : > { %v10592_v21 = vadd.f32 %v10591_v15, %v10590_v58  ;;  %v14894_v25 = vadd.f32 %v9517_v39, %v14708_v43 }
0x1055   : > { %v9520_v53 = vadd.f32 %v10592_v21, %v14880_v59  ;;  %9593 = vadd.xlane.f32.xlu0 %v14894_v25 }
0x1057   : > { %v14899_v1 = vadd.f32 %v9520_v53, %v14705_v48 }
0x1059   : > { %9595 = vadd.xlane.f32.xlu1 %v14899_v1 }
0x10ac   : > { %v10593_v47 = vpop.f32.mrf.mxu0 }
0x10ae   : > { %v10594_v22 = vpop.f32.mrf.mxu0 }
0x10af   : > { %v10595_v13 = vadd.f32 %v10594_v22, %v10593_v47 }
0x10b0   : > { %v10596_v20 = vpop.f32.mrf.mxu0 }
0x10b1   : > { %v9525_v23 = vadd.f32 %v10595_v13, %v14880_v59 }
0x10b2   : > { %v10597_v3 = vpop.f32.mrf.mxu0 }
0x10b3   : > { %v10598_v19 = vadd.f32 %v10597_v3, %v10596_v20  ;;  %v14904_v43 = vadd.f32 %v9525_v23, %v14766_v37 }
0x10b4   : > { %v10599_v4 = vpop.f32.mrf.mxu0 }
0x10b5   : > { %v9528_v10 = vadd.f32 %v10598_v19, %v14880_v59  ;;  %9597 = vadd.xlane.f32.xlu0 %v14904_v43 }
0x10b6   : > { %v10600_v48 = vpop.f32.mrf.mxu0 }
0x10b7   : > { %v10601_v28 = vadd.f32 %v10600_v48, %v10599_v4  ;;  %v14909_v29 = vadd.f32 %v9528_v10, %v14769_v46 }
0x10b8   : > { %v10602_v61 = vpop.f32.mrf.mxu0 }
0x10b9   : > { %v9533_v17 = vadd.f32 %v10601_v28, %v14880_v59  ;;  %9599 = vadd.xlane.f32.xlu1 %v14909_v29 }
0x10ba   : > { %v10603_v8 = vpop.f32.mrf.mxu0 }
0x10bb   : > { %v10604_v42 = vadd.f32 %v10603_v8, %v10602_v61  ;;  %v14914_v37 = vadd.f32 %v9533_v17, %v14782_v54 }
0x10bc   : > { %v10605_v45 = vpop.f32.mrf.mxu0 }
0x10bd   : > { %v9536_v30 = vadd.f32 %v10604_v42, %v14880_v59  ;;  %9601 = vadd.xlane.f32.xlu0 %v14914_v37 }
0x10be   : > { %v10606_v44 = vpop.f32.mrf.mxu0 }
0x10bf   : > { %v10607_v14 = vadd.f32 %v10606_v44, %v10605_v45  ;;  %v14919_v46 = vadd.f32 %v9536_v30, %v14779_v26 }
0x10c0   : > { %v10608_v18 = vpop.f32.mrf.mxu0 }
0x10c1   : > { %v9541_v49 = vadd.f32 %v10607_v14, %v14880_v59  ;;  %9603 = vadd.xlane.f32.xlu1 %v14919_v46 }
0x10c2   : > { %v10609_v50 = vpop.f32.mrf.mxu0 }
0x10c3   : > { %v10610_v9 = vadd.f32 %v10609_v50, %v10608_v18  ;;  %v14924_v54 = vadd.f32 %v9541_v49, %v14792_v0 }
0x10c4   : > { %v10611_v52 = vpop.f32.mrf.mxu0 }
0x10c5   : > { %v9544_v16 = vadd.f32 %v10610_v9, %v14880_v59  ;;  %9605 = vadd.xlane.f32.xlu0 %v14924_v54 }
0x10c6   : > { %v10612_v38 = vpop.f32.mrf.mxu0 }
0x10c7   : > { %v10613_v57 = vadd.f32 %v10612_v38, %v10611_v52  ;;  %v14929_v26 = vadd.f32 %v9544_v16, %v14796_v6 }
0x10c8   : > { %v10614_v41 = vpop.f32.mrf.mxu0 }
0x10c9   : > { %v9549_v35 = vadd.f32 %v10613_v57, %v14880_v59  ;;  %9607 = vadd.xlane.f32.xlu1 %v14929_v26 }
0x10ca   : > { %v10615_v2 = vpop.f32.mrf.mxu0 }
0x10cb   : > { %v10616_v55 = vadd.f32 %v10615_v2, %v10614_v41  ;;  %v14934_v0 = vadd.f32 %v9549_v35, %v14808_v60 }
0x10cc   : > { %v10617_v31 = vpop.f32.mrf.mxu0 }
0x10cd   : > { %v9552_v27 = vadd.f32 %v10616_v55, %v14880_v59  ;;  %9609 = vadd.xlane.f32.xlu0 %v14934_v0 }
0x10ce   : > { %v10618_v32 = vpop.f32.mrf.mxu0 }
0x10cf   : > { %v10619_v5 = vadd.f32 %v10618_v32, %v10617_v31  ;;  %v14939_v6 = vadd.f32 %v9552_v27, %v14805_v11 }
0x10d0   : > { %v10620_v63 = vpop.f32.mrf.mxu0 }
0x10d1   : > { %v9557_v56 = vadd.f32 %v10619_v5, %v14880_v59  ;;  %9611 = vadd.xlane.f32.xlu1 %v14939_v6 }
0x10d2   : > { %v10621_v36 = vpop.f32.mrf.mxu0 }
0x10d3   : > { %v10622_v7 = vadd.f32 %v10621_v36, %v10620_v63  ;;  %v14944_v60 = vadd.f32 %v9557_v56, %v14818_v51 }
0x10d4   : > { %v10623_v24 = vpop.f32.mrf.mxu0 }
0x10d5   : > { %v9560_v58 = vadd.f32 %v10622_v7, %v14880_v59  ;;  %9613 = vadd.xlane.f32.xlu0 %v14944_v60 }
0x10d6   : > { %v10624_v39 = vpop.f32.mrf.mxu0  ;;  %v9590_v15 = vpop.xlane.xlu0 %9589 }
0x10d7   : > { %v10625_v21 = vadd.f32 %v10624_v39, %v10623_v24  ;;  %v9621_v11 = vmul.f32 0.0078125, %v9590_v15  ;;  %v14949_v53 = vadd.f32 %v9560_v58, %v14821_v33 }
0x10d8   : > { %v10626_v47 = vpop.f32.mrf.mxu0 }
0x10d9   : > { %v9565_v22 = vadd.f32 %v10625_v21, %v14880_v59  ;;  %9615 = vadd.xlane.f32.xlu1 %v14949_v53  ;;  %v14954_v20 = vsub.f32 %v14884_v40, %v9621_v11 }
0x10da   : > { %v9592_v13 = vpop.xlane.xlu1 %9591  ;;  %v10627_v51 = vpop.f32.mrf.mxu0 }
0x10db   : > { %v9622_v23 = vmul.f32 0.0078125, %v9592_v13  ;;  %v10628_v3 = vadd.f32 %v10627_v51, %v10626_v47  ;;  %v14957_v19 = vadd.f32 %v9565_v22, %v14834_v62  ;;  %v9653_v40 = vmul.f32 %v14954_v20, %v14954_v20 }
0x10dd   : > { %v9568_v4 = vadd.f32 %v10628_v3, %v14880_v59  ;;  %9617 = vadd.xlane.f32.xlu0 %v14957_v19  ;;  %v14962_v10 = vsub.f32 %v14889_v34, %v9622_v23 }
0x10de   : > { %v9594_v33 = vpop.xlane.xlu0 %9593 }
0x10df   : > { %v9623_v48 = vmul.f32 0.0078125, %v9594_v33  ;;  %v14965_v28 = vadd.f32 %v9568_v4, %v14831_v12  ;;  %v9654_v17 = vmul.f32 %v14962_v10, %v14962_v10 }
0x10e1   : > { %v14970_v61 = vsub.f32 %v14894_v25, %v9623_v48  ;;  %9619 = vadd.xlane.f32.xlu1 %v14965_v28  ;;  %9669 = vadd.xlane.f32.xlu0 %v9653_v40 }
0x10e2   : > { %v9596_v62 = vpop.xlane.xlu1 %9595 }
0x10e3   : > { %v9624_v59 = vmul.f32 0.0078125, %v9596_v62  ;;  %v9655_v34 = vmul.f32 %v14970_v61, %v14970_v61 }
0x10e5   : > { %v14978_v12 = vsub.f32 %v14899_v1, %v9624_v59  ;;  %9671 = vadd.xlane.f32.xlu1 %v9654_v17  ;;  %9673 = vadd.xlane.f32.xlu0 %v9655_v34 }
0x10e7   : > { %v9656_v25 = vmul.f32 %v14978_v12, %v14978_v12 }
0x10e9   : > { %9675 = vadd.xlane.f32.xlu1 %v9656_v25 }
0x113e   : > { %v9598_v8 = vpop.xlane.xlu0 %9597 }
0x113f   : > { %v9625_v42 = vmul.f32 0.0078125, %v9598_v8 }
0x1141   : > { %v14983_v45 = vsub.f32 %v14904_v43, %v9625_v42  ;;  %v15045_v42 = vld [vmem:[%s15141_s15] ss:$0 sm:$0xff] }
0x1142   : > { %v9600_v30 = vpop.xlane.xlu1 %9599 }
0x1143   : > { %v9626_v44 = vmul.f32 0.0078125, %v9600_v30  ;;  %v9657_v14 = vmul.f32 %v14983_v45, %v14983_v45 }
0x1145   : > { %v14988_v18 = vsub.f32 %v14909_v29, %v9626_v44  ;;  %9677 = vadd.xlane.f32.xlu0 %v9657_v14  ;;  %v15051_v44 = vld [vmem:[%s15142_s16] ss:$0 sm:$0xff] }
0x1146   : > { %v9602_v1 = vpop.xlane.xlu0 %9601 }
0x1147   : > { %v9627_v49 = vmul.f32 0.0078125, %v9602_v1  ;;  %v9658_v50 = vmul.f32 %v14988_v18, %v14988_v18 }
0x1149   : > { %v14993_v9 = vsub.f32 %v14914_v37, %v9627_v49  ;;  %9679 = vadd.xlane.f32.xlu1 %v9658_v50 }
0x114a   : > { %v9604_v43 = vpop.xlane.xlu1 %9603 }
0x114b   : > { %v9628_v52 = vmul.f32 0.0078125, %v9604_v43  ;;  %v9659_v16 = vmul.f32 %v14993_v9, %v14993_v9 }
0x114d   : > { %v14998_v38 = vsub.f32 %v14919_v46, %v9628_v52  ;;  %9681 = vadd.xlane.f32.xlu0 %v9659_v16 }
0x114e   : > { %v9606_v29 = vpop.xlane.xlu0 %9605 }
0x114f   : > { %v9629_v57 = vmul.f32 0.0078125, %v9606_v29  ;;  %v9660_v41 = vmul.f32 %v14998_v38, %v14998_v38 }
0x1151   : > { %v15003_v35 = vsub.f32 %v14924_v54, %v9629_v57  ;;  %9683 = vadd.xlane.f32.xlu1 %v9660_v41 }
0x1152   : > { %v9608_v37 = vpop.xlane.xlu1 %9607 }
0x1153   : > { %v9630_v2 = vmul.f32 0.0078125, %v9608_v37  ;;  %v9661_v55 = vmul.f32 %v15003_v35, %v15003_v35 }
0x1155   : > { %v15008_v31 = vsub.f32 %v14929_v26, %v9630_v2  ;;  %9685 = vadd.xlane.f32.xlu0 %v9661_v55 }
0x1156   : > { %v9610_v46 = vpop.xlane.xlu0 %9609 }
0x1157   : > { %v9631_v27 = vmul.f32 0.0078125, %v9610_v46  ;;  %v9662_v32 = vmul.f32 %v15008_v31, %v15008_v31 }
0x1159   : > { %v15013_v5 = vsub.f32 %v14934_v0, %v9631_v27  ;;  %9687 = vadd.xlane.f32.xlu1 %v9662_v32 }
0x115a   : > { %v9612_v54 = vpop.xlane.xlu1 %9611 }
0x115b   : > { %v9632_v63 = vmul.f32 0.0078125, %v9612_v54  ;;  %v9663_v56 = vmul.f32 %v15013_v5, %v15013_v5 }
0x115d   : > { %v15018_v36 = vsub.f32 %v14939_v6, %v9632_v63  ;;  %9689 = vadd.xlane.f32.xlu0 %v9663_v56 }
0x115e   : > { %v9614_v26 = vpop.xlane.xlu0 %9613 }
0x115f   : > { %v9633_v7 = vmul.f32 0.0078125, %v9614_v26  ;;  %v9664_v24 = vmul.f32 %v15018_v36, %v15018_v36 }
0x1161   : > { %v15023_v58 = vsub.f32 %v14944_v60, %v9633_v7  ;;  %9691 = vadd.xlane.f32.xlu1 %v9664_v24 }
0x1162   : > { %v9616_v0 = vpop.xlane.xlu1 %9615 }
0x1163   : > { %v9634_v39 = vmul.f32 0.0078125, %v9616_v0  ;;  %v9665_v15 = vmul.f32 %v15023_v58, %v15023_v58 }
0x1165   : > { %v15028_v21 = vsub.f32 %v14949_v53, %v9634_v39  ;;  %9693 = vadd.xlane.f32.xlu0 %v9665_v15 }
0x1166   : > { %v9618_v6 = vpop.xlane.xlu0 %9617 }
0x1167   : > { %v9635_v11 = vmul.f32 0.0078125, %v9618_v6  ;;  %v9666_v47 = vmul.f32 %v15028_v21, %v15028_v21 }
0x1169   : > { %v15033_v22 = vsub.f32 %v14957_v19, %v9635_v11  ;;  %9695 = vadd.xlane.f32.xlu1 %v9666_v47 }
0x116a   : > { %v9620_v60 = vpop.xlane.xlu1 %9619  ;;  %v9670_v13 = vpop.xlane.xlu0 %9669 }
0x116b   : > { %v9636_v51 = vmul.f32 0.0078125, %v9620_v60  ;;  %v9701_v23 = vmul.f32 0.0078125, %v9670_v13  ;;  %v9667_v3 = vmul.f32 %v15033_v22, %v15033_v22 }
0x116d   : > { %v15038_v53 = vsub.f32 %v14965_v28, %v9636_v51  ;;  %v9717_v4 = vadd.f32 1e-05, %v9701_v23  ;;  %9697 = vadd.xlane.f32.xlu0 %v9667_v3 }
0x116e   : > { %v9672_v33 = vpop.xlane.xlu1 %9671  ;;  %v9674_v48 = vpop.xlane.xlu0 %9673 }
0x116f   : > { %11947 = vrsqrt.f32 %v9717_v4  ;;  %v9702_v40 = vmul.f32 0.0078125, %v9672_v33  ;;  %v9703_v62 = vmul.f32 0.0078125, %v9674_v48  ;;  %v9668_v19 = vmul.f32 %v15038_v53, %v15038_v53 }
0x1171   : > { %v9718_v59 = vadd.f32 1e-05, %v9702_v40  ;;  %v9719_v17 = vadd.f32 1e-05, %v9703_v62  ;;  %9699 = vadd.xlane.f32.xlu1 %v9668_v19 }
0x1172   : > { %v9676_v34 = vpop.xlane.xlu1 %9675 }
0x1173   : > { %11949 = vrsqrt.f32 %v9718_v59  ;;  %v9704_v25 = vmul.f32 0.0078125, %v9676_v34 }
0x1174   : > { %11951 = vrsqrt.f32 %v9719_v17 }
0x1175   : > { %v9720_v28 = vadd.f32 1e-05, %v9704_v25 }
0x1177   : > { %11953 = vrsqrt.f32 %v9720_v28 }
0x117c   : > { %v11948_v8 = vpop.eup %11947 }
0x117d   : > { %v9749_v30 = vmul.f32 %v11948_v8, %v14954_v20 }
0x117f   : > { %v9771_v14 = vmul.f32 %v15045_v42, %v9749_v30 }
0x1180   : > { %v11950_v1 = vpop.eup %11949 }
0x1181   : > { %v11952_v49 = vpop.eup %11951  ;;  %v9793_v20 = vadd.f32 %v15051_v44, %v9771_v14  ;;  %v9750_v50 = vmul.f32 %v11950_v1, %v14962_v10 }
0x1182   : > { %v9751_v43 = vmul.f32 %v11952_v49, %v14970_v61 }
0x1183   : > { %9809 = vst [vmem:[%s15059_s22] sm:$0xff] %v9793_v20  ;;  %v9772_v52 = vmul.f32 %v15045_v42, %v9750_v50 }
0x1184   : > { %v11954_v16 = vpop.eup %11953  ;;  %v9773_v29 = vmul.f32 %v15045_v42, %v9751_v43 }
0x1185   : > { %v9794_v57 = vadd.f32 %v15051_v44, %v9772_v52  ;;  %v9752_v41 = vmul.f32 %v11954_v16, %v14978_v12 }
0x1186   : > { %v9795_v37 = vadd.f32 %v15051_v44, %v9773_v29 }
0x1187   : > { %9810 = vst [vmem:[%s15059_s22 + $0x8] sm:$0xff] %v9794_v57  ;;  %v9774_v2 = vmul.f32 %v15045_v42, %v9752_v41 }
0x1188   : > { %9811 = vst [vmem:[%s15059_s22 + $0x10] sm:$0xff] %v9795_v37 }
0x1189   : > { %v9796_v10 = vadd.f32 %v15051_v44, %v9774_v2 }
0x118b   : > { %9812 = vst [vmem:[%s15059_s22 + $0x18] sm:$0xff] %v9796_v10 }
0x11ce   : > { %v9678_v61 = vpop.xlane.xlu0 %9677 }
0x11cf   : > { %v9705_v55 = vmul.f32 0.0078125, %v9678_v61 }
0x11d1   : > { %v9721_v46 = vadd.f32 1e-05, %v9705_v55 }
0x11d2   : > { %v9680_v27 = vpop.xlane.xlu1 %9679 }
0x11d3   : > { %11955 = vrsqrt.f32 %v9721_v46  ;;  %v9706_v32 = vmul.f32 0.0078125, %v9680_v27 }
0x11d5   : > { %v9722_v54 = vadd.f32 1e-05, %v9706_v32 }
0x11d6   : > { %v9682_v63 = vpop.xlane.xlu0 %9681 }
0x11d7   : > { %11957 = vrsqrt.f32 %v9722_v54  ;;  %v9707_v56 = vmul.f32 0.0078125, %v9682_v63 }
0x11d9   : > { %v9723_v12 = vadd.f32 1e-05, %v9707_v56 }
0x11da   : > { %v9684_v26 = vpop.xlane.xlu1 %9683 }
0x11db   : > { %11959 = vrsqrt.f32 %v9723_v12  ;;  %v9708_v7 = vmul.f32 0.0078125, %v9684_v26 }
0x11dd   : > { %v9724_v24 = vadd.f32 1e-05, %v9708_v7 }
0x11de   : > { %v9686_v0 = vpop.xlane.xlu0 %9685 }
0x11df   : > { %11961 = vrsqrt.f32 %v9724_v24  ;;  %v9709_v39 = vmul.f32 0.0078125, %v9686_v0 }
0x11e0   : > { %v11956_v15 = vpop.eup %11955 }
0x11e1   : > { %v9753_v6 = vmul.f32 %v11956_v15, %v14983_v45  ;;  %v9725_v11 = vadd.f32 1e-05, %v9709_v39 }
0x11e2   : > { %v9688_v47 = vpop.xlane.xlu1 %9687 }
0x11e3   : > { %v9775_v60 = vmul.f32 %v15045_v42, %v9753_v6  ;;  %11963 = vrsqrt.f32 %v9725_v11  ;;  %v9710_v13 = vmul.f32 0.0078125, %v9688_v47 }
0x11e4   : > { %v11958_v51 = vpop.eup %11957 }
0x11e5   : > { %v9797_v23 = vadd.f32 %v15051_v44, %v9775_v60  ;;  %v9754_v3 = vmul.f32 %v11958_v51, %v14988_v18  ;;  %v9726_v4 = vadd.f32 1e-05, %v9710_v13 }
0x11e6   : > { %v9690_v33 = vpop.xlane.xlu0 %9689 }
0x11e7   : > { %9813 = vst [vmem:[%s15059_s22 + $0x20] sm:$0xff] %v9797_v23  ;;  %v9776_v48 = vmul.f32 %v15045_v42, %v9754_v3  ;;  %11965 = vrsqrt.f32 %v9726_v4  ;;  %v9711_v45 = vmul.f32 0.0078125, %v9690_v33 }
0x11e8   : > { %v11960_v40 = vpop.eup %11959 }
0x11e9   : > { %v9798_v62 = vadd.f32 %v15051_v44, %v9776_v48  ;;  %v9755_v19 = vmul.f32 %v11960_v40, %v14993_v9  ;;  %v9727_v59 = vadd.f32 1e-05, %v9711_v45 }
0x11ea   : > { %v9692_v17 = vpop.xlane.xlu1 %9691 }
0x11eb   : > { %9814 = vst [vmem:[%s15059_s22 + $0x28] sm:$0xff] %v9798_v62  ;;  %v9777_v34 = vmul.f32 %v15045_v42, %v9755_v19  ;;  %11967 = vrsqrt.f32 %v9727_v59  ;;  %v9712_v18 = vmul.f32 0.0078125, %v9692_v17 }
0x11ec   : > { %v11962_v25 = vpop.eup %11961 }
0x11ed   : > { %v9799_v28 = vadd.f32 %v15051_v44, %v9777_v34  ;;  %v9756_v8 = vmul.f32 %v11962_v25, %v14998_v38  ;;  %v9728_v30 = vadd.f32 1e-05, %v9712_v18 }
0x11ee   : > { %v9694_v14 = vpop.xlane.xlu0 %9693 }
0x11ef   : > { %9815 = vst [vmem:[%s15059_s22 + $0x30] sm:$0xff] %v9799_v28  ;;  %v9778_v1 = vmul.f32 %v15045_v42, %v9756_v8  ;;  %11969 = vrsqrt.f32 %v9728_v30  ;;  %v9713_v9 = vmul.f32 0.0078125, %v9694_v14 }
0x11f0   : > { %v11964_v49 = vpop.eup %11963 }
0x11f1   : > { %v9800_v20 = vadd.f32 %v15051_v44, %v9778_v1  ;;  %v9757_v50 = vmul.f32 %v11964_v49, %v15003_v35  ;;  %v9729_v43 = vadd.f32 1e-05, %v9713_v9 }
0x11f2   : > { %v9696_v52 = vpop.xlane.xlu1 %9695 }
0x11f3   : > { %9816 = vst [vmem:[%s15059_s22 + $0x38] sm:$0xff] %v9800_v20  ;;  %v9779_v16 = vmul.f32 %v15045_v42, %v9757_v50  ;;  %11971 = vrsqrt.f32 %v9729_v43  ;;  %v9714_v38 = vmul.f32 0.0078125, %v9696_v52 }
0x11f4   : > { %v11966_v29 = vpop.eup %11965 }
0x11f5   : > { %v9801_v57 = vadd.f32 %v15051_v44, %v9779_v16  ;;  %v9758_v41 = vmul.f32 %v11966_v29, %v15008_v31  ;;  %v9730_v37 = vadd.f32 1e-05, %v9714_v38 }
0x11f6   : > { %v9698_v2 = vpop.xlane.xlu0 %9697 }
0x11f7   : > { %9817 = vst [vmem:[%s15059_s22 + $0x40] sm:$0xff] %v9801_v57  ;;  %v9780_v10 = vmul.f32 %v15045_v42, %v9758_v41  ;;  %11973 = vrsqrt.f32 %v9730_v37  ;;  %v9715_v35 = vmul.f32 0.0078125, %v9698_v2 }
0x11f8   : > { %v11968_v61 = vpop.eup %11967 }
0x11f9   : > { %v9802_v55 = vadd.f32 %v15051_v44, %v9780_v10  ;;  %v9759_v46 = vmul.f32 %v11968_v61, %v15013_v5  ;;  %v9731_v27 = vadd.f32 1e-05, %v9715_v35 }
0x11fa   : > { %v9700_v32 = vpop.xlane.xlu1 %9699 }
0x11fb   : > { %9818 = vst [vmem:[%s15059_s22 + $0x48] sm:$0xff] %v9802_v55  ;;  %v9781_v54 = vmul.f32 %v15045_v42, %v9759_v46  ;;  %11975 = vrsqrt.f32 %v9731_v27  ;;  %v9716_v31 = vmul.f32 0.0078125, %v9700_v32 }
0x11fc   : > { %v11970_v63 = vpop.eup %11969 }
0x11fd   : > { %v9803_v56 = vadd.f32 %v15051_v44, %v9781_v54  ;;  %v9760_v12 = vmul.f32 %v11970_v63, %v15018_v36  ;;  %v9732_v26 = vadd.f32 1e-05, %v9716_v31 }
0x11ff   : > { %9819 = vst [vmem:[%s15059_s22 + $0x50] sm:$0xff] %v9803_v56  ;;  %v9782_v7 = vmul.f32 %v15045_v42, %v9760_v12  ;;  %11977 = vrsqrt.f32 %v9732_v26 }
0x1200   : > { %v11972_v5 = vpop.eup %11971 }
0x1201   : > { %v9804_v24 = vadd.f32 %v15051_v44, %v9782_v7  ;;  %v9761_v0 = vmul.f32 %v11972_v5, %v15023_v58 }
0x1203   : > { %9820 = vst [vmem:[%s15059_s22 + $0x58] sm:$0xff] %v9804_v24  ;;  %v9783_v39 = vmul.f32 %v15045_v42, %v9761_v0 }
0x1204   : > { %v11974_v15 = vpop.eup %11973 }
0x1205   : > { %v9805_v6 = vadd.f32 %v15051_v44, %v9783_v39  ;;  %v9762_v36 = vmul.f32 %v11974_v15, %v15028_v21 }
0x1207   : > { %9821 = vst [vmem:[%s15059_s22 + $0x60] sm:$0xff] %v9805_v6  ;;  %v9784_v11 = vmul.f32 %v15045_v42, %v9762_v36 }
0x1208   : > { %v11976_v47 = vpop.eup %11975 }
0x1209   : > { %v9806_v60 = vadd.f32 %v15051_v44, %v9784_v11  ;;  %v9763_v13 = vmul.f32 %v11976_v47, %v15033_v22 }
0x120b   : > { %9822 = vst [vmem:[%s15059_s22 + $0x68] sm:$0xff] %v9806_v60  ;;  %v9785_v58 = vmul.f32 %v15045_v42, %v9763_v13 }
0x120c   : > { %v11978_v51 = vpop.eup %11977 }
0x120d   : > { %v9807_v23 = vadd.f32 %v15051_v44, %v9785_v58  ;;  %v9764_v3 = vmul.f32 %v11978_v51, %v15038_v53 }
0x120f   : > { %9823 = vst [vmem:[%s15059_s22 + $0x70] sm:$0xff] %v9807_v23  ;;  %v9786_v4 = vmul.f32 %v15045_v42, %v9764_v3 }
0x1211   : > { %v9808_v21 = vadd.f32 %v15051_v44, %v9786_v4 }
0x1213   : > { %9824 = vst [vmem:[%s15059_s22 + $0x78] sm:$0xff] %v9808_v21 }
0x1214 PF: > { %s27_s24 = sadd.s32 1, %s12002_s24  }
0x1215   : > { %p24_p4 = scmp.ge.s32.totalorder %s27_s24, 4  }
0x1217   :  { %26 = sbr.rel (!%p24_p4) target bundleno = 3 (0x3), region = 118 }

</bundles_post_ra>
